<compile_context>
chip_gen: v7x
topology: tpu7x:2x2x1
jax: 0.10.0
libtpu: 0.0.40
codegen_flags: <defaults>
</compile_context>

<pallas_src>
import math

import jax
import jax.numpy as jnp
from jax.experimental import pallas as pl
from jax.experimental.pallas import tpu as pltpu

LEAKY_SLOPE = 0.2
BIASED_ACT_GAIN = math.sqrt(2.0)   # BiasedActivation.Gain (init-time only)
LANE = 128                          # TPU vreg lane width
H_SP = W_SP = 4                     # GenerativeBasis spatial size (fixed 4x4)
HW = H_SP * W_SP


def _round_up(n, m):
    return ((n + m - 1) // m) * m


def _pad_to(a, shape):
    out = jnp.zeros(shape, a.dtype)
    return out.at[tuple(slice(0, s) for s in a.shape)].set(a)


# ------------------------------ fused stage kernel ---------------------------

def _make_stage_kernel(kernel_size):
    K = kernel_size
    PAD = (K - 1) // 2

    def kernel(x_ref, linw_ref, basis_ref, w1_ref, b1_ref, w2_ref, b2_ref,
               w3_ref, o_ref):
        TN = x_ref.shape[0]              # samples in this grid step
        Cp = basis_ref.shape[1]          # padded output channels (lane-dense)
        Ep = w1_ref.shape[2]             # padded expanded channels
        NB = w1_ref.shape[0]             # number of residual blocks
        Mt = TN * HW                     # rows in this tile: (n, h, w)

        # ---- GenerativeBasis: h[(n,h,w), c] = basis[(h,w), c] * (x @ W)[n, c] ----
        z = jnp.dot(x_ref[...].astype(jnp.bfloat16), linw_ref[...],
                    preferred_element_type=jnp.float32)            # [TN, Cp]
        h = (z[:, None, :] * basis_ref[...][None, :, :]).reshape(Mt, Cp)

        # Row -> (h, w) decode (H = W = 4 -> cheap bit ops), shared by all taps.
        r = jax.lax.broadcasted_iota(jnp.int32, (Mt, Ep), 0)
        hh = (r >> 2) & 3
        ww = r & 3
        tap_masks, tap_shifts = [], []
        for idh in range(K):
            dh = idh - PAD
            for idw in range(K):
                dw = idw - PAD
                ok = ((hh + dh >= 0) & (hh + dh < H_SP) &
                      (ww + dw >= 0) & (ww + dw < W_SP))
                tap_masks.append(ok)
                tap_shifts.append((-(dh * W_SP + dw)) % Mt)

        # ---- residual blocks (all fused; activations stay on-chip) ----
        for b in range(NB):
            # LinearLayer1 (1x1 conv) + BiasedActivation1
            t1 = jnp.dot(h.astype(jnp.bfloat16), w1_ref[b],
                         preferred_element_type=jnp.float32) + b1_ref[b]
            t1 = jnp.maximum(t1, LEAKY_SLOPE * t1)

            # LinearLayer2 (grouped KxK conv) as K*K shifted + masked matmuls.
            # (w2_ref[b, t] is the per-tap block-diagonal weight; with E <= 128 it
            #  fills exactly one MXU tile, so per-group splitting gains nothing here.)
            acc = jnp.zeros((Mt, Ep), jnp.float32)
            for t in range(K * K):
                s = tap_shifts[t]
                src = t1 if s == 0 else pltpu.roll(t1, shift=s, axis=0)
                src = jnp.where(tap_masks[t], src, 0.0)
                acc = acc + jnp.dot(src.astype(jnp.bfloat16), w2_ref[b, t],
                                    preferred_element_type=jnp.float32)
            t2 = acc + b2_ref[b]
            t2 = jnp.maximum(t2, LEAKY_SLOPE * t2)

            # LinearLayer3 (1x1 conv) + residual skip
            h = h + jnp.dot(t2.astype(jnp.bfloat16), w3_ref[b],
                            preferred_element_type=jnp.float32)

        o_ref[...] = h

    return kernel


# ------------------------- parameter initialization -------------------------

def init_generator_stage_params(key, input_dim, out_channels, cardinality,
                                num_blocks, expansion_factor, kernel_size,
                                variance_scaling, randomize_zero_init=False):
    C = out_channels
    E = C * expansion_factor
    K = kernel_size
    G = cardinality
    assert E % G == 0
    Eg = E // G
    # ActivationGain = Gain * VSP ** (-1/(2*NumberOfLinearLayers-2)), N layers = 3
    act_gain = BIASED_ACT_GAIN * variance_scaling ** (-1.0 / 4.0)

    Cp = _round_up(C, LANE)
    Ep = _round_up(E, LANE)
    Dp = _round_up(input_dim, LANE)

    keys = jax.random.split(key, 2 + 5 * num_blocks)

    # GenerativeBasis: Basis ~ N(0,1) [C,4,4]; Linear(D->C, bias=False), std 1/sqrt(D)
    basis = jax.random.normal(keys[0], (C, 4, 4), jnp.float32)
    basis_pc = jnp.transpose(basis, (1, 2, 0)).reshape(HW, C)        # [(h,w), C]
    lin_w = jax.random.normal(keys[1], (C, input_dim), jnp.float32) / math.sqrt(input_dim)

    w1s, b1s, w2s, b2s, w3s = [], [], [], [], []
    tw1, tw2, tw3, tb1, tb2 = [], [], [], [], []
    for blk in range(num_blocks):
        kw1, kw2, kw3, kb1, kb2 = keys[2 + 5 * blk: 7 + 5 * blk]
        # torch layouts: w1 [E, C] (1x1), w2 [E, Eg, K, K] (grouped), w3 [C, E] (1x1)
        w1 = jax.random.normal(kw1, (E, C), jnp.float32) * (act_gain / math.sqrt(C))
        w2 = jax.random.normal(kw2, (E, Eg, K, K), jnp.float32) * (
            act_gain / math.sqrt(Eg * K * K))
        if randomize_zero_init:
            # NOTE: the module zero-inits LinearLayer3 (ActivationGain=0) and the
            # BiasedActivation biases; the smoke test randomizes them so the
            # w1 / grouped-conv / w3 path is actually exercised (forward math is
            # unchanged, only parameter values differ).
            w3m = jax.random.normal(kw3, (E, C), jnp.float32) / math.sqrt(E)
            b1 = 0.1 * jax.random.normal(kb1, (E,), jnp.float32)
            b2 = 0.1 * jax.random.normal(kb2, (E,), jnp.float32)
        else:
            w3m = jnp.zeros((E, C), jnp.float32)
            b1 = jnp.zeros((E,), jnp.float32)
            b2 = jnp.zeros((E,), jnp.float32)

        # grouped KxK conv -> per-tap [ci, co] matrices (block-diagonal per group)
        w2_taps = jnp.zeros((K * K, E, E), jnp.float32)
        for g in range(G):
            blk_w = jnp.transpose(w2[g * Eg:(g + 1) * Eg], (2, 3, 1, 0))  # [K,K,ci,co]
            w2_taps = w2_taps.at[:, g * Eg:(g + 1) * Eg, g * Eg:(g + 1) * Eg].set(
                blk_w.reshape(K * K, Eg, Eg))

        w1s.append(_pad_to(w1.T, (Cp, Ep)).astype(jnp.bfloat16))
        w2s.append(_pad_to(w2_taps, (K * K, Ep, Ep)).astype(jnp.bfloat16))
        w3s.append(_pad_to(w3m, (Ep, Cp)).astype(jnp.bfloat16))
        b1s.append(_pad_to(b1[None, :], (1, Ep)))
        b2s.append(_pad_to(b2[None, :], (1, Ep)))
        tw1.append(w1); tw2.append(w2); tw3.append(w3m.T); tb1.append(b1); tb2.append(b2)

    return dict(
        out_channels=C,
        kernel_size=K,
        basis=_pad_to(basis_pc, (HW, Cp)),                       # f32 (VPU epilogue)
        lin_w=_pad_to(lin_w.T, (Dp, Cp)).astype(jnp.bfloat16),
        w1=jnp.stack(w1s), b1=jnp.stack(b1s),
        w2=jnp.stack(w2s), b2=jnp.stack(b2s),
        w3=jnp.stack(w3s),
        torch_ref=dict(num_blocks=num_blocks, groups=G, basis=basis, lin_w=lin_w,
                       w1=jnp.stack(tw1), w2=jnp.stack(tw2), w3=jnp.stack(tw3),
                       b1=jnp.stack(tb1), b2=jnp.stack(tb2)),
    )


# --------------------------------- forward ----------------------------------

def _const_spec(arr):
    nd = arr.ndim
    return pl.BlockSpec(tuple(arr.shape), lambda i, _nd=nd: (0,) * _nd)


def generator_stage_forward(x, params):
    x = x.astype(jnp.float32)            # x.to(self.DataType)
    N, D = x.shape
    C = params["out_channels"]
    K = params["kernel_size"]
    Cp = params["basis"].shape[-1]
    Dp = params["lin_w"].shape[0]

    xp = _pad_to(x, (N, Dp))             # lane-dense latent (zeros in padded lanes)

    TN = 8 if N % 8 == 0 else N          # batch tile (sublane-aligned)
    grid = (N // TN,)

    out2d = pl.pallas_call(
        _make_stage_kernel(K),
        out_shape=jax.ShapeDtypeStruct((N * HW, Cp), jnp.float32),
        grid=grid,
        in_specs=[
            pl.BlockSpec((TN, Dp), lambda i: (i, 0)),
            _const_spec(params["lin_w"]),
            _const_spec(params["basis"]),
            _const_spec(params["w1"]),
            _const_spec(params["b1"]),
            _const_spec(params["w2"]),
            _const_spec(params["b2"]),
            _const_spec(params["w3"]),
        ],
        out_specs=pl.BlockSpec((TN * HW, Cp), lambda i: (i, 0)),
        compiler_params=pltpu.CompilerParams(
            dimension_semantics=("parallel",),
            vmem_limit_bytes=32 * 1024 * 1024),   # fits v7x's 64 MiB with headroom
    )(xp, params["lin_w"], params["basis"], params["w1"], params["b1"],
      params["w2"], params["b2"], params["w3"])

    # Layout plumbing only: drop channel padding, go back to NCHW like the module.
    out = out2d[:, :C].reshape(N, H_SP, W_SP, C)
    return jnp.transpose(out, (0, 3, 1, 2))


# ------------------------- independent plain-XLA reference -------------------

def generator_stage_reference(x, params):
    """NCHW reference with torch-layout weights (weights rounded through bf16
    to mirror the kernel's weight storage)."""
    t = params["torch_ref"]
    rnd = lambda w: w.astype(jnp.bfloat16).astype(jnp.float32)
    x = x.astype(jnp.float32)
    z = x @ rnd(t["lin_w"]).T                                   # [N, C]
    h = t["basis"][None] * z[:, :, None, None]                  # [N, C, 4, 4]
    for b in range(t["num_blocks"]):
        y = jnp.einsum('nchw,ec->nehw', h, rnd(t["w1"][b]))
        y = y + t["b1"][b][None, :, None, None]
        y = jnp.maximum(y, LEAKY_SLOPE * y)
        y = jax.lax.conv_general_dilated(
            y, rnd(t["w2"][b]), window_strides=(1, 1), padding="SAME",
            feature_group_count=t["groups"],
            dimension_numbers=("NCHW", "OIHW", "NCHW"))
        y = y + t["b2"][b][None, :, None, None]
        y = jnp.maximum(y, LEAKY_SLOPE * y)
        h = h + jnp.einsum('nehw,ce->nchw', y, rnd(t["w3"][b]))
    return h


# ----------------------------------- main ------------------------------------

if __name__ == "__main__":
    # GeneratorStage(InputChannels=32, OutputChannels=16, Cardinality=2,
    #                NumberOfBlocks=2, ExpansionFactor=2, KernelSize=3,
    #                VarianceScalingParameter=2.0, ResamplingFilter=None)
    N, D = 16, 32
    OUT_C, CARD, N_BLOCKS, EXP_F, K_SIZE = 16, 2, 2, 2, 3
    VSP = float(N_BLOCKS)

    key = jax.random.PRNGKey(0)
    k_params, k_x = jax.random.split(key)

    params = init_generator_stage_params(
        k_params, D, OUT_C, CARD, N_BLOCKS, EXP_F, K_SIZE, VSP,
        randomize_zero_init=True)   # exercise the full w1/w2/w3/bias path
    x = jax.random.normal(k_x, (N, D), jnp.float32)

    out = generator_stage_forward(x, params)
    out = jax.block_until_ready(out)

    assert out.shape == (N, OUT_C, 4, 4), out.shape
    assert out.dtype == jnp.float32
    assert bool(jnp.all(jnp.isfinite(out)))

    ref = jax.block_until_ready(generator_stage_reference(x, params))
    max_err = float(jnp.max(jnp.abs(out - ref)))
    scale = float(jnp.max(jnp.abs(ref))) + 1e-6
    assert max_err <= 5e-2 * scale + 5e-2, (max_err, scale)

    print("KERNEL_OK")
</pallas_src>

<mosaic_0001>
module attributes {stable_mosaic.version = 11 : i64} {
  func.func @kernel(%arg0: i32, %arg1: memref<8x128xf32, #tpu.memory_space<vmem>>, %arg2: memref<128x128xbf16, #tpu.memory_space<vmem>>, %arg3: memref<16x128xf32, #tpu.memory_space<vmem>>, %arg4: memref<2x128x128xbf16, #tpu.memory_space<vmem>>, %arg5: memref<2x1x128xf32, #tpu.memory_space<vmem>>, %arg6: memref<2x9x128x128xbf16, #tpu.memory_space<vmem>>, %arg7: memref<2x1x128xf32, #tpu.memory_space<vmem>>, %arg8: memref<2x128x128xbf16, #tpu.memory_space<vmem>>, %arg9: memref<128x128xf32, #tpu.memory_space<vmem>>) attributes {dimension_semantics = [#tpu.dimension_semantics<parallel>], iteration_bounds = array<i64: 2>, scalar_prefetch = 0 : i64, scratch_operands = 0 : i64, tpu.core_type = #tpu.core_type<tc>, window_params = [{transform_indices = @transform_0, window_bounds = array<i64: 8, 128>}, {pipeline_mode = #tpu.pipeline_mode<synchronous>, transform_indices = @transform_1, window_bounds = array<i64: 128, 128>}, {pipeline_mode = #tpu.pipeline_mode<synchronous>, transform_indices = @transform_2, window_bounds = array<i64: 16, 128>}, {pipeline_mode = #tpu.pipeline_mode<synchronous>, transform_indices = @transform_3, window_bounds = array<i64: 2, 128, 128>}, {pipeline_mode = #tpu.pipeline_mode<synchronous>, transform_indices = @transform_4, window_bounds = array<i64: 2, 1, 128>}, {pipeline_mode = #tpu.pipeline_mode<synchronous>, transform_indices = @transform_5, window_bounds = array<i64: 2, 9, 128, 128>}, {pipeline_mode = #tpu.pipeline_mode<synchronous>, transform_indices = @transform_6, window_bounds = array<i64: 2, 1, 128>}, {pipeline_mode = #tpu.pipeline_mode<synchronous>, transform_indices = @transform_7, window_bounds = array<i64: 2, 128, 128>}, {transform_indices = @transform_8, window_bounds = array<i64: 128, 128>}]} {
    %c0 = arith.constant 0 : index
    %c0_0 = arith.constant 0 : index
    %0 = vector.load %arg1[%c0, %c0_0] : memref<8x128xf32, #tpu.memory_space<vmem>>, vector<8x128xf32>
    %1 = arith.truncf %0 : vector<8x128xf32> to vector<8x128xbf16>
    %c0_1 = arith.constant 0 : index
    %c0_2 = arith.constant 0 : index
    %2 = vector.load %arg2[%c0_1, %c0_2] : memref<128x128xbf16, #tpu.memory_space<vmem>>, vector<128x128xbf16>
    %cst = arith.constant dense<0.000000e+00> : vector<8x128xf32>
    %3 = tpu.matmul %1, %2, %cst {dimension_numbers = #tpu.dot_dimension_numbers<[1], [0], [0], [1], [0, 0, 1, 1], [], []>} : vector<8x128xbf16>, vector<128x128xbf16>, vector<8x128xf32> -> vector<8x128xf32>
    %4 = vector.shape_cast %3 : vector<8x128xf32> to vector<8x1x128xf32>
    %c0_3 = arith.constant 0 : index
    %c0_4 = arith.constant 0 : index
    %5 = vector.load %arg3[%c0_3, %c0_4] : memref<16x128xf32, #tpu.memory_space<vmem>>, vector<16x128xf32>
    %6 = vector.shape_cast %5 : vector<16x128xf32> to vector<1x16x128xf32>
    %7 = vector.broadcast %4 : vector<8x1x128xf32> to vector<8x16x128xf32>
    %8 = vector.broadcast %6 : vector<1x16x128xf32> to vector<8x16x128xf32>
    %9 = arith.mulf %7, %8 : vector<8x16x128xf32>
    %10 = vector.shape_cast %9 : vector<8x16x128xf32> to vector<128x128xf32>
    %11 = tpu.iota {dimensions = array<i32: 0>} : vector<128x128xi32>
    %c2_i32 = arith.constant 2 : i32
    %12 = vector.broadcast %c2_i32 : i32 to vector<128x128xi32>
    %13 = arith.shrsi %11, %12 : vector<128x128xi32>
    %c3_i32 = arith.constant 3 : i32
    %14 = vector.broadcast %c3_i32 : i32 to vector<128x128xi32>
    %15 = arith.andi %13, %14 : vector<128x128xi32>
    %c3_i32_5 = arith.constant 3 : i32
    %16 = vector.broadcast %c3_i32_5 : i32 to vector<128x128xi32>
    %17 = arith.andi %11, %16 : vector<128x128xi32>
    %c-1_i32 = arith.constant -1 : i32
    %18 = vector.broadcast %c-1_i32 : i32 to vector<128x128xi32>
    %19 = arith.addi %15, %18 : vector<128x128xi32>
    %c0_i32 = arith.constant 0 : i32
    %20 = vector.broadcast %c0_i32 : i32 to vector<128x128xi32>
    %21 = arith.cmpi sge, %19, %20 : vector<128x128xi32>
    %c-1_i32_6 = arith.constant -1 : i32
    %22 = vector.broadcast %c-1_i32_6 : i32 to vector<128x128xi32>
    %23 = arith.addi %15, %22 : vector<128x128xi32>
    %c4_i32 = arith.constant 4 : i32
    %24 = vector.broadcast %c4_i32 : i32 to vector<128x128xi32>
    %25 = arith.cmpi slt, %23, %24 : vector<128x128xi32>
    %26 = arith.andi %21, %25 : vector<128x128xi1>
    %c-1_i32_7 = arith.constant -1 : i32
    %27 = vector.broadcast %c-1_i32_7 : i32 to vector<128x128xi32>
    %28 = arith.addi %17, %27 : vector<128x128xi32>
    %c0_i32_8 = arith.constant 0 : i32
    %29 = vector.broadcast %c0_i32_8 : i32 to vector<128x128xi32>
    %30 = arith.cmpi sge, %28, %29 : vector<128x128xi32>
    %31 = arith.andi %26, %30 : vector<128x128xi1>
    %c-1_i32_9 = arith.constant -1 : i32
    %32 = vector.broadcast %c-1_i32_9 : i32 to vector<128x128xi32>
    %33 = arith.addi %17, %32 : vector<128x128xi32>
    %c4_i32_10 = arith.constant 4 : i32
    %34 = vector.broadcast %c4_i32_10 : i32 to vector<128x128xi32>
    %35 = arith.cmpi slt, %33, %34 : vector<128x128xi32>
    %36 = arith.andi %31, %35 : vector<128x128xi1>
    %c-1_i32_11 = arith.constant -1 : i32
    %37 = vector.broadcast %c-1_i32_11 : i32 to vector<128x128xi32>
    %38 = arith.addi %15, %37 : vector<128x128xi32>
    %c0_i32_12 = arith.constant 0 : i32
    %39 = vector.broadcast %c0_i32_12 : i32 to vector<128x128xi32>
    %40 = arith.cmpi sge, %38, %39 : vector<128x128xi32>
    %c-1_i32_13 = arith.constant -1 : i32
    %41 = vector.broadcast %c-1_i32_13 : i32 to vector<128x128xi32>
    %42 = arith.addi %15, %41 : vector<128x128xi32>
    %c4_i32_14 = arith.constant 4 : i32
    %43 = vector.broadcast %c4_i32_14 : i32 to vector<128x128xi32>
    %44 = arith.cmpi slt, %42, %43 : vector<128x128xi32>
    %45 = arith.andi %40, %44 : vector<128x128xi1>
    %c0_i32_15 = arith.constant 0 : i32
    %46 = vector.broadcast %c0_i32_15 : i32 to vector<128x128xi32>
    %47 = arith.addi %17, %46 : vector<128x128xi32>
    %c0_i32_16 = arith.constant 0 : i32
    %48 = vector.broadcast %c0_i32_16 : i32 to vector<128x128xi32>
    %49 = arith.cmpi sge, %47, %48 : vector<128x128xi32>
    %50 = arith.andi %45, %49 : vector<128x128xi1>
    %c0_i32_17 = arith.constant 0 : i32
    %51 = vector.broadcast %c0_i32_17 : i32 to vector<128x128xi32>
    %52 = arith.addi %17, %51 : vector<128x128xi32>
    %c4_i32_18 = arith.constant 4 : i32
    %53 = vector.broadcast %c4_i32_18 : i32 to vector<128x128xi32>
    %54 = arith.cmpi slt, %52, %53 : vector<128x128xi32>
    %55 = arith.andi %50, %54 : vector<128x128xi1>
    %c-1_i32_19 = arith.constant -1 : i32
    %56 = vector.broadcast %c-1_i32_19 : i32 to vector<128x128xi32>
    %57 = arith.addi %15, %56 : vector<128x128xi32>
    %c0_i32_20 = arith.constant 0 : i32
    %58 = vector.broadcast %c0_i32_20 : i32 to vector<128x128xi32>
    %59 = arith.cmpi sge, %57, %58 : vector<128x128xi32>
    %c-1_i32_21 = arith.constant -1 : i32
    %60 = vector.broadcast %c-1_i32_21 : i32 to vector<128x128xi32>
    %61 = arith.addi %15, %60 : vector<128x128xi32>
    %c4_i32_22 = arith.constant 4 : i32
    %62 = vector.broadcast %c4_i32_22 : i32 to vector<128x128xi32>
    %63 = arith.cmpi slt, %61, %62 : vector<128x128xi32>
    %64 = arith.andi %59, %63 : vector<128x128xi1>
    %c1_i32 = arith.constant 1 : i32
    %65 = vector.broadcast %c1_i32 : i32 to vector<128x128xi32>
    %66 = arith.addi %17, %65 : vector<128x128xi32>
    %c0_i32_23 = arith.constant 0 : i32
    %67 = vector.broadcast %c0_i32_23 : i32 to vector<128x128xi32>
    %68 = arith.cmpi sge, %66, %67 : vector<128x128xi32>
    %69 = arith.andi %64, %68 : vector<128x128xi1>
    %c1_i32_24 = arith.constant 1 : i32
    %70 = vector.broadcast %c1_i32_24 : i32 to vector<128x128xi32>
    %71 = arith.addi %17, %70 : vector<128x128xi32>
    %c4_i32_25 = arith.constant 4 : i32
    %72 = vector.broadcast %c4_i32_25 : i32 to vector<128x128xi32>
    %73 = arith.cmpi slt, %71, %72 : vector<128x128xi32>
    %74 = arith.andi %69, %73 : vector<128x128xi1>
    %c0_i32_26 = arith.constant 0 : i32
    %75 = vector.broadcast %c0_i32_26 : i32 to vector<128x128xi32>
    %76 = arith.addi %15, %75 : vector<128x128xi32>
    %c0_i32_27 = arith.constant 0 : i32
    %77 = vector.broadcast %c0_i32_27 : i32 to vector<128x128xi32>
    %78 = arith.cmpi sge, %76, %77 : vector<128x128xi32>
    %c0_i32_28 = arith.constant 0 : i32
    %79 = vector.broadcast %c0_i32_28 : i32 to vector<128x128xi32>
    %80 = arith.addi %15, %79 : vector<128x128xi32>
    %c4_i32_29 = arith.constant 4 : i32
    %81 = vector.broadcast %c4_i32_29 : i32 to vector<128x128xi32>
    %82 = arith.cmpi slt, %80, %81 : vector<128x128xi32>
    %83 = arith.andi %78, %82 : vector<128x128xi1>
    %c-1_i32_30 = arith.constant -1 : i32
    %84 = vector.broadcast %c-1_i32_30 : i32 to vector<128x128xi32>
    %85 = arith.addi %17, %84 : vector<128x128xi32>
    %c0_i32_31 = arith.constant 0 : i32
    %86 = vector.broadcast %c0_i32_31 : i32 to vector<128x128xi32>
    %87 = arith.cmpi sge, %85, %86 : vector<128x128xi32>
    %88 = arith.andi %83, %87 : vector<128x128xi1>
    %c-1_i32_32 = arith.constant -1 : i32
    %89 = vector.broadcast %c-1_i32_32 : i32 to vector<128x128xi32>
    %90 = arith.addi %17, %89 : vector<128x128xi32>
    %c4_i32_33 = arith.constant 4 : i32
    %91 = vector.broadcast %c4_i32_33 : i32 to vector<128x128xi32>
    %92 = arith.cmpi slt, %90, %91 : vector<128x128xi32>
    %93 = arith.andi %88, %92 : vector<128x128xi1>
    %c0_i32_34 = arith.constant 0 : i32
    %94 = vector.broadcast %c0_i32_34 : i32 to vector<128x128xi32>
    %95 = arith.addi %15, %94 : vector<128x128xi32>
    %c0_i32_35 = arith.constant 0 : i32
    %96 = vector.broadcast %c0_i32_35 : i32 to vector<128x128xi32>
    %97 = arith.cmpi sge, %95, %96 : vector<128x128xi32>
    %c0_i32_36 = arith.constant 0 : i32
    %98 = vector.broadcast %c0_i32_36 : i32 to vector<128x128xi32>
    %99 = arith.addi %15, %98 : vector<128x128xi32>
    %c4_i32_37 = arith.constant 4 : i32
    %100 = vector.broadcast %c4_i32_37 : i32 to vector<128x128xi32>
    %101 = arith.cmpi slt, %99, %100 : vector<128x128xi32>
    %102 = arith.andi %97, %101 : vector<128x128xi1>
    %c0_i32_38 = arith.constant 0 : i32
    %103 = vector.broadcast %c0_i32_38 : i32 to vector<128x128xi32>
    %104 = arith.addi %17, %103 : vector<128x128xi32>
    %c0_i32_39 = arith.constant 0 : i32
    %105 = vector.broadcast %c0_i32_39 : i32 to vector<128x128xi32>
    %106 = arith.cmpi sge, %104, %105 : vector<128x128xi32>
    %107 = arith.andi %102, %106 : vector<128x128xi1>
    %c0_i32_40 = arith.constant 0 : i32
    %108 = vector.broadcast %c0_i32_40 : i32 to vector<128x128xi32>
    %109 = arith.addi %17, %108 : vector<128x128xi32>
    %c4_i32_41 = arith.constant 4 : i32
    %110 = vector.broadcast %c4_i32_41 : i32 to vector<128x128xi32>
    %111 = arith.cmpi slt, %109, %110 : vector<128x128xi32>
    %112 = arith.andi %107, %111 : vector<128x128xi1>
    %c0_i32_42 = arith.constant 0 : i32
    %113 = vector.broadcast %c0_i32_42 : i32 to vector<128x128xi32>
    %114 = arith.addi %15, %113 : vector<128x128xi32>
    %c0_i32_43 = arith.constant 0 : i32
    %115 = vector.broadcast %c0_i32_43 : i32 to vector<128x128xi32>
    %116 = arith.cmpi sge, %114, %115 : vector<128x128xi32>
    %c0_i32_44 = arith.constant 0 : i32
    %117 = vector.broadcast %c0_i32_44 : i32 to vector<128x128xi32>
    %118 = arith.addi %15, %117 : vector<128x128xi32>
    %c4_i32_45 = arith.constant 4 : i32
    %119 = vector.broadcast %c4_i32_45 : i32 to vector<128x128xi32>
    %120 = arith.cmpi slt, %118, %119 : vector<128x128xi32>
    %121 = arith.andi %116, %120 : vector<128x128xi1>
    %c1_i32_46 = arith.constant 1 : i32
    %122 = vector.broadcast %c1_i32_46 : i32 to vector<128x128xi32>
    %123 = arith.addi %17, %122 : vector<128x128xi32>
    %c0_i32_47 = arith.constant 0 : i32
    %124 = vector.broadcast %c0_i32_47 : i32 to vector<128x128xi32>
    %125 = arith.cmpi sge, %123, %124 : vector<128x128xi32>
    %126 = arith.andi %121, %125 : vector<128x128xi1>
    %c1_i32_48 = arith.constant 1 : i32
    %127 = vector.broadcast %c1_i32_48 : i32 to vector<128x128xi32>
    %128 = arith.addi %17, %127 : vector<128x128xi32>
    %c4_i32_49 = arith.constant 4 : i32
    %129 = vector.broadcast %c4_i32_49 : i32 to vector<128x128xi32>
    %130 = arith.cmpi slt, %128, %129 : vector<128x128xi32>
    %131 = arith.andi %126, %130 : vector<128x128xi1>
    %c1_i32_50 = arith.constant 1 : i32
    %132 = vector.broadcast %c1_i32_50 : i32 to vector<128x128xi32>
    %133 = arith.addi %15, %132 : vector<128x128xi32>
    %c0_i32_51 = arith.constant 0 : i32
    %134 = vector.broadcast %c0_i32_51 : i32 to vector<128x128xi32>
    %135 = arith.cmpi sge, %133, %134 : vector<128x128xi32>
    %c1_i32_52 = arith.constant 1 : i32
    %136 = vector.broadcast %c1_i32_52 : i32 to vector<128x128xi32>
    %137 = arith.addi %15, %136 : vector<128x128xi32>
    %c4_i32_53 = arith.constant 4 : i32
    %138 = vector.broadcast %c4_i32_53 : i32 to vector<128x128xi32>
    %139 = arith.cmpi slt, %137, %138 : vector<128x128xi32>
    %140 = arith.andi %135, %139 : vector<128x128xi1>
    %c-1_i32_54 = arith.constant -1 : i32
    %141 = vector.broadcast %c-1_i32_54 : i32 to vector<128x128xi32>
    %142 = arith.addi %17, %141 : vector<128x128xi32>
    %c0_i32_55 = arith.constant 0 : i32
    %143 = vector.broadcast %c0_i32_55 : i32 to vector<128x128xi32>
    %144 = arith.cmpi sge, %142, %143 : vector<128x128xi32>
    %145 = arith.andi %140, %144 : vector<128x128xi1>
    %c-1_i32_56 = arith.constant -1 : i32
    %146 = vector.broadcast %c-1_i32_56 : i32 to vector<128x128xi32>
    %147 = arith.addi %17, %146 : vector<128x128xi32>
    %c4_i32_57 = arith.constant 4 : i32
    %148 = vector.broadcast %c4_i32_57 : i32 to vector<128x128xi32>
    %149 = arith.cmpi slt, %147, %148 : vector<128x128xi32>
    %150 = arith.andi %145, %149 : vector<128x128xi1>
    %c1_i32_58 = arith.constant 1 : i32
    %151 = vector.broadcast %c1_i32_58 : i32 to vector<128x128xi32>
    %152 = arith.addi %15, %151 : vector<128x128xi32>
    %c0_i32_59 = arith.constant 0 : i32
    %153 = vector.broadcast %c0_i32_59 : i32 to vector<128x128xi32>
    %154 = arith.cmpi sge, %152, %153 : vector<128x128xi32>
    %c1_i32_60 = arith.constant 1 : i32
    %155 = vector.broadcast %c1_i32_60 : i32 to vector<128x128xi32>
    %156 = arith.addi %15, %155 : vector<128x128xi32>
    %c4_i32_61 = arith.constant 4 : i32
    %157 = vector.broadcast %c4_i32_61 : i32 to vector<128x128xi32>
    %158 = arith.cmpi slt, %156, %157 : vector<128x128xi32>
    %159 = arith.andi %154, %158 : vector<128x128xi1>
    %c0_i32_62 = arith.constant 0 : i32
    %160 = vector.broadcast %c0_i32_62 : i32 to vector<128x128xi32>
    %161 = arith.addi %17, %160 : vector<128x128xi32>
    %c0_i32_63 = arith.constant 0 : i32
    %162 = vector.broadcast %c0_i32_63 : i32 to vector<128x128xi32>
    %163 = arith.cmpi sge, %161, %162 : vector<128x128xi32>
    %164 = arith.andi %159, %163 : vector<128x128xi1>
    %c0_i32_64 = arith.constant 0 : i32
    %165 = vector.broadcast %c0_i32_64 : i32 to vector<128x128xi32>
    %166 = arith.addi %17, %165 : vector<128x128xi32>
    %c4_i32_65 = arith.constant 4 : i32
    %167 = vector.broadcast %c4_i32_65 : i32 to vector<128x128xi32>
    %168 = arith.cmpi slt, %166, %167 : vector<128x128xi32>
    %169 = arith.andi %164, %168 : vector<128x128xi1>
    %c1_i32_66 = arith.constant 1 : i32
    %170 = vector.broadcast %c1_i32_66 : i32 to vector<128x128xi32>
    %171 = arith.addi %15, %170 : vector<128x128xi32>
    %c0_i32_67 = arith.constant 0 : i32
    %172 = vector.broadcast %c0_i32_67 : i32 to vector<128x128xi32>
    %173 = arith.cmpi sge, %171, %172 : vector<128x128xi32>
    %c1_i32_68 = arith.constant 1 : i32
    %174 = vector.broadcast %c1_i32_68 : i32 to vector<128x128xi32>
    %175 = arith.addi %15, %174 : vector<128x128xi32>
    %c4_i32_69 = arith.constant 4 : i32
    %176 = vector.broadcast %c4_i32_69 : i32 to vector<128x128xi32>
    %177 = arith.cmpi slt, %175, %176 : vector<128x128xi32>
    %178 = arith.andi %173, %177 : vector<128x128xi1>
    %c1_i32_70 = arith.constant 1 : i32
    %179 = vector.broadcast %c1_i32_70 : i32 to vector<128x128xi32>
    %180 = arith.addi %17, %179 : vector<128x128xi32>
    %c0_i32_71 = arith.constant 0 : i32
    %181 = vector.broadcast %c0_i32_71 : i32 to vector<128x128xi32>
    %182 = arith.cmpi sge, %180, %181 : vector<128x128xi32>
    %183 = arith.andi %178, %182 : vector<128x128xi1>
    %c1_i32_72 = arith.constant 1 : i32
    %184 = vector.broadcast %c1_i32_72 : i32 to vector<128x128xi32>
    %185 = arith.addi %17, %184 : vector<128x128xi32>
    %c4_i32_73 = arith.constant 4 : i32
    %186 = vector.broadcast %c4_i32_73 : i32 to vector<128x128xi32>
    %187 = arith.cmpi slt, %185, %186 : vector<128x128xi32>
    %188 = arith.andi %183, %187 : vector<128x128xi1>
    %189 = arith.truncf %10 : vector<128x128xf32> to vector<128x128xbf16>
    %c0_74 = arith.constant 0 : index
    %c0_75 = arith.constant 0 : index
    %c0_76 = arith.constant 0 : index
    %190 = vector.load %arg4[%c0_74, %c0_75, %c0_76] : memref<2x128x128xbf16, #tpu.memory_space<vmem>>, vector<1x128x128xbf16>
    %191 = vector.shape_cast %190 : vector<1x128x128xbf16> to vector<128x128xbf16>
    %cst_77 = arith.constant dense<0.000000e+00> : vector<128x128xf32>
    %192 = tpu.matmul %189, %191, %cst_77 {dimension_numbers = #tpu.dot_dimension_numbers<[1], [0], [0], [1], [0, 0, 1, 1], [], []>} : vector<128x128xbf16>, vector<128x128xbf16>, vector<128x128xf32> -> vector<128x128xf32>
    %c0_78 = arith.constant 0 : index
    %c0_79 = arith.constant 0 : index
    %c0_80 = arith.constant 0 : index
    %193 = vector.load %arg5[%c0_78, %c0_79, %c0_80] : memref<2x1x128xf32, #tpu.memory_space<vmem>>, vector<1x1x128xf32>
    %194 = vector.shape_cast %193 : vector<1x1x128xf32> to vector<1x128xf32>
    %195 = vector.broadcast %194 : vector<1x128xf32> to vector<128x128xf32>
    %196 = arith.addf %192, %195 : vector<128x128xf32>
    %cst_81 = arith.constant 2.000000e-01 : f32
    %197 = vector.broadcast %cst_81 : f32 to vector<128x128xf32>
    %198 = arith.mulf %197, %196 : vector<128x128xf32>
    %199 = arith.maximumf %196, %198 : vector<128x128xf32>
    %cst_82 = arith.constant 0.000000e+00 : f32
    %200 = vector.broadcast %cst_82 : f32 to vector<128x128xf32>
    %c5_i32 = arith.constant 5 : i32
    %201 = tpu.dynamic_rotate %199 by %c5_i32 dim 0 : vector<128x128xf32>, i32 -> vector<128x128xf32>
    %cst_83 = arith.constant 0.000000e+00 : f32
    %202 = vector.broadcast %cst_83 : f32 to vector<128x128xf32>
    %203 = arith.select %36, %201, %202 : vector<128x128xi1>, vector<128x128xf32>
    %204 = arith.truncf %203 : vector<128x128xf32> to vector<128x128xbf16>
    %c0_84 = arith.constant 0 : index
    %c0_85 = arith.constant 0 : index
    %c0_86 = arith.constant 0 : index
    %c0_87 = arith.constant 0 : index
    %205 = vector.load %arg6[%c0_84, %c0_85, %c0_86, %c0_87] : memref<2x9x128x128xbf16, #tpu.memory_space<vmem>>, vector<1x1x128x128xbf16>
    %206 = vector.shape_cast %205 : vector<1x1x128x128xbf16> to vector<128x128xbf16>
    %cst_88 = arith.constant dense<0.000000e+00> : vector<128x128xf32>
    %207 = tpu.matmul %204, %206, %cst_88 {dimension_numbers = #tpu.dot_dimension_numbers<[1], [0], [0], [1], [0, 0, 1, 1], [], []>} : vector<128x128xbf16>, vector<128x128xbf16>, vector<128x128xf32> -> vector<128x128xf32>
    %208 = arith.addf %200, %207 : vector<128x128xf32>
    %c4_i32_89 = arith.constant 4 : i32
    %209 = tpu.dynamic_rotate %199 by %c4_i32_89 dim 0 : vector<128x128xf32>, i32 -> vector<128x128xf32>
    %cst_90 = arith.constant 0.000000e+00 : f32
    %210 = vector.broadcast %cst_90 : f32 to vector<128x128xf32>
    %211 = arith.select %55, %209, %210 : vector<128x128xi1>, vector<128x128xf32>
    %212 = arith.truncf %211 : vector<128x128xf32> to vector<128x128xbf16>
    %c0_91 = arith.constant 0 : index
    %c1 = arith.constant 1 : index
    %c0_92 = arith.constant 0 : index
    %c0_93 = arith.constant 0 : index
    %213 = vector.load %arg6[%c0_91, %c1, %c0_92, %c0_93] : memref<2x9x128x128xbf16, #tpu.memory_space<vmem>>, vector<1x1x128x128xbf16>
    %214 = vector.shape_cast %213 : vector<1x1x128x128xbf16> to vector<128x128xbf16>
    %cst_94 = arith.constant dense<0.000000e+00> : vector<128x128xf32>
    %215 = tpu.matmul %212, %214, %cst_94 {dimension_numbers = #tpu.dot_dimension_numbers<[1], [0], [0], [1], [0, 0, 1, 1], [], []>} : vector<128x128xbf16>, vector<128x128xbf16>, vector<128x128xf32> -> vector<128x128xf32>
    %216 = arith.addf %208, %215 : vector<128x128xf32>
    %c3_i32_95 = arith.constant 3 : i32
    %217 = tpu.dynamic_rotate %199 by %c3_i32_95 dim 0 : vector<128x128xf32>, i32 -> vector<128x128xf32>
    %cst_96 = arith.constant 0.000000e+00 : f32
    %218 = vector.broadcast %cst_96 : f32 to vector<128x128xf32>
    %219 = arith.select %74, %217, %218 : vector<128x128xi1>, vector<128x128xf32>
    %220 = arith.truncf %219 : vector<128x128xf32> to vector<128x128xbf16>
    %c0_97 = arith.constant 0 : index
    %c2 = arith.constant 2 : index
    %c0_98 = arith.constant 0 : index
    %c0_99 = arith.constant 0 : index
    %221 = vector.load %arg6[%c0_97, %c2, %c0_98, %c0_99] : memref<2x9x128x128xbf16, #tpu.memory_space<vmem>>, vector<1x1x128x128xbf16>
    %222 = vector.shape_cast %221 : vector<1x1x128x128xbf16> to vector<128x128xbf16>
    %cst_100 = arith.constant dense<0.000000e+00> : vector<128x128xf32>
    %223 = tpu.matmul %220, %222, %cst_100 {dimension_numbers = #tpu.dot_dimension_numbers<[1], [0], [0], [1], [0, 0, 1, 1], [], []>} : vector<128x128xbf16>, vector<128x128xbf16>, vector<128x128xf32> -> vector<128x128xf32>
    %224 = arith.addf %216, %223 : vector<128x128xf32>
    %c1_i32_101 = arith.constant 1 : i32
    %225 = tpu.dynamic_rotate %199 by %c1_i32_101 dim 0 : vector<128x128xf32>, i32 -> vector<128x128xf32>
    %cst_102 = arith.constant 0.000000e+00 : f32
    %226 = vector.broadcast %cst_102 : f32 to vector<128x128xf32>
    %227 = arith.select %93, %225, %226 : vector<128x128xi1>, vector<128x128xf32>
    %228 = arith.truncf %227 : vector<128x128xf32> to vector<128x128xbf16>
    %c0_103 = arith.constant 0 : index
    %c3 = arith.constant 3 : index
    %c0_104 = arith.constant 0 : index
    %c0_105 = arith.constant 0 : index
    %229 = vector.load %arg6[%c0_103, %c3, %c0_104, %c0_105] : memref<2x9x128x128xbf16, #tpu.memory_space<vmem>>, vector<1x1x128x128xbf16>
    %230 = vector.shape_cast %229 : vector<1x1x128x128xbf16> to vector<128x128xbf16>
    %cst_106 = arith.constant dense<0.000000e+00> : vector<128x128xf32>
    %231 = tpu.matmul %228, %230, %cst_106 {dimension_numbers = #tpu.dot_dimension_numbers<[1], [0], [0], [1], [0, 0, 1, 1], [], []>} : vector<128x128xbf16>, vector<128x128xbf16>, vector<128x128xf32> -> vector<128x128xf32>
    %232 = arith.addf %224, %231 : vector<128x128xf32>
    %cst_107 = arith.constant 0.000000e+00 : f32
    %233 = vector.broadcast %cst_107 : f32 to vector<128x128xf32>
    %234 = arith.select %112, %199, %233 : vector<128x128xi1>, vector<128x128xf32>
    %235 = arith.truncf %234 : vector<128x128xf32> to vector<128x128xbf16>
    %c0_108 = arith.constant 0 : index
    %c4 = arith.constant 4 : index
    %c0_109 = arith.constant 0 : index
    %c0_110 = arith.constant 0 : index
    %236 = vector.load %arg6[%c0_108, %c4, %c0_109, %c0_110] : memref<2x9x128x128xbf16, #tpu.memory_space<vmem>>, vector<1x1x128x128xbf16>
    %237 = vector.shape_cast %236 : vector<1x1x128x128xbf16> to vector<128x128xbf16>
    %cst_111 = arith.constant dense<0.000000e+00> : vector<128x128xf32>
    %238 = tpu.matmul %235, %237, %cst_111 {dimension_numbers = #tpu.dot_dimension_numbers<[1], [0], [0], [1], [0, 0, 1, 1], [], []>} : vector<128x128xbf16>, vector<128x128xbf16>, vector<128x128xf32> -> vector<128x128xf32>
    %239 = arith.addf %232, %238 : vector<128x128xf32>
    %c127_i32 = arith.constant 127 : i32
    %240 = tpu.dynamic_rotate %199 by %c127_i32 dim 0 : vector<128x128xf32>, i32 -> vector<128x128xf32>
    %cst_112 = arith.constant 0.000000e+00 : f32
    %241 = vector.broadcast %cst_112 : f32 to vector<128x128xf32>
    %242 = arith.select %131, %240, %241 : vector<128x128xi1>, vector<128x128xf32>
    %243 = arith.truncf %242 : vector<128x128xf32> to vector<128x128xbf16>
    %c0_113 = arith.constant 0 : index
    %c5 = arith.constant 5 : index
    %c0_114 = arith.constant 0 : index
    %c0_115 = arith.constant 0 : index
    %244 = vector.load %arg6[%c0_113, %c5, %c0_114, %c0_115] : memref<2x9x128x128xbf16, #tpu.memory_space<vmem>>, vector<1x1x128x128xbf16>
    %245 = vector.shape_cast %244 : vector<1x1x128x128xbf16> to vector<128x128xbf16>
    %cst_116 = arith.constant dense<0.000000e+00> : vector<128x128xf32>
    %246 = tpu.matmul %243, %245, %cst_116 {dimension_numbers = #tpu.dot_dimension_numbers<[1], [0], [0], [1], [0, 0, 1, 1], [], []>} : vector<128x128xbf16>, vector<128x128xbf16>, vector<128x128xf32> -> vector<128x128xf32>
    %247 = arith.addf %239, %246 : vector<128x128xf32>
    %c125_i32 = arith.constant 125 : i32
    %248 = tpu.dynamic_rotate %199 by %c125_i32 dim 0 : vector<128x128xf32>, i32 -> vector<128x128xf32>
    %cst_117 = arith.constant 0.000000e+00 : f32
    %249 = vector.broadcast %cst_117 : f32 to vector<128x128xf32>
    %250 = arith.select %150, %248, %249 : vector<128x128xi1>, vector<128x128xf32>
    %251 = arith.truncf %250 : vector<128x128xf32> to vector<128x128xbf16>
    %c0_118 = arith.constant 0 : index
    %c6 = arith.constant 6 : index
    %c0_119 = arith.constant 0 : index
    %c0_120 = arith.constant 0 : index
    %252 = vector.load %arg6[%c0_118, %c6, %c0_119, %c0_120] : memref<2x9x128x128xbf16, #tpu.memory_space<vmem>>, vector<1x1x128x128xbf16>
    %253 = vector.shape_cast %252 : vector<1x1x128x128xbf16> to vector<128x128xbf16>
    %cst_121 = arith.constant dense<0.000000e+00> : vector<128x128xf32>
    %254 = tpu.matmul %251, %253, %cst_121 {dimension_numbers = #tpu.dot_dimension_numbers<[1], [0], [0], [1], [0, 0, 1, 1], [], []>} : vector<128x128xbf16>, vector<128x128xbf16>, vector<128x128xf32> -> vector<128x128xf32>
    %255 = arith.addf %247, %254 : vector<128x128xf32>
    %c124_i32 = arith.constant 124 : i32
    %256 = tpu.dynamic_rotate %199 by %c124_i32 dim 0 : vector<128x128xf32>, i32 -> vector<128x128xf32>
    %cst_122 = arith.constant 0.000000e+00 : f32
    %257 = vector.broadcast %cst_122 : f32 to vector<128x128xf32>
    %258 = arith.select %169, %256, %257 : vector<128x128xi1>, vector<128x128xf32>
    %259 = arith.truncf %258 : vector<128x128xf32> to vector<128x128xbf16>
    %c0_123 = arith.constant 0 : index
    %c7 = arith.constant 7 : index
    %c0_124 = arith.constant 0 : index
    %c0_125 = arith.constant 0 : index
    %260 = vector.load %arg6[%c0_123, %c7, %c0_124, %c0_125] : memref<2x9x128x128xbf16, #tpu.memory_space<vmem>>, vector<1x1x128x128xbf16>
    %261 = vector.shape_cast %260 : vector<1x1x128x128xbf16> to vector<128x128xbf16>
    %cst_126 = arith.constant dense<0.000000e+00> : vector<128x128xf32>
    %262 = tpu.matmul %259, %261, %cst_126 {dimension_numbers = #tpu.dot_dimension_numbers<[1], [0], [0], [1], [0, 0, 1, 1], [], []>} : vector<128x128xbf16>, vector<128x128xbf16>, vector<128x128xf32> -> vector<128x128xf32>
    %263 = arith.addf %255, %262 : vector<128x128xf32>
    %c123_i32 = arith.constant 123 : i32
    %264 = tpu.dynamic_rotate %199 by %c123_i32 dim 0 : vector<128x128xf32>, i32 -> vector<128x128xf32>
    %cst_127 = arith.constant 0.000000e+00 : f32
    %265 = vector.broadcast %cst_127 : f32 to vector<128x128xf32>
    %266 = arith.select %188, %264, %265 : vector<128x128xi1>, vector<128x128xf32>
    %267 = arith.truncf %266 : vector<128x128xf32> to vector<128x128xbf16>
    %c0_128 = arith.constant 0 : index
    %c8 = arith.constant 8 : index
    %c0_129 = arith.constant 0 : index
    %c0_130 = arith.constant 0 : index
    %268 = vector.load %arg6[%c0_128, %c8, %c0_129, %c0_130] : memref<2x9x128x128xbf16, #tpu.memory_space<vmem>>, vector<1x1x128x128xbf16>
    %269 = vector.shape_cast %268 : vector<1x1x128x128xbf16> to vector<128x128xbf16>
    %cst_131 = arith.constant dense<0.000000e+00> : vector<128x128xf32>
    %270 = tpu.matmul %267, %269, %cst_131 {dimension_numbers = #tpu.dot_dimension_numbers<[1], [0], [0], [1], [0, 0, 1, 1], [], []>} : vector<128x128xbf16>, vector<128x128xbf16>, vector<128x128xf32> -> vector<128x128xf32>
    %271 = arith.addf %263, %270 : vector<128x128xf32>
    %c0_132 = arith.constant 0 : index
    %c0_133 = arith.constant 0 : index
    %c0_134 = arith.constant 0 : index
    %272 = vector.load %arg7[%c0_132, %c0_133, %c0_134] : memref<2x1x128xf32, #tpu.memory_space<vmem>>, vector<1x1x128xf32>
    %273 = vector.shape_cast %272 : vector<1x1x128xf32> to vector<1x128xf32>
    %274 = vector.broadcast %273 : vector<1x128xf32> to vector<128x128xf32>
    %275 = arith.addf %271, %274 : vector<128x128xf32>
    %cst_135 = arith.constant 2.000000e-01 : f32
    %276 = vector.broadcast %cst_135 : f32 to vector<128x128xf32>
    %277 = arith.mulf %276, %275 : vector<128x128xf32>
    %278 = arith.maximumf %275, %277 : vector<128x128xf32>
    %279 = arith.truncf %278 : vector<128x128xf32> to vector<128x128xbf16>
    %c0_136 = arith.constant 0 : index
    %c0_137 = arith.constant 0 : index
    %c0_138 = arith.constant 0 : index
    %280 = vector.load %arg8[%c0_136, %c0_137, %c0_138] : memref<2x128x128xbf16, #tpu.memory_space<vmem>>, vector<1x128x128xbf16>
    %281 = vector.shape_cast %280 : vector<1x128x128xbf16> to vector<128x128xbf16>
    %cst_139 = arith.constant dense<0.000000e+00> : vector<128x128xf32>
    %282 = tpu.matmul %279, %281, %cst_139 {dimension_numbers = #tpu.dot_dimension_numbers<[1], [0], [0], [1], [0, 0, 1, 1], [], []>} : vector<128x128xbf16>, vector<128x128xbf16>, vector<128x128xf32> -> vector<128x128xf32>
    %283 = arith.addf %10, %282 : vector<128x128xf32>
    %284 = arith.truncf %283 : vector<128x128xf32> to vector<128x128xbf16>
    %c1_140 = arith.constant 1 : index
    %c0_141 = arith.constant 0 : index
    %c0_142 = arith.constant 0 : index
    %285 = vector.load %arg4[%c1_140, %c0_141, %c0_142] : memref<2x128x128xbf16, #tpu.memory_space<vmem>>, vector<1x128x128xbf16>
    %286 = vector.shape_cast %285 : vector<1x128x128xbf16> to vector<128x128xbf16>
    %cst_143 = arith.constant dense<0.000000e+00> : vector<128x128xf32>
    %287 = tpu.matmul %284, %286, %cst_143 {dimension_numbers = #tpu.dot_dimension_numbers<[1], [0], [0], [1], [0, 0, 1, 1], [], []>} : vector<128x128xbf16>, vector<128x128xbf16>, vector<128x128xf32> -> vector<128x128xf32>
    %c1_144 = arith.constant 1 : index
    %c0_145 = arith.constant 0 : index
    %c0_146 = arith.constant 0 : index
    %288 = vector.load %arg5[%c1_144, %c0_145, %c0_146] : memref<2x1x128xf32, #tpu.memory_space<vmem>>, vector<1x1x128xf32>
    %289 = vector.shape_cast %288 : vector<1x1x128xf32> to vector<1x128xf32>
    %290 = vector.broadcast %289 : vector<1x128xf32> to vector<128x128xf32>
    %291 = arith.addf %287, %290 : vector<128x128xf32>
    %cst_147 = arith.constant 2.000000e-01 : f32
    %292 = vector.broadcast %cst_147 : f32 to vector<128x128xf32>
    %293 = arith.mulf %292, %291 : vector<128x128xf32>
    %294 = arith.maximumf %291, %293 : vector<128x128xf32>
    %cst_148 = arith.constant 0.000000e+00 : f32
    %295 = vector.broadcast %cst_148 : f32 to vector<128x128xf32>
    %c5_i32_149 = arith.constant 5 : i32
    %296 = tpu.dynamic_rotate %294 by %c5_i32_149 dim 0 : vector<128x128xf32>, i32 -> vector<128x128xf32>
    %cst_150 = arith.constant 0.000000e+00 : f32
    %297 = vector.broadcast %cst_150 : f32 to vector<128x128xf32>
    %298 = arith.select %36, %296, %297 : vector<128x128xi1>, vector<128x128xf32>
    %299 = arith.truncf %298 : vector<128x128xf32> to vector<128x128xbf16>
    %c1_151 = arith.constant 1 : index
    %c0_152 = arith.constant 0 : index
    %c0_153 = arith.constant 0 : index
    %c0_154 = arith.constant 0 : index
    %300 = vector.load %arg6[%c1_151, %c0_152, %c0_153, %c0_154] : memref<2x9x128x128xbf16, #tpu.memory_space<vmem>>, vector<1x1x128x128xbf16>
    %301 = vector.shape_cast %300 : vector<1x1x128x128xbf16> to vector<128x128xbf16>
    %cst_155 = arith.constant dense<0.000000e+00> : vector<128x128xf32>
    %302 = tpu.matmul %299, %301, %cst_155 {dimension_numbers = #tpu.dot_dimension_numbers<[1], [0], [0], [1], [0, 0, 1, 1], [], []>} : vector<128x128xbf16>, vector<128x128xbf16>, vector<128x128xf32> -> vector<128x128xf32>
    %303 = arith.addf %295, %302 : vector<128x128xf32>
    %c4_i32_156 = arith.constant 4 : i32
    %304 = tpu.dynamic_rotate %294 by %c4_i32_156 dim 0 : vector<128x128xf32>, i32 -> vector<128x128xf32>
    %cst_157 = arith.constant 0.000000e+00 : f32
    %305 = vector.broadcast %cst_157 : f32 to vector<128x128xf32>
    %306 = arith.select %55, %304, %305 : vector<128x128xi1>, vector<128x128xf32>
    %307 = arith.truncf %306 : vector<128x128xf32> to vector<128x128xbf16>
    %c1_158 = arith.constant 1 : index
    %c1_159 = arith.constant 1 : index
    %c0_160 = arith.constant 0 : index
    %c0_161 = arith.constant 0 : index
    %308 = vector.load %arg6[%c1_158, %c1_159, %c0_160, %c0_161] : memref<2x9x128x128xbf16, #tpu.memory_space<vmem>>, vector<1x1x128x128xbf16>
    %309 = vector.shape_cast %308 : vector<1x1x128x128xbf16> to vector<128x128xbf16>
    %cst_162 = arith.constant dense<0.000000e+00> : vector<128x128xf32>
    %310 = tpu.matmul %307, %309, %cst_162 {dimension_numbers = #tpu.dot_dimension_numbers<[1], [0], [0], [1], [0, 0, 1, 1], [], []>} : vector<128x128xbf16>, vector<128x128xbf16>, vector<128x128xf32> -> vector<128x128xf32>
    %311 = arith.addf %303, %310 : vector<128x128xf32>
    %c3_i32_163 = arith.constant 3 : i32
    %312 = tpu.dynamic_rotate %294 by %c3_i32_163 dim 0 : vector<128x128xf32>, i32 -> vector<128x128xf32>
    %cst_164 = arith.constant 0.000000e+00 : f32
    %313 = vector.broadcast %cst_164 : f32 to vector<128x128xf32>
    %314 = arith.select %74, %312, %313 : vector<128x128xi1>, vector<128x128xf32>
    %315 = arith.truncf %314 : vector<128x128xf32> to vector<128x128xbf16>
    %c1_165 = arith.constant 1 : index
    %c2_166 = arith.constant 2 : index
    %c0_167 = arith.constant 0 : index
    %c0_168 = arith.constant 0 : index
    %316 = vector.load %arg6[%c1_165, %c2_166, %c0_167, %c0_168] : memref<2x9x128x128xbf16, #tpu.memory_space<vmem>>, vector<1x1x128x128xbf16>
    %317 = vector.shape_cast %316 : vector<1x1x128x128xbf16> to vector<128x128xbf16>
    %cst_169 = arith.constant dense<0.000000e+00> : vector<128x128xf32>
    %318 = tpu.matmul %315, %317, %cst_169 {dimension_numbers = #tpu.dot_dimension_numbers<[1], [0], [0], [1], [0, 0, 1, 1], [], []>} : vector<128x128xbf16>, vector<128x128xbf16>, vector<128x128xf32> -> vector<128x128xf32>
    %319 = arith.addf %311, %318 : vector<128x128xf32>
    %c1_i32_170 = arith.constant 1 : i32
    %320 = tpu.dynamic_rotate %294 by %c1_i32_170 dim 0 : vector<128x128xf32>, i32 -> vector<128x128xf32>
    %cst_171 = arith.constant 0.000000e+00 : f32
    %321 = vector.broadcast %cst_171 : f32 to vector<128x128xf32>
    %322 = arith.select %93, %320, %321 : vector<128x128xi1>, vector<128x128xf32>
    %323 = arith.truncf %322 : vector<128x128xf32> to vector<128x128xbf16>
    %c1_172 = arith.constant 1 : index
    %c3_173 = arith.constant 3 : index
    %c0_174 = arith.constant 0 : index
    %c0_175 = arith.constant 0 : index
    %324 = vector.load %arg6[%c1_172, %c3_173, %c0_174, %c0_175] : memref<2x9x128x128xbf16, #tpu.memory_space<vmem>>, vector<1x1x128x128xbf16>
    %325 = vector.shape_cast %324 : vector<1x1x128x128xbf16> to vector<128x128xbf16>
    %cst_176 = arith.constant dense<0.000000e+00> : vector<128x128xf32>
    %326 = tpu.matmul %323, %325, %cst_176 {dimension_numbers = #tpu.dot_dimension_numbers<[1], [0], [0], [1], [0, 0, 1, 1], [], []>} : vector<128x128xbf16>, vector<128x128xbf16>, vector<128x128xf32> -> vector<128x128xf32>
    %327 = arith.addf %319, %326 : vector<128x128xf32>
    %cst_177 = arith.constant 0.000000e+00 : f32
    %328 = vector.broadcast %cst_177 : f32 to vector<128x128xf32>
    %329 = arith.select %112, %294, %328 : vector<128x128xi1>, vector<128x128xf32>
    %330 = arith.truncf %329 : vector<128x128xf32> to vector<128x128xbf16>
    %c1_178 = arith.constant 1 : index
    %c4_179 = arith.constant 4 : index
    %c0_180 = arith.constant 0 : index
    %c0_181 = arith.constant 0 : index
    %331 = vector.load %arg6[%c1_178, %c4_179, %c0_180, %c0_181] : memref<2x9x128x128xbf16, #tpu.memory_space<vmem>>, vector<1x1x128x128xbf16>
    %332 = vector.shape_cast %331 : vector<1x1x128x128xbf16> to vector<128x128xbf16>
    %cst_182 = arith.constant dense<0.000000e+00> : vector<128x128xf32>
    %333 = tpu.matmul %330, %332, %cst_182 {dimension_numbers = #tpu.dot_dimension_numbers<[1], [0], [0], [1], [0, 0, 1, 1], [], []>} : vector<128x128xbf16>, vector<128x128xbf16>, vector<128x128xf32> -> vector<128x128xf32>
    %334 = arith.addf %327, %333 : vector<128x128xf32>
    %c127_i32_183 = arith.constant 127 : i32
    %335 = tpu.dynamic_rotate %294 by %c127_i32_183 dim 0 : vector<128x128xf32>, i32 -> vector<128x128xf32>
    %cst_184 = arith.constant 0.000000e+00 : f32
    %336 = vector.broadcast %cst_184 : f32 to vector<128x128xf32>
    %337 = arith.select %131, %335, %336 : vector<128x128xi1>, vector<128x128xf32>
    %338 = arith.truncf %337 : vector<128x128xf32> to vector<128x128xbf16>
    %c1_185 = arith.constant 1 : index
    %c5_186 = arith.constant 5 : index
    %c0_187 = arith.constant 0 : index
    %c0_188 = arith.constant 0 : index
    %339 = vector.load %arg6[%c1_185, %c5_186, %c0_187, %c0_188] : memref<2x9x128x128xbf16, #tpu.memory_space<vmem>>, vector<1x1x128x128xbf16>
    %340 = vector.shape_cast %339 : vector<1x1x128x128xbf16> to vector<128x128xbf16>
    %cst_189 = arith.constant dense<0.000000e+00> : vector<128x128xf32>
    %341 = tpu.matmul %338, %340, %cst_189 {dimension_numbers = #tpu.dot_dimension_numbers<[1], [0], [0], [1], [0, 0, 1, 1], [], []>} : vector<128x128xbf16>, vector<128x128xbf16>, vector<128x128xf32> -> vector<128x128xf32>
    %342 = arith.addf %334, %341 : vector<128x128xf32>
    %c125_i32_190 = arith.constant 125 : i32
    %343 = tpu.dynamic_rotate %294 by %c125_i32_190 dim 0 : vector<128x128xf32>, i32 -> vector<128x128xf32>
    %cst_191 = arith.constant 0.000000e+00 : f32
    %344 = vector.broadcast %cst_191 : f32 to vector<128x128xf32>
    %345 = arith.select %150, %343, %344 : vector<128x128xi1>, vector<128x128xf32>
    %346 = arith.truncf %345 : vector<128x128xf32> to vector<128x128xbf16>
    %c1_192 = arith.constant 1 : index
    %c6_193 = arith.constant 6 : index
    %c0_194 = arith.constant 0 : index
    %c0_195 = arith.constant 0 : index
    %347 = vector.load %arg6[%c1_192, %c6_193, %c0_194, %c0_195] : memref<2x9x128x128xbf16, #tpu.memory_space<vmem>>, vector<1x1x128x128xbf16>
    %348 = vector.shape_cast %347 : vector<1x1x128x128xbf16> to vector<128x128xbf16>
    %cst_196 = arith.constant dense<0.000000e+00> : vector<128x128xf32>
    %349 = tpu.matmul %346, %348, %cst_196 {dimension_numbers = #tpu.dot_dimension_numbers<[1], [0], [0], [1], [0, 0, 1, 1], [], []>} : vector<128x128xbf16>, vector<128x128xbf16>, vector<128x128xf32> -> vector<128x128xf32>
    %350 = arith.addf %342, %349 : vector<128x128xf32>
    %c124_i32_197 = arith.constant 124 : i32
    %351 = tpu.dynamic_rotate %294 by %c124_i32_197 dim 0 : vector<128x128xf32>, i32 -> vector<128x128xf32>
    %cst_198 = arith.constant 0.000000e+00 : f32
    %352 = vector.broadcast %cst_198 : f32 to vector<128x128xf32>
    %353 = arith.select %169, %351, %352 : vector<128x128xi1>, vector<128x128xf32>
    %354 = arith.truncf %353 : vector<128x128xf32> to vector<128x128xbf16>
    %c1_199 = arith.constant 1 : index
    %c7_200 = arith.constant 7 : index
    %c0_201 = arith.constant 0 : index
    %c0_202 = arith.constant 0 : index
    %355 = vector.load %arg6[%c1_199, %c7_200, %c0_201, %c0_202] : memref<2x9x128x128xbf16, #tpu.memory_space<vmem>>, vector<1x1x128x128xbf16>
    %356 = vector.shape_cast %355 : vector<1x1x128x128xbf16> to vector<128x128xbf16>
    %cst_203 = arith.constant dense<0.000000e+00> : vector<128x128xf32>
    %357 = tpu.matmul %354, %356, %cst_203 {dimension_numbers = #tpu.dot_dimension_numbers<[1], [0], [0], [1], [0, 0, 1, 1], [], []>} : vector<128x128xbf16>, vector<128x128xbf16>, vector<128x128xf32> -> vector<128x128xf32>
    %358 = arith.addf %350, %357 : vector<128x128xf32>
    %c123_i32_204 = arith.constant 123 : i32
    %359 = tpu.dynamic_rotate %294 by %c123_i32_204 dim 0 : vector<128x128xf32>, i32 -> vector<128x128xf32>
    %cst_205 = arith.constant 0.000000e+00 : f32
    %360 = vector.broadcast %cst_205 : f32 to vector<128x128xf32>
    %361 = arith.select %188, %359, %360 : vector<128x128xi1>, vector<128x128xf32>
    %362 = arith.truncf %361 : vector<128x128xf32> to vector<128x128xbf16>
    %c1_206 = arith.constant 1 : index
    %c8_207 = arith.constant 8 : index
    %c0_208 = arith.constant 0 : index
    %c0_209 = arith.constant 0 : index
    %363 = vector.load %arg6[%c1_206, %c8_207, %c0_208, %c0_209] : memref<2x9x128x128xbf16, #tpu.memory_space<vmem>>, vector<1x1x128x128xbf16>
    %364 = vector.shape_cast %363 : vector<1x1x128x128xbf16> to vector<128x128xbf16>
    %cst_210 = arith.constant dense<0.000000e+00> : vector<128x128xf32>
    %365 = tpu.matmul %362, %364, %cst_210 {dimension_numbers = #tpu.dot_dimension_numbers<[1], [0], [0], [1], [0, 0, 1, 1], [], []>} : vector<128x128xbf16>, vector<128x128xbf16>, vector<128x128xf32> -> vector<128x128xf32>
    %366 = arith.addf %358, %365 : vector<128x128xf32>
    %c1_211 = arith.constant 1 : index
    %c0_212 = arith.constant 0 : index
    %c0_213 = arith.constant 0 : index
    %367 = vector.load %arg7[%c1_211, %c0_212, %c0_213] : memref<2x1x128xf32, #tpu.memory_space<vmem>>, vector<1x1x128xf32>
    %368 = vector.shape_cast %367 : vector<1x1x128xf32> to vector<1x128xf32>
    %369 = vector.broadcast %368 : vector<1x128xf32> to vector<128x128xf32>
    %370 = arith.addf %366, %369 : vector<128x128xf32>
    %cst_214 = arith.constant 2.000000e-01 : f32
    %371 = vector.broadcast %cst_214 : f32 to vector<128x128xf32>
    %372 = arith.mulf %371, %370 : vector<128x128xf32>
    %373 = arith.maximumf %370, %372 : vector<128x128xf32>
    %374 = arith.truncf %373 : vector<128x128xf32> to vector<128x128xbf16>
    %c1_215 = arith.constant 1 : index
    %c0_216 = arith.constant 0 : index
    %c0_217 = arith.constant 0 : index
    %375 = vector.load %arg8[%c1_215, %c0_216, %c0_217] : memref<2x128x128xbf16, #tpu.memory_space<vmem>>, vector<1x128x128xbf16>
    %376 = vector.shape_cast %375 : vector<1x128x128xbf16> to vector<128x128xbf16>
    %cst_218 = arith.constant dense<0.000000e+00> : vector<128x128xf32>
    %377 = tpu.matmul %374, %376, %cst_218 {dimension_numbers = #tpu.dot_dimension_numbers<[1], [0], [0], [1], [0, 0, 1, 1], [], []>} : vector<128x128xbf16>, vector<128x128xbf16>, vector<128x128xf32> -> vector<128x128xf32>
    %378 = arith.addf %283, %377 : vector<128x128xf32>
    %c0_219 = arith.constant 0 : index
    %c0_220 = arith.constant 0 : index
    %379 = vector.load %arg9[%c0_219, %c0_220] : memref<128x128xf32, #tpu.memory_space<vmem>>, vector<128x128xf32>
    tpu.vector_store %arg9[%c0_219, %c0_220], %378 {strides = array<i32>} : memref<128x128xf32, #tpu.memory_space<vmem>>, vector<128x128xf32>,
    return
  }
  func.func @transform_0(%arg0: i32) -> (i32, i32) {
    %c0_i32 = arith.constant 0 : i32
    %c0_i32_0 = arith.constant 0 : i32
    return %arg0, %c0_i32 : i32, i32
  }
  func.func @transform_1(%arg0: i32) -> (i32, i32) {
    %c0_i32 = arith.constant 0 : i32
    %c0_i32_0 = arith.constant 0 : i32
    %c0_i32_1 = arith.constant 0 : i32
    return %c0_i32, %c0_i32_0 : i32, i32
  }
  func.func @transform_2(%arg0: i32) -> (i32, i32) {
    %c0_i32 = arith.constant 0 : i32
    %c0_i32_0 = arith.constant 0 : i32
    %c0_i32_1 = arith.constant 0 : i32
    return %c0_i32, %c0_i32_0 : i32, i32
  }
  func.func @transform_3(%arg0: i32) -> (i32, i32, i32) {
    %c0_i32 = arith.constant 0 : i32
    %c0_i32_0 = arith.constant 0 : i32
    %c0_i32_1 = arith.constant 0 : i32
    %c0_i32_2 = arith.constant 0 : i32
    return %c0_i32, %c0_i32_0, %c0_i32_1 : i32, i32, i32
  }
  func.func @transform_4(%arg0: i32) -> (i32, i32, i32) {
    %c0_i32 = arith.constant 0 : i32
    %c0_i32_0 = arith.constant 0 : i32
    %c0_i32_1 = arith.constant 0 : i32
    %c0_i32_2 = arith.constant 0 : i32
    return %c0_i32, %c0_i32_0, %c0_i32_1 : i32, i32, i32
  }
  func.func @transform_5(%arg0: i32) -> (i32, i32, i32, i32) {
    %c0_i32 = arith.constant 0 : i32
    %c0_i32_0 = arith.constant 0 : i32
    %c0_i32_1 = arith.constant 0 : i32
    %c0_i32_2 = arith.constant 0 : i32
    %c0_i32_3 = arith.constant 0 : i32
    return %c0_i32, %c0_i32_0, %c0_i32_1, %c0_i32_2 : i32, i32, i32, i32
  }
  func.func @transform_6(%arg0: i32) -> (i32, i32, i32) {
    %c0_i32 = arith.constant 0 : i32
    %c0_i32_0 = arith.constant 0 : i32
    %c0_i32_1 = arith.constant 0 : i32
    %c0_i32_2 = arith.constant 0 : i32
    return %c0_i32, %c0_i32_0, %c0_i32_1 : i32, i32, i32
  }
  func.func @transform_7(%arg0: i32) -> (i32, i32, i32) {
    %c0_i32 = arith.constant 0 : i32
    %c0_i32_0 = arith.constant 0 : i32
    %c0_i32_1 = arith.constant 0 : i32
    %c0_i32_2 = arith.constant 0 : i32
    return %c0_i32, %c0_i32_0, %c0_i32_1 : i32, i32, i32
  }
  func.func @transform_8(%arg0: i32) -> (i32, i32) {
    %c0_i32 = arith.constant 0 : i32
    %c0_i32_0 = arith.constant 0 : i32
    return %arg0, %c0_i32 : i32, i32
  }
}

</mosaic_0001>

<bundles_post_ra>
// kernel: tpu_custom_call.1
= control target key start
LH: loop header
LB: loop body
LE: loop exit
PB: predicated region body
PF: predicated region fallthrough
CT: control target
= control target key end

     0   :  { %s13488_s0 = inlined_call_operand.hbm [shape: f32[16,128], index: 0, kind: input, shape index: {}]   ;;  %s13489_s1 = inlined_call_operand.hbm [shape: bf16[128,128], index: 1, kind: input, shape index: {}]   ;;  %s13490_s2 = inlined_call_operand.hbm [shape: f32[16,128], index: 2, kind: input, shape index: {}]   ;;  %s13491_s3 = inlined_call_operand.hbm [shape: bf16[2,128,128], index: 3, kind: input, shape index: {}]   ;;  %s13492_s4 = inlined_call_operand.vmem [shape: f32[2,1,128], index: 4, kind: input, shape index: {}]   ;;  %s13493_s5 = inlined_call_operand.hbm [shape: bf16[2,9,128,128], index: 5, kind: input, shape index: {}]   ;;  %s13494_s6 = inlined_call_operand.vmem [shape: f32[2,1,128], index: 6, kind: input, shape index: {}]   ;;  %s13495_s7 = inlined_call_operand.hbm [shape: bf16[2,128,128], index: 7, kind: input, shape index: {}]   ;;  %s13496_s8 = inlined_call_operand.hbm [shape: f32[256,128], index: 8, kind: output, shape index: {}]  }
   0x1   :  { %14319 = sst [smem:[#allocation244_spill]] %s13489_s1 }
   0x2   :  { %14320 = sst [smem:[#allocation245_spill]] %s13491_s3 }
   0x3   :  { %13 = vsyncpa [#allocation3], 0 }
   0x4   :  { %15 = vsyncpa [#allocation3 + $0x1], 0 }
   0x5   :  { %16 = vsyncpa [#allocation6], 0 }
   0x6   :  { %17 = vsyncpa [#allocation9], 0 }
   0x7   :  { %18 = vsyncpa [#allocation12], 0 }
   0x8   :  { %19 = vsyncpa [#allocation4], 0 }
   0x9   :  { %21 = vsyncpa [#allocation4 + $0x1], 0  ;;  %s8802_s27 = smov 0   ;;  %s8804_s28 = smov 0  }
   0xa   :  { %s8806_s29 = smov 0   ;;  %s8808_s30 = smov 0  }
   0xb LB: > { %s8741_s9 = smov [#allocation5]   ;;  %s8823_s11 = sadd.s32 4294967295, %s8739_s30   ;;  %s8739_s30 = sphi %s8808_s30, %s16349_s30   ;;  %s8735_s29 = sphi %s8806_s29, %s16348_s29   ;;  %s8731_s28 = sphi %s8804_s28, %s16347_s28   ;;  %s8727_s27 = sphi %s8802_s27, %s16346_s27  }
   0xc   : > { %s243_s10 = sshll.u32 %s8741_s9, 4  ;;  %p6215_p0 = scmp.ge.s32.totalorder %s8739_s30, 1  ;;  %s8828_s10 = int_to_ptr.vmem [resolvable:$true] %s243_s10 }
   0xd   : > { %p13501_p1 = scmp.eq.s32.totalorder %s8823_s11, 0  ;;  %p231_p2 = scmp.lt.s32.totalorder %s8739_s30, 3 }
   0xe   : > { %s8742_s13 = smov [#allocation8]   ;;  %s8743_s16 = smov [#allocation7]  }
   0xf   : > { %p8830_p3 = pnand %p6215_p0, %p231_p2  ;;  %s269_s14 = sshll.u32 %s8742_s13, 4  ;;  %s8843_s14 = int_to_ptr.vmem [resolvable:$true] %s269_s14 }
  0x10   : > { %s256_s17 = sshll.u32 %s8743_s16, 4  ;;  %s14323_s1 = sld [smem:[#allocation244_spill]]  ;;  %s8845_s17 = int_to_ptr.vmem [resolvable:$true] %s256_s17 }
  0x11   : > { %s14321_s12 = scalar_select %p8830_p3, 1, 0 }
  0x12   : > { %p8225_p5 = pneg %p8830_p3 }
  0x14   : > { %p8839_p6 = pnand %p8225_p5, %p13501_p1 }
  0x16   : > { %s8491_s20 = scalar_lea.hbm %s14323_s1, 1024  ;;  %p8855_p8 = pneg %p8839_p6 }
  0x17   : > { %p8492_p7 = scmp.ne.s32.totalorder %s14323_s1, %s8491_s20  ;;  %p8498_p11 = scmp.lt.u32.totalorder %s8491_s20, %s14323_s1 }
  0x19   : > { %p8494_p9 = pnand %p8855_p8, %p8492_p7 }
  0x1b   : > { %p8495_p10 = pneg %p8494_p9 }
  0x1d   : > { %p8500_p12 = pnand %p8498_p11, %p8495_p10 }
  0x1f   : > { %8503 = shalt.err (!%p8500_p12)
}
  0x20   : > { %s8504_s26 = scalar_lea.vmem %s8828_s10, 1024  ;;  %p8512_p5 = scmp.lt.s32.totalorder %s8828_s10, %s8828_s10 }
  0x21   : > { %p8505_p13 = scmp.ne.s32.totalorder %s8828_s10, %s8504_s26  ;;  %p8513_p4 = scmp.lt.s32.totalorder %s8504_s26, %s8504_s26 }
  0x23   : > { %p8507_p0 = pnand %p8505_p13, %p8855_p8  ;;  %p8514_p7 = por %p8513_p4, %p8512_p5 }
  0x25   : > { %p8508_p2 = pneg %p8507_p0 }
  0x27   : > { %p8515_p9 = pnand %p8514_p7, %p8508_p2 }
  0x29   : > { %8518 = shalt.err (!%p8515_p9)
}
  0x2a   : > { %s13497_s9 = smov 64   ;;  %s13499_s13 = smov 4  }
  0x2b   : > { %8228 = dma.hbm_to_vmem [thread:$0]  (!%p8839_p6), %s14323_s1, 1024, %s8828_s10, [#allocation6], %s13497_s9, %s13497_s9, %s13499_s13  }
  0x2c   : > { %s14325_s3 = sld [smem:[#allocation245_spill]] }
  0x32   : > { %s8519_s21 = scalar_lea.hbm %s14325_s3, 2048 }
  0x33   : > { %p8520_p4 = scmp.ne.s32.totalorder %s14325_s3, %s8519_s21  ;;  %p8526_p12 = scmp.lt.u32.totalorder %s8519_s21, %s14325_s3 }
  0x35   : > { %p8522_p10 = pnand %p8520_p4, %p8855_p8 }
  0x37   : > { %p8523_p11 = pneg %p8522_p10 }
  0x39   : > { %p8528_p13 = pnand %p8526_p12, %p8523_p11 }
  0x3b   : > { %8531 = shalt.err (!%p8528_p13)
}
  0x3c   : > { %s8532_s10 = scalar_lea.vmem %s8843_s14, 2048  ;;  %p8540_p7 = scmp.lt.s32.totalorder %s8843_s14, %s8843_s14 }
  0x3d   : > { %p8533_p0 = scmp.ne.s32.totalorder %s8843_s14, %s8532_s10  ;;  %p8541_p9 = scmp.lt.s32.totalorder %s8532_s10, %s8532_s10 }
  0x3f   : > { %p8535_p2 = pnand %p8533_p0, %p8855_p8  ;;  %p8542_p4 = por %p8541_p9, %p8540_p7 }
  0x41   : > { %p8536_p5 = pneg %p8535_p2 }
  0x43   : > { %p8543_p10 = pnand %p8542_p4, %p8536_p5 }
  0x45   : > { %8546 = shalt.err (!%p8543_p10)
}
  0x46   : > { %8234 = dma.hbm_to_vmem [thread:$0]  (!%p8839_p6), %s14325_s3, 2048, %s8843_s14, [#allocation9], %s13497_s9, %s13497_s9, %s13499_s13  }
  0x47   : > { %s8547_s21 = scalar_lea.hbm %s13490_s2, 256 }
  0x48   : > { %p8548_p11 = scmp.ne.s32.totalorder %s13490_s2, %s8547_s21  ;;  %p8554_p0 = scmp.lt.u32.totalorder %s8547_s21, %s13490_s2 }
  0x4a   : > { %p8550_p12 = pnand %p8548_p11, %p8855_p8 }
  0x4c   : > { %p8551_p13 = pneg %p8550_p12 }
  0x4e   : > { %p8556_p2 = pnand %p8554_p0, %p8551_p13 }
  0x50   : > { %8559 = shalt.err (!%p8556_p2)
}
  0x51   : > { %s8560_s14 = scalar_lea.vmem %s8845_s17, 256  ;;  %p8568_p4 = scmp.lt.s32.totalorder %s8845_s17, %s8845_s17 }
  0x52   : > { %p8561_p5 = scmp.ne.s32.totalorder %s8845_s17, %s8560_s14  ;;  %p8569_p10 = scmp.lt.s32.totalorder %s8560_s14, %s8560_s14 }
  0x54   : > { %p8563_p7 = pnand %p8561_p5, %p8855_p8  ;;  %p8570_p11 = por %p8569_p10, %p8568_p4 }
  0x56   : > { %p8564_p9 = pneg %p8563_p7 }
  0x58   : > { %p8571_p12 = pnand %p8570_p11, %p8564_p9 }
  0x5a   : > { %8574 = shalt.err (!%p8571_p12)
}
  0x5b   : > { %s8746_s10 = smov 128   ;;  %s8747_s16 = smov 8  }
  0x5c   : > { %8231 = dma.hbm_to_vmem [thread:$0]  (!%p8839_p6), %s13490_s2, 256, %s8845_s17, [#allocation6], %s8746_s10, %s8746_s10, %s8747_s16  }
  0x5d   : > { %s8748_s20 = smov [#allocation10]   ;;  %s8749_s22 = smov [#allocation11]  }
  0x5e   : > { %s285_s21 = sshll.u32 %s8748_s20, 4  ;;  %s301_s24 = sshll.u32 %s8749_s22, 4  ;;  %s286_s21 = int_to_ptr.vmem [resolvable:$true] %s285_s21  ;;  %s302_s24 = int_to_ptr.vmem [resolvable:$true] %s301_s24 }
  0x5f   : > { %s8575_s14 = scalar_lea.hbm %s13493_s5, 18432 }
  0x60   : > { %p8576_p13 = scmp.ne.s32.totalorder %s13493_s5, %s8575_s14  ;;  %p8582_p5 = scmp.lt.u32.totalorder %s8575_s14, %s13493_s5 }
  0x62   : > { %p8578_p0 = pnand %p8576_p13, %p8855_p8 }
  0x64   : > { %p8579_p2 = pneg %p8578_p0 }
  0x66   : > { %p8584_p7 = pnand %p8582_p5, %p8579_p2 }
  0x68   : > { %8587 = shalt.err (!%p8584_p7)
}
  0x69   : > { %s8588_s17 = scalar_lea.vmem %s286_s21, 18432  ;;  %p8596_p11 = scmp.lt.s32.totalorder %s286_s21, %s286_s21 }
  0x6a   : > { %p8589_p9 = scmp.ne.s32.totalorder %s286_s21, %s8588_s17  ;;  %p8597_p12 = scmp.lt.s32.totalorder %s8588_s17, %s8588_s17 }
  0x6c   : > { %p8591_p4 = pnand %p8589_p9, %p8855_p8  ;;  %p8598_p1 = por %p8597_p12, %p8596_p11 }
  0x6e   : > { %p8592_p10 = pneg %p8591_p4 }
  0x70   : > { %p8599_p3 = pnand %p8598_p1, %p8592_p10 }
  0x72   : > { %8602 = shalt.err (!%p8599_p3)
}
  0x73   : > { %s14326_s9 = smov 4   ;;  %s14327_s13 = smov 64  }
  0x74   : > { %8237 = dma.hbm_to_vmem [thread:$0]  (!%p8839_p6), %s13493_s5, 18432, %s286_s21, [#allocation9], %s14327_s13, %s14327_s13, %s14326_s9  }
  0x75   : > { %s8603_s18 = scalar_lea.hbm %s13495_s7, 2048 }
  0x76   : > { %p8604_p1 = scmp.ne.s32.totalorder %s13495_s7, %s8603_s18  ;;  %p8610_p0 = scmp.lt.u32.totalorder %s8603_s18, %s13495_s7 }
  0x78   : > { %p8606_p3 = pnand %p8604_p1, %p8855_p8 }
  0x7a   : > { %p8607_p13 = pneg %p8606_p3 }
  0x7c   : > { %p8612_p2 = pnand %p8610_p0, %p8607_p13 }
  0x7e   : > { %8615 = shalt.err (!%p8612_p2)
}
  0x7f   : > { %s8616_s26 = scalar_lea.vmem %s302_s24, 2048  ;;  %p8624_p4 = scmp.lt.s32.totalorder %s302_s24, %s302_s24 }
  0x80   : > { %p8617_p5 = scmp.ne.s32.totalorder %s302_s24, %s8616_s26  ;;  %p8625_p10 = scmp.lt.s32.totalorder %s8616_s26, %s8616_s26 }
  0x82   : > { %p8619_p7 = pnand %p8617_p5, %p8855_p8  ;;  %p8626_p11 = por %p8625_p10, %p8624_p4 }
  0x84   : > { %p8620_p9 = pneg %p8619_p7 }
  0x86   : > { %p8627_p12 = pnand %p8626_p11, %p8620_p9 }
  0x88   : > { %8630 = shalt.err (!%p8627_p12)
}
  0x89   : > { %8240 = dma.hbm_to_vmem [thread:$0]  (!%p8839_p6), %s13495_s7, 2048, %s302_s24, [#allocation12], %s14327_s13, %s14327_s13, %s14326_s9  }
  0x8a   : > { %s6214_s15 = sadd.s32 4294967294, %s8739_s30   ;;  %s8972_s23 = sadd.s32 1, %s8739_s30  }
  0x8b   : > { %s34_s17 = sadd.s32 1, %s8735_s29  ;;  %s31_s1 = ssub.s32 %s8739_s30, %s8972_s23 }
  0x8c   : > { %p41_p8 = scmp.ne.s32.totalorder %s8735_s29, %s8731_s28  ;;  %p32_p1 = scmp.eq.s32.totalorder %s31_s1, 0 }
  0x8d   : > { %p42_p3 = scmp.eq.s32.totalorder %s8739_s30, 0  ;;  %p47_p13 = scmp.ne.s32.totalorder %s8731_s28, %s8727_s27 }
  0x8e   : > { %p218_p0 = scmp.eq.s32.totalorder %s8823_s11, 1  ;;  %p14328_p5 = scmp.eq.s32.totalorder %s8823_s11, 0 }
  0x8f   : > { %s8984_s3 = scalar_select %p32_p1, %s8735_s29, %s34_s17  }
  0x90   : > { %p43_p2 = por %p42_p3, %p41_p8  ;;  %p8988_p7 = por %p14328_p5, %p47_p13 }
  0x91   : > { %p8992_p6 = por %p218_p0, %p41_p8  ;;  %p224_p9 = scmp.eq.s32.totalorder %s6214_s15, 1 }
  0x92   : > { %p8254_p4 = scmp.lt.s32.totalorder %s8739_s30, 2  ;;  %s315_s9 = sand.u32 1, %s8735_s29  }
  0x93   : > { %s14330_s24 = scalar_select %p8992_p6, 1, 0 }
  0x94   : > { %p8998_p10 = por %p224_p9, %p47_p13  ;;  %s6222_s16 = sshll.u32 %s315_s9, 3 }
  0x95   : > { %s6223_s18 = sshll.u32 %s8739_s30, 7  ;;  %s319_s25 = scalar_lea.vmem [#allocation2], %s6222_s16 }
  0x96   : > { %s14331_s13 = scalar_select %p8998_p10, 1, 0 }
  0x97   : > { %s9006_s22 = scalar_lea.hbm %s13488_s0, %s6223_s18  ;;  %s326_s26 = sshll.u32 %s319_s25, 4  ;;  %s9012_s26 = int_to_ptr.vmem [resolvable:$true] %s326_s26 }
  0x98   : > { %p9008_p11 = pnand %p8254_p4, %p43_p2  ;;  %s316_s14 = scalar_lea.sflag [#allocation3], %s315_s9 }
  0x99   : > { %s8631_s15 = scalar_lea.hbm %s9006_s22, 128  ;;  %s8636_s16 = scalar_lea.hbm %s13488_s0, 256 }
  0x9a   : > { %p8632_p12 = scmp.ne.s32.totalorder %s9006_s22, %s8631_s15  ;;  %p8633_p8 = pneg %p9008_p11 }
  0x9b   : > { %p8637_p13 = scmp.lt.u32.totalorder %s9006_s22, %s13488_s0  ;;  %p8638_p0 = scmp.lt.u32.totalorder %s8636_s16, %s8631_s15 }
  0x9c   : > { %p8634_p1 = pnand %p8633_p8, %p8632_p12  ;;  %p8640_p5 = scmp.lt.u32.totalorder %s8631_s15, %s9006_s22 }
  0x9d   : > { %p8639_p2 = por %p8638_p0, %p8637_p13 }
  0x9e   : > { %p8635_p3 = pneg %p8634_p1 }
  0x9f   : > { %p8641_p9 = por %p8640_p5, %p8639_p2 }
  0xa1   : > { %p8642_p4 = pnand %p8641_p9, %p8635_p3 }
  0xa3   : > { %8645 = shalt.err (!%p8642_p4)
}
  0xa4   : > { %s8646_s9 = scalar_lea.vmem %s9012_s26, 128  ;;  %s8750_s20 = smov [#allocation2]  }
  0xa5   : > { %p8647_p12 = scmp.ne.s32.totalorder %s9012_s26, %s8646_s9  ;;  %s8651_s25 = sshll.u32 %s8750_s20, 4  ;;  %s8652_s25 = int_to_ptr.vmem [resolvable:$false] %s8651_s25 }
  0xa6   : > { %s8653_s17 = scalar_lea.vmem %s8652_s25, 256  ;;  %p8654_p6 = scmp.lt.s32.totalorder %s9012_s26, %s8652_s25 }
  0xa7   : > { %p8649_p1 = pnand %p8647_p12, %p8633_p8  ;;  %p8655_p13 = scmp.lt.s32.totalorder %s8653_s17, %s8646_s9 }
  0xa9   : > { %p8650_p10 = pneg %p8649_p1  ;;  %p8656_p0 = por %p8655_p13, %p8654_p6 }
  0xab   : > { %p8657_p2 = pnand %p8656_p0, %p8650_p10 }
  0xad   : > { %8660 = shalt.err (!%p8657_p2)
}
  0xae   : > { %8244 = dma.hbm_to_vmem [thread:$0]  (!%p9008_p11), %s9006_s22, 128, %s9012_s26, %s316_s14  }
  0xaf   : > { %p14333_p3 = scmp.ne.s32.totalorder %s14321_s12, 0 }
  0xb1   : > { %335 = sbr.rel (%p14333_p3) target bundleno = 2482 (0x9b2), region = 52 }
  0xb8   : > { %s9042_s15 = sand.u32 1, %s8731_s28  }
  0xb9   : > { %s6225_s1 = sshll.u32 %s9042_s15, 3  ;;  %s338_s16 = scalar_lea.sflag [#allocation3], %s9042_s15 }
  0xba   : > { %s9046_s18 = scalar_lea.vmem [#allocation2], %s6225_s1 }
  0xbb   : > { %8706 = dma.done.wait (%p8988_p7), %s338_s16, 128  }
  0xbc   : > { %8708 = vsyncadd (%p8988_p7), %s338_s16, 4294967168  ;;  %p14334_p6 = scmp.eq.s32.totalorder %s8823_s11, 0 }
  0xbe   : > { %8710 = dma.done.wait (%p14334_p6), [#allocation6], 1280   ;;  %p14335_p10 = pmov %p14334_p6 }
  0xbf   : > { %p14336_p11 = pmov %p14334_p6 }
  0xc0   : > { %8712 = vsyncadd (%p14335_p10), [#allocation6], 4294966016 }
  0xc1   : > { %8714 = dma.done.wait (%p14336_p11), [#allocation9], 20480   ;;  %p14337_p8 = pmov %p14334_p6 }
  0xc2   : > { %p14338_p5 = pmov %p14334_p6 }
  0xc3   : > { %8716 = vsyncadd (%p14337_p8), [#allocation9], 4294946816 }
  0xc4   : > { %8718 = dma.done.wait (%p14338_p5), [#allocation12], 2048   ;;  %p14339_p9 = pmov %p14338_p5 }
  0xc5   : > { %v8751_v0 = vmov 0.0   ;;  %vm8752_vm0 = vmmov 0   ;;  %v8307_v1 = vld [vmem:[#allocation5] sm:$0xff]   ;;  %v8308_v2 = vld [vmem:[#allocation5 + $0x8] sm:$0xff]   ;;  %v8309_v3 = vld [vmem:[#allocation5 + $0x10] sm:$0xff]   ;;  %v507_v21 = vlaneseq  ;;  %s6231_s20 = sshll.u32 %s9042_s15, 7 }
  0xc6   : > { %8720 = vsyncadd (%p14339_p9), [#allocation12], 4294965248  ;;  %7221 = vmatprep.subr.bf16.mxu0 %v8751_v0  ;;  %7237 = vmatprep.mubr.msk.bf16.mxu0 %vm8752_vm0, %v8751_v0  ;;  %v8310_v4 = vld [vmem:[#allocation5 + $0x18] sm:$0xff]   ;;  %v8315_v5 = vld [vmem:[#allocation8] sm:$0xff]   ;;  %v8753_v19 = vmov 1966171168  }
  0xc7   : > { %7222 = vmatpush3.bf16.msra.mxu0 %v8307_v1  ;;  %v8316_v6 = vld [vmem:[#allocation8 + $0x8] sm:$0xff]   ;;  %7241 = vmatprep.subr.bf16.mxu1 %v8315_v5  ;;  %v8311_v7 = vld [vmem:[#allocation5 + $0x20] sm:$0xff]   ;;  %v8318_v9 = vld [vmem:[#allocation8 + $0x18] sm:$0xff]   ;;  %v505_v20 = vunpack.c.l.s4 %v8753_v19  ;;  %v9065_v23 = vshrl.u32 %v507_v21, 7  ;;  %s13405_s25 = scalar_lea.vmem [#allocation13], %s6231_s20  ;;  %s6859_s17 = sshll.u32 %s8823_s11, 11 }
  0xc8   : > { %7223 = vmatprep.subr.bf16.mxu0 %v8751_v0  ;;  %7242 = vmatpush3.bf16.msra.mxu1 %v8315_v5  ;;  %v8317_v8 = vld [vmem:[#allocation8 + $0x10] sm:$0xff]   ;;  %v8312_v10 = vld [vmem:[#allocation5 + $0x28] sm:$0xff]   ;;  %v8319_v11 = vld [vmem:[#allocation8 + $0x20] sm:$0xff]   ;;  %s6093_s1 = sshll.u32 %s13405_s25, 4  ;;  %s13438_s12 = scalar_lea.hbm %s13496_s8, %s6859_s17  ;;  %s13440_s1 = int_to_ptr.vmem [resolvable:$true] %s6093_s1 }
  0xc9   : > { %7243 = vmatprep.subr.bf16.mxu1 %v8316_v6  ;;  %v8313_v12 = vld [vmem:[#allocation5 + $0x30] sm:$0xff]   ;;  %v8314_v13 = vld [vmem:[#allocation5 + $0x38] sm:$0xff]   ;;  %v8321_v17 = vld [vmem:[#allocation8 + $0x30] sm:$0xff]   ;;  %v506_v22 = vunpack.c.0.s8 %v505_v20  ;;  %14340 = vst [vmem:[#allocation19_spill] sm:$0xff] %v9065_v23  ;;  %v556_v29 = vsub.s32 0, %v9065_v23  ;;  %vm13615_vm1 = vcmp.lt.s32.totalorder %v9065_v23, 5 }
  0xca   : > { %v396_v14 = vld [vmem:[%s9046_s18] sm:$0xff]  ;;  %v8322_v18 = vld [vmem:[#allocation8 + $0x38] sm:$0xff]   ;;  %v552_v37 = vld [vmem:[#allocation7] sm:$0xff]  ;;  %vm13603_vm2 = vcmp.lt.s32.totalorder %v9065_v23, 4  ;;  %vm13646_vm13 = vcmp.lt.s32.totalorder %v9065_v23, 3  ;;  %s6080_s11 = scalar_lea.sflag [#allocation4], %s9042_s15 }
  0xcb   : > { %7224 = vmatpush3.bf16.msra.mxu0 %v8308_v2  ;;  %v397_v15 = vpack.c.bf16 %v396_v14, %v396_v14  ;;  %v8320_v16 = vld [vmem:[#allocation8 + $0x28] sm:$0xff]   ;;  %v509_v24 = vsub.s32 %v506_v22, %v9065_v23  ;;  %v553_v38 = vld [vmem:[#allocation7 + $0x8] sm:$0xff]  ;;  %v8329_v19 = vld [vmem:[#allocation10 + $0x70] sm:$0xff]   ;;  %v9121_v22 = vadd.s32 8, %v9065_v23  ;;  %s8661_s10 = scalar_lea.vmem %s13440_s1, 2048  ;;  %p16343_p4 = scmp.ne.s32.totalorder %s14330_s24, 0 }
  0xcc   : > { %7225 = vmatprep.subr.bf16.mxu0 %v8751_v0  ;;  %7244 = vmatpush3.bf16.msra.mxu1 %v8316_v6  ;;  %v8324_v14 = vld [vmem:[#allocation10 + $0x48] sm:$0xff]   ;;  %v8330_v20 = vld [vmem:[#allocation10 + $0x78] sm:$0xff]   ;;  %v9117_v21 = vld [vmem:[#allocation10] sm:$0xff]   ;;  %p8662_p7 = scmp.ne.s32.totalorder %s13440_s1, %s8661_s10  ;;  %s8754_s22 = smov [#allocation13]  }
  0xcd   : > { %7245 = vmatprep.subr.bf16.mxu1 %v8317_v8  ;;  %14357 = vst [vmem:[#allocation36_spill] sm:$0xff] %v9121_v22  ;;  %s8665_s26 = sshll.u32 %s8754_s22, 4  ;;  %s8666_s26 = int_to_ptr.vmem [resolvable:$false] %s8665_s26 }
  0xce   : > { %p8663_p12 = pnand %p8662_p7, %p16343_p4  ;;  %s8667_s21 = scalar_lea.vmem %s8666_s26, 4096 }
  0xcf   : > { %7226 = vmatpush3.bf16.msra.mxu0 %v8309_v3  ;;  %p8668_p13 = scmp.lt.s32.totalorder %s13440_s1, %s8666_s26  ;;  %p8669_p0 = scmp.lt.s32.totalorder %s8667_s21, %s8661_s10 }
  0xd0   : > { %7227 = vmatprep.subr.bf16.mxu0 %v8751_v0  ;;  %7246 = vmatpush3.bf16.msra.mxu1 %v8317_v8  ;;  %p8664_p1 = pneg %p8663_p12 }
  0xd1   : > { %7247 = vmatprep.subr.bf16.mxu1 %v8318_v9  ;;  %p8670_p2 = por %p8669_p0, %p8668_p13 }
  0xd3   : > { %7228 = vmatpush3.bf16.msra.mxu0 %v8310_v4  ;;  %p8671_p3 = pnand %p8670_p2, %p8664_p1 }
  0xd4   : > { %7229 = vmatprep.subr.bf16.mxu0 %v8751_v0  ;;  %7248 = vmatpush3.bf16.msra.mxu1 %v8318_v9 }
  0xd5   : > { %7249 = vmatprep.subr.bf16.mxu1 %v8319_v11 }
  0xd7   : > { %7230 = vmatpush3.bf16.msra.mxu0 %v8311_v7 }
  0xd8   : > { %7231 = vmatprep.subr.bf16.mxu0 %v8751_v0  ;;  %7250 = vmatpush3.bf16.msra.mxu1 %v8319_v11 }
  0xd9   : > { %7251 = vmatprep.subr.bf16.mxu1 %v8320_v16 }
  0xdb   : > { %7232 = vmatpush3.bf16.msra.mxu0 %v8312_v10 }
  0xdc   : > { %7233 = vmatprep.subr.bf16.mxu0 %v8751_v0  ;;  %7252 = vmatpush3.bf16.msra.mxu1 %v8320_v16  ;;  %v8326_v16 = vld [vmem:[#allocation10 + $0x58] sm:$0xff]  }
  0xdd   : > { %7253 = vmatprep.subr.bf16.mxu1 %v8321_v17 }
  0xdf   : > { %7234 = vmatpush3.bf16.msra.mxu0 %v8313_v12 }
  0xe0   : > { %7235 = vmatprep.subr.bf16.mxu0 %v8751_v0  ;;  %7254 = vmatpush3.bf16.msra.mxu1 %v8321_v17  ;;  %v8327_v17 = vld [vmem:[#allocation10 + $0x60] sm:$0xff]  }
  0xe1   : > { %7255 = vmatprep.subr.bf16.mxu1 %v8322_v18 }
  0xe3   : > { %7236 = vmatpush3.bf16.msra.mxu0 %v8314_v13  ;;  %v8323_v13 = vld [vmem:[#allocation10 + $0x40] sm:$0xff]  }
  0xe4   : > { %7256 = vmatpush3.bf16.msra.mxu1 %v8322_v18  ;;  %7273 = vmatprep.subr.bf16.mxu0 %v8323_v13  ;;  %v8328_v18 = vld [vmem:[#allocation10 + $0x68] sm:$0xff]  }
  0xe6   : > { %7238 = vmatmul.mubr.bf16.vlgmr.msra.gmra.mrb[0].mxu0 %v397_v15  ;;  %v8325_v15 = vld [vmem:[#allocation10 + $0x50] sm:$0xff]  }
  0xe7   : > { %7274 = vmatpush3.bf16.msra.mxu0 %v8323_v13 }
  0xe8   : > { %7275 = vmatprep.subr.bf16.mxu0 %v8324_v14 }
  0xeb   : > { %7276 = vmatpush3.bf16.msra.mxu0 %v8324_v14 }
  0xec   : > { %7277 = vmatprep.subr.bf16.mxu0 %v8325_v15 }
  0xef   : > { %7278 = vmatpush3.bf16.msra.mxu0 %v8325_v15 }
  0xf0   : > { %7279 = vmatprep.subr.bf16.mxu0 %v8326_v16 }
  0xf3   : > { %7280 = vmatpush3.bf16.msra.mxu0 %v8326_v16 }
  0xf4   : > { %7281 = vmatprep.subr.bf16.mxu0 %v8327_v17 }
  0xf7   : > { %7282 = vmatpush3.bf16.msra.mxu0 %v8327_v17 }
  0xf8   : > { %7283 = vmatprep.subr.bf16.mxu0 %v8328_v18 }
  0xfb   : > { %7284 = vmatpush3.bf16.msra.mxu0 %v8328_v18 }
  0xfc   : > { %7285 = vmatprep.subr.bf16.mxu0 %v8329_v19 }
  0xff   : > { %7286 = vmatpush3.bf16.msra.mxu0 %v8329_v19 }
 0x100   : > { %7287 = vmatprep.subr.bf16.mxu0 %v8330_v20 }
 0x103   : > { %7288 = vmatpush3.bf16.msra.mxu0 %v8330_v20 }
 0x104   : > { %7305 = vmatprep.subr.bf16.mxu0 %v9117_v21 }
 0x1b9   : > { %v496_v25 = vpop.f32.mrb[0].mxu0 }
 0x1ba   : > { %v503_v26 = vcombine.high %v496_v25, %v496_v25  ;;  %v510_v27 = vrot.slane %v496_v25, %v509_v24  ;;  %v7239_v28 = vpop.f32.mrb[1].mxu0  ;;  %v9125_v25 = vadd.s32 16, %v9065_v23 }
 0x1bb   : > { %v499_v30 = vpop.f32.mrb[2].mxu0  ;;  %v628_v28 = vshra.s32 %v9121_v22, 2 }
 0x1bc   : > { %v518_v31 = vcombine.high %v510_v27, %v510_v27  ;;  %v526_v32 = vrot.slane %v510_v27, %v509_v24  ;;  %v7240_v33 = vpop.f32.mrb[3].mxu0  ;;  %v517_v34 = vrot.slane %v503_v26, %v509_v24  ;;  %14358 = vst [vmem:[#allocation37_spill] sm:$0xff] %v9125_v25  ;;  %v9128_v26 = vadd.s32 24, %v9065_v23 }
 0x1bd   : > { %v9131_v27 = vadd.s32 32, %v9065_v23  ;;  %v9138_v30 = vadd.s32 48, %v9065_v23  ;;  %v9147_v33 = vadd.s32 72, %v9065_v23 }
 0x1be   : > { %v540_v35 = vrot.slane %v518_v31, %v509_v24  ;;  %v548_v36 = vcombine.high %v526_v32, %v526_v32  ;;  %v557_v39 = vrot.slane %v526_v32, %v556_v29  ;;  %v533_v42 = vrot.slane %v517_v34, %v509_v24  ;;  %14359 = vst [vmem:[#allocation38_spill] sm:$0xff] %v9128_v26 }
 0x1bf   : > { %v519_v51 = vcombine.high %v517_v34, %v517_v34  ;;  %14360 = vst [vmem:[#allocation39_spill] sm:$0xff] %v9131_v27  ;;  %14362 = vst [vmem:[#allocation41_spill] sm:$0xff] %v9138_v30  ;;  %v9141_v31 = vadd.s32 56, %v9065_v23  ;;  %v9144_v32 = vadd.s32 64, %v9065_v23  ;;  %v9150_v34 = vadd.s32 80, %v9065_v23 }
 0x1c0   : > { %v550_v40 = vcombine.high %v540_v35, %v540_v35  ;;  %v561_v41 = vrot.slane %v540_v35, %v556_v29  ;;  %v565_v43 = vrot.slane %v548_v36, %v556_v29  ;;  %v9069_v44 = vmul.f32 %v557_v39, %v552_v37  ;;  %14365 = vst [vmem:[#allocation44_spill] sm:$0xff] %v9147_v33 }
 0x1c1   : > { %v9071_v45 = vmul.f32 %v557_v39, %v553_v38  ;;  %v573_v54 = vrot.slane %v533_v42, %v556_v29  ;;  %v547_v56 = vrot.slane %v519_v51, %v509_v24  ;;  %v549_v59 = vcombine.high %v533_v42, %v533_v42  ;;  %14363 = vst [vmem:[#allocation42_spill] sm:$0xff] %v9141_v31 }
 0x1c2   : > { %14341 = vst [vmem:[#allocation20_spill] sm:$0xff] %v9069_v44  ;;  %v9073_v46 = vmul.f32 %v561_v41, %v552_v37  ;;  %v9075_v47 = vmul.f32 %v561_v41, %v553_v38  ;;  %v9079_v49 = vmul.f32 %v565_v43, %v552_v37  ;;  %v9081_v50 = vmul.f32 %v565_v43, %v553_v38 }
 0x1c3   : > { %14342 = vst [vmem:[#allocation21_spill] sm:$0xff] %v9071_v45  ;;  %v1267_v48 = vpack.c.bf16 %v9071_v45, %v9069_v44  ;;  %v569_v53 = vrot.slane %v550_v40, %v556_v29  ;;  %v9091_v60 = vmul.f32 %v573_v54, %v552_v37  ;;  %v9093_v61 = vmul.f32 %v573_v54, %v553_v38 }
 0x1c4   : > { %14343 = vst [vmem:[#allocation22_spill] sm:$0xff] %v9073_v46  ;;  %14344 = vst [vmem:[#allocation23_spill] sm:$0xff] %v9075_v47  ;;  %v1268_v52 = vpack.c.bf16 %v9075_v47, %v9073_v46  ;;  %v1269_v55 = vpack.c.bf16 %v9081_v50, %v9079_v49  ;;  %v577_v63 = vrot.slane %v547_v56, %v556_v29  ;;  %v627_v24 = vshra.s32 %v9065_v23, 2 }
 0x1c5   : > { %14345 = vst [vmem:[#allocation24_spill] sm:$0xff] %v9079_v49  ;;  %14346 = vst [vmem:[#allocation25_spill] sm:$0xff] %v9081_v50  ;;  %7257 = vmatprep.mubr.bf16.mxu1 %v1267_v48  ;;  %v9087_v57 = vmul.f32 %v569_v53, %v552_v37  ;;  %v9089_v58 = vmul.f32 %v569_v53, %v553_v38  ;;  %v1271_v0 = vpack.c.bf16 %v9093_v61, %v9091_v60 }
 0x1c6   : > { %7258 = vmatmul.mubr.bf16.vlgmr.msra.gmra.mrb[0].mxu1 %v1268_v52  ;;  %14349 = vst [vmem:[#allocation28_spill] sm:$0xff] %v9091_v60  ;;  %14350 = vst [vmem:[#allocation29_spill] sm:$0xff] %v9093_v61  ;;  %v581_v1 = vrot.slane %v549_v59, %v556_v29  ;;  %v551_v2 = vcombine.high %v547_v56, %v547_v56  ;;  %v9099_v3 = vmul.f32 %v577_v63, %v552_v37 }
 0x1c7   : > { %7261 = vmatprep.mubr.bf16.mxu1 %v1269_v55  ;;  %14347 = vst [vmem:[#allocation26_spill] sm:$0xff] %v9087_v57  ;;  %14348 = vst [vmem:[#allocation27_spill] sm:$0xff] %v9089_v58  ;;  %v1270_v62 = vpack.c.bf16 %v9089_v58, %v9087_v57  ;;  %v9101_v4 = vmul.f32 %v577_v63, %v553_v38  ;;  %v9153_v35 = vadd.s32 88, %v9065_v23  ;;  %v9156_v36 = vadd.s32 96, %v9065_v23 }
 0x1c8   : > { %14351 = vst [vmem:[#allocation30_spill] sm:$0xff] %v9099_v3  ;;  %v9103_v5 = vmul.f32 %v581_v1, %v552_v37  ;;  %v9105_v6 = vmul.f32 %v581_v1, %v553_v38  ;;  %v585_v8 = vrot.slane %v551_v2, %v556_v29  ;;  %v9135_v29 = vadd.s32 40, %v9065_v23  ;;  %14364 = vst [vmem:[#allocation43_spill] sm:$0xff] %v9144_v32 }
 0x1c9   : > { %14352 = vst [vmem:[#allocation31_spill] sm:$0xff] %v9101_v4  ;;  %v1272_v7 = vpack.c.bf16 %v9101_v4, %v9099_v3  ;;  %14366 = vst [vmem:[#allocation45_spill] sm:$0xff] %v9150_v34  ;;  %v629_v39 = vshra.s32 %v9125_v25, 2  ;;  %v630_v40 = vshra.s32 %v9128_v26, 2  ;;  %v631_v41 = vshra.s32 %v9131_v27, 2 }
 0x1ca   : > { %14353 = vst [vmem:[#allocation32_spill] sm:$0xff] %v9103_v5  ;;  %14354 = vst [vmem:[#allocation33_spill] sm:$0xff] %v9105_v6  ;;  %v1273_v9 = vpack.c.bf16 %v9105_v6, %v9103_v5  ;;  %v9111_v10 = vmul.f32 %v585_v8, %v552_v37  ;;  %v9113_v11 = vmul.f32 %v585_v8, %v553_v38  ;;  %v9159_v37 = vadd.s32 104, %v9065_v23 }
 0x1cb   : > { %14361 = vst [vmem:[#allocation40_spill] sm:$0xff] %v9135_v29  ;;  %14367 = vst [vmem:[#allocation46_spill] sm:$0xff] %v9153_v35  ;;  %v9161_v38 = vand.u32 3, %v627_v24  ;;  %v9166_v42 = vand.u32 3, %v628_v28  ;;  %v632_v43 = vshra.s32 %v9135_v29, 2  ;;  %v633_v48 = vshra.s32 %v9138_v30, 2 }
 0x1cc   : > { %14355 = vst [vmem:[#allocation34_spill] sm:$0xff] %v9111_v10  ;;  %14356 = vst [vmem:[#allocation35_spill] sm:$0xff] %v9113_v11  ;;  %v1274_v12 = vpack.c.bf16 %v9113_v11, %v9111_v10  ;;  %v634_v51 = vshra.s32 %v9141_v31, 2  ;;  %v635_v52 = vshra.s32 %v9144_v32, 2  ;;  %v636_v53 = vshra.s32 %v9147_v33, 2 }
 0x1cd   : > { %14368 = vst [vmem:[#allocation47_spill] sm:$0xff] %v9156_v36  ;;  %14369 = vst [vmem:[#allocation48_spill] sm:$0xff] %v9159_v37  ;;  %v637_v54 = vshra.s32 %v9150_v34, 2  ;;  %v638_v55 = vshra.s32 %v9153_v35, 2  ;;  %v639_v56 = vshra.s32 %v9156_v36, 2  ;;  %v640_v59 = vshra.s32 %v9159_v37, 2 }
 0x1ce   : > { %7262 = vmatmul.mubr.bf16.gmra.mrb[4].mxu1 %v1270_v62  ;;  %14370 = vst [vmem:[#allocation49_spill] sm:$0xff] %v9161_v38  ;;  %14371 = vst [vmem:[#allocation50_spill] sm:$0xff] %v9166_v42  ;;  %v9178_v62 = vadd.s32 112, %v9065_v23  ;;  %v9181_v63 = vadd.s32 120, %v9065_v23  ;;  %v9186_v1 = vand.u32 3, %v629_v39  ;;  %v9188_v2 = vand.u32 3, %v630_v40 }
 0x1cf   : > { %7265 = vmatprep.mubr.bf16.mxu1 %v1271_v0  ;;  %v9184_v0 = vadd.s32 4294967295, %v9161_v38  ;;  %v9193_v8 = vadd.s32 4294967295, %v9166_v42  ;;  %v9199_v13 = vand.u32 3, %v634_v51  ;;  %v9201_v14 = vand.u32 3, %v635_v52 }
 0x1d0   : > { %14372 = vst [vmem:[#allocation51_spill] sm:$0xff] %v9178_v62  ;;  %14373 = vst [vmem:[#allocation52_spill] sm:$0xff] %v9181_v63  ;;  %v9203_v15 = vand.u32 3, %v636_v53  ;;  %v9205_v16 = vand.u32 3, %v637_v54  ;;  %v9207_v17 = vand.u32 3, %v638_v55  ;;  %v9209_v18 = vand.u32 3, %v639_v56 }
 0x1d1   : > { %14374 = vst [vmem:[#allocation53_spill] sm:$0xff] %v9186_v1  ;;  %14375 = vst [vmem:[#allocation54_spill] sm:$0xff] %v9188_v2  ;;  %v9211_v19 = vand.u32 3, %v640_v59  ;;  %v641_v20 = vshra.s32 %v9178_v62, 2  ;;  %v642_v24 = vshra.s32 %v9181_v63, 2  ;;  %v9216_v28 = vadd.s32 4294967295, %v9186_v1 }
 0x1d2   : > { %14379 = vst [vmem:[#allocation58_spill] sm:$0xff] %v9199_v13  ;;  %14380 = vst [vmem:[#allocation59_spill] sm:$0xff] %v9201_v14  ;;  %v9219_v39 = vadd.s32 4294967295, %v9188_v2  ;;  %v9237_v52 = vadd.s32 4294967295, %v9199_v13  ;;  %v9241_v54 = vadd.s32 4294967295, %v9201_v14  ;;  %v9244_v55 = vadd.s32 4294967295, %v9203_v15 }
 0x1d3   : > { %14381 = vst [vmem:[#allocation60_spill] sm:$0xff] %v9203_v15  ;;  %14382 = vst [vmem:[#allocation61_spill] sm:$0xff] %v9205_v16  ;;  %v9247_v56 = vadd.s32 4294967295, %v9205_v16  ;;  %v9250_v59 = vadd.s32 4294967295, %v9207_v17  ;;  %v9253_v10 = vadd.s32 4294967295, %v9209_v18  ;;  %v9256_v6 = vadd.s32 4294967295, %v9211_v19 }
 0x1d4   : > { %14383 = vst [vmem:[#allocation62_spill] sm:$0xff] %v9207_v17  ;;  %14384 = vst [vmem:[#allocation63_spill] sm:$0xff] %v9209_v18  ;;  %v9258_v53 = vand.u32 3, %v641_v20  ;;  %v9260_v5 = vand.u32 3, %v642_v24  ;;  %v14388_v61 = vand.u32 3, %v9065_v23  ;;  %v14390_v24 = vand.u32 3, %v9121_v22 }
 0x1d5   : > { %14385 = vst [vmem:[#allocation64_spill] sm:$0xff] %v9211_v19  ;;  %v14393_v19 = vand.u32 3, %v9125_v25  ;;  %v14395_v44 = vand.u32 3, %v9128_v26  ;;  %vm691_vm3 = vcmp.ge.s32.totalorder %v9184_v0, 0  ;;  %vm707_vm4 = vcmp.lt.s32.totalorder %v9184_v0, 4 }
 0x1d6   : > { %7266 = vmatmul.mubr.bf16.gmra.mrb[8].mxu1 %v1272_v7  ;;  %v9190_v7 = vand.u32 3, %v631_v41  ;;  %14386 = vst [vmem:[#allocation65_spill] sm:$0xff] %v9258_v53  ;;  %14387 = vst [vmem:[#allocation66_spill] sm:$0xff] %v9260_v5  ;;  %v9267_v60 = vadd.s32 4294967295, %v14388_v61  ;;  %v9274_v49 = vadd.s32 4294967295, %v14390_v24  ;;  %v9283_v47 = vadd.s32 4294967295, %v9258_v53 }
 0x1d7   : > { %7269 = vmatprep.mubr.bf16.mxu1 %v1273_v9  ;;  %v9195_v9 = vand.u32 3, %v632_v43  ;;  %v9228_v43 = vld [vmem:[%s13492_s4] ss:$0 sm:$0xff]  ;;  %v9286_v24 = vadd.s32 4294967295, %v9260_v5  ;;  %v9296_v18 = vadd.s32 4294967295, %v14395_v44  ;;  %v14398_v53 = vand.u32 3, %v9131_v27  ;;  %vm9493_vm15 = vmand %vm691_vm3, %vm707_vm4 }
 0x1d8   : > { %14376 = vst [vmem:[#allocation55_spill] sm:$0xff] %v9190_v7  ;;  %v9222_v40 = vadd.s32 4294967295, %v9190_v7  ;;  %14389 = vst [vmem:[#allocation67_spill] sm:$0xff] %v9267_v60  ;;  %v14400_v5 = vand.u32 3, %v9135_v29  ;;  %v14405_v44 = vand.u32 3, %v9141_v31  ;;  %vm692_vm5 = vcmp.ge.s32.totalorder %v9193_v8, 0 }
 0x1d9   : > { %14377 = vst [vmem:[#allocation56_spill] sm:$0xff] %v9195_v9  ;;  %14391 = vst [vmem:[#allocation68_spill] sm:$0xff] %v9274_v49  ;;  %v9302_v17 = vadd.s32 4294967295, %v14398_v53  ;;  %vm708_vm6 = vcmp.lt.s32.totalorder %v9193_v8, 4  ;;  %vm693_vm7 = vcmp.ge.s32.totalorder %v9216_v28, 0  ;;  %vm709_vm8 = vcmp.lt.s32.totalorder %v9216_v28, 4 }
 0x1da   : > { %14396 = vst [vmem:[#allocation71_spill] sm:$0xff] %v9296_v18  ;;  %vm694_vm9 = vcmp.ge.s32.totalorder %v9219_v39, 0  ;;  %vm710_vm10 = vcmp.lt.s32.totalorder %v9219_v39, 4  ;;  %vm695_vm11 = vcmp.ge.s32.totalorder %v9222_v40, 0  ;;  %vm711_vm12 = vcmp.lt.s32.totalorder %v9222_v40, 4  ;;  %vm9509_vm3 = vmand %vm692_vm5, %vm708_vm6 }
 0x1db   : > { %14399 = vst [vmem:[#allocation73_spill] sm:$0xff] %v9302_v17  ;;  %vm714_vm14 = vcmp.lt.s32.totalorder %v9237_v52, 4  ;;  %v14443_v0 = vmov 0  ;;  %vm715_vm0 = vcmp.lt.s32.totalorder %v9241_v54, 4  ;;  %vm9526_vm5 = vmand %vm693_vm7, %vm709_vm8  ;;  %v14448_v8 = vmov 0 }
 0x1dc   : > { %v14444_v0 = vsel %vm9509_vm3, 4294967295, %v14443_v0  ;;  %v14449_v8 = vsel %vm9526_vm5, 4294967295, %v14448_v8  ;;  %vm9541_vm7 = vmand %vm694_vm9, %vm710_vm10  ;;  %v14452_v28 = vmov 0  ;;  %v14457_v39 = vmov 0 }
 0x1dd   : > { %14445 = vst [vmem:[#allocation108_spill] sm:$0xff] %v14444_v0  ;;  %14450 = vst [vmem:[#allocation111_spill] sm:$0xff] %v14449_v8  ;;  %v14453_v28 = vsel %vm9541_vm7, 4294967295, %v14452_v28 }
 0x1de   : > { %7270 = vmatmul.mubr.bf16.gmra.mrb[12].mxu1 %v1274_v12  ;;  %v9197_v12 = vand.u32 3, %v633_v48  ;;  %v9231_v48 = vadd.s32 4294967295, %v9195_v9  ;;  %14454 = vst [vmem:[#allocation113_spill] sm:$0xff] %v14453_v28  ;;  %vm9559_vm8 = vmand %vm695_vm11, %vm711_vm12 }
 0x1df   : > { %v14458_v39 = vsel %vm9559_vm8, 4294967295, %v14457_v39  ;;  %vm13604_vm11 = vmpackc.low %vm9509_vm3, %vm9493_vm15 }
 0x1e0   : > { %14378 = vst [vmem:[#allocation57_spill] sm:$0xff] %v9197_v12  ;;  %v9234_v51 = vadd.s32 4294967295, %v9197_v12  ;;  %14459 = vst [vmem:[#allocation116_spill] sm:$0xff] %v14458_v39  ;;  %vm14461_vm9 = vcmp.lt.s32.totalorder %v9231_v48, 4  ;;  %vm14462_vm10 = vcmp.ge.s32.totalorder %v9231_v48, 0 }
 0x1e1   : > { %vm9574_vm6 = vmand %vm14462_vm10, %vm14461_vm9  ;;  %vm14519_vm9 = vcmp.ge.s32.totalorder %v9247_v56, 0 }
 0x1e2   : > { %vm13614_vm10 = vmpackc.low %vm9541_vm7, %vm9526_vm5 }
 0x1e3   : > { %vm13613_vm4 = vmpackc.low %vm9574_vm6, %vm9559_vm8 }
 0x299   : > { %v7259_v41 = vpop.f32.mrb[0].mxu1 }
 0x29a   : > { %v1389_v11 = vadd.f32 %v7259_v41, %v9228_v43  ;;  %v1380_v3 = vpop.f32.mrb[1].mxu1 }
 0x29b   : > { %v1381_v20 = vadd.f32 %v9228_v43, %v1380_v3  ;;  %v7260_v50 = vpop.f32.mrb[2].mxu1 }
 0x29c   : > { %v1445_v46 = vmul.f32 0.2, %v1389_v11  ;;  %v1392_v45 = vadd.f32 %v7260_v50, %v9228_v43  ;;  %v1383_v61 = vpop.f32.mrb[3].mxu1  ;;  %v9292_v50 = vadd.s32 4294967295, %v14393_v19  ;;  %v14403_v19 = vand.u32 3, %v9138_v30 }
 0x29d   : > { %v1443_v57 = vmul.f32 0.2, %v1381_v20  ;;  %v1384_v3 = vadd.f32 %v9228_v43, %v1383_v61 }
 0x29e   : > { %v9288_v41 = vmax.f32 %v1389_v11, %v1445_v46  ;;  %v1446_v58 = vmul.f32 0.2, %v1392_v45  ;;  %14394 = vst [vmem:[#allocation70_spill] sm:$0xff] %v9292_v50  ;;  %v9306_v46 = vadd.s32 4294967295, %v14400_v5  ;;  %v9313_v15 = vadd.s32 4294967295, %v14403_v19 }
 0x29f   : > { %v9298_v4 = vmax.f32 %v1381_v20, %v1443_v57  ;;  %v1444_v61 = vmul.f32 0.2, %v1384_v3  ;;  %v9317_v57 = vadd.s32 4294967295, %v14405_v44 }
 0x2a0   : > { %14392 = vst [vmem:[#allocation69_spill] sm:$0xff] %v9288_v41  ;;  %14401 = vst [vmem:[#allocation74_spill] sm:$0xff] %v9306_v46  ;;  %v1477_v11 = vrot.slane %v9288_v41, 3  ;;  %v9309_v16 = vmax.f32 %v1392_v45, %v1446_v58  ;;  %v1550_v19 = vrot.slane %v9288_v41, 4 }
 0x2a1   : > { %14397 = vst [vmem:[#allocation72_spill] sm:$0xff] %v9298_v4  ;;  %14404 = vst [vmem:[#allocation76_spill] sm:$0xff] %v9313_v15  ;;  %v9321_v14 = vmax.f32 %v1384_v3, %v1444_v61  ;;  %v7263_v5 = vpop.f32.mrb[4].mxu1  ;;  %v14410_v2 = vrot.slane %v9298_v4, 4  ;;  %v14418_v26 = vrot.slane %v9298_v4, 3 }
 0x2a2   : > { %14402 = vst [vmem:[#allocation75_spill] sm:$0xff] %v9309_v16  ;;  %14406 = vst [vmem:[#allocation77_spill] sm:$0xff] %v9317_v57  ;;  %v1396_v12 = vpop.f32.mrb[5].mxu1  ;;  %v1405_v44 = vadd.f32 %v7263_v5, %v9228_v43  ;;  %v1551_v61 = vrot.slane %v9309_v16, 4  ;;  %v14408_v31 = vrot.slane %v9309_v16, 3 }
 0x2a3   : > { %14407 = vst [vmem:[#allocation78_spill] sm:$0xff] %v9321_v14  ;;  %v1397_v20 = vadd.f32 %v9228_v43, %v1396_v12  ;;  %v7264_v7 = vpop.f32.mrb[6].mxu1  ;;  %v1549_v3 = vrot.slane %v9321_v14, 4  ;;  %v1476_v58 = vrot.slane %v9321_v14, 3 }
 0x2a4   : > { %v1408_v13 = vadd.f32 %v7264_v7, %v9228_v43  ;;  %v1399_v45 = vpop.f32.mrb[7].mxu1  ;;  %v9339_v9 = vsel %vm13615_vm1, %v1477_v11, %v14408_v31  ;;  %v1449_v5 = vmul.f32 0.2, %v1405_v44  ;;  %v9350_v1 = vsel %vm13603_vm2, %v1550_v19, %v1551_v61 }
 0x2a5   : > { %14409 = vst [vmem:[#allocation79_spill] sm:$0xff] %v9339_v9  ;;  %v1447_v12 = vmul.f32 0.2, %v1397_v20  ;;  %v1400_v30 = vadd.f32 %v9228_v43, %v1399_v45  ;;  %v9346_v53 = vsel %vm13603_vm2, %v14410_v2, %v1549_v3  ;;  %14412 = vst [vmem:[#allocation81_spill] sm:$0xff] %v9350_v1  ;;  %v9354_v42 = vsel %vm13603_vm2, %v1549_v3, %v1550_v19 }
 0x2a6   : > { %14411 = vst [vmem:[#allocation80_spill] sm:$0xff] %v9346_v53  ;;  %v1450_v7 = vmul.f32 0.2, %v1408_v13  ;;  %14413 = vst [vmem:[#allocation82_spill] sm:$0xff] %v9354_v42  ;;  %v9358_v31 = vsel %vm13615_vm1, %v1476_v58, %v1477_v11  ;;  %v9360_v45 = vmax.f32 %v1405_v44, %v1449_v5  ;;  %v9372_v19 = vsel %vm13615_vm1, %v14418_v26, %v1476_v58 }
 0x2a7   : > { %14414 = vst [vmem:[#allocation83_spill] sm:$0xff] %v9358_v31  ;;  %v9362_v38 = vmax.f32 %v1397_v20, %v1447_v12  ;;  %v1448_v29 = vmul.f32 0.2, %v1400_v30  ;;  %14419 = vst [vmem:[#allocation87_spill] sm:$0xff] %v9372_v19 }
 0x2a8   : > { %14415 = vst [vmem:[#allocation84_spill] sm:$0xff] %v9360_v45  ;;  %v9366_v27 = vmax.f32 %v1408_v13, %v1450_v7  ;;  %v1554_v12 = vrot.slane %v9360_v45, 4  ;;  %v1481_v11 = vrot.slane %v9360_v45, 3 }
 0x2a9   : > { %14416 = vst [vmem:[#allocation85_spill] sm:$0xff] %v9362_v38  ;;  %v9377_v3 = vmax.f32 %v1400_v30, %v1448_v29  ;;  %v7267_v20 = vpop.f32.mrb[8].mxu1  ;;  %v1552_v5 = vrot.slane %v9362_v38, 4  ;;  %v1479_v58 = vrot.slane %v9362_v38, 3 }
 0x2aa   : > { %14417 = vst [vmem:[#allocation86_spill] sm:$0xff] %v9366_v27  ;;  %v1421_v7 = vadd.f32 %v7267_v20, %v9228_v43  ;;  %v1412_v2 = vpop.f32.mrb[9].mxu1  ;;  %v1555_v26 = vrot.slane %v9366_v27, 4 }
 0x2ab   : > { %14420 = vst [vmem:[#allocation88_spill] sm:$0xff] %v9377_v3  ;;  %v1413_v44 = vadd.f32 %v9228_v43, %v1412_v2  ;;  %v7268_v29 = vpop.f32.mrb[10].mxu1  ;;  %v1553_v30 = vrot.slane %v9377_v3, 4  ;;  %v9392_v13 = vsel %vm13603_vm2, %v1551_v61, %v1552_v5  ;;  %v1480_v20 = vrot.slane %v9377_v3, 3 }
 0x2ac   : > { %14421 = vst [vmem:[#allocation89_spill] sm:$0xff] %v9392_v13  ;;  %v1453_v31 = vmul.f32 0.2, %v1421_v7  ;;  %v1424_v25 = vadd.f32 %v7268_v29, %v9228_v43  ;;  %v1415_v22 = vpop.f32.mrb[11].mxu1  ;;  %v9402_v57 = vsel %vm13603_vm2, %v1554_v12, %v1555_v26 }
 0x2ad   : > { %14422 = vst [vmem:[#allocation90_spill] sm:$0xff] %v9402_v57  ;;  %v1451_v15 = vmul.f32 0.2, %v1413_v44  ;;  %v1416_v61 = vadd.f32 %v9228_v43, %v1415_v22  ;;  %v9409_v29 = vsel %vm13603_vm2, %v1552_v5, %v1553_v30  ;;  %v9413_v63 = vsel %vm13603_vm2, %v1553_v30, %v1554_v12 }
 0x2ae   : > { %14423 = vst [vmem:[#allocation91_spill] sm:$0xff] %v9409_v29  ;;  %14424 = vst [vmem:[#allocation92_spill] sm:$0xff] %v9413_v63  ;;  %v9415_v2 = vmax.f32 %v1421_v7, %v1453_v31  ;;  %v1454_v62 = vmul.f32 0.2, %v1424_v25  ;;  %v9429_v31 = vsel %vm13615_vm1, %v1479_v58, %v1480_v20  ;;  %v14428_v12 = vrot.slane %v9309_v16, 3 }
 0x2af   : > { %v9423_v36 = vmax.f32 %v1413_v44, %v1451_v15  ;;  %v1452_v5 = vmul.f32 0.2, %v1416_v61  ;;  %14427 = vst [vmem:[#allocation95_spill] sm:$0xff] %v9429_v31 }
 0x2b0   : > { %14425 = vst [vmem:[#allocation93_spill] sm:$0xff] %v9415_v2  ;;  %v9435_v7 = vsel %vm13615_vm1, %v14428_v12, %v1479_v58  ;;  %v9437_v30 = vmax.f32 %v1424_v25, %v1454_v62  ;;  %v1558_v15 = vrot.slane %v9415_v2, 4  ;;  %v1482_v25 = vrot.slane %v9366_v27, 3 }
 0x2b1   : > { %14426 = vst [vmem:[#allocation94_spill] sm:$0xff] %v9423_v36  ;;  %14429 = vst [vmem:[#allocation96_spill] sm:$0xff] %v9435_v7  ;;  %v9446_v22 = vmax.f32 %v1416_v61, %v1452_v5  ;;  %v7271_v46 = vpop.f32.mrb[12].mxu1  ;;  %v1556_v58 = vrot.slane %v9423_v36, 4  ;;  %v9452_v62 = vsel %vm13615_vm1, %v1480_v20, %v1481_v11  ;;  %v1483_v44 = vrot.slane %v9423_v36, 3 }
 0x2b2   : > { %14430 = vst [vmem:[#allocation97_spill] sm:$0xff] %v9437_v30  ;;  %14432 = vst [vmem:[#allocation99_spill] sm:$0xff] %v9452_v62  ;;  %v1437_v12 = vadd.f32 %v7271_v46, %v9228_v43  ;;  %v1428_v35 = vpop.f32.mrb[13].mxu1  ;;  %v1559_v17 = vrot.slane %v9437_v30, 4  ;;  %v1485_v37 = vrot.slane %v9415_v2, 3  ;;  %v9466_v20 = vsel %vm13615_vm1, %v1481_v11, %v1482_v25 }
 0x2b3   : > { %14431 = vst [vmem:[#allocation98_spill] sm:$0xff] %v9446_v22  ;;  %v1429_v61 = vadd.f32 %v9228_v43, %v1428_v35  ;;  %v7272_v5 = vpop.f32.mrb[14].mxu1  ;;  %v1557_v7 = vrot.slane %v9446_v22, 4  ;;  %v9462_v31 = vsel %vm13603_vm2, %v1555_v26, %v1556_v58  ;;  %14434 = vst [vmem:[#allocation101_spill] sm:$0xff] %v9466_v20 }
 0x2b4   : > { %14433 = vst [vmem:[#allocation100_spill] sm:$0xff] %v9462_v31  ;;  %v1457_v46 = vmul.f32 0.2, %v1437_v12  ;;  %v1440_v9 = vadd.f32 %v7272_v5, %v9228_v43  ;;  %v1431_v34 = vpop.f32.mrb[15].mxu1  ;;  %v9471_v33 = vsel %vm13603_vm2, %v1558_v15, %v1559_v17 }
 0x2b5   : > { %14435 = vst [vmem:[#allocation102_spill] sm:$0xff] %v9471_v33  ;;  %v1455_v18 = vmul.f32 0.2, %v1429_v61  ;;  %v1432_v50 = vadd.f32 %v9228_v43, %v1431_v34  ;;  %v9480_v11 = vsel %vm13603_vm2, %v1556_v58, %v1557_v7  ;;  %v9484_v26 = vsel %vm13603_vm2, %v1557_v7, %v1558_v15 }
 0x2b6   : > { %14436 = vst [vmem:[#allocation103_spill] sm:$0xff] %v9480_v11  ;;  %14437 = vst [vmem:[#allocation104_spill] sm:$0xff] %v9484_v26  ;;  %v9487_v5 = vmax.f32 %v1437_v12, %v1457_v46  ;;  %v1458_v35 = vmul.f32 0.2, %v1440_v9  ;;  %v14439_v34 = vmov 0  ;;  %v1484_v12 = vrot.slane %v9446_v22, 3 }
 0x2b7   : > { %v14440_v34 = vsel %vm9493_vm15, 4294967295, %v14439_v34  ;;  %v9503_v15 = vmax.f32 %v1429_v61, %v1455_v18  ;;  %v1456_v58 = vmul.f32 0.2, %v1432_v50  ;;  %v9518_v46 = vsel %vm13615_vm1, %v1482_v25, %v1483_v44 }
 0x2b8   : > { %14438 = vst [vmem:[#allocation105_spill] sm:$0xff] %v9487_v5  ;;  %14441 = vst [vmem:[#allocation106_spill] sm:$0xff] %v14440_v34  ;;  %v9520_v18 = vmax.f32 %v1440_v9, %v1458_v35  ;;  %v1562_v61 = vrot.slane %v9487_v5, 4  ;;  %v1486_v7 = vrot.slane %v9437_v30, 3  ;;  %v1489_v25 = vrot.slane %v9487_v5, 3 }
 0x2b9   : > { %14442 = vst [vmem:[#allocation107_spill] sm:$0xff] %v9503_v15  ;;  %14446 = vst [vmem:[#allocation109_spill] sm:$0xff] %v9518_v46  ;;  %v9535_v9 = vmax.f32 %v1432_v50, %v1456_v58  ;;  %v1560_v35 = vrot.slane %v9503_v15, 4  ;;  %v9548_v43 = vsel %vm13615_vm1, %v1483_v44, %v1484_v12  ;;  %v9552_v20 = vsel %vm13615_vm1, %v1484_v12, %v1485_v37  ;;  %v14570_v46 = vld [vmem:[#allocation52_spill] sm:$0xff] }
 0x2ba   : > { %14447 = vst [vmem:[#allocation110_spill] sm:$0xff] %v9520_v18  ;;  %14455 = vst [vmem:[#allocation114_spill] sm:$0xff] %v9548_v43  ;;  %v1563_v50 = vrot.slane %v9520_v18, 4  ;;  %v1490_v58 = vrot.slane %v9520_v18, 3  ;;  %v9568_v62 = vsel %vm13615_vm1, %v1485_v37, %v1486_v7  ;;  %v14463_v12 = vmov 0 }
 0x2bb   : > { %14451 = vst [vmem:[#allocation112_spill] sm:$0xff] %v9535_v9  ;;  %14456 = vst [vmem:[#allocation115_spill] sm:$0xff] %v9552_v20  ;;  %v14464_v12 = vsel %vm9574_vm6, 4294967295, %v14463_v12  ;;  %v1561_v40 = vrot.slane %v9535_v9, 4  ;;  %v9581_v26 = vsel %vm13603_vm2, %v1559_v17, %v1560_v35  ;;  %v1487_v37 = vrot.slane %v9503_v15, 3 }
 0x2bc   : > { %14460 = vst [vmem:[#allocation117_spill] sm:$0xff] %v9568_v62  ;;  %14465 = vst [vmem:[#allocation118_spill] sm:$0xff] %v14464_v12  ;;  %v14467_v43 = vrot.slane %v9298_v4, 4  ;;  %v9600_v17 = vsel %vm13603_vm2, %v1562_v61, %v1563_v50  ;;  %v14470_v44 = vrot.slane %v9298_v4, 3  ;;  %v14582_v34 = vmov 0 }
 0x2bd   : > { %14466 = vst [vmem:[#allocation119_spill] sm:$0xff] %v9581_v26  ;;  %14469 = vst [vmem:[#allocation121_spill] sm:$0xff] %v9600_v17 }
 0x2be   : > { %v9590_v48 = vsel %vm13603_vm2, %v1563_v50, %v14467_v43  ;;  %v9606_v62 = vsel %vm13615_vm1, %v1490_v58, %v14470_v44  ;;  %v1488_v43 = vrot.slane %v9535_v9, 3  ;;  %v9619_v50 = vsel %vm13603_vm2, %v1560_v35, %v1561_v40 }
 0x2bf   : > { %14468 = vst [vmem:[#allocation120_spill] sm:$0xff] %v9590_v48  ;;  %14471 = vst [vmem:[#allocation122_spill] sm:$0xff] %v9606_v62  ;;  %v6258_v20 = vpack.c.bf16 %v9346_v53, %v9590_v48  ;;  %v9623_v44 = vsel %vm13603_vm2, %v1561_v40, %v1562_v61  ;;  %v8332_v53 = vld [vmem:[#allocation10 + $0x8] sm:$0xff]   ;;  %v9643_v48 = vsel %vm13615_vm1, %v1486_v7, %v1487_v37  ;;  %vm14480_vm2 = vcmp.ge.s32.totalorder %v9234_v51, 0 }
 0x2c0   : > { %14472 = vst [vmem:[#allocation123_spill] sm:$0xff] %v9619_v50  ;;  %14473 = vst [vmem:[#allocation124_spill] sm:$0xff] %v9623_v44  ;;  %v9639_v40 = vsel %vm13615_vm1, %v1487_v37, %v1488_v43  ;;  %v9656_v35 = vsel %vm13615_vm1, %v1489_v25, %v1490_v58  ;;  %v9660_v7 = vsel %vm13615_vm1, %v1488_v43, %v1489_v25  ;;  %v14481_v25 = vmov 0 }
 0x2c1   : > { %14474 = vst [vmem:[#allocation125_spill] sm:$0xff] %v9639_v40  ;;  %14475 = vst [vmem:[#allocation126_spill] sm:$0xff] %v9643_v48  ;;  %7289 = vmatprep.mubr.msk.bf16.mxu0 %vm13604_vm11, %v6258_v20  ;;  %v14478_v20 = vpack.c.bf16 %v9350_v1, %v9354_v42  ;;  %vm14479_vm11 = vcmp.lt.s32.totalorder %v9234_v51, 4  ;;  %v14484_v43 = vrot.slane %v9288_v41, 5  ;;  %v14485_v61 = vrot.slane %v9321_v14, 5 }
 0x2c2   : > { %14476 = vst [vmem:[#allocation127_spill] sm:$0xff] %v9656_v35  ;;  %14477 = vst [vmem:[#allocation128_spill] sm:$0xff] %v9660_v7  ;;  %v14488_v1 = vrot.slane %v9298_v4, 5  ;;  %v14490_v42 = vrot.slane %v9309_v16, 5 }
 0x2c3   : > { %7290 = vmatmul.mubr.msk.bf16.vlgmr.msra.gmra.mrb[4].mxu0 %vm13614_vm10, %v14478_v20  ;;  %vm9676_vm12 = vmand %vm14480_vm2, %vm14479_vm11  ;;  %v9688_v37 = vsel %vm13646_vm13, %v14485_v61, %v14484_v43  ;;  %v14487_v20 = vmov %v14485_v61  ;;  %v14491_v58 = vmov %v14484_v43  ;;  %v14493_v61 = vpack.c.bf16 %v9409_v29, %v9392_v13 }
 0x2c4   : > { %v14482_v25 = vsel %vm9676_vm12, 4294967295, %v14481_v25  ;;  %14486 = vst [vmem:[#allocation130_spill] sm:$0xff] %v9688_v37  ;;  %v9696_v51 = vsel %vm13646_vm13, %v14488_v1, %v14487_v20  ;;  %v9704_v35 = vsel %vm13646_vm13, %v14491_v58, %v14490_v42  ;;  %7306 = vmatpush3.bf16.msra.mxu0 %v9117_v21  ;;  %vm14494_vm2 = vcmp.ge.s32.totalorder %v9237_v52, 0  ;;  %v8333_v52 = vld [vmem:[#allocation10 + $0x10] sm:$0xff]  }
 0x2c5   : > { %14483 = vst [vmem:[#allocation129_spill] sm:$0xff] %v14482_v25  ;;  %14489 = vst [vmem:[#allocation131_spill] sm:$0xff] %v9696_v51  ;;  %7293 = vmatprep.mubr.msk.bf16.mxu0 %vm13613_vm4, %v14493_v61  ;;  %v14495_v1 = vmov 0  ;;  %v14498_v42 = vrot.slane %v9298_v4, 5  ;;  %v14499_v21 = vrot.slane %v9520_v18, 5  ;;  %v1916_v20 = vrot.slane %v9362_v38, 5  ;;  %7307 = vmatprep.subr.bf16.mxu0 %v8332_v53 }
 0x2c6   : > { %14492 = vst [vmem:[#allocation132_spill] sm:$0xff] %v9704_v35  ;;  %vm9719_vm11 = vmand %vm14494_vm2, %vm714_vm14  ;;  %v1917_v61 = vrot.slane %v9377_v3, 5  ;;  %vm14501_vm14 = vcmp.ge.s32.totalorder %v9241_v54, 0  ;;  %v14502_v13 = vmov 0  ;;  %v1919_v43 = vrot.slane %v9366_v27, 5 }
 0x2c7   : > { %v14496_v1 = vsel %vm9719_vm11, 4294967295, %v14495_v1  ;;  %v9729_v58 = vsel %vm13646_vm13, %v14499_v21, %v14498_v42  ;;  %vm9739_vm2 = vmand %vm14501_vm14, %vm715_vm0  ;;  %v1918_v21 = vrot.slane %v9360_v45, 5  ;;  %v1920_v37 = vrot.slane %v9423_v36, 5 }
 0x2c8   : > { %14497 = vst [vmem:[#allocation133_spill] sm:$0xff] %v14496_v1  ;;  %14500 = vst [vmem:[#allocation134_spill] sm:$0xff] %v9729_v58  ;;  %v14503_v13 = vsel %vm9739_vm2, 4294967295, %v14502_v13  ;;  %vm14505_vm4 = vcmp.lt.s32.totalorder %v9244_v55, 4  ;;  %vm14506_vm10 = vcmp.ge.s32.totalorder %v9244_v55, 0  ;;  %v14507_v29 = vmov 0  ;;  %7308 = vmatpush3.bf16.msra.mxu0 %v8332_v53 }
 0x2c9   : > { %14504 = vst [vmem:[#allocation135_spill] sm:$0xff] %v14503_v13  ;;  %vm9752_vm1 = vmand %vm14506_vm10, %vm14505_vm4  ;;  %v9759_v54 = vsel %vm13646_vm13, %v1916_v20, %v1917_v61  ;;  %v14511_v42 = vrot.slane %v9309_v16, 5  ;;  %v1921_v51 = vrot.slane %v9446_v22, 5  ;;  %v1922_v55 = vrot.slane %v9415_v2, 5  ;;  %7309 = vmatprep.subr.bf16.mxu0 %v8333_v52 }
 0x2ca   : > { %v14508_v29 = vsel %vm9752_vm1, 4294967295, %v14507_v29  ;;  %14510 = vst [vmem:[#allocation137_spill] sm:$0xff] %v9759_v54  ;;  %v9777_v48 = vsel %vm13646_vm13, %v1918_v21, %v1919_v43  ;;  %v1923_v53 = vrot.slane %v9437_v30, 5  ;;  %vm14518_vm0 = vcmp.lt.s32.totalorder %v9247_v56, 4 }
 0x2cb   : > { %14509 = vst [vmem:[#allocation136_spill] sm:$0xff] %v14508_v29  ;;  %v9765_v58 = vsel %vm13646_vm13, %v14511_v42, %v1916_v20  ;;  %14513 = vst [vmem:[#allocation139_spill] sm:$0xff] %v9777_v48  ;;  %v9781_v20 = vsel %vm13646_vm13, %v1917_v61, %v1918_v21  ;;  %v9793_v40 = vsel %vm13646_vm13, %v1920_v37, %v1921_v51  ;;  %v8334_v21 = vld [vmem:[#allocation10 + $0x18] sm:$0xff]   ;;  %v1926_v42 = vrot.slane %v9487_v5, 5  ;;  %v14585_v29 = vld [vmem:[#allocation77_spill] sm:$0xff] }
 0x2cc   : > { %14512 = vst [vmem:[#allocation138_spill] sm:$0xff] %v9765_v58  ;;  %14514 = vst [vmem:[#allocation140_spill] sm:$0xff] %v9781_v20  ;;  %v9797_v61 = vsel %vm13646_vm13, %v1919_v43, %v1920_v37  ;;  %v9809_v7 = vsel %vm13646_vm13, %v1921_v51, %v1922_v55  ;;  %v1924_v37 = vrot.slane %v9503_v15, 5  ;;  %v1925_v43 = vrot.slane %v9535_v9, 5  ;;  %7310 = vmatpush3.bf16.msra.mxu0 %v8333_v52  ;;  %v14548_v52 = vld [vmem:[#allocation70_spill] sm:$0xff] }
 0x2cd   : > { %14515 = vst [vmem:[#allocation141_spill] sm:$0xff] %v9793_v40  ;;  %14516 = vst [vmem:[#allocation142_spill] sm:$0xff] %v9797_v61  ;;  %v14520_v58 = vmov 0  ;;  %v9823_v35 = vsel %vm13646_vm13, %v1922_v55, %v1923_v53  ;;  %v2147_v51 = vrot.slane %v9298_v4, 7  ;;  %v2148_v40 = vrot.slane %v9321_v14, 7  ;;  %7311 = vmatprep.subr.bf16.mxu0 %v8334_v21 }
 0x2ce   : > { %14517 = vst [vmem:[#allocation143_spill] sm:$0xff] %v9809_v7  ;;  %vm9817_vm14 = vmand %vm14519_vm9, %vm14518_vm0  ;;  %v14524_v61 = vpack.c.bf16 %v9402_v57, %v9413_v63  ;;  %vm14526_vm0 = vcmp.lt.s32.totalorder %v9250_v59, 4  ;;  %vm14527_vm10 = vcmp.ge.s32.totalorder %v9250_v59, 0  ;;  %v14528_v56 = vmov 0  ;;  %v14558_v7 = vld [vmem:[#allocation44_spill] sm:$0xff] }
 0x2cf   : > { %v14521_v58 = vsel %vm9817_vm14, 4294967295, %v14520_v58  ;;  %14523 = vst [vmem:[#allocation145_spill] sm:$0xff] %v9823_v35  ;;  %vm14525_vm9 = vmpackc.low %vm9719_vm11, %vm9676_vm12  ;;  %v9848_v48 = vsel %vm13646_vm13, %v1924_v37, %v1925_v43  ;;  %v9852_v20 = vsel %vm13646_vm13, %v1923_v53, %v1924_v37  ;;  %v14533_v59 = vpack.c.bf16 %v9480_v11, %v9462_v31  ;;  %v14557_v35 = vld [vmem:[#allocation71_spill] sm:$0xff]  ;;  %v14568_v31 = vld [vmem:[#allocation48_spill] sm:$0xff] }
 0x2d0   : > { %14522 = vst [vmem:[#allocation144_spill] sm:$0xff] %v14521_v58  ;;  %7294 = vmatmul.mubr.msk.bf16.gmra.mrb[8].mxu0 %vm14525_vm9, %v14524_v61  ;;  %vm9840_vm4 = vmand %vm14527_vm10, %vm14526_vm0  ;;  %vm14535_vm9 = vcmp.lt.s32.totalorder %v9253_v10, 4  ;;  %vm14536_vm0 = vcmp.ge.s32.totalorder %v9253_v10, 0  ;;  %v14537_v55 = vmov 0  ;;  %v14540_v37 = vrot.slane %v9520_v18, 5  ;;  %v8335_v10 = vld [vmem:[#allocation10 + $0x20] sm:$0xff]  }
 0x2d1   : > { %v14529_v56 = vsel %vm9840_vm4, 4294967295, %v14528_v56  ;;  %14531 = vst [vmem:[#allocation147_spill] sm:$0xff] %v9848_v48  ;;  %14532 = vst [vmem:[#allocation148_spill] sm:$0xff] %v9852_v20  ;;  %v14545_v53 = vmov 0  ;;  %v14549_v48 = vrot.slane %v9288_v41, 7  ;;  %v14560_v54 = vrot.slane %v9309_v16, 7  ;;  %7312 = vmatpush3.bf16.msra.mxu0 %v8334_v21 }
 0x2d2   : > { %14530 = vst [vmem:[#allocation146_spill] sm:$0xff] %v14529_v56  ;;  %vm14534_vm10 = vmpackc.low %vm9752_vm1, %vm9739_vm2  ;;  %v9878_v61 = vsel %vm13646_vm13, %v1926_v42, %v14540_v37  ;;  %v2151_v37 = vrot.slane %v9362_v38, 7  ;;  %7313 = vmatprep.subr.bf16.mxu0 %v8335_v10  ;;  %v14572_v21 = vmov 0  ;;  %v14578_v63 = vrot.slane %v9309_v16, 7 }
 0x2d3   : > { %7297 = vmatprep.mubr.msk.bf16.mxu0 %vm14534_vm10, %v14533_v59  ;;  %vm9867_vm11 = vmand %vm14536_vm0, %vm14535_vm9  ;;  %14541 = vst [vmem:[#allocation150_spill] sm:$0xff] %v9878_v61  ;;  %v9882_v59 = vsel %vm13646_vm13, %v1925_v43, %v1926_v42  ;;  %vm14543_vm10 = vcmp.lt.s32.totalorder %v9256_v6, 4  ;;  %vm14544_vm9 = vcmp.ge.s32.totalorder %v9256_v6, 0  ;;  %vm14550_vm13 = vcmp.lt.s32.totalorder %v9065_v23, 1  ;;  %v14559_v61 = vld [vmem:[#allocation45_spill] sm:$0xff] }
 0x2d4   : > { %v14538_v55 = vsel %vm9867_vm11, 4294967295, %v14537_v55  ;;  %14542 = vst [vmem:[#allocation151_spill] sm:$0xff] %v9882_v59  ;;  %vm9888_vm0 = vmand %vm14544_vm9, %vm14543_vm10  ;;  %v9899_v42 = vsel %vm14550_vm13, %v2148_v40, %v14549_v48  ;;  %v14554_v6 = vrot.slane %v9520_v18, 7  ;;  %v14569_v59 = vld [vmem:[#allocation51_spill] sm:$0xff]  ;;  %v2153_v57 = vrot.slane %v9360_v45, 7 }
 0x2d5   : > { %14539 = vst [vmem:[#allocation149_spill] sm:$0xff] %v14538_v55  ;;  %v14546_v53 = vsel %vm9888_vm0, 4294967295, %v14545_v53  ;;  %14551 = vst [vmem:[#allocation153_spill] sm:$0xff] %v9899_v42  ;;  %v8336_v42 = vld [vmem:[#allocation10 + $0x28] sm:$0xff]   ;;  %v14586_v13 = vand.u32 3, %v9144_v32  ;;  %v14590_v18 = vand.u32 3, %v14559_v61  ;;  %7314 = vmatpush3.bf16.msra.mxu0 %v8335_v10 }
 0x2d6   : > { %14547 = vst [vmem:[#allocation152_spill] sm:$0xff] %v14546_v53  ;;  %vm14552_vm2 = vmmov %vm14550_vm13  ;;  %vm14602_vm9 = vcmp.lt.s32.totalorder %v9065_v23, 1  ;;  %v14614_v10 = vand.u32 3, %v14568_v31  ;;  %7315 = vmatprep.subr.bf16.mxu0 %v8336_v42  ;;  %v14616_v61 = vand.u32 3, %v14569_v59  ;;  %v14618_v32 = vand.u32 3, %v14570_v46  ;;  %v14625_v59 = vld [vmem:[#allocation37_spill] sm:$0xff] }
 0x2d7   : > { %v9903_v43 = vsel %vm14552_vm2, %v2147_v51, %v2148_v40  ;;  %vm14555_vm10 = vmmov %vm14552_vm2  ;;  %v14561_v40 = vmov %v14549_v48  ;;  %v9960_v48 = vsel %vm14552_vm2, %v14578_v63, %v2151_v37  ;;  %v9975_v1 = vadd.s32 4294967295, %v14586_v13 }
 0x2d8   : > { %14553 = vst [vmem:[#allocation154_spill] sm:$0xff] %v9903_v43  ;;  %v9909_v20 = vsel %vm14555_vm10, %v14554_v6, %v2147_v51  ;;  %vm14562_vm13 = vmmov %vm14552_vm2  ;;  %v14564_v51 = vld [vmem:[#allocation73_spill] sm:$0xff]  ;;  %v14565_v6 = vld [vmem:[#allocation46_spill] sm:$0xff]  ;;  %vm14571_vm10 = vcmp.ge.s32.totalorder %v9267_v60, 0  ;;  %v2154_v60 = vrot.slane %v9366_v27, 7  ;;  %v14588_v63 = vand.u32 3, %v14558_v7 }
 0x2d9   : > { %14556 = vst [vmem:[#allocation155_spill] sm:$0xff] %v9909_v20  ;;  %v9922_v11 = vsel %vm14562_vm13, %v14561_v40, %v14560_v54  ;;  %v2152_v20 = vrot.slane %v9377_v3, 7  ;;  %v14566_v54 = vld [vmem:[#allocation74_spill] sm:$0xff]  ;;  %v14567_v40 = vld [vmem:[#allocation47_spill] sm:$0xff]  ;;  %vm9947_vm1 = vmand %vm9493_vm15, %vm14571_vm10  ;;  %vm14580_vm10 = vcmp.lt.s32.totalorder %v9283_v47, 4  ;;  %vm14581_vm15 = vcmp.ge.s32.totalorder %v9283_v47, 0  ;;  %7316 = vmatpush3.bf16.msra.mxu0 %v8336_v42 }
 0x2da   : > { %14563 = vst [vmem:[#allocation156_spill] sm:$0xff] %v9922_v11  ;;  %v14573_v21 = vsel %vm9947_vm1, 4294967295, %v14572_v21  ;;  %vm14576_vm13 = vmmov %vm14552_vm2  ;;  %v9983_v25 = vadd.s32 4294967295, %v14590_v18  ;;  %v14592_v11 = vld [vmem:[#allocation104_spill] sm:$0xff]  ;;  %vm14595_vm2 = vcmp.lt.s32.totalorder %v9286_v24, 4  ;;  %v14597_v13 = vmov 0 }
 0x2db   : > { %14574 = vst [vmem:[#allocation157_spill] sm:$0xff] %v14573_v21  ;;  %v9954_v43 = vsel %vm14576_vm13, %v2151_v37, %v2152_v20  ;;  %14579 = vst [vmem:[#allocation159_spill] sm:$0xff] %v9960_v48  ;;  %v9979_v37 = vadd.s32 4294967295, %v14588_v63  ;;  %v14593_v62 = vpack.c.bf16 %v9471_v33, %v14592_v11  ;;  %v14600_v18 = vand.u32 3, %v14565_v6  ;;  %v14800_v33 = vld [vmem:[#allocation141_spill] sm:$0xff]  ;;  %v14803_v11 = vld [vmem:[#allocation148_spill] sm:$0xff] }
 0x2dc   : > { %14577 = vst [vmem:[#allocation158_spill] sm:$0xff] %v9954_v43  ;;  %vm9968_vm12 = vmand %vm14581_vm15, %vm14580_vm10  ;;  %vm14596_vm10 = vcmp.ge.s32.totalorder %v9286_v24, 0  ;;  %v10009_v47 = vsel %vm14602_vm9, %v2153_v57, %v2154_v60  ;;  %v14606_v24 = vpack.c.bf16 %v9619_v50, %v9581_v26  ;;  %v10038_v43 = vadd.s32 4294967295, %v14614_v10 }
 0x2dd   : > { %v14583_v34 = vsel %vm9968_vm12, 4294967295, %v14582_v34  ;;  %14587 = vst [vmem:[#allocation161_spill] sm:$0xff] %v9975_v1  ;;  %14589 = vst [vmem:[#allocation162_spill] sm:$0xff] %v9979_v37  ;;  %v10005_v63 = vadd.s32 4294967295, %v14600_v18  ;;  %v14609_v18 = vmov 0  ;;  %v10045_v7 = vadd.s32 4294967295, %v14616_v61 }
 0x2de   : > { %14584 = vst [vmem:[#allocation160_spill] sm:$0xff] %v14583_v34  ;;  %14591 = vst [vmem:[#allocation163_spill] sm:$0xff] %v9983_v25  ;;  %v2157_v10 = vrot.slane %v9415_v2, 7  ;;  %v14621_v61 = vand.u32 3, %v9065_v23  ;;  %v2158_v46 = vrot.slane %v9437_v30, 7  ;;  %v2159_v42 = vrot.slane %v9503_v15, 7 }
 0x2df   : > { %vm14594_vm15 = vmpackc.low %vm9840_vm4, %vm9817_vm14  ;;  %14601 = vst [vmem:[#allocation165_spill] sm:$0xff] %v10005_v63  ;;  %v14668_v26 = vmov 0  ;;  %v2585_v21 = vrot.slane %v9321_v14, 1  ;;  %v2592_v14 = vrot.slane %v9423_v36, 1 }
 0x2e0   : > { %7298 = vmatmul.mubr.msk.bf16.gmra.mrb[12].mxu0 %vm14594_vm15, %v14593_v62  ;;  %vm9999_vm13 = vmand %vm14596_vm10, %vm14595_vm2  ;;  %14603 = vst [vmem:[#allocation166_spill] sm:$0xff] %v10009_v47  ;;  %v2155_v62 = vrot.slane %v9423_v36, 7  ;;  %vm14608_vm2 = vcmp.ge.s32.totalorder %v9274_v49, 0  ;;  %v8337_v49 = vld [vmem:[#allocation10 + $0x30] sm:$0xff]   ;;  %v10064_v6 = vadd.s32 1, %v14621_v61  ;;  %v14626_v61 = vand.u32 3, %v14625_v59 }
 0x2e1   : > { %v14598_v13 = vsel %vm9999_vm13, 4294967295, %v14597_v13  ;;  %vm14604_vm6 = vmmov %vm14602_vm9  ;;  %14615 = vst [vmem:[#allocation170_spill] sm:$0xff] %v10038_v43  ;;  %vm14631_vm10 = vcmp.ge.s32.totalorder %v14548_v52, 0  ;;  %v14632_v59 = vmov 0  ;;  %7317 = vmatprep.subr.bf16.mxu0 %v8337_v49  ;;  %v8338_v52 = vld [vmem:[#allocation10 + $0x38] sm:$0xff]   ;;  %v14689_v36 = vrot.slane %v9298_v4, 1 }
 0x2e2   : > { %14599 = vst [vmem:[#allocation164_spill] sm:$0xff] %v14598_v13  ;;  %v10013_v48 = vsel %vm14604_vm6, %v2152_v20, %v2153_v57  ;;  %vm14607_vm15 = vmpackc.low %vm9888_vm0, %vm9867_vm11  ;;  %v14612_v57 = vand.u32 3, %v14567_v40  ;;  %v10049_v40 = vadd.s32 4294967295, %v14618_v32  ;;  %v14622_v32 = vld [vmem:[#allocation36_spill] sm:$0xff]  ;;  %v10082_v31 = vadd.s32 1, %v14626_v61  ;;  %v14635_v61 = vld [vmem:[#allocation39_spill] sm:$0xff]  ;;  %7318 = vmatpush3.bf16.msra.mxu0 %v8337_v49 }
 0x2e3   : > { %14605 = vst [vmem:[#allocation167_spill] sm:$0xff] %v10013_v48  ;;  %7301 = vmatprep.mubr.msk.bf16.mxu0 %vm14607_vm15, %v14606_v24  ;;  %vm10028_vm9 = vmand %vm9509_vm3, %vm14608_vm2  ;;  %v2156_v24 = vrot.slane %v9446_v22, 7  ;;  %v14623_v48 = vand.u32 3, %v14622_v32  ;;  %v14627_v32 = vld [vmem:[#allocation38_spill] sm:$0xff]  ;;  %vm14647_vm15 = vcmp.ge.s32.totalorder %v14564_v51, 0  ;;  %7319 = vmatprep.subr.bf16.mxu0 %v8338_v52 }
 0x2e4   : > { %v14610_v18 = vsel %vm10028_vm9, 4294967295, %v14609_v18  ;;  %v10034_v20 = vadd.s32 4294967295, %v14612_v57  ;;  %14617 = vst [vmem:[#allocation171_spill] sm:$0xff] %v10045_v7  ;;  %14619 = vst [vmem:[#allocation172_spill] sm:$0xff] %v10049_v40  ;;  %v10053_v57 = vsel %vm14604_vm6, %v2154_v60, %v2155_v62 }
 0x2e5   : > { %14611 = vst [vmem:[#allocation168_spill] sm:$0xff] %v14610_v18  ;;  %14620 = vst [vmem:[#allocation173_spill] sm:$0xff] %v10053_v57  ;;  %v10068_v47 = vadd.s32 1, %v14623_v48  ;;  %v10072_v60 = vsel %vm14604_vm6, %v2155_v62, %v2156_v24  ;;  %v14628_v48 = vand.u32 3, %v14627_v32  ;;  %v10092_v50 = vsel %vm14604_vm6, %v2156_v24, %v2157_v10 }
 0x2e6   : > { %14613 = vst [vmem:[#allocation169_spill] sm:$0xff] %v10034_v20  ;;  %14624 = vst [vmem:[#allocation36_spill] sm:$0xff] %v10072_v60  ;;  %v14636_v32 = vand.u32 3, %v14635_v61  ;;  %v2160_v24 = vrot.slane %v9535_v9, 7  ;;  %v2587_v57 = vrot.slane %v9309_v16, 1  ;;  %v2588_v60 = vrot.slane %v9362_v38, 1  ;;  %7320 = vmatpush3.bf16.msra.mxu0 %v8338_v52 }
 0x2e7   : > { %v10086_v0 = vadd.s32 1, %v14628_v48  ;;  %14630 = vst [vmem:[#allocation38_spill] sm:$0xff] %v10092_v50  ;;  %vm10098_vm2 = vmand %vm9526_vm5, %vm14631_vm10  ;;  %vm14640_vm10 = vcmp.ge.s32.totalorder %v14557_v35, 0  ;;  %v14641_v61 = vmov 0  ;;  %v14648_v35 = vmov 0  ;;  %v8339_v38 = vld [vmem:[#allocation10 + $0x80] sm:$0xff]  }
 0x2e8   : > { %v14633_v59 = vsel %vm10098_vm2, 4294967295, %v14632_v59  ;;  %v10105_v48 = vadd.s32 1, %v14636_v32  ;;  %vm14638_vm3 = vmmov %vm14604_vm6  ;;  %v14654_v50 = vpack.c.bf16 %v9600_v17, %v9623_v44  ;;  %v14678_v16 = vld [vmem:[#allocation133_spill] sm:$0xff]  ;;  %7337 = vmatprep.subr.bf16.mxu0 %v8339_v38  ;;  %v14797_v17 = vld [vmem:[#allocation140_spill] sm:$0xff]  ;;  %v14809_v44 = vmov 0 }
 0x2e9   : > { %14629 = vst [vmem:[#allocation37_spill] sm:$0xff] %v10086_v0  ;;  %14634 = vst [vmem:[#allocation174_spill] sm:$0xff] %v14633_v59  ;;  %v10109_v62 = vsel %vm14638_vm3, %v2157_v10, %v2158_v46  ;;  %v14644_v10 = vld [vmem:[#allocation40_spill] sm:$0xff]  ;;  %v2597_v59 = vrot.slane %v9535_v9, 1  ;;  %v14796_v9 = vld [vmem:[#allocation137_spill] sm:$0xff] }
 0x2ea   : > { %14637 = vst [vmem:[#allocation39_spill] sm:$0xff] %v10105_v48  ;;  %14639 = vst [vmem:[#allocation175_spill] sm:$0xff] %v10109_v62  ;;  %v14645_v32 = vand.u32 3, %v14644_v10  ;;  %v10145_v10 = vsel %vm14638_vm3, %v2158_v46, %v2159_v42  ;;  %v14658_v46 = vmov 0  ;;  %v14671_v62 = vld [vmem:[#allocation110_spill] sm:$0xff] }
 0x2eb   : > { %vm10119_vm6 = vmand %vm9541_vm7, %vm14640_vm10  ;;  %14653 = vst [vmem:[#allocation179_spill] sm:$0xff] %v10145_v10  ;;  %vm14657_vm10 = vnez %v14464_v12  ;;  %v14666_v10 = vld [vmem:[#allocation129_spill] sm:$0xff] }
 0x2ec   : > { %v14642_v61 = vsel %vm10119_vm6, 4294967295, %v14641_v61  ;;  %v10126_v8 = vadd.s32 1, %v14645_v32  ;;  %vm10134_vm5 = vmand %vm9559_vm8, %vm14647_vm15  ;;  %v2161_v32 = vrot.slane %v9487_v5, 7  ;;  %vm14667_vm8 = vnez %v14666_v10 }
 0x2ed   : > { %14643 = vst [vmem:[#allocation176_spill] sm:$0xff] %v14642_v61  ;;  %v14649_v35 = vsel %vm10134_vm5, 4294967295, %v14648_v35  ;;  %vm14651_vm7 = vmmov %vm14638_vm3  ;;  %v14724_v61 = vld [vmem:[#allocation95_spill] sm:$0xff] }
 0x2ee   : > { %14646 = vst [vmem:[#allocation40_spill] sm:$0xff] %v10126_v8  ;;  %14650 = vst [vmem:[#allocation177_spill] sm:$0xff] %v14649_v35  ;;  %v10141_v28 = vsel %vm14651_vm7, %v2159_v42, %v2160_v24  ;;  %vm14656_vm7 = vcmp.ge.s32.totalorder %v14566_v54, 0  ;;  %v14661_v54 = vld [vmem:[#allocation122_spill] sm:$0xff]  ;;  %v14664_v42 = vld [vmem:[#allocation76_spill] sm:$0xff] }
 0x2ef   : > { %14652 = vst [vmem:[#allocation178_spill] sm:$0xff] %v10141_v28  ;;  %vm14655_vm15 = vmpackc.low %vm9999_vm13, %vm9968_vm12  ;;  %v14662_v51 = vpack.c.bf16 %v9372_v19, %v14661_v54  ;;  %vm14673_vm13 = vcmp.lt.s32.totalorder %v9065_v23, 1  ;;  %v14680_v28 = vmov 0  ;;  %v14793_v54 = vmov 0 }
 0x2f0   : > { %7302 = vmatmul.mubr.msk.bf16.gmra.mrb[16].mxu0 %vm14655_vm15, %v14654_v50  ;;  %vm10162_vm3 = vmand %vm14657_vm10, %vm14656_vm7  ;;  %vm14665_vm7 = vcmp.ge.s32.totalorder %v14664_v42, 0  ;;  %v14672_v50 = vrot.slane %v14671_v62, 7  ;;  %v14859_v42 = vld [vmem:[#allocation44_spill] sm:$0xff] }
 0x2f1   : > { %v14659_v46 = vsel %vm10162_vm3, 4294967295, %v14658_v46  ;;  %vm14663_vm15 = vmpackc.low %vm10028_vm9, %vm9947_vm1 }
 0x2f2   : > { %14660 = vst [vmem:[#allocation180_spill] sm:$0xff] %v14659_v46  ;;  %7321 = vmatprep.mubr.msk.bf16.mxu0 %vm14663_vm15, %v14662_v51  ;;  %vm10187_vm10 = vmand %vm14667_vm8, %vm14665_vm7  ;;  %v10195_v49 = vsel %vm14673_vm13, %v2161_v32, %v14672_v50  ;;  %vm14677_vm15 = vcmp.ge.s32.totalorder %v14585_v29, 0  ;;  %vm14679_vm7 = vnez %v14678_v16  ;;  %v2586_v50 = vrot.slane %v9288_v41, 1 }
 0x2f3   : > { %v14669_v26 = vsel %vm10187_vm10, 4294967295, %v14668_v26  ;;  %14674 = vst [vmem:[#allocation182_spill] sm:$0xff] %v10195_v49  ;;  %vm14675_vm12 = vmmov %vm14673_vm13  ;;  %v2590_v51 = vrot.slane %v9360_v45, 1  ;;  %v2593_v41 = vrot.slane %v9446_v22, 1  ;;  %vm14694_vm13 = vcmp.ge.s32.totalorder %v9975_v1, 0  ;;  %v14705_v1 = vld [vmem:[#allocation136_spill] sm:$0xff] }
 0x2f4   : > { %14670 = vst [vmem:[#allocation181_spill] sm:$0xff] %v14669_v26  ;;  %v10199_v18 = vsel %vm14675_vm12, %v2160_v24, %v2161_v32  ;;  %vm10208_vm1 = vmand %vm14679_vm7, %vm14677_vm15  ;;  %vm14683_vm15 = vcmp.lt.s32.totalorder %v9065_v23, 7  ;;  %v2589_v32 = vrot.slane %v9377_v3, 1  ;;  %v14697_v49 = vmov 0  ;;  %v14791_v23 = vld [vmem:[#allocation106_spill] sm:$0xff] }
 0x2f5   : > { %14676 = vst [vmem:[#allocation183_spill] sm:$0xff] %v10199_v18  ;;  %v14681_v28 = vsel %vm10208_vm1, 4294967295, %v14680_v28  ;;  %v10229_v24 = vsel %vm14683_vm15, %v2587_v57, %v2588_v60  ;;  %v2591_v18 = vrot.slane %v9366_v27, 1  ;;  %vm14685_vm9 = vmmov %vm14683_vm15  ;;  %v8340_v27 = vld [vmem:[#allocation10 + $0x88] sm:$0xff]   ;;  %v14707_v29 = vmov 0 }
 0x2f6   : > { %14682 = vst [vmem:[#allocation184_spill] sm:$0xff] %v14681_v28  ;;  %14684 = vst [vmem:[#allocation185_spill] sm:$0xff] %v10229_v24  ;;  %v10248_v3 = vsel %vm14685_vm9, %v2586_v50, %v2587_v57  ;;  %v14695_v57 = vld [vmem:[#allocation135_spill] sm:$0xff]  ;;  %v2599_v46 = vrot.slane %v14671_v62, 1 }
 0x2f7   : > { %14686 = vst [vmem:[#allocation186_spill] sm:$0xff] %v10248_v3  ;;  %vm14687_vm7 = vmmov %vm14685_vm9  ;;  %vm14696_vm9 = vnez %v14695_v57  ;;  %v2594_v3 = vrot.slane %v9415_v2, 1  ;;  %v14784_v62 = vld [vmem:[#allocation131_spill] sm:$0xff] }
 0x2f8   : > { %v10252_v45 = vsel %vm14687_vm7, %v2585_v21, %v2586_v50  ;;  %vm14690_vm12 = vmmov %vm14687_vm7 }
 0x2f9   : > { %14688 = vst [vmem:[#allocation187_spill] sm:$0xff] %v10252_v45  ;;  %v10258_v52 = vsel %vm14690_vm12, %v14689_v36, %v2585_v21  ;;  %vm14692_vm8 = vmmov %vm14687_vm7  ;;  %v14710_v21 = vld [vmem:[#allocation49_spill] sm:$0xff]  ;;  %v14716_v45 = vld [vmem:[#allocation83_spill] sm:$0xff] }
 0x2fa   : > { %14691 = vst [vmem:[#allocation188_spill] sm:$0xff] %v10258_v52  ;;  %v10262_v22 = vsel %vm14692_vm8, %v2588_v60, %v2589_v32  ;;  %vm10268_vm15 = vmand %vm14696_vm9, %vm14694_vm13  ;;  %vm14704_vm13 = vcmp.ge.s32.totalorder %v9979_v37, 0  ;;  %vm14706_vm9 = vnez %v14705_v1  ;;  %v14715_v52 = vld [vmem:[#allocation79_spill] sm:$0xff] }
 0x2fb   : > { %14693 = vst [vmem:[#allocation189_spill] sm:$0xff] %v10262_v22  ;;  %v14698_v49 = vsel %vm10268_vm15, 4294967295, %v14697_v49  ;;  %vm14700_vm8 = vmmov %vm14687_vm7  ;;  %v14717_v37 = vpack.c.bf16 %v14715_v52, %v14716_v45  ;;  %v14725_v52 = vld [vmem:[#allocation96_spill] sm:$0xff]  ;;  %v14744_v45 = vmov 0 }
 0x2fc   : > { %14699 = vst [vmem:[#allocation190_spill] sm:$0xff] %v14698_v49  ;;  %v10279_v60 = vsel %vm14700_vm8, %v2589_v32, %v2590_v51  ;;  %vm14702_vm12 = vmmov %vm14687_vm7  ;;  %vm14719_vm8 = vcmp.ge.s32.totalorder %v9983_v25, 0  ;;  %v2596_v32 = vrot.slane %v9503_v15, 1  ;;  %v14726_v22 = vpack.c.bf16 %v14724_v61, %v14725_v52  ;;  %v14785_v15 = vld [vmem:[#allocation130_spill] sm:$0xff]  ;;  %v14798_v61 = vld [vmem:[#allocation139_spill] sm:$0xff] }
 0x2fd   : > { %14701 = vst [vmem:[#allocation191_spill] sm:$0xff] %v10279_v60  ;;  %v10283_v50 = vsel %vm14702_vm12, %v2591_v18, %v2592_v14  ;;  %vm10289_vm10 = vmand %vm14706_vm9, %vm14704_vm13  ;;  %v2598_v52 = vrot.slane %v9487_v5, 1  ;;  %v14759_v5 = vld [vmem:[#allocation117_spill] sm:$0xff]  ;;  %v8342_v60 = vld [vmem:[#allocation10 + $0x98] sm:$0xff]  }
 0x2fe   : > { %14703 = vst [vmem:[#allocation192_spill] sm:$0xff] %v10283_v50  ;;  %v14708_v29 = vsel %vm10289_vm10, 4294967295, %v14707_v29  ;;  %vm14711_vm12 = vmmov %vm14687_vm7  ;;  %v14856_v25 = vld [vmem:[#allocation43_spill] sm:$0xff] }
 0x2ff   : > { %14709 = vst [vmem:[#allocation193_spill] sm:$0xff] %v14708_v29  ;;  %v10301_v36 = vsel %vm14711_vm12, %v2590_v51, %v2591_v18  ;;  %vm14713_vm13 = vmmov %vm14687_vm7  ;;  %v14720_v18 = vmov 0  ;;  %v14729_v51 = vmov 0  ;;  %v14815_v29 = vld [vmem:[#allocation150_spill] sm:$0xff] }
 0x300   : > { %14712 = vst [vmem:[#allocation194_spill] sm:$0xff] %v10301_v36  ;;  %v10306_v24 = vsel %vm14713_vm13, %v2592_v14, %v2593_v41  ;;  %vm14718_vm15 = vmpackc.low %vm10119_vm6, %vm10098_vm2  ;;  %v14723_v14 = vld [vmem:[#allocation50_spill] sm:$0xff]  ;;  %v14735_v36 = vmov 0  ;;  %vm14777_vm2 = vnez %v14598_v13  ;;  %vm14788_vm6 = vnez %v14669_v26  ;;  %v14802_v26 = vld [vmem:[#allocation145_spill] sm:$0xff] }
 0x301   : > { %14714 = vst [vmem:[#allocation195_spill] sm:$0xff] %v10306_v24  ;;  %7322 = vmatmul.mubr.msk.bf16.vlgmr.msra.gmra.mrb[4].mxu0 %vm14718_vm15, %v14717_v37  ;;  %vm10320_vm12 = vmand %vm9817_vm14, %vm14719_vm8  ;;  %v2595_v37 = vrot.slane %v9437_v30, 1  ;;  %vm14728_vm8 = vcmp.ge.s32.totalorder %v10005_v63, 0  ;;  %v14807_v30 = vld [vmem:[#allocation108_spill] sm:$0xff]  ;;  %vm14830_vm14 = vcmp.ge.s32.totalorder %v14710_v21, 0 }
 0x302   : > { %v14721_v18 = vsel %vm10320_vm12, 4294967295, %v14720_v18  ;;  %7338 = vmatpush3.bf16.msra.mxu0 %v8339_v38  ;;  %vm14727_vm15 = vmpackc.low %vm10162_vm3, %vm10134_vm5 }
 0x303   : > { %14722 = vst [vmem:[#allocation196_spill] sm:$0xff] %v14721_v18  ;;  %7325 = vmatprep.mubr.msk.bf16.mxu0 %vm14727_vm15, %v14726_v22  ;;  %vm10345_vm7 = vmand %vm9840_vm4, %vm14728_vm8  ;;  %7339 = vmatprep.subr.bf16.mxu0 %v8340_v27  ;;  %v8341_v22 = vld [vmem:[#allocation10 + $0x90] sm:$0xff]   ;;  %vm14734_vm15 = vcmp.ge.s32.totalorder %v10034_v20, 0 }
 0x304   : > { %v14730_v51 = vsel %vm10345_vm7, 4294967295, %v14729_v51  ;;  %vm14732_vm9 = vmmov %vm14713_vm13 }
 0x305   : > { %14731 = vst [vmem:[#allocation197_spill] sm:$0xff] %v14730_v51  ;;  %v10351_v38 = vsel %vm14732_vm9, %v2593_v41, %v2594_v3  ;;  %vm10361_vm8 = vmand %vm9867_vm11, %vm14734_vm15  ;;  %v10369_v50 = vsel %vm14732_vm9, %v2595_v37, %v2596_v32  ;;  %vm14743_vm15 = vcmp.ge.s32.totalorder %v10038_v43, 0  ;;  %v14760_v41 = vld [vmem:[#allocation126_spill] sm:$0xff]  ;;  %v14899_v51 = vmov 0 }
 0x306   : > { %14733 = vst [vmem:[#allocation198_spill] sm:$0xff] %v10351_v38  ;;  %v14736_v36 = vsel %vm10361_vm8, 4294967295, %v14735_v36  ;;  %14738 = vst [vmem:[#allocation200_spill] sm:$0xff] %v10369_v50  ;;  %v14755_v50 = vld [vmem:[#allocation101_spill] sm:$0xff]  ;;  %7340 = vmatpush3.bf16.msra.mxu0 %v8340_v27  ;;  %v14766_v27 = vmov 0  ;;  %v14847_v43 = vld [vmem:[#allocation42_spill] sm:$0xff] }
 0x307   : > { %14737 = vst [vmem:[#allocation199_spill] sm:$0xff] %v14736_v36  ;;  %vm14739_vm1 = vmmov %vm14732_vm9  ;;  %v14756_v38 = vld [vmem:[#allocation109_spill] sm:$0xff]  ;;  %7341 = vmatprep.subr.bf16.mxu0 %v8341_v22  ;;  %v14848_v20 = vand.u32 3, %v14847_v43  ;;  %v14860_v43 = vand.u32 3, %v14859_v42 }
 0x308   : > { %v10373_v35 = vsel %vm14739_vm1, %v2594_v3, %v2595_v37  ;;  %vm14741_vm13 = vmmov %vm14739_vm1  ;;  %v10395_v3 = vsel %vm14739_vm1, %v2598_v52, %v2599_v46  ;;  %v14873_v42 = vld [vmem:[#allocation57_spill] sm:$0xff] }
 0x309   : > { %14740 = vst [vmem:[#allocation201_spill] sm:$0xff] %v10373_v35  ;;  %v10377_v19 = vsel %vm14741_vm13, %v2596_v32, %v2597_v59  ;;  %vm10383_vm5 = vmand %vm9888_vm0, %vm14743_vm15  ;;  %v14750_v32 = vrot.slane %v9298_v4, 1  ;;  %vm14753_vm15 = vnez %v14698_v49  ;;  %v14778_v4 = vmov 0  ;;  %v14834_v35 = vld [vmem:[#allocation54_spill] sm:$0xff] }
 0x30a   : > { %14742 = vst [vmem:[#allocation202_spill] sm:$0xff] %v10377_v19  ;;  %v14745_v45 = vsel %vm10383_vm5, 4294967295, %v14744_v45  ;;  %vm14747_vm9 = vmmov %vm14739_vm1  ;;  %vm14792_vm0 = vnez %v14791_v23  ;;  %v14799_v19 = vld [vmem:[#allocation142_spill] sm:$0xff]  ;;  %7342 = vmatpush3.bf16.msra.mxu0 %v8341_v22  ;;  %v14813_v22 = vld [vmem:[#allocation147_spill] sm:$0xff]  ;;  %v14831_v49 = vmov 0  ;;  %vm14836_vm5 = vnez %v14458_v39 }
 0x30b   : > { %14746 = vst [vmem:[#allocation203_spill] sm:$0xff] %v14745_v45  ;;  %v10391_v24 = vsel %vm14747_vm9, %v2597_v59, %v2598_v52  ;;  %14749 = vst [vmem:[#allocation205_spill] sm:$0xff] %v10395_v3  ;;  %v14754_v52 = vld [vmem:[#allocation99_spill] sm:$0xff]  ;;  %v14762_v59 = vld [vmem:[#allocation128_spill] sm:$0xff]  ;;  %vm14765_vm9 = vnez %v14583_v34  ;;  %7343 = vmatprep.subr.bf16.mxu0 %v8342_v60  ;;  %v10557_v63 = vadd.s32 1, %v14848_v20  ;;  %v14852_v39 = vmov 0 }
 0x30c   : > { %14748 = vst [vmem:[#allocation204_spill] sm:$0xff] %v10391_v24  ;;  %vm14751_vm13 = vmmov %vm14739_vm1  ;;  %v14761_v24 = vld [vmem:[#allocation125_spill] sm:$0xff]  ;;  %vm14776_vm1 = vcmp.ge.s32.totalorder %v10049_v40, 0  ;;  %v14786_v2 = vpack.c.bf16 %v14755_v50, %v14754_v52  ;;  %v14816_v3 = vld [vmem:[#allocation134_spill] sm:$0xff]  ;;  %v10575_v20 = vadd.s32 1, %v14860_v43 }
 0x30d   : > { %v10401_v37 = vsel %vm14751_vm13, %v2599_v46, %v14750_v32  ;;  %v14757_v46 = vld [vmem:[#allocation114_spill] sm:$0xff]  ;;  %v14758_v32 = vld [vmem:[#allocation115_spill] sm:$0xff]  ;;  %vm14764_vm13 = vcmp.ge.s32.totalorder %v10045_v7, 0  ;;  %v14812_v7 = vld [vmem:[#allocation53_spill] sm:$0xff] }
 0x30e   : > { %14752 = vst [vmem:[#allocation206_spill] sm:$0xff] %v10401_v37  ;;  %v14763_v37 = vld [vmem:[#allocation127_spill] sm:$0xff]  ;;  %vm10435_vm3 = vmand %vm14765_vm9, %vm14764_vm13  ;;  %vm14790_vm9 = vcmp.lt.s32.totalorder %v10064_v6, 4  ;;  %v14804_v23 = vpack.c.bf16 %v14757_v46, %v14756_v38  ;;  %v14824_v50 = vld [vmem:[#allocation113_spill] sm:$0xff]  ;;  %v14826_v38 = vmov 0  ;;  %7344 = vmatpush3.bf16.msra.mxu0 %v8342_v60  ;;  %v14875_v60 = vmov 0 }
 0x30f   : > { %v14767_v27 = vsel %vm10435_vm3, 4294967295, %v14766_v27  ;;  %vm10451_vm13 = vmand %vm14777_vm2, %vm14776_vm1  ;;  %vm14787_vm1 = vnez %v14681_v28  ;;  %v14801_v28 = vld [vmem:[#allocation143_spill] sm:$0xff]  ;;  %vm14825_vm4 = vnez %v14824_v50  ;;  %v14842_v50 = vmov 0  ;;  %v14845_v52 = vld [vmem:[#allocation41_spill] sm:$0xff]  ;;  %14861 = vst [vmem:[#allocation44_spill] sm:$0xff] %v10575_v20 }
 0x310   : > { %14768 = vst [vmem:[#allocation207_spill] sm:$0xff] %v14767_v27  ;;  %v14779_v4 = vsel %vm10451_vm13, 4294967295, %v14778_v4  ;;  %vm14789_vm2 = vmpackc.low %vm14787_vm1, %vm14788_vm6  ;;  %vm14808_vm6 = vnez %v14807_v30  ;;  %v14818_v46 = vld [vmem:[#allocation111_spill] sm:$0xff]  ;;  %v14820_v30 = vmov 0  ;;  %v14846_v40 = vand.u32 3, %v14845_v52  ;;  %v14878_v43 = vld [vmem:[#allocation58_spill] sm:$0xff] }
 0x311   : > { %14780 = vst [vmem:[#allocation208_spill] sm:$0xff] %v14779_v4  ;;  %7326 = vmatmul.mubr.msk.bf16.gmra.mrb[8].mxu0 %vm14789_vm2, %v14786_v2  ;;  %vm10475_vm11 = vmand %vm14792_vm0, %vm14790_vm9  ;;  %vm14806_vm9 = vcmp.lt.s32.totalorder %v10068_v47, 4  ;;  %vm14823_vm0 = vcmp.lt.s32.totalorder %v10086_v0, 4  ;;  %v14857_v52 = vand.u32 3, %v14856_v25  ;;  %v14867_v2 = vld [vmem:[#allocation56_spill] sm:$0xff]  ;;  %v14870_v25 = vmov 0 }
 0x312   : > { %v14794_v54 = vsel %vm10475_vm11, 4294967295, %v14793_v54  ;;  %vm14805_vm2 = vmpackc.low %vm10289_vm10, %vm14753_vm15  ;;  %vm14819_vm15 = vnez %v14818_v46  ;;  %v14837_v46 = vmov 0  ;;  %14849 = vst [vmem:[#allocation41_spill] sm:$0xff] %v10557_v63  ;;  %vm14890_vm11 = vcmp.lt.s32.totalorder %v10064_v6, 4 }
 0x313   : > { %14795 = vst [vmem:[#allocation209_spill] sm:$0xff] %v14794_v54  ;;  %7329 = vmatprep.mubr.msk.bf16.mxu0 %vm14805_vm2, %v14804_v23  ;;  %vm10499_vm1 = vmand %vm14808_vm6, %vm14806_vm9  ;;  %v8343_v23 = vld [vmem:[#allocation10 + $0xa0] sm:$0xff]   ;;  %vm14817_vm2 = vcmp.lt.s32.totalorder %v10082_v31, 4  ;;  %vm14829_vm6 = vcmp.lt.s32.totalorder %v14710_v21, 4  ;;  %v10553_v21 = vadd.s32 1, %v14846_v40  ;;  %v10571_v40 = vadd.s32 1, %v14857_v52 }
 0x314   : > { %v14810_v44 = vsel %vm10499_vm1, 4294967295, %v14809_v44  ;;  %vm10513_vm9 = vmand %vm14819_vm15, %vm14817_vm2  ;;  %7345 = vmatprep.subr.bf16.mxu0 %v8343_v23  ;;  %v8344_v52 = vld [vmem:[#allocation10 + $0xa8] sm:$0xff]   ;;  %vm14903_vm13 = vcmp.lt.s32.totalorder %v10068_v47, 4 }
 0x315   : > { %14811 = vst [vmem:[#allocation210_spill] sm:$0xff] %v14810_v44  ;;  %v14821_v30 = vsel %vm10513_vm9, 4294967295, %v14820_v30  ;;  %vm10521_vm10 = vmand %vm14825_vm4, %vm14823_vm0  ;;  %vm14835_vm9 = vcmp.lt.s32.totalorder %v10105_v48, 4  ;;  %vm14840_vm4 = vcmp.lt.s32.totalorder %v10126_v8, 4  ;;  %7346 = vmatpush3.bf16.msra.mxu0 %v8343_v23  ;;  %v14905_v23 = vmov 0 }
 0x316   : > { %14822 = vst [vmem:[#allocation53_spill] sm:$0xff] %v14821_v30  ;;  %v14827_v38 = vsel %vm10521_vm10, 4294967295, %v14826_v38  ;;  %vm10529_vm8 = vmand %vm14830_vm14, %vm14829_vm6  ;;  %vm14841_vm10 = vnez %v14464_v12  ;;  %vm14850_vm6 = vcmp.lt.s32.totalorder %v14723_v14, 4  ;;  %v14855_v12 = vld [vmem:[#allocation55_spill] sm:$0xff]  ;;  %7347 = vmatprep.subr.bf16.mxu0 %v8344_v52 }
 0x317   : > { %14828 = vst [vmem:[#allocation211_spill] sm:$0xff] %v14827_v38  ;;  %v14832_v49 = vsel %vm10529_vm8, 4294967295, %v14831_v49  ;;  %vm10539_vm0 = vmand %vm14836_vm5, %vm14835_vm9  ;;  %vm14851_vm9 = vcmp.ge.s32.totalorder %v14723_v14, 0  ;;  %vm983_vm15 = vcmp.lt.s32.totalorder %v14855_v12, 4  ;;  %vm14862_vm5 = vcmp.lt.s32.totalorder %v14812_v7, 4 }
 0x318   : > { %14833 = vst [vmem:[#allocation212_spill] sm:$0xff] %v14832_v49  ;;  %v14838_v46 = vsel %vm10539_vm0, 4294967295, %v14837_v46  ;;  %vm10547_vm14 = vmand %vm14841_vm10, %vm14840_vm4  ;;  %vm14863_vm10 = vcmp.ge.s32.totalorder %v14812_v7, 0  ;;  %v14864_v14 = vmov 0  ;;  %vm984_vm4 = vcmp.lt.s32.totalorder %v14867_v2, 4 }
 0x319   : > { %14839 = vst [vmem:[#allocation54_spill] sm:$0xff] %v14838_v46  ;;  %v14843_v50 = vsel %vm10547_vm14, 4294967295, %v14842_v50  ;;  %vm10563_vm2 = vmand %vm14851_vm9, %vm14850_vm6  ;;  %vm14868_vm0 = vcmp.lt.s32.totalorder %v14834_v35, 4  ;;  %vm14874_vm14 = vcmp.ge.s32.totalorder %v14855_v12, 0  ;;  %v14883_v12 = vpack.c.bf16 %v14759_v5, %v14758_v32  ;;  %v14902_v5 = vld [vmem:[#allocation60_spill] sm:$0xff]  ;;  %v14942_v32 = vld [vmem:[#allocation62_spill] sm:$0xff]  ;;  %7348 = vmatpush3.bf16.msra.mxu0 %v8344_v52 }
 0x31a   : > { %14844 = vst [vmem:[#allocation213_spill] sm:$0xff] %v14843_v50  ;;  %v14853_v39 = vsel %vm10563_vm2, 4294967295, %v14852_v39  ;;  %14858 = vst [vmem:[#allocation43_spill] sm:$0xff] %v10571_v40  ;;  %vm14869_vm2 = vcmp.ge.s32.totalorder %v14834_v35, 0  ;;  %vm14891_vm1 = vnez %v14832_v49  ;;  %v14955_v52 = vld [vmem:[#allocation63_spill] sm:$0xff] }
 0x31b   : > { %14854 = vst [vmem:[#allocation42_spill] sm:$0xff] %v14853_v39  ;;  %vm10581_vm6 = vmand %vm14863_vm10, %vm14862_vm5  ;;  %vm969_vm5 = vcmp.ge.s32.totalorder %v14873_v42, 0  ;;  %vm985_vm10 = vcmp.lt.s32.totalorder %v14873_v42, 4  ;;  %v14880_v42 = vmov 0  ;;  %vm14904_vm9 = vnez %v14853_v39 }
 0x31c   : > { %v14865_v14 = vsel %vm10581_vm6, 4294967295, %v14864_v14  ;;  %vm10595_vm8 = vmand %vm14869_vm2, %vm14868_vm0  ;;  %vm970_vm2 = vcmp.ge.s32.totalorder %v14878_v43, 0  ;;  %vm986_vm0 = vcmp.lt.s32.totalorder %v14878_v43, 4  ;;  %vm14879_vm6 = vcmp.ge.s32.totalorder %v14867_v2, 0  ;;  %v14889_v2 = vld [vmem:[#allocation59_spill] sm:$0xff] }
 0x31d   : > { %14866 = vst [vmem:[#allocation214_spill] sm:$0xff] %v14865_v14  ;;  %v14871_v25 = vsel %vm10595_vm8, 4294967295, %v14870_v25  ;;  %vm10607_vm3 = vmand %vm14874_vm14, %vm983_vm15  ;;  %vm14884_vm15 = vnez %v14721_v18  ;;  %v14886_v43 = vmov 0  ;;  %v14892_v18 = vmov 0 }
 0x31e   : > { %14872 = vst [vmem:[#allocation215_spill] sm:$0xff] %v14871_v25  ;;  %v14876_v60 = vsel %vm10607_vm3, 4294967295, %v14875_v60  ;;  %vm10617_vm12 = vmand %vm14879_vm6, %vm984_vm4  ;;  %vm972_vm6 = vcmp.ge.s32.totalorder %v14902_v5, 0 }
 0x31f   : > { %14877 = vst [vmem:[#allocation216_spill] sm:$0xff] %v14876_v60  ;;  %v14881_v42 = vsel %vm10617_vm12, 4294967295, %v14880_v42  ;;  %vm14885_vm14 = vmpackc.low %vm10345_vm7, %vm14884_vm15 }
 0x320   : > { %14882 = vst [vmem:[#allocation217_spill] sm:$0xff] %v14881_v42  ;;  %7330 = vmatmul.mubr.msk.bf16.gmra.mrb[12].mxu0 %vm14885_vm14, %v14883_v12  ;;  %vm10631_vm8 = vmand %vm969_vm5, %vm985_vm10  ;;  %v14895_v12 = vpack.c.bf16 %v14761_v24, %v14760_v41  ;;  %vm14896_vm5 = vnez %v14745_v45  ;;  %vm14897_vm10 = vnez %v14736_v36  ;;  %v8345_v36 = vld [vmem:[#allocation10 + $0xb0] sm:$0xff]   ;;  %v14915_v45 = vmov 0 }
 0x321   : > { %v14887_v43 = vsel %vm10631_vm8, 4294967295, %v14886_v43  ;;  %vm10641_vm12 = vmand %vm14891_vm1, %vm14890_vm11  ;;  %vm988_vm11 = vcmp.lt.s32.totalorder %v14902_v5, 4  ;;  %vm14923_vm1 = vcmp.lt.s32.totalorder %v10575_v20, 4  ;;  %v14930_v24 = vmov 0  ;;  %7349 = vmatprep.subr.bf16.mxu0 %v8345_v36 }
 0x322   : > { %14888 = vst [vmem:[#allocation218_spill] sm:$0xff] %v14887_v43  ;;  %v14893_v18 = vsel %vm10641_vm12, 4294967295, %v14892_v18  ;;  %vm14898_vm14 = vmpackc.low %vm14896_vm5, %vm14897_vm10  ;;  %vm14913_vm10 = vcmp.lt.s32.totalorder %v10557_v63, 4  ;;  %vm14914_vm5 = vnez %v14678_v16  ;;  %v14925_v16 = vmov 0  ;;  %7350 = vmatpush3.bf16.msra.mxu0 %v8345_v36 }
 0x323   : > { %14894 = vst [vmem:[#allocation59_spill] sm:$0xff] %v14893_v18  ;;  %7333 = vmatprep.mubr.msk.bf16.mxu0 %vm14898_vm14, %v14895_v12  ;;  %vm10653_vm4 = vmand %vm970_vm2, %vm986_vm0  ;;  %vm14908_vm14 = vcmp.lt.s32.totalorder %v10553_v21, 4  ;;  %vm14909_vm2 = vnez %v14666_v10  ;;  %v14910_v12 = vmov 0  ;;  %v14920_v10 = vmov 0 }
 0x324   : > { %v14900_v51 = vsel %vm10653_vm4, 4294967295, %v14899_v51  ;;  %vm10663_vm15 = vmand %vm14904_vm9, %vm14903_vm13  ;;  %vm14918_vm9 = vcmp.lt.s32.totalorder %v10571_v40, 4  ;;  %vm14929_vm13 = vcmp.ge.s32.totalorder %v14889_v2, 0  ;;  %v14939_v41 = vmov 0 }
 0x325   : > { %14901 = vst [vmem:[#allocation219_spill] sm:$0xff] %v14900_v51  ;;  %v14906_v23 = vsel %vm10663_vm15, 4294967295, %v14905_v23  ;;  %vm10671_vm0 = vmand %vm14909_vm2, %vm14908_vm14  ;;  %vm14919_vm14 = vnez %v14695_v57  ;;  %v14933_v57 = vld [vmem:[#allocation61_spill] sm:$0xff]  ;;  %vm14934_vm15 = vcmp.lt.s32.totalorder %v10082_v31, 4  ;;  %v14945_v18 = vmov 0 }
 0x326   : > { %14907 = vst [vmem:[#allocation60_spill] sm:$0xff] %v14906_v23  ;;  %v14911_v12 = vsel %vm10671_vm0, 4294967295, %v14910_v12  ;;  %vm10679_vm7 = vmand %vm14914_vm5, %vm14913_vm10  ;;  %vm14924_vm10 = vnez %v14705_v1  ;;  %v14936_v1 = vmov 0  ;;  %vm14944_vm0 = vnez %v14871_v25  ;;  %v8346_v23 = vld [vmem:[#allocation10 + $0xb8] sm:$0xff]  }
 0x327   : > { %14912 = vst [vmem:[#allocation220_spill] sm:$0xff] %v14911_v12  ;;  %v14916_v45 = vsel %vm10679_vm7, 4294967295, %v14915_v45  ;;  %vm10691_vm2 = vmand %vm14919_vm14, %vm14918_vm9  ;;  %vm14928_vm7 = vcmp.lt.s32.totalorder %v14889_v2, 4  ;;  %vm973_vm9 = vcmp.ge.s32.totalorder %v14933_v57, 0  ;;  %vm989_vm14 = vcmp.lt.s32.totalorder %v14933_v57, 4  ;;  %7351 = vmatprep.subr.bf16.mxu0 %v8346_v23 }
 0x328   : > { %14917 = vst [vmem:[#allocation221_spill] sm:$0xff] %v14916_v45  ;;  %v14921_v10 = vsel %vm10691_vm2, 4294967295, %v14920_v10  ;;  %vm10699_vm5 = vmand %vm14924_vm10, %vm14923_vm1  ;;  %vm14935_vm2 = vnez %v14865_v14  ;;  %vm975_vm8 = vcmp.ge.s32.totalorder %v14955_v52, 0  ;;  %v14983_v36 = vmov 0  ;;  %7352 = vmatpush3.bf16.msra.mxu0 %v8346_v23  ;;  %v8348_v23 = vld [vmem:[#allocation10 + $0xc8] sm:$0xff]  }
 0x329   : > { %14922 = vst [vmem:[#allocation222_spill] sm:$0xff] %v14921_v10  ;;  %v14926_v16 = vsel %vm10699_vm5, 4294967295, %v14925_v16  ;;  %vm10707_vm12 = vmand %vm14929_vm13, %vm14928_vm7  ;;  %vm974_vm7 = vcmp.ge.s32.totalorder %v14942_v32, 0  ;;  %vm990_vm13 = vcmp.lt.s32.totalorder %v14942_v32, 4  ;;  %vm14943_vm5 = vcmp.lt.s32.totalorder %v10086_v0, 4  ;;  %v14963_v0 = vld [vmem:[#allocation64_spill] sm:$0xff] }
 0x32a   : > { %14927 = vst [vmem:[#allocation223_spill] sm:$0xff] %v14926_v16  ;;  %v14931_v24 = vsel %vm10707_vm12, 4294967295, %v14930_v24  ;;  %vm10717_vm1 = vmand %vm14935_vm2, %vm14934_vm15  ;;  %v14952_v32 = vmov 0  ;;  %vm14956_vm15 = vcmp.lt.s32.totalorder %v10105_v48, 4  ;;  %v14966_v48 = vmov 0 }
 0x32b   : > { %14932 = vst [vmem:[#allocation224_spill] sm:$0xff] %v14931_v24  ;;  %v14937_v1 = vsel %vm10717_vm1, 4294967295, %v14936_v1  ;;  %vm10721_vm10 = vmand %vm972_vm6, %vm988_vm11  ;;  %vm14949_vm6 = vnez %v14827_v38  ;;  %vm991_vm11 = vcmp.lt.s32.totalorder %v14955_v52, 4  ;;  %v14969_v52 = vpack.c.bf16 %v14763_v37, %v14762_v59  ;;  %v14997_v59 = vld [vmem:[#allocation46_spill] sm:$0xff] }
 0x32c   : > { %14938 = vst [vmem:[#allocation61_spill] sm:$0xff] %v14937_v1  ;;  %v14940_v41 = vsel %vm10721_vm10, 4294967295, %v14939_v41  ;;  %vm10731_vm12 = vmand %vm14944_vm0, %vm14943_vm5  ;;  %v14957_v1 = vmov 0  ;;  %vm14964_vm0 = vcmp.lt.s32.totalorder %v10126_v8, 4  ;;  %v14973_v8 = vpack.c.bf16 %v14784_v62, %v14816_v3  ;;  %v14991_v62 = vld [vmem:[#allocation66_spill] sm:$0xff] }
 0x32d   : > { %14941 = vst [vmem:[#allocation225_spill] sm:$0xff] %v14940_v41  ;;  %v14946_v18 = vsel %vm10731_vm12, 4294967295, %v14945_v18  ;;  %vm10747_vm4 = vmand %vm973_vm9, %vm989_vm14  ;;  %vm976_vm14 = vcmp.ge.s32.totalorder %v14963_v0, 0  ;;  %vm992_vm9 = vcmp.lt.s32.totalorder %v14963_v0, 4  ;;  %vm14965_vm12 = vnez %v14881_v42 }
 0x32e   : > { %14947 = vst [vmem:[#allocation226_spill] sm:$0xff] %v14946_v18  ;;  %v14953_v32 = vsel %vm10747_vm4, 4294967295, %v14952_v32  ;;  %vm10757_vm2 = vmand %vm10607_vm3, %vm14956_vm15  ;;  %v14960_v18 = vmov 0  ;;  %vm14981_vm3 = vcmp.lt.s32.totalorder %v10553_v21, 4  ;;  %v14988_v3 = vmov 0 }
 0x32f   : > { %14954 = vst [vmem:[#allocation227_spill] sm:$0xff] %v14953_v32  ;;  %v14958_v1 = vsel %vm10757_vm2, 4294967295, %v14957_v1  ;;  %vm10761_vm1 = vmand %vm974_vm7, %vm990_vm13  ;;  %vm14970_vm7 = vnez %v14779_v4  ;;  %vm14971_vm13 = vnez %v14767_v27  ;;  %v14977_v4 = vmov 0 }
 0x330   : > { %14959 = vst [vmem:[#allocation228_spill] sm:$0xff] %v14958_v1  ;;  %v14961_v18 = vsel %vm10761_vm1, 4294967295, %v14960_v18  ;;  %vm10771_vm10 = vmand %vm14965_vm12, %vm14964_vm0  ;;  %vm14974_vm0 = vnez %v14810_v44  ;;  %vm14975_vm12 = vnez %v14794_v54  ;;  %v8347_v54 = vld [vmem:[#allocation10 + $0xc0] sm:$0xff]   ;;  %v14986_v44 = vld [vmem:[#allocation45_spill] sm:$0xff]  ;;  %v14994_v37 = vmov 0 }
 0x331   : > { %14962 = vst [vmem:[#allocation229_spill] sm:$0xff] %v14961_v18  ;;  %v14967_v48 = vsel %vm10771_vm10, 4294967295, %v14966_v48  ;;  %vm14972_vm15 = vmpackc.low %vm14970_vm7, %vm14971_vm13  ;;  %vm14982_vm7 = vnez %v14887_v43  ;;  %v14999_v1 = vmov 0  ;;  %vm15002_vm10 = vcmp.lt.s32.totalorder %v10571_v40, 4  ;;  %7369 = vmatprep.subr.bf16.mxu0 %v8347_v54 }
 0x332   : > { %14968 = vst [vmem:[#allocation64_spill] sm:$0xff] %v14967_v48  ;;  %7334 = vmatmul.mubr.msk.bf16.gmra.mrb[16].mxu0 %vm14972_vm15, %v14969_v52  ;;  %vm14976_vm5 = vmpackc.low %vm14974_vm0, %vm14975_vm12  ;;  %v14980_v52 = vld [vmem:[#allocation65_spill] sm:$0xff]  ;;  %vm14992_vm12 = vcmp.lt.s32.totalorder %v10557_v63, 4  ;;  %v15004_v48 = vmov 0  ;;  %v15016_v40 = vmov 0  ;;  %v15033_v63 = vmov 0 }
 0x333   : > { %7353 = vmatprep.mubr.msk.bf16.mxu0 %vm14976_vm5, %v14973_v8  ;;  %vm10795_vm1 = vmand %vm975_vm8, %vm991_vm11  ;;  %vm977_vm15 = vcmp.ge.s32.totalorder %v14980_v52, 0  ;;  %vm993_vm13 = vcmp.lt.s32.totalorder %v14980_v52, 4  ;;  %v14987_v8 = vand.u32 3, %v14986_v44  ;;  %vm978_vm11 = vcmp.ge.s32.totalorder %v14991_v62, 0  ;;  %v15026_v52 = vld [vmem:[#allocation132_spill] sm:$0xff] }
 0x334   : > { %v14978_v4 = vsel %vm10795_vm1, 4294967295, %v14977_v4  ;;  %vm10805_vm2 = vmand %vm14982_vm7, %vm14981_vm3  ;;  %vm994_vm5 = vcmp.lt.s32.totalorder %v14991_v62, 4  ;;  %vm14993_vm3 = vnez %v14900_v51  ;;  %v14998_v44 = vand.u32 3, %v14997_v59  ;;  %v15009_v59 = vld [vmem:[#allocation47_spill] sm:$0xff] }
 0x335   : > { %14979 = vst [vmem:[#allocation230_spill] sm:$0xff] %v14978_v4  ;;  %v14984_v36 = vsel %vm10805_vm2, 4294967295, %v14983_v36  ;;  %v10811_v27 = vadd.s32 1, %v14987_v8  ;;  %vm10813_vm8 = vmand %vm976_vm14, %vm992_vm9  ;;  %vm15007_vm7 = vnez %v14911_v12  ;;  %vm15019_vm1 = vnez %v14921_v10  ;;  %v8351_v12 = vld [vmem:[#allocation10 + $0xe0] sm:$0xff]   ;;  %v8352_v10 = vld [vmem:[#allocation10 + $0xe8] sm:$0xff]  }
 0x336   : > { %14985 = vst [vmem:[#allocation231_spill] sm:$0xff] %v14984_v36  ;;  %v14989_v3 = vsel %vm10813_vm8, 4294967295, %v14988_v3  ;;  %vm10823_vm0 = vmand %vm14993_vm3, %vm14992_vm12  ;;  %v10829_v8 = vadd.s32 1, %v14998_v44  ;;  %vm15003_vm12 = vnez %v14931_v24  ;;  %vm15008_vm8 = vnez %v14916_v45 }
 0x337   : > { %14990 = vst [vmem:[#allocation45_spill] sm:$0xff] %v14989_v3  ;;  %v14995_v37 = vsel %vm10823_vm0, 4294967295, %v14994_v37  ;;  %vm10835_vm9 = vmand %vm977_vm15, %vm993_vm13  ;;  %v15010_v44 = vand.u32 3, %v15009_v59  ;;  %vm15014_vm15 = vcmp.lt.s32.totalorder %v10575_v20, 4  ;;  %vm15020_vm2 = vnez %v14926_v16  ;;  %v15021_v59 = vld [vmem:[#allocation48_spill] sm:$0xff] }
 0x338   : > { %14996 = vst [vmem:[#allocation232_spill] sm:$0xff] %v14995_v37  ;;  %v15000_v1 = vsel %vm10835_vm9, 4294967295, %v14999_v1  ;;  %vm10843_vm3 = vmand %vm15003_vm12, %vm15002_vm10  ;;  %v15011_v37 = vmov 0  ;;  %vm15015_vm10 = vnez %v14940_v41  ;;  %v15023_v20 = vmov 0 }
 0x339   : > { %15001 = vst [vmem:[#allocation46_spill] sm:$0xff] %v15000_v1  ;;  %v15005_v48 = vsel %vm10843_vm3, 4294967295, %v15004_v48  ;;  %v10853_v36 = vadd.s32 1, %v15010_v44  ;;  %vm10855_vm13 = vmand %vm978_vm11, %vm994_vm5  ;;  %vm13949_vm11 = vcmp.lt.s32.totalorder %v10811_v27, 4  ;;  %v15022_v44 = vand.u32 3, %v15021_v59 }
 0x33a   : > { %15006 = vst [vmem:[#allocation233_spill] sm:$0xff] %v15005_v48  ;;  %v15012_v37 = vsel %vm10855_vm13, 4294967295, %v15011_v37  ;;  %vm10863_vm14 = vmand %vm15015_vm10, %vm15014_vm15  ;;  %vm13955_vm15 = vcmp.lt.s32.totalorder %v10829_v8, 4  ;;  %v15027_v59 = vpack.c.bf16 %v15026_v52, %v14785_v15  ;;  %vm15028_vm0 = vnez %v14821_v30  ;;  %v15036_v52 = vld [vmem:[#allocation138_spill] sm:$0xff] }
 0x33b   : > { %15013 = vst [vmem:[#allocation47_spill] sm:$0xff] %v15012_v37  ;;  %v15017_v40 = vsel %vm10863_vm14, 4294967295, %v15016_v40  ;;  %v10874_v62 = vadd.s32 1, %v15022_v44  ;;  %vm10885_vm10 = vmand %vm10747_vm4, %vm13949_vm11  ;;  %v15030_v44 = vld [vmem:[#allocation51_spill] sm:$0xff]  ;;  %vm15032_vm5 = vnez %v14961_v18  ;;  %v15037_v38 = vpack.c.bf16 %v14796_v9, %v15036_v52  ;;  %v15179_v52 = vld [vmem:[#allocation173_spill] sm:$0xff] }
 0x33c   : > { %15018 = vst [vmem:[#allocation234_spill] sm:$0xff] %v15017_v40  ;;  %v15024_v20 = vsel %vm10885_vm10, 4294967295, %v15023_v20  ;;  %vm15029_vm12 = vmpackc.low %vm14949_vm6, %vm15028_vm0  ;;  %v15031_v48 = vand.u32 3, %v15030_v44  ;;  %vm15038_vm3 = vnez %v14843_v50  ;;  %vm13960_vm6 = vcmp.lt.s32.totalorder %v10853_v36, 4 }
 0x33d   : > { %15025 = vst [vmem:[#allocation48_spill] sm:$0xff] %v15024_v20  ;;  %7354 = vmatmul.mubr.msk.bf16.vlgmr.msra.gmra.mrb[4].mxu0 %vm15029_vm12, %v15027_v59  ;;  %vm10905_vm11 = vmand %vm15032_vm5, %vm13955_vm15  ;;  %vm15039_vm12 = vnez %v14838_v46  ;;  %vm13964_vm14 = vcmp.lt.s32.totalorder %v10874_v62, 4  ;;  %v8350_v46 = vld [vmem:[#allocation10 + $0xd8] sm:$0xff]   ;;  %v15054_v50 = vmov 0  ;;  %v15061_v30 = vmov 0 }
 0x33e   : > { %v10899_v40 = vadd.s32 1, %v15031_v48  ;;  %v15034_v63 = vsel %vm10905_vm11, 4294967295, %v15033_v63  ;;  %7370 = vmatpush3.bf16.msra.mxu0 %v8347_v54  ;;  %vm15040_vm0 = vmpackc.low %vm15038_vm3, %vm15039_vm12  ;;  %v15041_v48 = vld [vmem:[#allocation52_spill] sm:$0xff]  ;;  %v8349_v54 = vld [vmem:[#allocation10 + $0xd0] sm:$0xff]   ;;  %vm15043_vm12 = vnez %v14978_v4  ;;  %vm15047_vm3 = vnez %v14989_v3 }
 0x33f   : > { %15035 = vst [vmem:[#allocation51_spill] sm:$0xff] %v15034_v63  ;;  %7357 = vmatprep.mubr.msk.bf16.mxu0 %vm15040_vm0, %v15037_v38  ;;  %v15042_v59 = vand.u32 3, %v15041_v48  ;;  %7371 = vmatprep.subr.bf16.mxu0 %v8348_v23  ;;  %vm10931_vm0 = vmand %vm15043_vm12, %vm13960_vm6  ;;  %v15044_v38 = vmov 0  ;;  %v15048_v48 = vmov 0  ;;  %v15064_v9 = vpack.c.bf16 %v14800_v33, %v14799_v19 }
 0x340   : > { %v15045_v38 = vsel %vm10931_vm0, 4294967295, %v15044_v38  ;;  %vm10939_vm5 = vmand %vm15047_vm3, %vm13964_vm14  ;;  %vm13966_vm15 = vcmp.lt.s32.totalorder %v10899_v40, 4  ;;  %vm15059_vm0 = vcmp.lt.s32.totalorder %v10811_v27, 4  ;;  %v15081_v16 = vpack.c.bf16 %v14802_v26, %v14801_v28  ;;  %v15143_v26 = vld [vmem:[#allocation158_spill] sm:$0xff] }
 0x341   : > { %v10920_v44 = vadd.s32 1, %v15042_v59  ;;  %15046 = vst [vmem:[#allocation52_spill] sm:$0xff] %v15045_v38  ;;  %v15049_v48 = vsel %vm10939_vm5, 4294967295, %v15048_v48  ;;  %vm10953_vm11 = vmand %vm10835_vm9, %vm13966_vm15  ;;  %v15051_v59 = vmov 0  ;;  %v15087_v45 = vpack.c.bf16 %v14813_v22, %v14803_v11  ;;  %v15144_v11 = vld [vmem:[#allocation159_spill] sm:$0xff] }
 0x342   : > { %15050 = vst [vmem:[#allocation235_spill] sm:$0xff] %v15049_v48  ;;  %7372 = vmatpush3.bf16.msra.mxu0 %v8348_v23  ;;  %v15052_v59 = vsel %vm10953_vm11, 4294967295, %v15051_v59  ;;  %v15057_v23 = vpack.c.bf16 %v14798_v61, %v14797_v17  ;;  %vm15058_vm15 = vmpackc.low %vm15008_vm8, %vm15007_vm7  ;;  %vm15067_vm7 = vnez %v14529_v56  ;;  %v15145_v33 = vpack.c.bf16 %v15143_v26, %v15144_v11  ;;  %v15158_v26 = vld [vmem:[#allocation162_spill] sm:$0xff]  ;;  %v15172_v61 = vld [vmem:[#allocation165_spill] sm:$0xff] }
 0x343   : > { %vm13969_vm6 = vcmp.lt.s32.totalorder %v10920_v44, 4  ;;  %15053 = vst [vmem:[#allocation236_spill] sm:$0xff] %v15052_v59  ;;  %7373 = vmatprep.subr.bf16.mxu0 %v8349_v54  ;;  %vm15065_vm10 = vmpackc.low %vm15020_vm2, %vm15019_vm1  ;;  %vm15077_vm1 = vnez %v14546_v53  ;;  %v15113_v53 = vld [vmem:[#allocation154_spill] sm:$0xff]  ;;  %v15155_v11 = vmov 0  ;;  %v15175_v19 = vmov 0  ;;  %v15178_v17 = vld [vmem:[#allocation36_spill] sm:$0xff] }
 0x344   : > { %vm10961_vm14 = vmand %vm10855_vm13, %vm13969_vm6  ;;  %vm15060_vm6 = vnez %v14521_v58  ;;  %v15114_v58 = vld [vmem:[#allocation155_spill] sm:$0xff]  ;;  %v15180_v15 = vpack.c.bf16 %v15178_v17, %v15179_v52  ;;  %v15189_v17 = vmov 0 }
 0x345   : > { %v15055_v50 = vsel %vm10961_vm14, 4294967295, %v15054_v50  ;;  %7358 = vmatmul.mubr.msk.bf16.gmra.mrb[8].mxu0 %vm15058_vm15, %v15057_v23  ;;  %vm10981_vm5 = vmand %vm15060_vm6, %vm15059_vm0  ;;  %vm15066_vm15 = vcmp.lt.s32.totalorder %v10829_v8, 4  ;;  %v15068_v23 = vmov 0  ;;  %vm15071_vm0 = vcmp.lt.s32.totalorder %v10853_v36, 4 }
 0x346   : > { %15056 = vst [vmem:[#allocation237_spill] sm:$0xff] %v15055_v50  ;;  %v15062_v30 = vsel %vm10981_vm5, 4294967295, %v15061_v30  ;;  %7374 = vmatpush3.bf16.msra.mxu0 %v8349_v54  ;;  %7361 = vmatprep.mubr.msk.bf16.mxu0 %vm15065_vm10, %v15064_v9  ;;  %vm10997_vm8 = vmand %vm15067_vm7, %vm15066_vm15  ;;  %vm15072_vm6 = vnez %v14538_v55  ;;  %v15073_v54 = vmov 0  ;;  %vm15076_vm10 = vcmp.lt.s32.totalorder %v10874_v62, 4 }
 0x347   : > { %15063 = vst [vmem:[#allocation238_spill] sm:$0xff] %v15062_v30  ;;  %v15069_v23 = vsel %vm10997_vm8, 4294967295, %v15068_v23  ;;  %7375 = vmatprep.subr.bf16.mxu0 %v8350_v46  ;;  %vm11005_vm11 = vmand %vm15072_vm6, %vm15071_vm0  ;;  %v15078_v9 = vmov 0  ;;  %vm15083_vm6 = vnez %v14583_v34  ;;  %v8353_v30 = vld [vmem:[#allocation10 + $0xf0] sm:$0xff]   ;;  %v15105_v34 = vld [vmem:[#allocation151_spill] sm:$0xff]  ;;  %v15110_v55 = vmov 0 }
 0x348   : > { %15070 = vst [vmem:[#allocation239_spill] sm:$0xff] %v15069_v23  ;;  %v15074_v54 = vsel %vm11005_vm11, 4294967295, %v15073_v54  ;;  %vm11013_vm2 = vmand %vm15077_vm1, %vm15076_vm10  ;;  %vm15082_vm10 = vcmp.lt.s32.totalorder %v10899_v40, 4  ;;  %v8354_v23 = vld [vmem:[#allocation10 + $0xf8] sm:$0xff]   ;;  %v15115_v56 = vpack.c.bf16 %v15113_v53, %v15114_v58  ;;  %v15125_v58 = vmov 0 }
 0x349   : > { %15075 = vst [vmem:[#allocation240_spill] sm:$0xff] %v15074_v54  ;;  %v15079_v9 = vsel %vm11013_vm2, 4294967295, %v15078_v9  ;;  %vm13984_vm15 = vmpackc.low %vm10997_vm8, %vm10981_vm5  ;;  %vm15089_vm5 = vnez %v14598_v13  ;;  %v15099_v54 = vld [vmem:[#allocation68_spill] sm:$0xff]  ;;  %v15106_v13 = vpack.c.bf16 %v14815_v29, %v15105_v34  ;;  %v15128_v53 = vld [vmem:[#allocation74_spill] sm:$0xff]  ;;  %v15140_v34 = vmov 0 }
 0x34a   : > { %15080 = vst [vmem:[#allocation241_spill] sm:$0xff] %v15079_v9  ;;  %7376 = vmatpush3.bf16.msra.mxu0 %v8350_v46  ;;  %vm13990_vm0 = vmpackc.low %vm11013_vm2, %vm11005_vm11  ;;  %v15084_v46 = vmov 0  ;;  %v15096_v9 = vmov 0  ;;  %vm15101_vm11 = vnez %v14853_v39  ;;  %v15135_v29 = vld [vmem:[#allocation153_spill] sm:$0xff] }
 0x34b   : > { %7377 = vmatprep.subr.bf16.mxu0 %v8351_v12  ;;  %vm11037_vm1 = vmand %vm15083_vm6, %vm15082_vm10  ;;  %vm15095_vm6 = vnez %v14832_v49 }
 0x34c   : > { %v15085_v46 = vsel %vm11037_vm1, 4294967295, %v15084_v46 }
 0x34d   : > { %7362 = vmatmul.mubr.msk.bf16.gmra.mrb[12].mxu0 %vm13984_vm15, %v15081_v16  ;;  %15086 = vst [vmem:[#allocation242_spill] sm:$0xff] %v15085_v46  ;;  %vm15088_vm15 = vcmp.lt.s32.totalorder %v10920_v44, 4  ;;  %v15090_v16 = vmov 0  ;;  %v15116_v46 = vld [vmem:[#allocation71_spill] sm:$0xff] }
 0x34e   : > { %7378 = vmatpush3.bf16.msra.mxu0 %v8351_v12  ;;  %7365 = vmatprep.mubr.msk.bf16.mxu0 %vm13990_vm0, %v15087_v45  ;;  %vm11053_vm8 = vmand %vm15089_vm5, %vm15088_vm15  ;;  %v15093_v12 = vld [vmem:[#allocation67_spill] sm:$0xff]  ;;  %vm15100_vm0 = vcmp.ge.s32.totalorder %v15099_v54, 0  ;;  %v15102_v45 = vmov 0  ;;  %vm15109_vm5 = vnez %v14865_v14 }
 0x34f   : > { %v15091_v16 = vsel %vm11053_vm8, 4294967295, %v15090_v16  ;;  %7379 = vmatprep.subr.bf16.mxu0 %v8352_v10  ;;  %vm15094_vm10 = vcmp.ge.s32.totalorder %v15093_v12, 0  ;;  %vm11069_vm2 = vmand %vm15101_vm11, %vm15100_vm0 }
 0x350   : > { %15092 = vst [vmem:[#allocation243_spill] sm:$0xff] %v15091_v16  ;;  %vm11061_vm7 = vmand %vm15095_vm6, %vm15094_vm10  ;;  %v15103_v45 = vsel %vm11069_vm2, 4294967295, %v15102_v45  ;;  %v8355_v16 = vld [vmem:[#allocation10 + $0x100] sm:$0xff]  }
 0x351   : > { %v15097_v9 = vsel %vm11061_vm7, 4294967295, %v15096_v9  ;;  %15104 = vst [vmem:[#allocation68_spill] sm:$0xff] %v15103_v45  ;;  %vm14003_vm15 = vmpackc.low %vm11053_vm8, %vm11037_vm1  ;;  %vm15118_vm1 = vnez %v14871_v25  ;;  %v15134_v45 = vld [vmem:[#allocation156_spill] sm:$0xff] }
 0x352   : > { %15098 = vst [vmem:[#allocation67_spill] sm:$0xff] %v15097_v9  ;;  %7380 = vmatpush3.bf16.msra.mxu0 %v8352_v10  ;;  %vm14007_vm10 = vmpackc.low %vm11069_vm2, %vm11061_vm7  ;;  %v15107_v10 = vld [vmem:[#allocation70_spill] sm:$0xff]  ;;  %vm15130_vm7 = vnez %v14881_v42  ;;  %v8356_v9 = vld [vmem:[#allocation10 + $0x108] sm:$0xff]   ;;  %v15136_v22 = vpack.c.bf16 %v15134_v45, %v15135_v29 }
 0x353   : > { %7381 = vmatprep.subr.bf16.mxu0 %v8353_v30  ;;  %vm15108_vm0 = vcmp.ge.s32.totalorder %v15107_v10, 0  ;;  %v15146_v29 = vld [vmem:[#allocation77_spill] sm:$0xff] }
 0x354   : > { %vm11093_vm14 = vmand %vm15109_vm5, %vm15108_vm0  ;;  %vm15124_vm5 = vnez %v14876_v60  ;;  %v8357_v45 = vld [vmem:[#allocation10 + $0x110] sm:$0xff]  }
 0x355   : > { %7366 = vmatmul.mubr.msk.bf16.gmra.mrb[16].mxu0 %vm14003_vm15, %v15106_v13  ;;  %v15111_v55 = vsel %vm11093_vm14, 4294967295, %v15110_v55  ;;  %vm15117_vm15 = vcmp.ge.s32.totalorder %v15116_v46, 0  ;;  %v15119_v13 = vmov 0 }
 0x356   : > { %15112 = vst [vmem:[#allocation70_spill] sm:$0xff] %v15111_v55  ;;  %7382 = vmatpush3.bf16.msra.mxu0 %v8353_v30  ;;  %7385 = vmatprep.mubr.msk.bf16.mxu0 %vm14007_vm10, %v15115_v56  ;;  %vm11109_vm8 = vmand %vm15118_vm1, %vm15117_vm15  ;;  %v15122_v30 = vld [vmem:[#allocation73_spill] sm:$0xff]  ;;  %vm15129_vm10 = vcmp.ge.s32.totalorder %v15128_v53, 0  ;;  %v15131_v56 = vmov 0  ;;  %v15166_v55 = vmov 0 }
 0x357   : > { %v15120_v13 = vsel %vm11109_vm8, 4294967295, %v15119_v13  ;;  %7383 = vmatprep.subr.bf16.mxu0 %v8354_v23  ;;  %vm15123_vm0 = vcmp.ge.s32.totalorder %v15122_v30, 0  ;;  %vm11125_vm2 = vmand %vm15130_vm7, %vm15129_vm10  ;;  %vm15139_vm7 = vnez %v14887_v43 }
 0x358   : > { %15121 = vst [vmem:[#allocation154_spill] sm:$0xff] %v15120_v13  ;;  %vm11117_vm11 = vmand %vm15124_vm5, %vm15123_vm0  ;;  %v15132_v56 = vsel %vm11125_vm2, 4294967295, %v15131_v56  ;;  %v15170_v13 = vld [vmem:[#allocation167_spill] sm:$0xff] }
 0x359   : > { %v15126_v58 = vsel %vm11117_vm11, 4294967295, %v15125_v58  ;;  %15133 = vst [vmem:[#allocation71_spill] sm:$0xff] %v15132_v56  ;;  %vm14017_vm15 = vmpackc.low %vm11109_vm8, %vm11093_vm14  ;;  %vm15148_vm14 = vnez %v14900_v51  ;;  %v15164_v56 = vld [vmem:[#allocation163_spill] sm:$0xff] }
 0x35a   : > { %15127 = vst [vmem:[#allocation155_spill] sm:$0xff] %v15126_v58  ;;  %7384 = vmatpush3.bf16.msra.mxu0 %v8354_v23  ;;  %vm14020_vm0 = vmpackc.low %vm11125_vm2, %vm11117_vm11  ;;  %v15137_v23 = vld [vmem:[#allocation76_spill] sm:$0xff]  ;;  %vm15160_vm11 = vnez %v14940_v41  ;;  %v8358_v58 = vld [vmem:[#allocation10 + $0x118] sm:$0xff]  }
 0x35b   : > { %7401 = vmatprep.subr.bf16.mxu0 %v8355_v16  ;;  %vm15138_vm10 = vcmp.ge.s32.totalorder %v15137_v23, 0 }
 0x35c   : > { %vm11149_vm5 = vmand %vm15139_vm7, %vm15138_vm10  ;;  %vm15154_vm7 = vnez %v14931_v24 }
 0x35d   : > { %7386 = vmatmul.mubr.msk.bf16.vlgmr.msra.gmra.mrb[4].mxu0 %vm14017_vm15, %v15136_v22  ;;  %v15141_v34 = vsel %vm11149_vm5, 4294967295, %v15140_v34  ;;  %vm15147_vm15 = vcmp.ge.s32.totalorder %v15146_v29, 0  ;;  %v15149_v22 = vmov 0 }
 0x35e   : > { %15142 = vst [vmem:[#allocation73_spill] sm:$0xff] %v15141_v34  ;;  %7402 = vmatpush3.bf16.msra.mxu0 %v8355_v16  ;;  %7389 = vmatprep.mubr.msk.bf16.mxu0 %vm14020_vm0, %v15145_v33  ;;  %vm11165_vm8 = vmand %vm15148_vm14, %vm15147_vm15  ;;  %v15152_v16 = vld [vmem:[#allocation161_spill] sm:$0xff]  ;;  %vm15159_vm0 = vcmp.ge.s32.totalorder %v15158_v26, 0  ;;  %v15161_v33 = vmov 0  ;;  %v8360_v34 = vld [vmem:[#allocation10 + $0x128] sm:$0xff]  }
 0x35f   : > { %v15150_v22 = vsel %vm11165_vm8, 4294967295, %v15149_v22  ;;  %7403 = vmatprep.subr.bf16.mxu0 %v8356_v9  ;;  %vm15153_vm10 = vcmp.ge.s32.totalorder %v15152_v16, 0  ;;  %vm11181_vm2 = vmand %vm15160_vm11, %vm15159_vm0  ;;  %vm15174_vm11 = vnez %v14961_v18  ;;  %v15209_v26 = vld [vmem:[#allocation178_spill] sm:$0xff]  ;;  %v15210_v16 = vld [vmem:[#allocation179_spill] sm:$0xff] }
 0x360   : > { %15151 = vst [vmem:[#allocation74_spill] sm:$0xff] %v15150_v22  ;;  %vm11173_vm1 = vmand %vm15154_vm7, %vm15153_vm10  ;;  %v15162_v33 = vsel %vm11181_vm2, 4294967295, %v15161_v33  ;;  %vm15165_vm7 = vcmp.ge.s32.totalorder %v15164_v56, 0  ;;  %vm15173_vm10 = vcmp.ge.s32.totalorder %v15172_v61, 0  ;;  %v15194_v22 = vld [vmem:[#allocation171_spill] sm:$0xff]  ;;  %v15211_v29 = vpack.c.bf16 %v15209_v26, %v15210_v16 }
 0x361   : > { %v15156_v11 = vsel %vm11173_vm1, 4294967295, %v15155_v11  ;;  %15163 = vst [vmem:[#allocation153_spill] sm:$0xff] %v15162_v33  ;;  %vm14032_vm15 = vmpackc.low %vm11165_vm8, %vm11149_vm5  ;;  %v15204_v61 = vld [vmem:[#allocation175_spill] sm:$0xff]  ;;  %v15219_v26 = vmov 0 }
 0x362   : > { %15157 = vst [vmem:[#allocation156_spill] sm:$0xff] %v15156_v11  ;;  %7404 = vmatpush3.bf16.msra.mxu0 %v8356_v9  ;;  %vm11197_vm0 = vmand %vm10747_vm4, %vm15165_vm7  ;;  %v15169_v9 = vld [vmem:[#allocation166_spill] sm:$0xff] }
 0x363   : > { %7405 = vmatprep.subr.bf16.mxu0 %v8357_v45  ;;  %v15167_v55 = vsel %vm11197_vm0, 4294967295, %v15166_v55  ;;  %v15171_v28 = vpack.c.bf16 %v15169_v9, %v15170_v13  ;;  %vm11213_vm14 = vmand %vm15174_vm11, %vm15173_vm10  ;;  %v15182_v13 = vld [vmem:[#allocation169_spill] sm:$0xff]  ;;  %v8359_v9 = vld [vmem:[#allocation10 + $0x120] sm:$0xff]  }
 0x364   : > { %15168 = vst [vmem:[#allocation76_spill] sm:$0xff] %v15167_v55  ;;  %v15176_v19 = vsel %vm11213_vm14, 4294967295, %v15175_v19  ;;  %vm15181_vm7 = vmpackc.low %vm11181_vm2, %vm11173_vm1  ;;  %v15193_v11 = vld [vmem:[#allocation50_spill] sm:$0xff] }
 0x365   : > { %7390 = vmatmul.mubr.msk.bf16.gmra.mrb[8].mxu0 %vm14032_vm15, %v15171_v28  ;;  %15177 = vst [vmem:[#allocation158_spill] sm:$0xff] %v15176_v19  ;;  %vm15183_vm15 = vcmp.ge.s32.totalorder %v15182_v13, 0  ;;  %v15184_v28 = vmov 0  ;;  %v1108_v33 = vadd.s32 1, %v15193_v11  ;;  %v15201_v13 = vmov 0 }
 0x366   : > { %7406 = vmatpush3.bf16.msra.mxu0 %v8357_v45  ;;  %7393 = vmatprep.mubr.msk.bf16.mxu0 %vm15181_vm7, %v15180_v15  ;;  %vm11229_vm5 = vmand %vm15043_vm12, %vm15183_vm15  ;;  %v15187_v45 = vld [vmem:[#allocation170_spill] sm:$0xff]  ;;  %v15192_v15 = vld [vmem:[#allocation49_spill] sm:$0xff]  ;;  %v1110_v11 = vadd.s32 1, %v14834_v35 }
 0x367   : > { %v15185_v28 = vsel %vm11229_vm5, 4294967295, %v15184_v28  ;;  %7407 = vmatprep.subr.bf16.mxu0 %v8358_v58  ;;  %vm15188_vm10 = vcmp.ge.s32.totalorder %v15187_v45, 0  ;;  %v1107_v52 = vadd.s32 1, %v15192_v15  ;;  %v15196_v45 = vmov 0  ;;  %v15214_v35 = vld [vmem:[#allocation56_spill] sm:$0xff] }
 0x368   : > { %15186 = vst [vmem:[#allocation159_spill] sm:$0xff] %v15185_v28  ;;  %vm11237_vm8 = vmand %vm15047_vm3, %vm15188_vm10  ;;  %vm15195_vm10 = vcmp.ge.s32.totalorder %v15194_v22, 0  ;;  %v1109_v15 = vadd.s32 1, %v14812_v7  ;;  %v15205_v22 = vld [vmem:[#allocation38_spill] sm:$0xff]  ;;  %v15208_v7 = vld [vmem:[#allocation55_spill] sm:$0xff] }
 0x369   : > { %v15190_v17 = vsel %vm11237_vm8, 4294967295, %v15189_v17  ;;  %vm11255_vm1 = vmand %vm10835_vm9, %vm15195_vm10  ;;  %v15206_v56 = vpack.c.bf16 %v15204_v61, %v15205_v22  ;;  %vm1123_vm15 = vcmp.ge.s32.totalorder %v1107_v52, 0  ;;  %vm1139_vm9 = vcmp.lt.s32.totalorder %v1107_v52, 4  ;;  %v15218_v22 = vld [vmem:[#allocation57_spill] sm:$0xff]  ;;  %v15247_v28 = vld [vmem:[#allocation72_spill] sm:$0xff] }
 0x36a   : > { %15191 = vst [vmem:[#allocation166_spill] sm:$0xff] %v15190_v17  ;;  %7408 = vmatpush3.bf16.msra.mxu0 %v8358_v58  ;;  %v15197_v45 = vsel %vm11255_vm1, 4294967295, %v15196_v45  ;;  %v15199_v58 = vld [vmem:[#allocation172_spill] sm:$0xff]  ;;  %vm15207_vm10 = vmpackc.low %vm11213_vm14, %vm11197_vm0  ;;  %vm1140_vm14 = vcmp.lt.s32.totalorder %v1108_v33, 4  ;;  %v1112_v61 = vadd.s32 1, %v15214_v35  ;;  %vm1125_vm12 = vcmp.ge.s32.totalorder %v1109_v15, 0 }
 0x36b   : > { %7409 = vmatprep.subr.bf16.mxu0 %v8359_v9  ;;  %15198 = vst [vmem:[#allocation167_spill] sm:$0xff] %v15197_v45  ;;  %vm15200_vm7 = vcmp.ge.s32.totalorder %v15199_v58, 0  ;;  %v1111_v58 = vadd.s32 1, %v15208_v7  ;;  %vm1141_vm11 = vcmp.lt.s32.totalorder %v1109_v15, 4  ;;  %v1113_v16 = vadd.s32 1, %v15218_v22  ;;  %v8362_v15 = vld [vmem:[#allocation10 + $0x138] sm:$0xff]  }
 0x36c   : > { %vm11264_vm2 = vmand %vm10855_vm13, %vm15200_vm7  ;;  %v15237_v7 = vld [vmem:[#allocation182_spill] sm:$0xff]  ;;  %v15238_v35 = vld [vmem:[#allocation183_spill] sm:$0xff]  ;;  %vm15241_vm3 = vnez %v15197_v45  ;;  %v1115_v22 = vadd.s32 1, %v14889_v2  ;;  %v15254_v2 = vmov 0 }
 0x36d   : > { %v15202_v13 = vsel %vm11264_vm2, 4294967295, %v15201_v13  ;;  %7394 = vmatmul.mubr.msk.bf16.gmra.mrb[12].mxu0 %vm15207_vm10, %v15206_v56  ;;  %vm15212_vm7 = vmpackc.low %vm11237_vm8, %vm11229_vm5  ;;  %vm1124_vm10 = vcmp.ge.s32.totalorder %v1108_v33, 0  ;;  %v8361_v56 = vld [vmem:[#allocation10 + $0x130] sm:$0xff]   ;;  %vm1142_vm8 = vcmp.lt.s32.totalorder %v1110_v11, 4  ;;  %vm1127_vm4 = vcmp.ge.s32.totalorder %v1111_v58, 0  ;;  %v15349_v45 = vld [vmem:[#allocation43_spill] sm:$0xff] }
 0x36e   : > { %15203 = vst [vmem:[#allocation36_spill] sm:$0xff] %v15202_v13  ;;  %7410 = vmatpush3.bf16.msra.mxu0 %v8359_v9  ;;  %7397 = vmatprep.mubr.msk.bf16.mxu0 %vm15212_vm7, %v15211_v29  ;;  %vm11295_vm5 = vmand %vm1123_vm15, %vm1139_vm9  ;;  %v15215_v29 = vmov 0  ;;  %vm1143_vm6 = vcmp.lt.s32.totalorder %v1111_v58, 4  ;;  %v15224_v33 = vmov 0  ;;  %vm1128_vm15 = vcmp.ge.s32.totalorder %v1112_v61, 0  ;;  %v15227_v9 = vld [vmem:[#allocation58_spill] sm:$0xff] }
 0x36f   : > { %7411 = vmatprep.subr.bf16.mxu0 %v8360_v34  ;;  %v15216_v29 = vsel %vm11295_vm5, 4294967295, %v15215_v29  ;;  %vm11300_vm0 = vmand %vm1124_vm10, %vm1140_vm14  ;;  %vm1144_vm7 = vcmp.lt.s32.totalorder %v1112_v61, 4  ;;  %v1114_v52 = vadd.s32 1, %v15227_v9  ;;  %vm15230_vm5 = vcmp.ge.s32.totalorder %v1110_v11, 0  ;;  %v15246_v9 = vld [vmem:[#allocation78_spill] sm:$0xff] }
 0x370   : > { %15217 = vst [vmem:[#allocation173_spill] sm:$0xff] %v15216_v29  ;;  %v15220_v26 = vsel %vm11300_vm0, 4294967295, %v15219_v26  ;;  %vm11308_vm9 = vmand %vm1125_vm12, %vm1141_vm11  ;;  %v15234_v58 = vmov 0  ;;  %vm1129_vm12 = vcmp.ge.s32.totalorder %v1113_v16, 0  ;;  %vm1145_vm1 = vcmp.lt.s32.totalorder %v1113_v16, 4 }
 0x371   : > { %15221 = vst [vmem:[#allocation49_spill] sm:$0xff] %v15220_v26  ;;  %v15225_v33 = vsel %vm11308_vm9, 4294967295, %v15224_v33  ;;  %vm11318_vm2 = vmand %vm15230_vm5, %vm1142_vm8  ;;  %v15239_v61 = vpack.c.bf16 %v15237_v7, %v15238_v35  ;;  %vm15240_vm13 = vnez %v15202_v13  ;;  %v15243_v11 = vmov 0  ;;  %v15286_v7 = vld [vmem:[#allocation62_spill] sm:$0xff] }
 0x372   : > { %7412 = vmatpush3.bf16.msra.mxu0 %v8360_v34  ;;  %15226 = vst [vmem:[#allocation50_spill] sm:$0xff] %v15225_v33  ;;  %v15231_v34 = vmov 0  ;;  %vm11322_vm11 = vmand %vm1127_vm4, %vm1143_vm6  ;;  %v15248_v17 = vpack.c.bf16 %v15246_v9, %v15247_v28  ;;  %vm15249_vm4 = vnez %v14853_v39  ;;  %vm15250_vm6 = vnez %v14832_v49  ;;  %v8363_v28 = vld [vmem:[#allocation10 + $0x140] sm:$0xff]  }
 0x373   : > { %7413 = vmatprep.subr.bf16.mxu0 %v8361_v56  ;;  %v15232_v34 = vsel %vm11318_vm2, 4294967295, %v15231_v34  ;;  %v15235_v58 = vsel %vm11322_vm11, 4294967295, %v15234_v58  ;;  %vm15242_vm9 = vmpackc.low %vm15240_vm13, %vm15241_vm3  ;;  %vm1130_vm5 = vcmp.ge.s32.totalorder %v1114_v52, 0  ;;  %vm1146_vm14 = vcmp.lt.s32.totalorder %v1114_v52, 4  ;;  %v15277_v52 = vld [vmem:[#allocation37_spill] sm:$0xff] }
 0x374   : > { %15233 = vst [vmem:[#allocation175_spill] sm:$0xff] %v15232_v34  ;;  %15236 = vst [vmem:[#allocation38_spill] sm:$0xff] %v15235_v58  ;;  %v1116_v16 = vadd.s32 1, %v14902_v5  ;;  %v15262_v5 = vmov 0  ;;  %vm15270_vm10 = vcmp.lt.s32.totalorder %v10082_v31, 4  ;;  %vm15271_vm11 = vnez %v15225_v33 }
 0x375   : > { %7398 = vmatmul.mubr.msk.bf16.gmra.mrb[16].mxu0 %vm15242_vm9, %v15239_v61  ;;  %vm11334_vm0 = vmand %vm1128_vm15, %vm1144_vm7  ;;  %vm15252_vm7 = vcmp.lt.s32.totalorder %v10064_v6, 4  ;;  %vm15253_vm9 = vnez %v15216_v29  ;;  %v1117_v6 = vadd.s32 1, %v14933_v57  ;;  %v8364_v57 = vld [vmem:[#allocation10 + $0x148] sm:$0xff]   ;;  %v15283_v31 = vmov 0  ;;  %v15287_v61 = vld [vmem:[#allocation75_spill] sm:$0xff] }
 0x376   : > { %v15244_v11 = vsel %vm11334_vm0, 4294967295, %v15243_v11  ;;  %7414 = vmatpush3.bf16.msra.mxu0 %v8361_v56  ;;  %vm15251_vm8 = vmpackc.low %vm15249_vm4, %vm15250_vm6  ;;  %v15257_v56 = vmov 0  ;;  %vm15261_vm6 = vnez %v15220_v26  ;;  %vm1148_vm0 = vcmp.lt.s32.totalorder %v1116_v16, 4 }
 0x377   : > { %15245 = vst [vmem:[#allocation55_spill] sm:$0xff] %v15244_v11  ;;  %7417 = vmatprep.mubr.msk.bf16.mxu0 %vm15251_vm8, %v15248_v17  ;;  %vm11352_vm15 = vmand %vm15253_vm9, %vm15252_vm7  ;;  %7415 = vmatprep.subr.bf16.mxu0 %v8362_v15  ;;  %vm15260_vm8 = vcmp.lt.s32.totalorder %v10068_v47, 4  ;;  %v15265_v17 = vmov 0  ;;  %v15272_v47 = vmov 0  ;;  %v1118_v35 = vadd.s32 1, %v15286_v7  ;;  %v15297_v7 = vld [vmem:[#allocation39_spill] sm:$0xff] }
 0x378   : > { %v15255_v2 = vsel %vm11352_vm15, 4294967295, %v15254_v2  ;;  %vm11356_vm3 = vmand %vm1129_vm12, %vm1145_vm1  ;;  %vm1131_vm1 = vcmp.ge.s32.totalorder %v1115_v22, 0  ;;  %vm1147_vm12 = vcmp.lt.s32.totalorder %v1115_v22, 4  ;;  %vm15278_vm15 = vcmp.lt.s32.totalorder %v15277_v52, 4  ;;  %v15288_v22 = vld [vmem:[#allocation69_spill] sm:$0xff]  ;;  %v15296_v52 = vld [vmem:[#allocation63_spill] sm:$0xff] }
 0x379   : > { %15256 = vst [vmem:[#allocation178_spill] sm:$0xff] %v15255_v2  ;;  %v15258_v56 = vsel %vm11356_vm3, 4294967295, %v15257_v56  ;;  %vm11364_vm4 = vmand %vm15261_vm6, %vm15260_vm8  ;;  %vm1132_vm3 = vcmp.ge.s32.totalorder %v1116_v16, 0  ;;  %vm15279_vm6 = vnez %v15232_v34  ;;  %v15289_v9 = vpack.c.bf16 %v15287_v61, %v15288_v22  ;;  %v15303_v61 = vld [vmem:[#allocation88_spill] sm:$0xff]  ;;  %v15304_v22 = vld [vmem:[#allocation85_spill] sm:$0xff] }
 0x37a   : > { %15259 = vst [vmem:[#allocation179_spill] sm:$0xff] %v15258_v56  ;;  %v15263_v5 = vsel %vm11364_vm4, 4294967295, %v15262_v5  ;;  %vm11373_vm13 = vmand %vm1130_vm5, %vm1146_vm14  ;;  %7416 = vmatpush3.bf16.msra.mxu0 %v8362_v15  ;;  %v15280_v15 = vmov 0  ;;  %v15293_v16 = vmov 0  ;;  %vm15298_vm14 = vcmp.lt.s32.totalorder %v15297_v7, 4 }
 0x37b   : > { %15264 = vst [vmem:[#allocation56_spill] sm:$0xff] %v15263_v5  ;;  %v15266_v17 = vsel %vm11373_vm13, 4294967295, %v15265_v17  ;;  %vm11385_vm2 = vmand %vm15271_vm11, %vm15270_vm10  ;;  %7433 = vmatprep.subr.bf16.mxu0 %v8363_v28  ;;  %vm1133_vm10 = vcmp.ge.s32.totalorder %v1117_v6, 0  ;;  %vm1149_vm11 = vcmp.lt.s32.totalorder %v1117_v6, 4  ;;  %v1119_v6 = vadd.s32 1, %v15296_v52  ;;  %v15309_v52 = vld [vmem:[#allocation40_spill] sm:$0xff] }
 0x37c   : > { %15267 = vst [vmem:[#allocation57_spill] sm:$0xff] %v15266_v17  ;;  %v15273_v47 = vsel %vm11385_vm2, 4294967295, %v15272_v47  ;;  %vm11397_vm4 = vmand %vm15279_vm6, %vm15278_vm15  ;;  %vm15290_vm15 = vnez %v14871_v25  ;;  %vm15291_vm6 = vnez %v14865_v14  ;;  %vm15299_vm5 = vnez %v15235_v58  ;;  %v15348_v25 = vld [vmem:[#allocation66_spill] sm:$0xff] }
 0x37d   : > { %15274 = vst [vmem:[#allocation58_spill] sm:$0xff] %v15273_v47  ;;  %v15281_v15 = vsel %vm11397_vm4, 4294967295, %v15280_v15  ;;  %vm11401_vm9 = vmand %vm1131_vm1, %vm1147_vm12  ;;  %v15300_v49 = vmov 0  ;;  %v15305_v14 = vpack.c.bf16 %v15303_v61, %v15304_v22  ;;  %v15312_v7 = vmov 0 }
 0x37e   : > { %15282 = vst [vmem:[#allocation182_spill] sm:$0xff] %v15281_v15  ;;  %v15284_v31 = vsel %vm11401_vm9, 4294967295, %v15283_v31  ;;  %vm15292_vm1 = vmpackc.low %vm15290_vm15, %vm15291_vm6  ;;  %vm15310_vm6 = vcmp.lt.s32.totalorder %v15309_v52, 4  ;;  %vm15311_vm15 = vnez %v15244_v11  ;;  %v15315_v61 = vmov 0  ;;  %v15339_v52 = vld [vmem:[#allocation86_spill] sm:$0xff] }
 0x37f   : > { %15285 = vst [vmem:[#allocation183_spill] sm:$0xff] %v15284_v31  ;;  %7418 = vmatmul.mubr.msk.bf16.vlgmr.msra.gmra.mrb[4].mxu0 %vm15292_vm1, %v15289_v9  ;;  %vm11418_vm12 = vmand %vm1132_vm3, %vm1148_vm0  ;;  %vm15306_vm1 = vnez %v14881_v42  ;;  %vm15307_vm3 = vnez %v14876_v60  ;;  %v1120_v9 = vadd.s32 1, %v14963_v0  ;;  %vm15318_vm4 = vcmp.lt.s32.totalorder %v10553_v21, 4  ;;  %v8366_v21 = vld [vmem:[#allocation10 + $0x158] sm:$0xff]  }
 0x380   : > { %v15294_v16 = vsel %vm11418_vm12, 4294967295, %v15293_v16  ;;  %vm11427_vm7 = vmand %vm15299_vm5, %vm15298_vm14  ;;  %7434 = vmatpush3.bf16.msra.mxu0 %v8363_v28  ;;  %v8365_v28 = vld [vmem:[#allocation10 + $0x150] sm:$0xff]   ;;  %v15320_v0 = vmov 0  ;;  %vm1135_vm5 = vcmp.ge.s32.totalorder %v1119_v6, 0  ;;  %v15325_v22 = vmov 0 }
 0x381   : > { %15295 = vst [vmem:[#allocation78_spill] sm:$0xff] %v15294_v16  ;;  %v15301_v49 = vsel %vm11427_vm7, 4294967295, %v15300_v49  ;;  %vm15308_vm0 = vmpackc.low %vm15306_vm1, %vm15307_vm3  ;;  %7435 = vmatprep.subr.bf16.mxu0 %v8364_v57  ;;  %vm1134_vm3 = vcmp.ge.s32.totalorder %v1118_v35, 0  ;;  %vm1150_vm1 = vcmp.lt.s32.totalorder %v1118_v35, 4  ;;  %vm15329_vm7 = vnez %v14961_v18  ;;  %v15434_v18 = vld [vmem:[#allocation64_spill] sm:$0xff] }
 0x382   : > { %15302 = vst [vmem:[#allocation72_spill] sm:$0xff] %v15301_v49  ;;  %7421 = vmatprep.mubr.msk.bf16.mxu0 %vm15308_vm0, %v15305_v14  ;;  %vm11444_vm14 = vmand %vm15311_vm15, %vm15310_vm6  ;;  %vm15319_vm6 = vnez %v15258_v56  ;;  %v15323_v14 = vld [vmem:[#allocation41_spill] sm:$0xff]  ;;  %v15335_v35 = vmov 0  ;;  %vm15342_vm12 = vnez %v14900_v51  ;;  %v15345_v42 = vmov 0 }
 0x383   : > { %v15313_v7 = vsel %vm11444_vm14, 4294967295, %v15312_v7  ;;  %vm11448_vm2 = vmand %vm1133_vm10, %vm1149_vm11  ;;  %vm1151_vm11 = vcmp.lt.s32.totalorder %v1119_v6, 4  ;;  %vm15324_vm10 = vcmp.lt.s32.totalorder %v15323_v14, 4  ;;  %v15338_v6 = vld [vmem:[#allocation65_spill] sm:$0xff]  ;;  %v15340_v14 = vld [vmem:[#allocation84_spill] sm:$0xff]  ;;  %vm15343_vm14 = vnez %v14887_v43 }
 0x384   : > { %15314 = vst [vmem:[#allocation37_spill] sm:$0xff] %v15313_v7  ;;  %v15316_v61 = vsel %vm11448_vm2, 4294967295, %v15315_v61  ;;  %vm11460_vm15 = vmand %vm15319_vm6, %vm15318_vm4  ;;  %7436 = vmatpush3.bf16.msra.mxu0 %v8364_v57  ;;  %vm1136_vm4 = vcmp.ge.s32.totalorder %v1120_v9, 0  ;;  %vm1152_vm6 = vcmp.lt.s32.totalorder %v1120_v9, 4  ;;  %v15332_v57 = vmov 0 }
 0x385   : > { %15317 = vst [vmem:[#allocation62_spill] sm:$0xff] %v15316_v61  ;;  %v15321_v0 = vsel %vm11460_vm15, 4294967295, %v15320_v0  ;;  %vm11468_vm2 = vmand %vm11373_vm13, %vm15324_vm10  ;;  %7437 = vmatprep.subr.bf16.mxu0 %v8365_v28  ;;  %vm15331_vm13 = vnez %v14989_v3  ;;  %v1121_v9 = vadd.s32 1, %v15338_v6  ;;  %v15341_v60 = vpack.c.bf16 %v15339_v52, %v15340_v14  ;;  %v15355_v52 = vld [vmem:[#allocation98_spill] sm:$0xff]  ;;  %v15418_v3 = vld [vmem:[#allocation60_spill] sm:$0xff] }
 0x386   : > { %15322 = vst [vmem:[#allocation75_spill] sm:$0xff] %v15321_v0  ;;  %v15326_v22 = vsel %vm11468_vm2, 4294967295, %v15325_v22  ;;  %vm11484_vm8 = vmand %vm1134_vm3, %vm1150_vm1  ;;  %v1122_v39 = vadd.s32 1, %v15348_v25  ;;  %vm15351_vm1 = vnez %v15284_v31  ;;  %v15352_v6 = vmov 0  ;;  %v15356_v14 = vld [vmem:[#allocation94_spill] sm:$0xff] }
 0x387   : > { %15327 = vst [vmem:[#allocation69_spill] sm:$0xff] %v15326_v22  ;;  %v15333_v57 = vsel %vm11484_vm8, 4294967295, %v15332_v57  ;;  %vm11488_vm0 = vmand %vm1135_vm5, %vm1151_vm11  ;;  %vm15350_vm5 = vcmp.lt.s32.totalorder %v15349_v45, 4  ;;  %v15357_v43 = vpack.c.bf16 %v15355_v52, %v15356_v14  ;;  %v15364_v25 = vmov 0  ;;  %v8367_v45 = vld [vmem:[#allocation10 + $0x160] sm:$0xff]  }
 0x388   : > { %15334 = vst [vmem:[#allocation63_spill] sm:$0xff] %v15333_v57  ;;  %v15336_v35 = vsel %vm11488_vm0, 4294967295, %v15335_v35  ;;  %vm15344_vm15 = vmpackc.low %vm15342_vm12, %vm15343_vm14  ;;  %7438 = vmatpush3.bf16.msra.mxu0 %v8365_v28  ;;  %vm15363_vm14 = vnez %v15294_v16  ;;  %vm1137_vm2 = vcmp.ge.s32.totalorder %v1121_v9, 0  ;;  %v15373_v28 = vmov 0 }
 0x389   : > { %15337 = vst [vmem:[#allocation39_spill] sm:$0xff] %v15336_v35  ;;  %7422 = vmatmul.mubr.msk.bf16.gmra.mrb[8].mxu0 %vm15344_vm15, %v15341_v60  ;;  %vm11501_vm9 = vmand %vm1136_vm4, %vm1152_vm6  ;;  %vm15358_vm15 = vnez %v14940_v41  ;;  %vm15359_vm6 = vnez %v14931_v24  ;;  %v15361_v60 = vld [vmem:[#allocation44_spill] sm:$0xff]  ;;  %7439 = vmatprep.subr.bf16.mxu0 %v8366_v21  ;;  %v15390_v14 = vmov 0  ;;  %v15394_v24 = vld [vmem:[#allocation107_spill] sm:$0xff] }
 0x38a   : > { %v15346_v42 = vsel %vm11501_vm9, 4294967295, %v15345_v42  ;;  %vm11510_vm3 = vmand %vm15351_vm1, %vm15350_vm5  ;;  %vm15362_vm4 = vcmp.lt.s32.totalorder %v15361_v60, 4  ;;  %vm1153_vm1 = vcmp.lt.s32.totalorder %v1121_v9, 4  ;;  %vm15372_vm9 = vcmp.lt.s32.totalorder %v10829_v8, 4  ;;  %v15385_v9 = vld [vmem:[#allocation93_spill] sm:$0xff]  ;;  %v15393_v60 = vld [vmem:[#allocation112_spill] sm:$0xff] }
 0x38b   : > { %15347 = vst [vmem:[#allocation88_spill] sm:$0xff] %v15346_v42  ;;  %v15353_v6 = vsel %vm11510_vm3, 4294967295, %v15352_v6  ;;  %vm15360_vm11 = vmpackc.low %vm15358_vm15, %vm15359_vm6  ;;  %vm15367_vm6 = vcmp.lt.s32.totalorder %v10811_v27, 4  ;;  %vm15376_vm5 = vnez %v15000_v1  ;;  %vm15377_vm3 = vnez %v15012_v37  ;;  %v15424_v1 = vld [vmem:[#allocation186_spill] sm:$0xff] }
 0x38c   : > { %15354 = vst [vmem:[#allocation85_spill] sm:$0xff] %v15353_v6  ;;  %7425 = vmatprep.mubr.msk.bf16.mxu0 %vm15360_vm11, %v15357_v43  ;;  %vm11526_vm12 = vmand %vm15363_vm14, %vm15362_vm4  ;;  %vm15368_vm11 = vnez %v15316_v61  ;;  %v15369_v43 = vmov 0  ;;  %vm1138_vm4 = vcmp.ge.s32.totalorder %v1122_v39, 0  ;;  %vm1154_vm14 = vcmp.lt.s32.totalorder %v1122_v39, 4  ;;  %7440 = vmatpush3.bf16.msra.mxu0 %v8366_v21  ;;  %v8368_v39 = vld [vmem:[#allocation10 + $0x168] sm:$0xff]   ;;  %v15384_v21 = vld [vmem:[#allocation97_spill] sm:$0xff] }
 0x38d   : > { %v15365_v25 = vsel %vm11526_vm12, 4294967295, %v15364_v25  ;;  %vm11538_vm15 = vmand %vm15368_vm11, %vm15367_vm6  ;;  %7441 = vmatprep.subr.bf16.mxu0 %v8367_v45  ;;  %v15378_v27 = vmov 0  ;;  %v15381_v8 = vmov 0  ;;  %v15386_v52 = vpack.c.bf16 %v15384_v21, %v15385_v9  ;;  %v8369_v21 = vld [vmem:[#allocation10 + $0x170] sm:$0xff]  }
 0x38e   : > { %15366 = vst [vmem:[#allocation40_spill] sm:$0xff] %v15365_v25  ;;  %v15370_v43 = vsel %vm11538_vm15, 4294967295, %v15369_v43  ;;  %vm11546_vm10 = vmand %vm11484_vm8, %vm15372_vm9  ;;  %vm15387_vm12 = vnez %v14953_v32  ;;  %vm15389_vm6 = vcmp.lt.s32.totalorder %v10853_v36, 4  ;;  %v15395_v41 = vpack.c.bf16 %v15393_v60, %v15394_v24  ;;  %v15416_v60 = vld [vmem:[#allocation188_spill] sm:$0xff]  ;;  %v15420_v32 = vld [vmem:[#allocation59_spill] sm:$0xff] }
 0x38f   : > { %15371 = vst [vmem:[#allocation41_spill] sm:$0xff] %v15370_v43  ;;  %v15374_v28 = vsel %vm11546_vm10, 4294967295, %v15373_v28  ;;  %vm11558_vm11 = vmand %vm1137_vm2, %vm1153_vm1  ;;  %v15400_v36 = vmov 0  ;;  %v15404_v24 = vmov 0  ;;  %vm15497_vm10 = vnez %v15235_v58 }
 0x390   : > { %15375 = vst [vmem:[#allocation65_spill] sm:$0xff] %v15374_v28  ;;  %v15379_v27 = vsel %vm11558_vm11, 4294967295, %v15378_v27  ;;  %vm11562_vm9 = vmand %vm1138_vm4, %vm1154_vm14  ;;  %7442 = vmatpush3.bf16.msra.mxu0 %v8367_v45  ;;  %vm15396_vm14 = vnez %v14978_v4  ;;  %vm15399_vm4 = vnez %v15346_v42  ;;  %v15412_v45 = vld [vmem:[#allocation105_spill] sm:$0xff] }
 0x391   : > { %15380 = vst [vmem:[#allocation86_spill] sm:$0xff] %v15379_v27  ;;  %v15382_v8 = vsel %vm11562_vm9, 4294967295, %v15381_v8  ;;  %vm15388_vm8 = vmpackc.low %vm15329_vm7, %vm15387_vm12  ;;  %7443 = vmatprep.subr.bf16.mxu0 %v8368_v39  ;;  %vm15403_vm7 = vcmp.lt.s32.totalorder %v10899_v40, 4  ;;  %v15411_v40 = vld [vmem:[#allocation110_spill] sm:$0xff] }
 0x392   : > { %15383 = vst [vmem:[#allocation84_spill] sm:$0xff] %v15382_v8  ;;  %7426 = vmatmul.mubr.msk.bf16.gmra.mrb[12].mxu0 %vm15388_vm8, %v15386_v52  ;;  %vm11578_vm2 = vmand %vm11488_vm0, %vm15389_vm6  ;;  %vm15398_vm8 = vcmp.lt.s32.totalorder %v10874_v62, 4  ;;  %v15408_v62 = vmov 0  ;;  %v15413_v9 = vpack.c.bf16 %v15411_v40, %v15412_v45  ;;  %v8396_v52 = vld [vmem:[#allocation11 + $0x8] sm:$0xff]   ;;  %vm15421_vm6 = vnez %v15420_v32  ;;  %v8371_v40 = vld [vmem:[#allocation10 + $0x180] sm:$0xff]  }
 0x393   : > { %v15391_v14 = vsel %vm11578_vm2, 4294967295, %v15390_v14  ;;  %vm15397_vm1 = vmpackc.low %vm15331_vm13, %vm15396_vm14  ;;  %v8397_v45 = vld [vmem:[#allocation11 + $0x10] sm:$0xff]   ;;  %v15431_v32 = vld [vmem:[#allocation191_spill] sm:$0xff] }
 0x394   : > { %15392 = vst [vmem:[#allocation66_spill] sm:$0xff] %v15391_v14  ;;  %7429 = vmatprep.mubr.msk.bf16.mxu0 %vm15397_vm1, %v15395_v41  ;;  %vm11594_vm12 = vmand %vm15399_vm4, %vm15398_vm8  ;;  %vm15407_vm8 = vcmp.lt.s32.totalorder %v10920_v44, 4  ;;  %7444 = vmatpush3.bf16.msra.mxu0 %v8368_v39  ;;  %v8370_v41 = vld [vmem:[#allocation10 + $0x178] sm:$0xff]   ;;  %v8395_v44 = vld [vmem:[#allocation11] sm:$0xff]  }
 0x395   : > { %v15401_v36 = vsel %vm11594_vm12, 4294967295, %v15400_v36  ;;  %vm11606_vm1 = vmand %vm11558_vm11, %vm15403_vm7  ;;  %7445 = vmatprep.subr.bf16.mxu0 %v8369_v21  ;;  %v15415_v39 = vld [vmem:[#allocation187_spill] sm:$0xff]  ;;  %7561 = vmatprep.subr.bf16.mxu1 %v8395_v44  ;;  %vm15484_vm12 = vnez %v15225_v33 }
 0x396   : > { %15402 = vst [vmem:[#allocation43_spill] sm:$0xff] %v15401_v36  ;;  %v15405_v24 = vsel %vm11606_vm1, 4294967295, %v15404_v24  ;;  %vm11614_vm14 = vmand %vm11562_vm9, %vm15407_vm8  ;;  %v15417_v4 = vpack.c.bf16 %v15415_v39, %v15416_v60  ;;  %vm15419_vm8 = vnez %v15418_v3  ;;  %7562 = vmatpush3.bf16.msra.mxu1 %v8395_v44  ;;  %v15426_v39 = vld [vmem:[#allocation226_spill] sm:$0xff]  ;;  %v15428_v60 = vld [vmem:[#allocation61_spill] sm:$0xff]  ;;  %vm15467_vm1 = vcmp.ge.s32.totalorder %v15093_v12, 0 }
 0x397   : > { %15406 = vst [vmem:[#allocation98_spill] sm:$0xff] %v15405_v24  ;;  %v15409_v62 = vsel %vm11614_vm14, 4294967295, %v15408_v62  ;;  %vm15414_vm7 = vmpackc.low %vm15377_vm3, %vm15376_vm5  ;;  %7563 = vmatprep.subr.bf16.mxu1 %v8396_v52  ;;  %vm15429_vm5 = vnez %v15428_v60  ;;  %v15432_v44 = vld [vmem:[#allocation189_spill] sm:$0xff]  ;;  %vm15468_vm14 = vnez %v15216_v29  ;;  %v8378_v12 = vld [vmem:[#allocation10 + $0x1b8] sm:$0xff]  }
 0x398   : > { %15410 = vst [vmem:[#allocation94_spill] sm:$0xff] %v15409_v62  ;;  %7446 = vmatpush3.bf16.msra.mxu0 %v8369_v21  ;;  %vm15422_vm13 = vmpackc.low %vm15419_vm8, %vm15421_vm6  ;;  %v15423_v21 = vld [vmem:[#allocation185_spill] sm:$0xff]  ;;  %v15433_v3 = vpack.c.bf16 %v15431_v32, %v15432_v44  ;;  %v15444_v32 = vld [vmem:[#allocation231_spill] sm:$0xff] }
 0x399   : > { %7447 = vmatprep.subr.bf16.mxu0 %v8370_v41  ;;  %v15425_v37 = vpack.c.bf16 %v15423_v21, %v15424_v1  ;;  %v8373_v1 = vld [vmem:[#allocation10 + $0x190] sm:$0xff]   ;;  %v15439_v21 = vld [vmem:[#allocation192_spill] sm:$0xff]  ;;  %v15448_v44 = vld [vmem:[#allocation195_spill] sm:$0xff] }
 0x39a   : > { %7430 = vmatmul.mubr.msk.bf16.gmra.mrb[16].mxu0 %vm15414_vm7, %v15413_v9  ;;  %v8372_v9 = vld [vmem:[#allocation10 + $0x188] sm:$0xff]   ;;  %7564 = vmatpush3.bf16.msra.mxu1 %v8396_v52  ;;  %vm15427_vm7 = vnez %v15426_v39  ;;  %v8399_v52 = vld [vmem:[#allocation11 + $0x20] sm:$0xff]   ;;  %vm11690_vm2 = vmand %vm15468_vm14, %vm15467_vm1  ;;  %vm15480_vm1 = vnez %v15055_v50 }
 0x39b   : > { %7449 = vmatprep.mubr.msk.bf16.mxu0 %vm15422_vm13, %v15417_v4  ;;  %vm15430_vm3 = vmpackc.low %vm15427_vm7, %vm15429_vm5  ;;  %7565 = vmatprep.subr.bf16.mxu1 %v8397_v45  ;;  %v8398_v4 = vld [vmem:[#allocation11 + $0x18] sm:$0xff]   ;;  %vm15435_vm13 = vnez %v15434_v18  ;;  %v15442_v39 = vld [vmem:[#allocation232_spill] sm:$0xff]  ;;  %vm15445_vm5 = vnez %v15444_v32 }
 0x39c   : > { %7448 = vmatpush3.bf16.msra.mxu0 %v8370_v41  ;;  %v15436_v41 = vld [vmem:[#allocation228_spill] sm:$0xff]  ;;  %v15456_v32 = vld [vmem:[#allocation201_spill] sm:$0xff] }
 0x39d   : > { %7465 = vmatprep.subr.bf16.mxu0 %v8371_v40  ;;  %vm15437_vm6 = vnez %v15436_v41  ;;  %v15450_v41 = vld [vmem:[#allocation234_spill] sm:$0xff] }
 0x39e   : > { %vm15438_vm8 = vmpackc.low %vm15435_vm13, %vm15437_vm6  ;;  %7566 = vmatpush3.bf16.msra.mxu1 %v8397_v45 }
 0x39f   : > { %7567 = vmatprep.subr.bf16.mxu1 %v8398_v4 }
 0x3a2   : > { %7450 = vmatmul.mubr.msk.bf16.vlgmr.msra.gmra.mrb[4].mxu0 %vm15430_vm3, %v15425_v37  ;;  %v8374_v37 = vld [vmem:[#allocation10 + $0x198] sm:$0xff]   ;;  %7568 = vmatpush3.bf16.msra.mxu1 %v8398_v4  ;;  %vm15443_vm3 = vnez %v15442_v39  ;;  %v8375_v4 = vld [vmem:[#allocation10 + $0x1a0] sm:$0xff]  }
 0x3a3   : > { %7466 = vmatpush3.bf16.msra.mxu0 %v8371_v40  ;;  %7453 = vmatprep.mubr.msk.bf16.mxu0 %vm15438_vm8, %v15433_v3  ;;  %v15440_v40 = vld [vmem:[#allocation194_spill] sm:$0xff]  ;;  %vm15446_vm7 = vmpackc.low %vm15443_vm3, %vm15445_vm5  ;;  %vm15451_vm8 = vnez %v15450_v41  ;;  %vm15459_vm5 = vnez %v15024_v20  ;;  %v8420_v41 = vld [vmem:[#allocation10 + $0x248] sm:$0xff]  }
 0x3a4   : > { %7467 = vmatprep.subr.bf16.mxu0 %v8372_v9  ;;  %v15441_v60 = vpack.c.bf16 %v15439_v21, %v15440_v40  ;;  %7569 = vmatprep.subr.bf16.mxu1 %v8399_v52  ;;  %v15447_v3 = vld [vmem:[#allocation198_spill] sm:$0xff]  ;;  %v8376_v21 = vld [vmem:[#allocation10 + $0x1a8] sm:$0xff]  }
 0x3a5   : > { %v15449_v45 = vpack.c.bf16 %v15447_v3, %v15448_v44  ;;  %v15455_v40 = vld [vmem:[#allocation200_spill] sm:$0xff]  ;;  %v15462_v3 = vld [vmem:[#allocation202_spill] sm:$0xff] }
 0x3a6   : > { %7570 = vmatpush3.bf16.msra.mxu1 %v8399_v52  ;;  %v8377_v52 = vld [vmem:[#allocation10 + $0x1b0] sm:$0xff]  }
 0x3a7   : > { %7468 = vmatpush3.bf16.msra.mxu0 %v8372_v9  ;;  %v15452_v9 = vld [vmem:[#allocation233_spill] sm:$0xff] }
 0x3a8   : > { %7469 = vmatprep.subr.bf16.mxu0 %v8373_v1  ;;  %vm15453_vm6 = vnez %v15452_v9 }
 0x3a9   : > { %vm15454_vm13 = vmpackc.low %vm15451_vm8, %vm15453_vm6  ;;  %vm15465_vm6 = vnez %v15045_v38 }
 0x3aa   : > { %7454 = vmatmul.mubr.msk.bf16.gmra.mrb[8].mxu0 %vm15446_vm7, %v15441_v60  ;;  %v15457_v60 = vpack.c.bf16 %v15455_v40, %v15456_v32  ;;  %vm15458_vm7 = vnez %v15034_v63  ;;  %v15474_v32 = vmov 0 }
 0x3ab   : > { %7470 = vmatpush3.bf16.msra.mxu0 %v8373_v1  ;;  %7457 = vmatprep.mubr.msk.bf16.mxu0 %vm15454_vm13, %v15449_v45  ;;  %vm15460_vm3 = vmpackc.low %vm15458_vm7, %vm15459_vm5  ;;  %v15461_v1 = vld [vmem:[#allocation204_spill] sm:$0xff]  ;;  %vm15464_vm13 = vnez %v15049_v48  ;;  %vm15473_vm5 = vnez %v15220_v26  ;;  %v15477_v45 = vld [vmem:[#allocation206_spill] sm:$0xff] }
 0x3ac   : > { %7471 = vmatprep.subr.bf16.mxu0 %v8374_v37  ;;  %v15463_v44 = vpack.c.bf16 %v15461_v1, %v15462_v3  ;;  %vm15466_vm8 = vmpackc.low %vm15464_vm13, %vm15465_vm6  ;;  %vm15481_vm6 = vnez %v15052_v59  ;;  %v8379_v3 = vld [vmem:[#allocation10 + $0x1c0] sm:$0xff]  }
 0x3ad   : > { %vm15482_vm13 = vmpackc.low %vm15480_vm1, %vm15481_vm6  ;;  %vm15492_vm6 = vnez %v15232_v34 }
 0x3af   : > { %7472 = vmatpush3.bf16.msra.mxu0 %v8374_v37  ;;  %v15469_v37 = vmov 0 }
 0x3b0   : > { %7473 = vmatprep.subr.bf16.mxu0 %v8375_v4  ;;  %v15470_v37 = vsel %vm11690_vm2, 4294967295, %v15469_v37 }
 0x3b1   : > { %15471 = vst [vmem:[#allocation44_spill] sm:$0xff] %v15470_v37 }
 0x3b2   : > { %7458 = vmatmul.mubr.msk.bf16.gmra.mrb[12].mxu0 %vm15460_vm3, %v15457_v60  ;;  %vm15472_vm3 = vcmp.ge.s32.totalorder %v15099_v54, 0  ;;  %v15485_v54 = vmov 0  ;;  %v15489_v60 = vld [vmem:[#allocation87_spill] sm:$0xff] }
 0x3b3   : > { %7474 = vmatpush3.bf16.msra.mxu0 %v8375_v4  ;;  %7461 = vmatprep.mubr.msk.bf16.mxu0 %vm15466_vm8, %v15463_v44  ;;  %vm11698_vm7 = vmand %vm15473_vm5, %vm15472_vm3  ;;  %v15478_v4 = vld [vmem:[#allocation205_spill] sm:$0xff]  ;;  %vm15483_vm3 = vcmp.ge.s32.totalorder %v15107_v10, 0  ;;  %v15493_v10 = vmov 0  ;;  %v15498_v44 = vmov 0 }
 0x3b4   : > { %7475 = vmatprep.subr.bf16.mxu0 %v8376_v21  ;;  %v15475_v32 = vsel %vm11698_vm7, 4294967295, %v15474_v32  ;;  %vm14127_vm8 = vmpackc.low %vm11698_vm7, %vm11690_vm2  ;;  %v15479_v40 = vpack.c.bf16 %v15477_v45, %v15478_v4  ;;  %vm15502_vm2 = vnez %v15244_v11  ;;  %v15514_v4 = vld [vmem:[#allocation99_spill] sm:$0xff] }
 0x3b5   : > { %15476 = vst [vmem:[#allocation97_spill] sm:$0xff] %v15475_v32  ;;  %vm11718_vm15 = vmand %vm15484_vm12, %vm15483_vm3  ;;  %vm15496_vm3 = vcmp.ge.s32.totalorder %v15122_v30, 0  ;;  %v8380_v30 = vld [vmem:[#allocation10 + $0x1c8] sm:$0xff]  }
 0x3b6   : > { %v15486_v54 = vsel %vm11718_vm15, 4294967295, %v15485_v54  ;;  %vm11742_vm12 = vmand %vm15497_vm10, %vm15496_vm3 }
 0x3b7   : > { %7476 = vmatpush3.bf16.msra.mxu0 %v8376_v21  ;;  %15487 = vst [vmem:[#allocation93_spill] sm:$0xff] %v15486_v54  ;;  %v15488_v21 = vld [vmem:[#allocation83_spill] sm:$0xff]  ;;  %v15499_v44 = vsel %vm11742_vm12, 4294967295, %v15498_v44 }
 0x3b8   : > { %7477 = vmatprep.subr.bf16.mxu0 %v8377_v52  ;;  %v15490_v1 = vpack.c.bf16 %v15488_v21, %v15489_v60  ;;  %15500 = vst [vmem:[#allocation107_spill] sm:$0xff] %v15499_v44  ;;  %v15517_v60 = vld [vmem:[#allocation77_spill] sm:$0xff]  ;;  %v15545_v44 = vld [vmem:[#allocation114_spill] sm:$0xff] }
 0x3ba   : > { %7462 = vmatmul.mubr.msk.bf16.gmra.mrb[16].mxu0 %vm15482_vm13, %v15479_v40  ;;  %vm15491_vm13 = vcmp.ge.s32.totalorder %v15116_v46, 0  ;;  %v15503_v46 = vmov 0  ;;  %v15515_v40 = vld [vmem:[#allocation95_spill] sm:$0xff] }
 0x3bb   : > { %7478 = vmatpush3.bf16.msra.mxu0 %v8377_v52  ;;  %7481 = vmatprep.mubr.msk.bf16.mxu0 %vm14127_vm8, %v15490_v1  ;;  %vm11734_vm1 = vmand %vm15492_vm6, %vm15491_vm13  ;;  %vm15501_vm8 = vcmp.ge.s32.totalorder %v15128_v53, 0  ;;  %v15506_v53 = vld [vmem:[#allocation96_spill] sm:$0xff]  ;;  %v15507_v52 = vld [vmem:[#allocation79_spill] sm:$0xff]  ;;  %v15516_v21 = vpack.c.bf16 %v15514_v4, %v15515_v40 }
 0x3bc   : > { %v15494_v10 = vsel %vm11734_vm1, 4294967295, %v15493_v10  ;;  %7479 = vmatprep.subr.bf16.mxu0 %v8378_v12  ;;  %vm11750_vm7 = vmand %vm15502_vm2, %vm15501_vm8  ;;  %v15508_v45 = vpack.c.bf16 %v15506_v53, %v15507_v52  ;;  %vm15509_vm8 = vcmp.ge.s32.totalorder %v15137_v23, 0  ;;  %vm15510_vm2 = vnez %v15258_v56  ;;  %v8381_v1 = vld [vmem:[#allocation10 + $0x1d0] sm:$0xff]   ;;  %v15529_v52 = vld [vmem:[#allocation162_spill] sm:$0xff] }
 0x3bd   : > { %15495 = vst [vmem:[#allocation112_spill] sm:$0xff] %v15494_v10  ;;  %v15504_v46 = vsel %vm11750_vm7, 4294967295, %v15503_v46  ;;  %vm14130_vm13 = vmpackc.low %vm11734_vm1, %vm11718_vm15  ;;  %vm15519_vm15 = vnez %v15266_v17  ;;  %v15520_v23 = vmov 0  ;;  %v15526_v53 = vmov 0  ;;  %v8382_v4 = vld [vmem:[#allocation10 + $0x1d8] sm:$0xff]   ;;  %v15535_v40 = vld [vmem:[#allocation109_spill] sm:$0xff] }
 0x3be   : > { %15505 = vst [vmem:[#allocation110_spill] sm:$0xff] %v15504_v46  ;;  %vm14133_vm3 = vmpackc.low %vm11750_vm7, %vm11742_vm12  ;;  %vm15531_vm12 = vnez %v15294_v16 }
 0x3bf   : > { %7480 = vmatpush3.bf16.msra.mxu0 %v8378_v12  ;;  %vm11774_vm10 = vmand %vm15510_vm2, %vm15509_vm8  ;;  %v15511_v12 = vmov 0  ;;  %vm15525_vm2 = vnez %v15284_v31 }
 0x3c0   : > { %7497 = vmatprep.subr.bf16.mxu0 %v8379_v3  ;;  %v15512_v12 = vsel %vm11774_vm10, 4294967295, %v15511_v12 }
 0x3c1   : > { %15513 = vst [vmem:[#allocation105_spill] sm:$0xff] %v15512_v12  ;;  %v15569_v12 = vld [vmem:[#allocation171_spill] sm:$0xff] }
 0x3c2   : > { %7482 = vmatmul.mubr.msk.bf16.vlgmr.msra.gmra.mrb[4].mxu0 %vm14130_vm13, %v15508_v45  ;;  %vm15518_vm13 = vcmp.ge.s32.totalorder %v15517_v60, 0  ;;  %v15532_v45 = vmov 0 }
 0x3c3   : > { %7498 = vmatpush3.bf16.msra.mxu0 %v8379_v3  ;;  %7485 = vmatprep.mubr.msk.bf16.mxu0 %vm14133_vm3, %v15516_v21  ;;  %vm11790_vm1 = vmand %vm15519_vm15, %vm15518_vm13  ;;  %v15523_v3 = vld [vmem:[#allocation161_spill] sm:$0xff]  ;;  %vm15530_vm3 = vcmp.ge.s32.totalorder %v15529_v52, 0  ;;  %v15544_v52 = vld [vmem:[#allocation115_spill] sm:$0xff] }
 0x3c4   : > { %v15521_v23 = vsel %vm11790_vm1, 4294967295, %v15520_v23  ;;  %7499 = vmatprep.subr.bf16.mxu0 %v8380_v30  ;;  %vm15524_vm8 = vcmp.ge.s32.totalorder %v15523_v3, 0  ;;  %vm11806_vm7 = vmand %vm15531_vm12, %vm15530_vm3  ;;  %v15536_v21 = vld [vmem:[#allocation101_spill] sm:$0xff]  ;;  %vm15540_vm12 = vnez %v15316_v61  ;;  %v15541_v3 = vmov 0 }
 0x3c5   : > { %15522 = vst [vmem:[#allocation187_spill] sm:$0xff] %v15521_v23  ;;  %vm11798_vm6 = vmand %vm15525_vm2, %vm15524_vm8  ;;  %v15533_v45 = vsel %vm11806_vm7, 4294967295, %v15532_v45  ;;  %v15537_v60 = vpack.c.bf16 %v15535_v40, %v15536_v21  ;;  %v15546_v46 = vpack.c.bf16 %v15544_v52, %v15545_v44  ;;  %v15547_v40 = vld [vmem:[#allocation165_spill] sm:$0xff]  ;;  %v15550_v21 = vmov 0  ;;  %v8384_v52 = vld [vmem:[#allocation10 + $0x1e8] sm:$0xff]  }
 0x3c6   : > { %v15527_v53 = vsel %vm11798_vm6, 4294967295, %v15526_v53  ;;  %15534 = vst [vmem:[#allocation185_spill] sm:$0xff] %v15533_v45  ;;  %vm14138_vm13 = vmpackc.low %vm11790_vm1, %vm11774_vm10  ;;  %vm15549_vm10 = vnez %v15333_v57  ;;  %v15555_v44 = vmov 0 }
 0x3c7   : > { %15528 = vst [vmem:[#allocation188_spill] sm:$0xff] %v15527_v53  ;;  %7500 = vmatpush3.bf16.msra.mxu0 %v8380_v30  ;;  %vm14141_vm8 = vmpackc.low %vm11806_vm7, %vm11798_vm6  ;;  %v15538_v30 = vld [vmem:[#allocation163_spill] sm:$0xff]  ;;  %v15567_v53 = vld [vmem:[#allocation125_spill] sm:$0xff] }
 0x3c8   : > { %7501 = vmatprep.subr.bf16.mxu0 %v8381_v1  ;;  %vm15539_vm3 = vcmp.ge.s32.totalorder %v15538_v30, 0  ;;  %v15558_v30 = vld [vmem:[#allocation170_spill] sm:$0xff] }
 0x3c9   : > { %vm11830_vm2 = vmand %vm15540_vm12, %vm15539_vm3 }
 0x3ca   : > { %7486 = vmatmul.mubr.msk.bf16.gmra.mrb[8].mxu0 %vm14138_vm13, %v15537_v60  ;;  %v15542_v3 = vsel %vm11830_vm2, 4294967295, %v15541_v3  ;;  %vm15548_vm13 = vcmp.ge.s32.totalorder %v15547_v40, 0  ;;  %v8383_v60 = vld [vmem:[#allocation10 + $0x1e0] sm:$0xff]   ;;  %v15563_v40 = vld [vmem:[#allocation126_spill] sm:$0xff] }
 0x3cb   : > { %15543 = vst [vmem:[#allocation186_spill] sm:$0xff] %v15542_v3  ;;  %7502 = vmatpush3.bf16.msra.mxu0 %v8381_v1  ;;  %7489 = vmatprep.mubr.msk.bf16.mxu0 %vm14141_vm8, %v15546_v46  ;;  %vm11846_vm1 = vmand %vm15549_vm10, %vm15548_vm13  ;;  %v15553_v1 = vld [vmem:[#allocation169_spill] sm:$0xff]  ;;  %vm15559_vm8 = vcmp.ge.s32.totalorder %v15558_v30, 0  ;;  %v15560_v46 = vmov 0 }
 0x3cc   : > { %v15551_v21 = vsel %vm11846_vm1, 4294967295, %v15550_v21  ;;  %7503 = vmatprep.subr.bf16.mxu0 %v8382_v4  ;;  %vm15554_vm3 = vcmp.ge.s32.totalorder %v15553_v1, 0  ;;  %vm11862_vm6 = vmand %vm15399_vm4, %vm15559_vm8  ;;  %v15564_v1 = vld [vmem:[#allocation117_spill] sm:$0xff]  ;;  %vm15570_vm8 = vcmp.ge.s32.totalorder %v15569_v12, 0  ;;  %v8386_v12 = vld [vmem:[#allocation10 + $0x1f8] sm:$0xff]  }
 0x3cd   : > { %15552 = vst [vmem:[#allocation191_spill] sm:$0xff] %v15551_v21  ;;  %vm11854_vm12 = vmand %vm11488_vm0, %vm15554_vm3  ;;  %v15561_v46 = vsel %vm11862_vm6, 4294967295, %v15560_v46  ;;  %v15565_v30 = vpack.c.bf16 %v15563_v40, %v15564_v1  ;;  %v15571_v40 = vmov 0  ;;  %v8385_v1 = vld [vmem:[#allocation10 + $0x1f0] sm:$0xff]  }
 0x3ce   : > { %v15556_v44 = vsel %vm11854_vm12, 4294967295, %v15555_v44  ;;  %15562 = vst [vmem:[#allocation192_spill] sm:$0xff] %v15561_v46  ;;  %vm14147_vm13 = vmpackc.low %vm11846_vm1, %vm11830_vm2  ;;  %v8387_v46 = vld [vmem:[#allocation10 + $0x200] sm:$0xff]  }
 0x3cf   : > { %15557 = vst [vmem:[#allocation189_spill] sm:$0xff] %v15556_v44  ;;  %7504 = vmatpush3.bf16.msra.mxu0 %v8382_v4  ;;  %vm14149_vm3 = vmpackc.low %vm11862_vm6, %vm11854_vm12  ;;  %v15566_v4 = vld [vmem:[#allocation128_spill] sm:$0xff]  ;;  %vm15586_vm12 = vnez %v15232_v34 }
 0x3d0   : > { %7505 = vmatprep.subr.bf16.mxu0 %v8383_v60  ;;  %v15568_v45 = vpack.c.bf16 %v15566_v4, %v15567_v53  ;;  %vm11894_vm7 = vmand %vm11558_vm11, %vm15570_vm8  ;;  %v15576_v53 = vmov 0 }
 0x3d1   : > { %v15572_v40 = vsel %vm11894_vm7, 4294967295, %v15571_v40  ;;  %vm14157_vm8 = vmpackc.low %vm15473_vm5, %vm15468_vm14 }
 0x3d2   : > { %7490 = vmatmul.mubr.msk.bf16.gmra.mrb[12].mxu0 %vm14147_vm13, %v15565_v30  ;;  %15573 = vst [vmem:[#allocation194_spill] sm:$0xff] %v15572_v40  ;;  %v15580_v30 = vld [vmem:[#allocation127_spill] sm:$0xff] }
 0x3d3   : > { %7506 = vmatpush3.bf16.msra.mxu0 %v8383_v60  ;;  %7493 = vmatprep.mubr.msk.bf16.mxu0 %vm14149_vm3, %v15568_v45  ;;  %v15574_v60 = vld [vmem:[#allocation172_spill] sm:$0xff]  ;;  %v15579_v45 = vld [vmem:[#allocation122_spill] sm:$0xff] }
 0x3d4   : > { %7507 = vmatprep.subr.bf16.mxu0 %v8384_v52  ;;  %vm15575_vm13 = vcmp.ge.s32.totalorder %v15574_v60, 0  ;;  %v15581_v4 = vpack.c.bf16 %v15579_v45, %v15580_v30  ;;  %v15583_v60 = vld [vmem:[#allocation80_spill] sm:$0xff]  ;;  %v15589_v45 = vld [vmem:[#allocation89_spill] sm:$0xff] }
 0x3d5   : > { %vm11902_vm2 = vmand %vm11562_vm9, %vm15575_vm13  ;;  %vm15585_vm13 = vnez %v15225_v33  ;;  %v15590_v30 = vld [vmem:[#allocation81_spill] sm:$0xff] }
 0x3d6   : > { %v15577_v53 = vsel %vm11902_vm2, 4294967295, %v15576_v53  ;;  %vm14154_vm3 = vmpackc.low %vm11902_vm2, %vm11894_vm7  ;;  %vm15588_vm7 = vnez %v15244_v11 }
 0x3d7   : > { %15578 = vst [vmem:[#allocation198_spill] sm:$0xff] %v15577_v53  ;;  %7508 = vmatpush3.bf16.msra.mxu0 %v8384_v52  ;;  %v15582_v52 = vld [vmem:[#allocation82_spill] sm:$0xff]  ;;  %vm14159_vm6 = vmpackc.low %vm15586_vm12, %vm15585_vm13  ;;  %vm15597_vm13 = vnez %v15294_v16 }
 0x3d8   : > { %7509 = vmatprep.subr.bf16.mxu0 %v8385_v1  ;;  %v15584_v44 = vpack.c.bf16 %v15582_v52, %v15583_v60  ;;  %v8389_v60 = vld [vmem:[#allocation10 + $0x210] sm:$0xff]  }
 0x3da   : > { %7494 = vmatmul.mubr.msk.bf16.gmra.mrb[16].mxu0 %vm14154_vm3, %v15581_v4  ;;  %vm15587_vm3 = vnez %v15235_v58  ;;  %v15591_v4 = vpack.c.bf16 %v15589_v45, %v15590_v30  ;;  %v15598_v45 = vld [vmem:[#allocation100_spill] sm:$0xff]  ;;  %v15599_v30 = vld [vmem:[#allocation90_spill] sm:$0xff] }
 0x3db   : > { %7510 = vmatpush3.bf16.msra.mxu0 %v8385_v1  ;;  %7513 = vmatprep.mubr.msk.bf16.mxu0 %vm14157_vm8, %v15584_v44  ;;  %vm14162_vm2 = vmpackc.low %vm15588_vm7, %vm15587_vm3  ;;  %v8388_v1 = vld [vmem:[#allocation10 + $0x208] sm:$0xff]   ;;  %vm15595_vm8 = vnez %v15258_v56 }
 0x3dc   : > { %7511 = vmatprep.subr.bf16.mxu0 %v8386_v12  ;;  %v15592_v44 = vld [vmem:[#allocation92_spill] sm:$0xff]  ;;  %vm14164_vm14 = vmpackc.low %vm15519_vm15, %vm15595_vm8 }
 0x3df   : > { %7512 = vmatpush3.bf16.msra.mxu0 %v8386_v12  ;;  %v15593_v12 = vld [vmem:[#allocation91_spill] sm:$0xff] }
 0x3e0   : > { %7529 = vmatprep.subr.bf16.mxu0 %v8387_v46  ;;  %v15594_v52 = vpack.c.bf16 %v15592_v44, %v15593_v12  ;;  %v15602_v44 = vld [vmem:[#allocation103_spill] sm:$0xff] }
 0x3e2   : > { %7514 = vmatmul.mubr.msk.bf16.vlgmr.msra.gmra.mrb[4].mxu0 %vm14159_vm6, %v15591_v4  ;;  %vm15596_vm6 = vnez %v15284_v31  ;;  %v15600_v4 = vpack.c.bf16 %v15598_v45, %v15599_v30  ;;  %v15605_v45 = vld [vmem:[#allocation119_spill] sm:$0xff]  ;;  %v15606_v30 = vld [vmem:[#allocation102_spill] sm:$0xff] }
 0x3e3   : > { %7530 = vmatpush3.bf16.msra.mxu0 %v8387_v46  ;;  %7517 = vmatprep.mubr.msk.bf16.mxu0 %vm14162_vm2, %v15594_v52  ;;  %vm14165_vm12 = vmpackc.low %vm15597_vm13, %vm15596_vm6  ;;  %v8390_v46 = vld [vmem:[#allocation10 + $0x218] sm:$0xff]   ;;  %v8391_v52 = vld [vmem:[#allocation10 + $0x220] sm:$0xff]   ;;  %vm15604_vm2 = vnez %v15316_v61 }
 0x3e4   : > { %7531 = vmatprep.subr.bf16.mxu0 %v8388_v1  ;;  %vm14167_vm3 = vmpackc.low %vm15549_vm10, %vm15604_vm2  ;;  %vm15630_vm2 = vnez %v15301_v49 }
 0x3e7   : > { %7532 = vmatpush3.bf16.msra.mxu0 %v8388_v1  ;;  %v15601_v1 = vld [vmem:[#allocation104_spill] sm:$0xff] }
 0x3e8   : > { %7533 = vmatprep.subr.bf16.mxu0 %v8389_v60  ;;  %v15603_v12 = vpack.c.bf16 %v15601_v1, %v15602_v44  ;;  %v15609_v1 = vld [vmem:[#allocation123_spill] sm:$0xff] }
 0x3ea   : > { %7518 = vmatmul.mubr.msk.bf16.gmra.mrb[8].mxu0 %vm14164_vm14, %v15600_v4  ;;  %vm14166_vm14 = vmpackc.low %vm15399_vm4, %vm11488_vm0  ;;  %v15607_v4 = vpack.c.bf16 %v15605_v45, %v15606_v30  ;;  %v8394_v45 = vld [vmem:[#allocation10 + $0x238] sm:$0xff]   ;;  %v15612_v30 = vld [vmem:[#allocation121_spill] sm:$0xff]  ;;  %vm15623_vm4 = vnez %v15281_v15 }
 0x3eb   : > { %7534 = vmatpush3.bf16.msra.mxu0 %v8389_v60  ;;  %7521 = vmatprep.mubr.msk.bf16.mxu0 %vm14165_vm12, %v15603_v12  ;;  %v8392_v60 = vld [vmem:[#allocation10 + $0x228] sm:$0xff]   ;;  %v8393_v12 = vld [vmem:[#allocation10 + $0x230] sm:$0xff]   ;;  %vm14171_vm12 = vmpackc.low %vm11562_vm9, %vm11558_vm11  ;;  %vm15624_vm11 = vnez %v15273_v47  ;;  %vm15629_vm9 = vnez %v15313_v7 }
 0x3ec   : > { %7535 = vmatprep.subr.bf16.mxu0 %v8390_v46 }
 0x3ef   : > { %7536 = vmatpush3.bf16.msra.mxu0 %v8390_v46  ;;  %v15608_v46 = vld [vmem:[#allocation124_spill] sm:$0xff] }
 0x3f0   : > { %7537 = vmatprep.subr.bf16.mxu0 %v8391_v52  ;;  %v15610_v44 = vpack.c.bf16 %v15608_v46, %v15609_v1  ;;  %v15614_v46 = vld [vmem:[#allocation130_spill] sm:$0xff]  ;;  %v15615_v1 = vld [vmem:[#allocation131_spill] sm:$0xff] }
 0x3f2   : > { %7522 = vmatmul.mubr.msk.bf16.gmra.mrb[12].mxu0 %vm14167_vm3, %v15607_v4  ;;  %vm15618_vm3 = vnez %v15255_v2 }
 0x3f3   : > { %7538 = vmatpush3.bf16.msra.mxu0 %v8391_v52  ;;  %7525 = vmatprep.mubr.msk.bf16.mxu0 %vm14166_vm14, %v15610_v44  ;;  %v15611_v52 = vld [vmem:[#allocation120_spill] sm:$0xff]  ;;  %vm15617_vm14 = vnez %v15263_v5  ;;  %v15620_v44 = vld [vmem:[#allocation138_spill] sm:$0xff] }
 0x3f4   : > { %7539 = vmatprep.subr.bf16.mxu0 %v8392_v60  ;;  %v15613_v4 = vpack.c.bf16 %v15611_v52, %v15612_v30  ;;  %vm15619_vm0 = vmpackc.low %vm15617_vm14, %vm15618_vm3  ;;  %v15621_v52 = vld [vmem:[#allocation132_spill] sm:$0xff]  ;;  %vm15636_vm14 = vnez %v15321_v0 }
 0x3f5   : > { %v15622_v30 = vpack.c.bf16 %v15620_v44, %v15621_v52  ;;  %vm15631_vm3 = vmpackc.low %vm15629_vm9, %vm15630_vm2  ;;  %v15638_v44 = vld [vmem:[#allocation143_spill] sm:$0xff]  ;;  %v15639_v52 = vld [vmem:[#allocation141_spill] sm:$0xff]  ;;  %vm15648_vm2 = vnez %v15370_v43 }
 0x3f7   : > { %7540 = vmatpush3.bf16.msra.mxu0 %v8392_v60  ;;  %v15616_v60 = vpack.c.bf16 %v15614_v46, %v15615_v1  ;;  %v15632_v1 = vld [vmem:[#allocation142_spill] sm:$0xff] }
 0x3f8   : > { %7541 = vmatprep.subr.bf16.mxu0 %v8393_v12 }
 0x3fa   : > { %7526 = vmatmul.mubr.msk.bf16.gmra.mrb[16].mxu0 %vm14171_vm12, %v15613_v4  ;;  %vm15625_vm12 = vmpackc.low %vm15623_vm4, %vm15624_vm11  ;;  %v15627_v4 = vld [vmem:[#allocation137_spill] sm:$0xff]  ;;  %vm15642_vm11 = vnez %v15353_v6 }
 0x3fb   : > { %7542 = vmatpush3.bf16.msra.mxu0 %v8393_v12  ;;  %7545 = vmatprep.mubr.msk.bf16.mxu0 %vm15619_vm0, %v15616_v60  ;;  %v15626_v12 = vld [vmem:[#allocation140_spill] sm:$0xff]  ;;  %vm15635_vm0 = vnez %v15326_v22 }
 0x3fc   : > { %7543 = vmatprep.subr.bf16.mxu0 %v8394_v45  ;;  %v15628_v46 = vpack.c.bf16 %v15626_v12, %v15627_v4  ;;  %vm15637_vm10 = vmpackc.low %vm15635_vm0, %vm15636_vm14  ;;  %v15644_v12 = vld [vmem:[#allocation148_spill] sm:$0xff]  ;;  %v15645_v4 = vld [vmem:[#allocation145_spill] sm:$0xff]  ;;  %vm15654_vm14 = vnez %v15391_v14 }
 0x3ff   : > { %7544 = vmatpush3.bf16.msra.mxu0 %v8394_v45  ;;  %v15633_v45 = vld [vmem:[#allocation139_spill] sm:$0xff] }
 0x400   : > { %v15634_v60 = vpack.c.bf16 %v15632_v1, %v15633_v45  ;;  %v15650_v1 = vld [vmem:[#allocation151_spill] sm:$0xff] }
 0x401   : > { %v15651_v45 = vld [vmem:[#allocation147_spill] sm:$0xff] }
 0x402   : > { %7546 = vmatmul.mubr.msk.bf16.vlgmr.msra.gmra.mrb[4].mxu0 %vm15625_vm12, %v15622_v30  ;;  %v15640_v30 = vpack.c.bf16 %v15638_v44, %v15639_v52  ;;  %vm15641_vm12 = vnez %v15365_v25  ;;  %v15656_v44 = vld [vmem:[#allocation134_spill] sm:$0xff] }
 0x403   : > { %7549 = vmatprep.mubr.msk.bf16.mxu0 %vm15631_vm3, %v15628_v46  ;;  %vm15643_vm4 = vmpackc.low %vm15641_vm12, %vm15642_vm11  ;;  %v15646_v46 = vpack.c.bf16 %v15644_v12, %v15645_v4  ;;  %vm15647_vm3 = vnez %v15374_v28  ;;  %v15657_v52 = vld [vmem:[#allocation150_spill] sm:$0xff]  ;;  %vm15660_vm11 = vnez %v15405_v24  ;;  %v8400_v12 = vld [vmem:[#allocation11 + $0x28] sm:$0xff]  }
 0x404   : > { %vm15649_vm9 = vmpackc.low %vm15647_vm3, %vm15648_vm2  ;;  %7571 = vmatprep.subr.bf16.mxu1 %v8400_v12  ;;  %v8401_v4 = vld [vmem:[#allocation11 + $0x30] sm:$0xff]  }
 0x405   : > { %7572 = vmatpush3.bf16.msra.mxu1 %v8400_v12 }
 0x406   : > { %7573 = vmatprep.subr.bf16.mxu1 %v8401_v4 }
 0x409   : > { %7574 = vmatpush3.bf16.msra.mxu1 %v8401_v4 }
 0x40a   : > { %7550 = vmatmul.mubr.msk.bf16.gmra.mrb[8].mxu0 %vm15637_vm10, %v15634_v60  ;;  %v15652_v60 = vpack.c.bf16 %v15650_v1, %v15651_v45  ;;  %vm15653_vm10 = vnez %v15401_v36  ;;  %v8403_v1 = vld [vmem:[#allocation8 + $0x40] sm:$0xff]  }
 0x40b   : > { %7553 = vmatprep.mubr.msk.bf16.mxu0 %vm15643_vm4, %v15640_v30  ;;  %vm15655_vm0 = vmpackc.low %vm15653_vm10, %vm15654_vm14  ;;  %v15658_v30 = vpack.c.bf16 %v15656_v44, %v15657_v52  ;;  %vm15659_vm4 = vnez %v15409_v62  ;;  %v12081_v45 = vld [vmem:[%s13494_s6] ss:$0 sm:$0xff] }
 0x40c   : > { %vm15661_vm12 = vmpackc.low %vm15659_vm4, %vm15660_vm11 }
 0x412   : > { %7554 = vmatmul.mubr.msk.bf16.gmra.mrb[12].mxu0 %vm15649_vm9, %v15646_v46  ;;  %v8402_v46 = vld [vmem:[#allocation11 + $0x38] sm:$0xff]  }
 0x413   : > { %7557 = vmatprep.mubr.msk.bf16.mxu0 %vm15655_vm0, %v15652_v60  ;;  %7575 = vmatprep.subr.bf16.mxu1 %v8402_v46 }
 0x414   : > { %7576 = vmatpush3.bf16.msra.mxu1 %v8402_v46 }
 0x415   : > { %7593 = vmatprep.subr.bf16.mxu1 %v8403_v1 }
 0x41a   : > { %7558 = vmatmul.mubr.msk.bf16.gmra.mrb[16].mxu0 %vm15661_vm12, %v15658_v30 }
 0x4d5   : > { %v7547_v60 = vpop.f32.mrb[4].mxu0 }
 0x4d6   : > { %v3434_v44 = vadd.f32 %v7547_v60, %v12081_v45  ;;  %v3346_v52 = vpop.f32.mrb[5].mxu0 }
 0x4d7   : > { %v3432_v30 = vadd.f32 %v12081_v45, %v3346_v52  ;;  %v7548_v12 = vpop.f32.mrb[6].mxu0 }
 0x4d8   : > { %v3450_v24 = vmul.f32 0.2, %v3434_v44  ;;  %v3435_v4 = vadd.f32 %v7548_v12, %v12081_v45  ;;  %v3349_v62 = vpop.f32.mrb[7].mxu0 }
 0x4d9   : > { %v3448_v14 = vmul.f32 0.2, %v3432_v30  ;;  %v3433_v46 = vadd.f32 %v12081_v45, %v3349_v62  ;;  %v8404_v62 = vld [vmem:[#allocation8 + $0x48] sm:$0xff]  }
 0x4da   : > { %v3451_v36 = vmul.f32 0.2, %v3435_v4  ;;  %v3466_v28 = vmax.f32 %v3434_v44, %v3450_v24 }
 0x4db   : > { %v3449_v43 = vmul.f32 0.2, %v3433_v46  ;;  %v3464_v25 = vmax.f32 %v3432_v30, %v3448_v14 }
 0x4dc   : > { %v3467_v6 = vmax.f32 %v3435_v4, %v3451_v36 }
 0x4dd   : > { %v3465_v0 = vmax.f32 %v3433_v46, %v3449_v43  ;;  %v7551_v22 = vpop.f32.mrb[8].mxu0 }
 0x4de   : > { %v3481_v49 = vpack.c.bf16 %v3467_v6, %v3466_v28  ;;  %v3438_v60 = vadd.f32 %v7551_v22, %v12081_v45  ;;  %v3362_v7 = vpop.f32.mrb[9].mxu0  ;;  %v8405_v28 = vld [vmem:[#allocation8 + $0x50] sm:$0xff]  }
 0x4df   : > { %v3436_v52 = vadd.f32 %v12081_v45, %v3362_v7  ;;  %v7552_v47 = vpop.f32.mrb[10].mxu0  ;;  %v3480_v15 = vpack.c.bf16 %v3465_v0, %v3464_v25 }
 0x4e0   : > { %v3454_v12 = vmul.f32 0.2, %v3438_v60  ;;  %v3439_v2 = vadd.f32 %v7552_v47, %v12081_v45  ;;  %v3365_v5 = vpop.f32.mrb[11].mxu0 }
 0x4e1   : > { %v3452_v27 = vmul.f32 0.2, %v3436_v52  ;;  %v3437_v24 = vadd.f32 %v12081_v45, %v3365_v5  ;;  %7577 = vmatprep.mubr.bf16.mxu1 %v3480_v15 }
 0x4e2   : > { %v3455_v14 = vmul.f32 0.2, %v3439_v2  ;;  %7578 = vmatmul.mubr.bf16.vlgmr.msra.gmra.mrb[16].mxu1 %v3481_v49  ;;  %v3470_v6 = vmax.f32 %v3438_v60, %v3454_v12 }
 0x4e3   : > { %v3453_v43 = vmul.f32 0.2, %v3437_v24  ;;  %7594 = vmatpush3.bf16.msra.mxu1 %v8403_v1  ;;  %v3468_v7 = vmax.f32 %v3436_v52, %v3452_v27 }
 0x4e4   : > { %v3471_v22 = vmax.f32 %v3439_v2, %v3455_v14  ;;  %7595 = vmatprep.subr.bf16.mxu1 %v8404_v62  ;;  %v8406_v2 = vld [vmem:[#allocation8 + $0x58] sm:$0xff]   ;;  %v8407_v14 = vld [vmem:[#allocation8 + $0x60] sm:$0xff]  }
 0x4e5   : > { %v3469_v36 = vmax.f32 %v3437_v24, %v3453_v43  ;;  %v7555_v0 = vpop.f32.mrb[12].mxu0 }
 0x4e6   : > { %v3442_v25 = vadd.f32 %v7555_v0, %v12081_v45  ;;  %v3378_v47 = vpop.f32.mrb[13].mxu0  ;;  %v3483_v44 = vpack.c.bf16 %v3471_v22, %v3470_v6 }
 0x4e7   : > { %v3440_v30 = vadd.f32 %v12081_v45, %v3378_v47  ;;  %v7556_v4 = vpop.f32.mrb[14].mxu0  ;;  %v3482_v5 = vpack.c.bf16 %v3469_v36, %v3468_v7  ;;  %7596 = vmatpush3.bf16.msra.mxu1 %v8404_v62 }
 0x4e8   : > { %v3458_v15 = vmul.f32 0.2, %v3442_v25  ;;  %v3443_v49 = vadd.f32 %v7556_v4, %v12081_v45  ;;  %v3381_v1 = vpop.f32.mrb[15].mxu0  ;;  %7597 = vmatprep.subr.bf16.mxu1 %v8405_v28 }
 0x4e9   : > { %v3456_v46 = vmul.f32 0.2, %v3440_v30  ;;  %v3441_v27 = vadd.f32 %v12081_v45, %v3381_v1  ;;  %7581 = vmatprep.mubr.bf16.mxu1 %v3482_v5 }
 0x4ea   : > { %v3459_v60 = vmul.f32 0.2, %v3443_v49  ;;  %7582 = vmatmul.mubr.bf16.gmra.mrb[20].mxu1 %v3483_v44  ;;  %v3474_v12 = vmax.f32 %v3442_v25, %v3458_v15  ;;  %v8408_v25 = vld [vmem:[#allocation8 + $0x68] sm:$0xff]  }
 0x4eb   : > { %v3457_v52 = vmul.f32 0.2, %v3441_v27  ;;  %7598 = vmatpush3.bf16.msra.mxu1 %v8405_v28  ;;  %v3472_v43 = vmax.f32 %v3440_v30, %v3456_v46 }
 0x4ec   : > { %v3475_v24 = vmax.f32 %v3443_v49, %v3459_v60  ;;  %7599 = vmatprep.subr.bf16.mxu1 %v8406_v2 }
 0x4ed   : > { %v3473_v62 = vmax.f32 %v3441_v27, %v3457_v52  ;;  %v7559_v6 = vpop.f32.mrb[16].mxu0 }
 0x4ee   : > { %v3446_v22 = vadd.f32 %v7559_v6, %v12081_v45  ;;  %v3394_v7 = vpop.f32.mrb[17].mxu0  ;;  %v3485_v36 = vpack.c.bf16 %v3475_v24, %v3474_v12  ;;  %v8409_v24 = vld [vmem:[#allocation8 + $0x70] sm:$0xff]  }
 0x4ef   : > { %v3444_v0 = vadd.f32 %v12081_v45, %v3394_v7  ;;  %v7560_v47 = vpop.f32.mrb[18].mxu0  ;;  %v3484_v4 = vpack.c.bf16 %v3473_v62, %v3472_v43  ;;  %7600 = vmatpush3.bf16.msra.mxu1 %v8406_v2  ;;  %v8410_v43 = vld [vmem:[#allocation8 + $0x78] sm:$0xff]  }
 0x4f0   : > { %v3462_v5 = vmul.f32 0.2, %v3446_v22  ;;  %v3447_v44 = vadd.f32 %v7560_v47, %v12081_v45  ;;  %v3397_v28 = vpop.f32.mrb[19].mxu0  ;;  %7601 = vmatprep.subr.bf16.mxu1 %v8407_v14  ;;  %v15666_v47 = vld [vmem:[#allocation21_spill] sm:$0xff] }
 0x4f1   : > { %v3460_v15 = vmul.f32 0.2, %v3444_v0  ;;  %v3445_v30 = vadd.f32 %v12081_v45, %v3397_v28  ;;  %7585 = vmatprep.mubr.bf16.mxu1 %v3484_v4 }
 0x4f2   : > { %v3463_v49 = vmul.f32 0.2, %v3447_v44  ;;  %7586 = vmatmul.mubr.bf16.gmra.mrb[24].mxu1 %v3485_v36  ;;  %v3478_v46 = vmax.f32 %v3446_v22, %v3462_v5  ;;  %v15664_v36 = vld [vmem:[#allocation20_spill] sm:$0xff]  ;;  %v15668_v5 = vld [vmem:[#allocation22_spill] sm:$0xff] }
 0x4f3   : > { %v3461_v1 = vmul.f32 0.2, %v3445_v30  ;;  %7602 = vmatpush3.bf16.msra.mxu1 %v8407_v14  ;;  %v3476_v60 = vmax.f32 %v3444_v0, %v3460_v15  ;;  %v15662_v14 = vld [vmem:[#allocation23_spill] sm:$0xff] }
 0x4f4   : > { %v3479_v27 = vmax.f32 %v3447_v44, %v3463_v49  ;;  %7603 = vmatprep.subr.bf16.mxu1 %v8408_v25 }
 0x4f5   : > { %v3477_v52 = vmax.f32 %v3445_v30, %v3461_v1  ;;  %v15670_v1 = vld [vmem:[#allocation27_spill] sm:$0xff] }
 0x4f6   : > { %v3487_v2 = vpack.c.bf16 %v3479_v27, %v3478_v46 }
 0x4f7   : > { %v3486_v12 = vpack.c.bf16 %v3477_v52, %v3476_v60  ;;  %7604 = vmatpush3.bf16.msra.mxu1 %v8408_v25  ;;  %v15672_v60 = vld [vmem:[#allocation24_spill] sm:$0xff] }
 0x4f8   : > { %7605 = vmatprep.subr.bf16.mxu1 %v8409_v24 }
 0x4f9   : > { %7589 = vmatprep.mubr.bf16.mxu1 %v3486_v12 }
 0x4fa   : > { %7590 = vmatmul.mubr.bf16.gmra.mrb[28].mxu1 %v3487_v2  ;;  %v15674_v2 = vld [vmem:[#allocation25_spill] sm:$0xff] }
 0x4fb   : > { %7606 = vmatpush3.bf16.msra.mxu1 %v8409_v24  ;;  %v15676_v24 = vld [vmem:[#allocation26_spill] sm:$0xff] }
 0x4fc   : > { %7607 = vmatprep.subr.bf16.mxu1 %v8410_v43 }
 0x4ff   : > { %7608 = vmatpush3.bf16.msra.mxu1 %v8410_v43 }
 0x5b5   : > { %v7579_v45 = vpop.f32.mrb[16].mxu1 }
 0x5b6   : > { %v3586_v62 = vpop.f32.mrb[17].mxu1  ;;  %v12109_v44 = vadd.f32 %v7579_v45, %v15668_v5 }
 0x5b7   : > { %v7580_v6 = vpop.f32.mrb[18].mxu1  ;;  %v12103_v0 = vadd.f32 %v3586_v62, %v15664_v36  ;;  %v15678_v36 = vld [vmem:[#allocation31_spill] sm:$0xff] }
 0x5b8   : > { %v12100_v22 = vadd.f32 %v7580_v6, %v15662_v14  ;;  %v3589_v7 = vpop.f32.mrb[19].mxu1  ;;  %15669 = vst [vmem:[#allocation204_spill] sm:$0xff] %v12109_v44 }
 0x5b9   : > { %15665 = vst [vmem:[#allocation200_spill] sm:$0xff] %v12103_v0  ;;  %v12106_v4 = vadd.f32 %v3589_v7, %v15666_v47 }
 0x5ba   : > { %15663 = vst [vmem:[#allocation195_spill] sm:$0xff] %v12100_v22  ;;  %v3666_v25 = vpack.c.bf16 %v12100_v22, %v12109_v44 }
 0x5bb   : > { %15667 = vst [vmem:[#allocation201_spill] sm:$0xff] %v12106_v4  ;;  %v3665_v28 = vpack.c.bf16 %v12106_v4, %v12103_v0  ;;  %v15696_v4 = vld [vmem:[#allocation19_spill] sm:$0xff] }
 0x5bc   : > { %vm15697_vm9 = vcmp.lt.s32.totalorder %v15696_v4, 4  ;;  %vm15700_vm0 = vcmp.lt.s32.totalorder %v15696_v4, 5 }
 0x5bd   : > { %v7583_v15 = vpop.f32.mrb[20].mxu1  ;;  %7609 = vmatprep.mubr.bf16.mxu1 %v3665_v28  ;;  %v15680_v28 = vld [vmem:[#allocation28_spill] sm:$0xff]  ;;  %vm15701_vm12 = vmmov %vm15697_vm9 }
 0x5be   : > { %v3602_v30 = vpop.f32.mrb[21].mxu1  ;;  %7610 = vmatmul.mubr.bf16.vlgmr.msra.gmra.mrb[32].mxu1 %v3666_v25  ;;  %v12125_v43 = vadd.f32 %v7583_v15, %v15676_v24  ;;  %v15682_v15 = vld [vmem:[#allocation29_spill] sm:$0xff]  ;;  %vm15705_vm11 = vmmov %vm15700_vm0 }
 0x5bf   : > { %v7584_v49 = vpop.f32.mrb[22].mxu1  ;;  %v12119_v52 = vadd.f32 %v3602_v30, %v15672_v60 }
 0x5c0   : > { %v12116_v46 = vadd.f32 %v7584_v49, %v15670_v1  ;;  %v3605_v27 = vpop.f32.mrb[23].mxu1  ;;  %15677 = vst [vmem:[#allocation83_spill] sm:$0xff] %v12125_v43  ;;  %v15684_v49 = vld [vmem:[#allocation30_spill] sm:$0xff] }
 0x5c1   : > { %15673 = vst [vmem:[#allocation206_spill] sm:$0xff] %v12119_v52  ;;  %v12122_v12 = vadd.f32 %v3605_v27, %v15674_v2 }
 0x5c2   : > { %15671 = vst [vmem:[#allocation202_spill] sm:$0xff] %v12116_v46  ;;  %v3668_v62 = vpack.c.bf16 %v12116_v46, %v12125_v43 }
 0x5c3   : > { %15675 = vst [vmem:[#allocation205_spill] sm:$0xff] %v12122_v12  ;;  %v3667_v45 = vpack.c.bf16 %v12122_v12, %v12119_v52 }
 0x5c5   : > { %v7587_v6 = vpop.f32.mrb[24].mxu1  ;;  %7613 = vmatprep.mubr.bf16.mxu1 %v3667_v45 }
 0x5c6   : > { %v3618_v14 = vpop.f32.mrb[25].mxu1  ;;  %7614 = vmatmul.mubr.bf16.gmra.mrb[36].mxu1 %v3668_v62  ;;  %v12141_v1 = vadd.f32 %v7587_v6, %v15684_v49  ;;  %v15686_v62 = vld [vmem:[#allocation35_spill] sm:$0xff]  ;;  %v15690_v6 = vld [vmem:[#allocation33_spill] sm:$0xff] }
 0x5c7   : > { %v7588_v7 = vpop.f32.mrb[26].mxu1  ;;  %v12135_v25 = vadd.f32 %v3618_v14, %v15680_v28 }
 0x5c8   : > { %v12132_v47 = vadd.f32 %v7588_v7, %v15678_v36  ;;  %v3621_v5 = vpop.f32.mrb[27].mxu1  ;;  %15685 = vst [vmem:[#allocation99_spill] sm:$0xff] %v12141_v1  ;;  %v15688_v36 = vld [vmem:[#allocation32_spill] sm:$0xff] }
 0x5c9   : > { %15681 = vst [vmem:[#allocation96_spill] sm:$0xff] %v12135_v25  ;;  %v12138_v30 = vadd.f32 %v3621_v5, %v15682_v15  ;;  %v15692_v15 = vld [vmem:[#allocation34_spill] sm:$0xff] }
 0x5ca   : > { %15679 = vst [vmem:[#allocation87_spill] sm:$0xff] %v12132_v47  ;;  %v3670_v60 = vpack.c.bf16 %v12132_v47, %v12141_v1 }
 0x5cb   : > { %15683 = vst [vmem:[#allocation79_spill] sm:$0xff] %v12138_v30  ;;  %v3669_v27 = vpack.c.bf16 %v12138_v30, %v12135_v25 }
 0x5cd   : > { %v7591_v2 = vpop.f32.mrb[28].mxu1  ;;  %7617 = vmatprep.mubr.bf16.mxu1 %v3669_v27 }
 0x5ce   : > { %v3634_v24 = vpop.f32.mrb[29].mxu1  ;;  %7618 = vmatmul.mubr.bf16.gmra.mrb[40].mxu1 %v3670_v60  ;;  %v12157_v49 = vadd.f32 %v7591_v2, %v15692_v15  ;;  %v8411_v60 = vld [vmem:[#allocation10 + $0x280] sm:$0xff]  }
 0x5cf   : > { %v7592_v45 = vpop.f32.mrb[30].mxu1  ;;  %v12151_v5 = vadd.f32 %v3634_v24, %v15688_v36  ;;  %7625 = vmatprep.subr.bf16.mxu1 %v8411_v60  ;;  %v8413_v24 = vld [vmem:[#allocation10 + $0x290] sm:$0xff]   ;;  %v8415_v2 = vld [vmem:[#allocation10 + $0x2a0] sm:$0xff]  }
 0x5d0   : > { %v12148_v14 = vadd.f32 %v7592_v45, %v15686_v62  ;;  %v3637_v7 = vpop.f32.mrb[31].mxu1  ;;  %15693 = vst [vmem:[#allocation162_spill] sm:$0xff] %v12157_v49  ;;  %7626 = vmatpush3.bf16.msra.mxu1 %v8411_v60  ;;  %v8412_v45 = vld [vmem:[#allocation10 + $0x288] sm:$0xff]   ;;  %v8414_v62 = vld [vmem:[#allocation10 + $0x298] sm:$0xff]   ;;  %v8417_v36 = vld [vmem:[#allocation10 + $0x2b0] sm:$0xff]  }
 0x5d1   : > { %15689 = vst [vmem:[#allocation77_spill] sm:$0xff] %v12151_v5  ;;  %v12154_v28 = vadd.f32 %v3637_v7, %v15690_v6  ;;  %7627 = vmatprep.subr.bf16.mxu1 %v8412_v45  ;;  %v8416_v7 = vld [vmem:[#allocation10 + $0x2a8] sm:$0xff]   ;;  %v12163_v6 = vld [vmem:[#allocation10 + $0x240] sm:$0xff]  }
 0x5d2   : > { %15687 = vst [vmem:[#allocation95_spill] sm:$0xff] %v12148_v14  ;;  %v3672_v27 = vpack.c.bf16 %v12148_v14, %v12157_v49  ;;  %v12169_v15 = vld [vmem:[%s13492_s4 + $0x1] ss:$0 sm:$0xff] }
 0x5d3   : > { %15691 = vst [vmem:[#allocation161_spill] sm:$0xff] %v12154_v28  ;;  %v3671_v30 = vpack.c.bf16 %v12154_v28, %v12151_v5 }
 0x5d4   : > { %7628 = vmatpush3.bf16.msra.mxu1 %v8412_v45 }
 0x5d5   : > { %7621 = vmatprep.mubr.bf16.mxu1 %v3671_v30  ;;  %7629 = vmatprep.subr.bf16.mxu1 %v8413_v24  ;;  %v8418_v30 = vld [vmem:[#allocation10 + $0x2b8] sm:$0xff]  }
 0x5d6   : > { %7622 = vmatmul.mubr.bf16.gmra.mrb[44].mxu1 %v3672_v27 }
 0x5d8   : > { %7630 = vmatpush3.bf16.msra.mxu1 %v8413_v24 }
 0x5d9   : > { %7631 = vmatprep.subr.bf16.mxu1 %v8414_v62 }
 0x5dc   : > { %7632 = vmatpush3.bf16.msra.mxu1 %v8414_v62 }
 0x5dd   : > { %7633 = vmatprep.subr.bf16.mxu1 %v8415_v2 }
 0x5e0   : > { %7634 = vmatpush3.bf16.msra.mxu1 %v8415_v2 }
 0x5e1   : > { %7635 = vmatprep.subr.bf16.mxu1 %v8416_v7 }
 0x5e4   : > { %7636 = vmatpush3.bf16.msra.mxu1 %v8416_v7 }
 0x5e5   : > { %7637 = vmatprep.subr.bf16.mxu1 %v8417_v36 }
 0x5e8   : > { %7638 = vmatpush3.bf16.msra.mxu1 %v8417_v36 }
 0x5e9   : > { %7639 = vmatprep.subr.bf16.mxu1 %v8418_v30 }
 0x5ec   : > { %7640 = vmatpush3.bf16.msra.mxu1 %v8418_v30 }
 0x5ed   : > { %7657 = vmatprep.subr.bf16.mxu1 %v12163_v6 }
 0x691   : > { %v7611_v27 = vpop.f32.mrb[32].mxu1 }
 0x692   : > { %v3789_v60 = vadd.f32 %v7611_v27, %v12169_v15  ;;  %v3780_v45 = vpop.f32.mrb[33].mxu1 }
 0x693   : > { %v3781_v24 = vadd.f32 %v12169_v15, %v3780_v45  ;;  %v7612_v62 = vpop.f32.mrb[34].mxu1 }
 0x694   : > { %v3845_v2 = vmul.f32 0.2, %v3789_v60  ;;  %v3792_v7 = vadd.f32 %v7612_v62, %v12169_v15  ;;  %v3783_v36 = vpop.f32.mrb[35].mxu1 }
 0x695   : > { %v3843_v28 = vmul.f32 0.2, %v3781_v24  ;;  %v3784_v30 = vadd.f32 %v12169_v15, %v3783_v36 }
 0x696   : > { %v12175_v14 = vmax.f32 %v3789_v60, %v3845_v2  ;;  %v3846_v5 = vmul.f32 0.2, %v3792_v7 }
 0x697   : > { %v12177_v49 = vmax.f32 %v3781_v24, %v3843_v28  ;;  %v3844_v47 = vmul.f32 0.2, %v3784_v30 }
 0x698   : > { %15694 = vst [vmem:[#allocation109_spill] sm:$0xff] %v12175_v14  ;;  %v3877_v25 = vrot.slane %v12175_v14, 3  ;;  %v3950_v27 = vrot.slane %v12175_v14, 4  ;;  %v12183_v12 = vmax.f32 %v3792_v7, %v3846_v5  ;;  %v15774_v55 = vrot.slane %v12175_v14, 5 }
 0x699   : > { %v12185_v62 = vmax.f32 %v3784_v30, %v3844_v47  ;;  %v7615_v46 = vpop.f32.mrb[36].mxu1  ;;  %v15703_v44 = vrot.slane %v12177_v49, 4  ;;  %v15708_v31 = vrot.slane %v12177_v49, 3  ;;  %v15738_v48 = vrot.slane %v12177_v49, 4 }
 0x69a   : > { %v3805_v28 = vadd.f32 %v7615_v46, %v12169_v15  ;;  %v3796_v24 = vpop.f32.mrb[37].mxu1  ;;  %v3878_v1 = vrot.slane %v12183_v12, 3  ;;  %v3951_v5 = vrot.slane %v12183_v12, 4  ;;  %v15743_v63 = vrot.slane %v12177_v49, 3 }
 0x69b   : > { %15695 = vst [vmem:[#allocation101_spill] sm:$0xff] %v12185_v62  ;;  %v7616_v30 = vpop.f32.mrb[38].mxu1  ;;  %v3797_v46 = vadd.f32 %v12169_v15, %v3796_v24  ;;  %v3949_v45 = vrot.slane %v12185_v62, 4  ;;  %v3876_v47 = vrot.slane %v12185_v62, 3 }
 0x69c   : > { %v3849_v60 = vmul.f32 0.2, %v3805_v28  ;;  %v3808_v36 = vadd.f32 %v7616_v30, %v12169_v15  ;;  %v3799_v43 = vpop.f32.mrb[39].mxu1  ;;  %v12204_v22 = vsel %vm15697_vm9, %v3950_v27, %v3951_v5  ;;  %v12211_v24 = vsel %vm15700_vm0, %v3877_v25, %v3878_v1 }
 0x69d   : > { %v3800_v52 = vadd.f32 %v12169_v15, %v3799_v43  ;;  %15698 = vst [vmem:[#allocation163_spill] sm:$0xff] %v12204_v22  ;;  %v3847_v0 = vmul.f32 0.2, %v3797_v46  ;;  %v12215_v43 = vsel %vm15701_vm12, %v3949_v45, %v3950_v27  ;;  %v12221_v8 = vsel %vm15697_vm9, %v15703_v44, %v3949_v45  ;;  %vm15712_vm12 = vmmov %vm15697_vm9 }
 0x69e   : > { %v12207_v7 = vmax.f32 %v3805_v28, %v3849_v60  ;;  %v3850_v2 = vmul.f32 0.2, %v3808_v36  ;;  %15702 = vst [vmem:[#allocation114_spill] sm:$0xff] %v12215_v43  ;;  %15704 = vst [vmem:[#allocation165_spill] sm:$0xff] %v12221_v8  ;;  %v12225_v60 = vsel %vm15705_vm11, %v3876_v47, %v3877_v25  ;;  %v12240_v44 = vsel %vm15700_vm0, %v15708_v31, %v3876_v47 }
 0x69f   : > { %v3848_v30 = vmul.f32 0.2, %v3800_v52  ;;  %v12227_v28 = vmax.f32 %v3797_v46, %v3847_v0  ;;  %15709 = vst [vmem:[#allocation126_spill] sm:$0xff] %v12240_v44  ;;  %vm15710_vm11 = vmmov %vm15697_vm9  ;;  %v15756_v51 = vpack.c.bf16 %v12204_v22, %v12215_v43  ;;  %v15961_v43 = vld [vmem:[#allocation211_spill] sm:$0xff] }
 0x6a0   : > { %15699 = vst [vmem:[#allocation115_spill] sm:$0xff] %v12207_v7  ;;  %v12229_v35 = vmax.f32 %v3808_v36, %v3850_v2  ;;  %v3954_v27 = vrot.slane %v12207_v7, 4  ;;  %v3881_v25 = vrot.slane %v12207_v7, 3  ;;  %vm15716_vm0 = vmmov %vm15697_vm9  ;;  %v4317_v22 = vrot.slane %v12207_v7, 5 }
 0x6a1   : > { %v12234_v61 = vmax.f32 %v3800_v52, %v3848_v30  ;;  %v7619_v57 = vpop.f32.mrb[40].mxu1  ;;  %v3952_v52 = vrot.slane %v12227_v28, 4  ;;  %v3879_v47 = vrot.slane %v12227_v28, 3  ;;  %v4315_v9 = vrot.slane %v12227_v28, 5 }
 0x6a2   : > { %15706 = vst [vmem:[#allocation169_spill] sm:$0xff] %v12229_v35  ;;  %v3821_v2 = vadd.f32 %v7619_v57, %v12169_v15  ;;  %v3812_v36 = vpop.f32.mrb[41].mxu1  ;;  %v3955_v46 = vrot.slane %v12229_v35, 4 }
 0x6a3   : > { %15707 = vst [vmem:[#allocation170_spill] sm:$0xff] %v12234_v61  ;;  %v3813_v30 = vadd.f32 %v12169_v15, %v3812_v36  ;;  %v7620_v42 = vpop.f32.mrb[42].mxu1  ;;  %v3953_v31 = vrot.slane %v12234_v61, 4  ;;  %v3880_v0 = vrot.slane %v12234_v61, 3  ;;  %v12256_v57 = vsel %vm15710_vm11, %v3951_v5, %v3952_v52 }
 0x6a4   : > { %v3853_v16 = vmul.f32 0.2, %v3821_v2  ;;  %v3824_v56 = vadd.f32 %v7620_v42, %v12169_v15  ;;  %v3815_v45 = vpop.f32.mrb[43].mxu1  ;;  %15711 = vst [vmem:[#allocation117_spill] sm:$0xff] %v12256_v57  ;;  %v12260_v17 = vsel %vm15712_vm12, %v3954_v27, %v3955_v46  ;;  %vm15719_vm11 = vcmp.lt.s32.totalorder %v15696_v4, 5 }
 0x6a5   : > { %15713 = vst [vmem:[#allocation128_spill] sm:$0xff] %v12260_v17  ;;  %v3851_v36 = vmul.f32 0.2, %v3813_v30  ;;  %v3816_v58 = vadd.f32 %v12169_v15, %v3815_v45  ;;  %v12265_v11 = vsel %vm15697_vm9, %v3952_v52, %v3953_v31  ;;  %v12275_v29 = vsel %vm15716_vm0, %v3953_v31, %v3954_v27  ;;  %vm15720_vm12 = vmmov %vm15719_vm11 }
 0x6a6   : > { %15714 = vst [vmem:[#allocation125_spill] sm:$0xff] %v12265_v11  ;;  %v12269_v42 = vmax.f32 %v3821_v2, %v3853_v16  ;;  %v3854_v34 = vmul.f32 0.2, %v3824_v56  ;;  %15717 = vst [vmem:[#allocation172_spill] sm:$0xff] %v12275_v29  ;;  %v12283_v40 = vsel %vm15719_vm11, %v3879_v47, %v3880_v0  ;;  %v12290_v33 = vsel %vm15720_vm12, %v3878_v1, %v3879_v47 }
 0x6a7   : > { %v12277_v26 = vmax.f32 %v3813_v30, %v3851_v36  ;;  %v3852_v45 = vmul.f32 0.2, %v3816_v58  ;;  %15721 = vst [vmem:[#allocation127_spill] sm:$0xff] %v12290_v33  ;;  %v3882_v27 = vrot.slane %v12229_v35, 3  ;;  %vm15723_vm9 = vmmov %vm15719_vm11  ;;  %vm15725_vm11 = vcmp.lt.s32.totalorder %v15696_v4, 4 }
 0x6a8   : > { %15715 = vst [vmem:[#allocation171_spill] sm:$0xff] %v12269_v42  ;;  %v12285_v16 = vmax.f32 %v3824_v56, %v3854_v34  ;;  %v3958_v2 = vrot.slane %v12269_v42, 4  ;;  %vm15724_vm0 = vmmov %vm15723_vm9  ;;  %v4316_v13 = vrot.slane %v12234_v61, 5 }
 0x6a9   : > { %15718 = vst [vmem:[#allocation122_spill] sm:$0xff] %v12277_v26  ;;  %v12293_v30 = vmax.f32 %v3816_v58, %v3852_v45  ;;  %v7623_v31 = vpop.f32.mrb[44].mxu1  ;;  %v3956_v36 = vrot.slane %v12277_v26, 4  ;;  %v12304_v1 = vsel %vm15723_vm9, %v3881_v25, %v3882_v27  ;;  %v12308_v58 = vsel %vm15724_vm0, %v3880_v0, %v3881_v25  ;;  %vm15727_vm12 = vmmov %vm15725_vm11 }
 0x6aa   : > { %v3837_v56 = vadd.f32 %v7623_v31, %v12169_v15  ;;  %v3828_v5 = vpop.f32.mrb[45].mxu1  ;;  %v3959_v53 = vrot.slane %v12285_v16, 4  ;;  %v3883_v25 = vrot.slane %v12277_v26, 3  ;;  %vm15729_vm9 = vmmov %vm15725_vm11 }
 0x6ab   : > { %15722 = vst [vmem:[#allocation82_spill] sm:$0xff] %v12293_v30  ;;  %v3829_v47 = vadd.f32 %v12169_v15, %v3828_v5  ;;  %v7624_v45 = vpop.f32.mrb[46].mxu1  ;;  %v3957_v52 = vrot.slane %v12293_v30, 4  ;;  %v12314_v34 = vsel %vm15725_vm11, %v3955_v46, %v3956_v36  ;;  %vm15731_vm0 = vmmov %vm15729_vm9  ;;  %vm15733_vm11 = vcmp.lt.s32.totalorder %v15696_v4, 5 }
 0x6ac   : > { %15726 = vst [vmem:[#allocation80_spill] sm:$0xff] %v12314_v34  ;;  %v3857_v3 = vmul.f32 0.2, %v3837_v56  ;;  %v3840_v21 = vadd.f32 %v7624_v45, %v12169_v15  ;;  %v3831_v23 = vpop.f32.mrb[47].mxu1  ;;  %v12321_v0 = vsel %vm15727_vm12, %v3958_v2, %v3959_v53  ;;  %vm15734_vm12 = vmmov %vm15733_vm11 }
 0x6ad   : > { %15728 = vst [vmem:[#allocation89_spill] sm:$0xff] %v12321_v0  ;;  %v3855_v5 = vmul.f32 0.2, %v3829_v47  ;;  %v3832_v54 = vadd.f32 %v12169_v15, %v3831_v23  ;;  %v12327_v46 = vsel %vm15729_vm9, %v3956_v36, %v3957_v52  ;;  %v12331_v31 = vsel %vm15731_vm0, %v3957_v52, %v3958_v2  ;;  %vm15735_vm9 = vmmov %vm15733_vm11 }
 0x6ae   : > { %15730 = vst [vmem:[#allocation81_spill] sm:$0xff] %v12327_v46  ;;  %15732 = vst [vmem:[#allocation92_spill] sm:$0xff] %v12331_v31  ;;  %v12333_v10 = vmax.f32 %v3837_v56, %v3857_v3  ;;  %v3858_v45 = vmul.f32 0.2, %v3840_v21  ;;  %v3884_v15 = vrot.slane %v12293_v30, 3  ;;  %v12344_v36 = vsel %vm15733_vm11, %v3882_v27, %v3883_v25 }
 0x6af   : > { %v12339_v59 = vmax.f32 %v3829_v47, %v3855_v5  ;;  %v3856_v23 = vmul.f32 0.2, %v3832_v54  ;;  %v3885_v2 = vrot.slane %v12269_v42, 3  ;;  %v3886_v56 = vrot.slane %v12285_v16, 3  ;;  %vm15737_vm11 = vmmov %vm15735_vm9 }
 0x6b0   : > { %v12346_v52 = vmax.f32 %v3840_v21, %v3858_v45  ;;  %v3962_v3 = vrot.slane %v12333_v10, 4  ;;  %v12356_v5 = vsel %vm15734_vm12, %v3883_v25, %v3884_v15  ;;  %vm15739_vm12 = vmmov %vm15731_vm0 }
 0x6b1   : > { %v12351_v37 = vmax.f32 %v3832_v54, %v3856_v23  ;;  %v3960_v47 = vrot.slane %v12339_v59, 4  ;;  %v3887_v32 = vrot.slane %v12339_v59, 3  ;;  %v12365_v50 = vsel %vm15735_vm9, %v3885_v2, %v3886_v56  ;;  %vm15741_vm9 = vmmov %vm15731_vm0 }
 0x6b2   : > { %v3963_v27 = vrot.slane %v12346_v52, 4  ;;  %v3890_v21 = vrot.slane %v12346_v52, 3  ;;  %v12374_v25 = vsel %vm15737_vm11, %v3884_v15, %v3885_v2  ;;  %v4312_v15 = vrot.slane %v12185_v62, 5 }
 0x6b3   : > { %v3961_v54 = vrot.slane %v12351_v37, 4  ;;  %v12370_v23 = vsel %vm15731_vm0, %v3959_v53, %v3960_v47  ;;  %v3888_v38 = vrot.slane %v12351_v37, 3  ;;  %vm15744_vm0 = vmmov %vm15737_vm11  ;;  %v4326_v18 = vrot.slane %v12346_v52, 5 }
 0x6b4   : > { %15736 = vst [vmem:[#allocation91_spill] sm:$0xff] %v12370_v23  ;;  %v12381_v45 = vsel %vm15739_vm12, %v3963_v27, %v15738_v48  ;;  %v12385_v20 = vsel %vm15741_vm9, %v3962_v3, %v3963_v27  ;;  %v12391_v53 = vsel %vm15744_vm0, %v3890_v21, %v15743_v63  ;;  %vm15746_vm11 = vmmov %vm15741_vm9  ;;  %v3889_v63 = vrot.slane %v12333_v10, 3 }
 0x6b5   : > { %15740 = vst [vmem:[#allocation100_spill] sm:$0xff] %v12381_v45  ;;  %15742 = vst [vmem:[#allocation90_spill] sm:$0xff] %v12385_v20  ;;  %v6565_v2 = vpack.c.bf16 %v12221_v8, %v12381_v45  ;;  %v12399_v48 = vsel %vm15746_vm11, %v3960_v47, %v3961_v54  ;;  %v12417_v47 = vsel %vm15744_vm0, %v3886_v56, %v3887_v32  ;;  %v15759_v56 = vld [vmem:[#allocation111_spill] sm:$0xff]  ;;  %v15784_v45 = vrot.slane %v12183_v12, 5  ;;  %v15924_v8 = vld [vmem:[#allocation184_spill] sm:$0xff] }
 0x6b6   : > { %15745 = vst [vmem:[#allocation104_spill] sm:$0xff] %v12391_v53  ;;  %15747 = vst [vmem:[#allocation103_spill] sm:$0xff] %v12399_v48 }
 0x6b7   : > { %vm15748_vm12 = vmmov %vm15741_vm9 }
 0x6b8   : > { %v12403_v27 = vsel %vm15748_vm12, %v3961_v54, %v3962_v3  ;;  %vm15750_vm9 = vmmov %vm15744_vm0  ;;  %v15751_v3 = vld [vmem:[#allocation108_spill] sm:$0xff]  ;;  %v15753_v54 = vld [vmem:[#allocation106_spill] sm:$0xff]  ;;  %vm15760_vm0 = vnez %v15759_v56 }
 0x6b9   : > { %15749 = vst [vmem:[#allocation119_spill] sm:$0xff] %v12403_v27  ;;  %v12413_v39 = vsel %vm15750_vm9, %v3887_v32, %v3888_v38  ;;  %vm15752_vm11 = vnez %v15751_v3  ;;  %vm15754_vm12 = vnez %v15753_v54  ;;  %v15757_v32 = vld [vmem:[#allocation113_spill] sm:$0xff]  ;;  %v15763_v3 = vrot.slane %v12175_v14, 5  ;;  %v15769_v56 = vld [vmem:[#allocation116_spill] sm:$0xff] }
 0x6ba   : > { %vm15755_vm4 = vmpackc.low %vm15752_vm11, %vm15754_vm12  ;;  %vm15758_vm9 = vnez %v15757_v32  ;;  %v15766_v32 = vpack.c.bf16 %v12265_v11, %v12256_v57  ;;  %vm15770_vm11 = vnez %v15769_v56  ;;  %v8421_v56 = vld [vmem:[#allocation10 + $0x250] sm:$0xff]  }
 0x6bb   : > { %7641 = vmatprep.mubr.msk.bf16.mxu1 %vm15755_vm4, %v6565_v2  ;;  %vm15761_vm14 = vmpackc.low %vm15758_vm9, %vm15760_vm0  ;;  %v15762_v2 = vrot.slane %v12183_v12, 5  ;;  %vm15764_vm4 = vcmp.lt.s32.totalorder %v15696_v4, 3  ;;  %vm15772_vm9 = vcmp.lt.s32.totalorder %v15696_v4, 5 }
 0x6bc   : > { %7642 = vmatmul.mubr.msk.bf16.vlgmr.msra.gmra.mrb[48].mxu1 %vm15761_vm14, %v15756_v51  ;;  %v15767_v51 = vld [vmem:[#allocation118_spill] sm:$0xff]  ;;  %vm15773_vm0 = vmmov %vm15772_vm9 }
 0x6bd   : > { %v12443_v54 = vsel %vm15764_vm4, %v15763_v3, %v15762_v2  ;;  %7658 = vmatpush3.bf16.msra.mxu1 %v12163_v6  ;;  %vm15768_vm14 = vnez %v15767_v51  ;;  %v12459_v2 = vsel %vm15772_vm9, %v3889_v63, %v3890_v21  ;;  %v12463_v3 = vsel %vm15773_vm0, %v3888_v38, %v3889_v63  ;;  %vm15785_vm9 = vmmov %vm15764_vm4 }
 0x6be   : > { %15765 = vst [vmem:[#allocation102_spill] sm:$0xff] %v12443_v54  ;;  %vm15771_vm12 = vmpackc.low %vm15768_vm14, %vm15770_vm11  ;;  %v12469_v6 = vsel %vm15764_vm4, %v4312_v15, %v15774_v55  ;;  %v4318_v51 = vrot.slane %v12229_v35, 5  ;;  %7659 = vmatprep.subr.bf16.mxu1 %v8420_v41  ;;  %v15776_v21 = vrot.slane %v12177_v49, 5 }
 0x6bf   : > { %7645 = vmatprep.mubr.msk.bf16.mxu1 %vm15771_vm12, %v15766_v32  ;;  %15775 = vst [vmem:[#allocation124_spill] sm:$0xff] %v12469_v6  ;;  %vm15777_vm14 = vmmov %vm15764_vm4  ;;  %v4321_v6 = vrot.slane %v12269_v42, 5 }
 0x6c0   : > { %v12478_v57 = vsel %vm15777_vm14, %v15776_v21, %v4312_v15  ;;  %v15779_v38 = vmov %v15776_v21  ;;  %vm15780_vm11 = vmmov %vm15764_vm4  ;;  %v12498_v15 = vsel %vm15785_vm9, %v15784_v45, %v4315_v9  ;;  %v4320_v45 = vrot.slane %v12293_v30, 5 }
 0x6c1   : > { %15778 = vst [vmem:[#allocation123_spill] sm:$0xff] %v12478_v57  ;;  %v12484_v63 = vsel %vm15780_vm11, %v4326_v18, %v15779_v38  ;;  %vm15782_vm12 = vmmov %vm15764_vm4  ;;  %7660 = vmatpush3.bf16.msra.mxu1 %v8420_v41  ;;  %v4322_v57 = vrot.slane %v12285_v16, 5  ;;  %v8422_v38 = vld [vmem:[#allocation10 + $0x258] sm:$0xff]   ;;  %v4325_v41 = vrot.slane %v12333_v10, 5 }
 0x6c2   : > { %15781 = vst [vmem:[#allocation120_spill] sm:$0xff] %v12484_v63  ;;  %v12492_v32 = vsel %vm15782_vm12, %v4315_v9, %v4316_v13  ;;  %15786 = vst [vmem:[#allocation130_spill] sm:$0xff] %v12498_v15  ;;  %v4319_v63 = vrot.slane %v12277_v26, 5  ;;  %7661 = vmatprep.subr.bf16.mxu1 %v8421_v56 }
 0x6c3   : > { %15783 = vst [vmem:[#allocation121_spill] sm:$0xff] %v12492_v32  ;;  %vm15787_vm0 = vmmov %vm15764_vm4  ;;  %v15800_v32 = vld [vmem:[#allocation129_spill] sm:$0xff] }
 0x6c4   : > { %v12502_v21 = vsel %vm15787_vm0, %v4317_v22, %v4318_v51  ;;  %vm15789_vm4 = vmmov %vm15787_vm0 }
 0x6c5   : > { %15788 = vst [vmem:[#allocation131_spill] sm:$0xff] %v12502_v21  ;;  %v12510_v19 = vsel %vm15789_vm4, %v4316_v13, %v4317_v22  ;;  %vm15791_vm14 = vmmov %vm15787_vm0  ;;  %v4323_v13 = vrot.slane %v12339_v59, 5  ;;  %v4324_v22 = vrot.slane %v12351_v37, 5  ;;  %v15797_v21 = vpack.c.bf16 %v12260_v17, %v12275_v29  ;;  %7662 = vmatpush3.bf16.msra.mxu1 %v8421_v56  ;;  %v8432_v29 = vld [vmem:[#allocation10 + $0x2e8] sm:$0xff]  }
 0x6c6   : > { %15790 = vst [vmem:[#allocation138_spill] sm:$0xff] %v12510_v19  ;;  %v12520_v55 = vsel %vm15791_vm14, %v4318_v51, %v4319_v63  ;;  %vm15792_vm11 = vmmov %vm15787_vm0  ;;  %v4546_v51 = vrot.slane %v12185_v62, 7  ;;  %v15798_v19 = vld [vmem:[#allocation133_spill] sm:$0xff]  ;;  %vm15801_vm4 = vnez %v15800_v32  ;;  %v15808_v32 = vld [vmem:[#allocation136_spill] sm:$0xff]  ;;  %v4560_v56 = vrot.slane %v12346_v52, 7  ;;  %7663 = vmatprep.subr.bf16.mxu1 %v8422_v38 }
 0x6c7   : > { %v12527_v9 = vsel %vm15792_vm11, %v4319_v63, %v4320_v45  ;;  %vm15793_vm12 = vmmov %vm15787_vm0 }
 0x6c8   : > { %v12531_v15 = vsel %vm15793_vm12, %v4321_v6, %v4322_v57  ;;  %vm15795_vm9 = vmmov %vm15787_vm0  ;;  %vm15799_vm0 = vnez %v15798_v19  ;;  %v15807_v19 = vpack.c.bf16 %v12327_v46, %v12314_v34  ;;  %v15912_v46 = vld [vmem:[#allocation124_spill] sm:$0xff]  ;;  %v15923_v34 = vpack.c.bf16 %v12304_v1, %v12308_v58 }
 0x6c9   : > { %15794 = vst [vmem:[#allocation132_spill] sm:$0xff] %v12531_v15  ;;  %v12535_v54 = vsel %vm15795_vm9, %v4320_v45, %v4321_v6  ;;  %vm15802_vm14 = vmpackc.low %vm15799_vm0, %vm15801_vm4  ;;  %7664 = vmatpush3.bf16.msra.mxu1 %v8422_v38 }
 0x6ca   : > { %15796 = vst [vmem:[#allocation140_spill] sm:$0xff] %v12535_v54  ;;  %7646 = vmatmul.mubr.msk.bf16.gmra.mrb[52].mxu1 %vm15802_vm14, %v15797_v21  ;;  %vm15803_vm11 = vmmov %vm15795_vm9  ;;  %v15810_v21 = vld [vmem:[#allocation135_spill] sm:$0xff]  ;;  %v15913_v17 = vld [vmem:[#allocation121_spill] sm:$0xff] }
 0x6cb   : > { %v12552_v6 = vsel %vm15803_vm11, %v4323_v13, %v4324_v22  ;;  %vm15805_vm12 = vmmov %vm15795_vm9  ;;  %vm15809_vm9 = vnez %v15808_v32  ;;  %vm15811_vm0 = vnez %v15810_v21 }
 0x6cc   : > { %15804 = vst [vmem:[#allocation137_spill] sm:$0xff] %v12552_v6  ;;  %v12556_v45 = vsel %vm15805_vm12, %v4322_v57, %v4323_v13  ;;  %vm15812_vm4 = vmpackc.low %vm15809_vm9, %vm15811_vm0  ;;  %v12574_v57 = vsel %vm15803_vm11, %v4324_v22, %v4325_v41  ;;  %v8423_v13 = vld [vmem:[#allocation10 + $0x260] sm:$0xff]   ;;  %vm15817_vm12 = vcmp.lt.s32.totalorder %v15696_v4, 1  ;;  %v15822_v22 = vrot.slane %v12183_v12, 7 }
 0x6cd   : > { %15806 = vst [vmem:[#allocation142_spill] sm:$0xff] %v12556_v45  ;;  %7649 = vmatprep.mubr.msk.bf16.mxu1 %vm15812_vm4, %v15807_v19  ;;  %vm15813_vm14 = vmmov %vm15803_vm11  ;;  %v15816_v19 = vrot.slane %v12175_v14, 7  ;;  %v4551_v45 = vrot.slane %v12207_v7, 7  ;;  %7665 = vmatprep.subr.bf16.mxu1 %v8423_v13 }
 0x6ce   : > { %v12570_v63 = vsel %vm15813_vm14, %v4325_v41, %v4326_v18  ;;  %15815 = vst [vmem:[#allocation143_spill] sm:$0xff] %v12574_v57  ;;  %v15819_v18 = vrot.slane %v12177_v49, 7  ;;  %vm15820_vm9 = vmmov %vm15817_vm12  ;;  %v4555_v57 = vrot.slane %v12269_v42, 7  ;;  %7666 = vmatpush3.bf16.msra.mxu1 %v8423_v13  ;;  %v4982_v13 = vrot.slane %v12185_v62, 1 }
 0x6cf   : > { %15814 = vst [vmem:[#allocation139_spill] sm:$0xff] %v12570_v63  ;;  %v12583_v21 = vsel %vm15817_vm12, %v4546_v51, %v15816_v19  ;;  %v15823_v41 = vmov %v15816_v19  ;;  %vm15824_vm0 = vmmov %vm15820_vm9  ;;  %v15831_v63 = vrot.slane %v12183_v12, 7  ;;  %v15860_v62 = vrot.slane %v12177_v49, 1 }
 0x6d0   : > { %15818 = vst [vmem:[#allocation141_spill] sm:$0xff] %v12583_v21  ;;  %v12589_v33 = vsel %vm15820_vm9, %v15819_v18, %v4546_v51  ;;  %v12597_v6 = vsel %vm15824_vm0, %v15823_v41, %v15822_v22  ;;  %v15826_v32 = vmov %v15819_v18  ;;  %vm15827_vm4 = vmmov %vm15824_vm0  ;;  %v4549_v51 = vrot.slane %v12227_v28, 7 }
 0x6d1   : > { %15821 = vst [vmem:[#allocation148_spill] sm:$0xff] %v12589_v33  ;;  %15825 = vst [vmem:[#allocation145_spill] sm:$0xff] %v12597_v6  ;;  %v12603_v19 = vsel %vm15827_vm4, %v4560_v56, %v15826_v32  ;;  %v4550_v18 = vrot.slane %v12234_v61, 7  ;;  %v4552_v22 = vrot.slane %v12229_v35, 7  ;;  %v4553_v41 = vrot.slane %v12277_v26, 7  ;;  %v15916_v11 = vld [vmem:[#allocation140_spill] sm:$0xff] }
 0x6d2   : > { %15828 = vst [vmem:[#allocation151_spill] sm:$0xff] %v12603_v19  ;;  %vm15829_vm14 = vmmov %vm15824_vm0  ;;  %v4554_v6 = vrot.slane %v12293_v30, 7  ;;  %v8424_v19 = vld [vmem:[#allocation10 + $0x268] sm:$0xff]   ;;  %v4556_v33 = vrot.slane %v12285_v16, 7 }
 0x6d3   : > { %v12616_v32 = vsel %vm15829_vm14, %v4549_v51, %v4550_v18  ;;  %vm15832_vm11 = vmmov %vm15824_vm0  ;;  %7667 = vmatprep.subr.bf16.mxu1 %v8424_v19 }
 0x6d4   : > { %15830 = vst [vmem:[#allocation147_spill] sm:$0xff] %v12616_v32  ;;  %v12622_v21 = vsel %vm15832_vm11, %v15831_v63, %v4549_v51  ;;  %vm15834_vm12 = vmmov %vm15824_vm0  ;;  %v12638_v63 = vsel %vm15824_vm0, %v4552_v22, %v4553_v41  ;;  %v15848_v32 = vld [vmem:[#allocation152_spill] sm:$0xff]  ;;  %7668 = vmatpush3.bf16.msra.mxu1 %v8424_v19  ;;  %v8426_v19 = vld [vmem:[#allocation10 + $0x278] sm:$0xff]   ;;  %v4987_v51 = vrot.slane %v12207_v7, 1  ;;  %v15868_v7 = vpack.c.bf16 %v12385_v20, %v12403_v27 }
 0x6d5   : > { %15833 = vst [vmem:[#allocation134_spill] sm:$0xff] %v12622_v21  ;;  %v12630_v38 = vsel %vm15834_vm12, %v4551_v45, %v4552_v22  ;;  %vm15836_vm9 = vmmov %vm15824_vm0  ;;  %v15844_v22 = vld [vmem:[#allocation144_spill] sm:$0xff]  ;;  %v15920_v27 = vld [vmem:[#allocation143_spill] sm:$0xff] }
 0x6d6   : > { %15835 = vst [vmem:[#allocation150_spill] sm:$0xff] %v12630_v38  ;;  %v12634_v15 = vsel %vm15836_vm9, %v4550_v18, %v4551_v45  ;;  %15838 = vst [vmem:[#allocation20_spill] sm:$0xff] %v12638_v63  ;;  %v15841_v45 = vpack.c.bf16 %v12321_v0, %v12331_v31  ;;  %v15842_v18 = vld [vmem:[#allocation146_spill] sm:$0xff]  ;;  %vm15845_vm12 = vnez %v15844_v22  ;;  %v4559_v38 = vrot.slane %v12333_v10, 7  ;;  %v8425_v63 = vld [vmem:[#allocation10 + $0x270] sm:$0xff]  }
 0x6d7   : > { %15837 = vst [vmem:[#allocation23_spill] sm:$0xff] %v12634_v15  ;;  %vm15839_vm4 = vmmov %vm15824_vm0  ;;  %vm15843_vm11 = vnez %v15842_v18  ;;  %v4558_v15 = vrot.slane %v12351_v37, 7  ;;  %v15850_v18 = vld [vmem:[#allocation149_spill] sm:$0xff]  ;;  %7669 = vmatprep.subr.bf16.mxu1 %v8425_v63  ;;  %v15917_v0 = vld [vmem:[#allocation132_spill] sm:$0xff] }
 0x6d8   : > { %v12644_v54 = vsel %vm15839_vm4, %v4553_v41, %v4554_v6  ;;  %vm15840_vm14 = vmmov %vm15824_vm0  ;;  %v4557_v41 = vrot.slane %v12339_v59, 7  ;;  %vm15849_vm0 = vnez %v15848_v32  ;;  %vm15851_vm4 = vnez %v15850_v18  ;;  %7670 = vmatpush3.bf16.msra.mxu1 %v8425_v63  ;;  %v15921_v20 = vld [vmem:[#allocation139_spill] sm:$0xff]  ;;  %v8430_v31 = vld [vmem:[#allocation10 + $0x2d8] sm:$0xff]  }
 0x6d9   : > { %v12649_v21 = vsel %vm15840_vm14, %v4554_v6, %v4555_v57  ;;  %vm15846_vm9 = vmpackc.low %vm15843_vm11, %vm15845_vm12  ;;  %v15847_v6 = vpack.c.bf16 %v12399_v48, %v12370_v23  ;;  %vm15853_vm11 = vcmp.lt.s32.totalorder %v15696_v4, 1  ;;  %v4992_v63 = vrot.slane %v12285_v16, 1  ;;  %7671 = vmatprep.subr.bf16.mxu1 %v8426_v19  ;;  %v15918_v23 = vld [vmem:[#allocation142_spill] sm:$0xff]  ;;  %v15919_v48 = vld [vmem:[#allocation137_spill] sm:$0xff] }
 0x6da   : > { %7650 = vmatmul.mubr.msk.bf16.gmra.mrb[56].mxu1 %vm15846_vm9, %v15841_v45  ;;  %vm15852_vm14 = vmpackc.low %vm15849_vm0, %vm15851_vm4  ;;  %v12674_v45 = vsel %vm15853_vm11, %v4555_v57, %v4556_v33 }
 0x6db   : > { %7653 = vmatprep.mubr.msk.bf16.mxu1 %vm15852_vm14, %v15847_v6  ;;  %vm15854_vm12 = vmmov %vm15853_vm11  ;;  %vm15861_vm14 = vcmp.lt.s32.totalorder %v15696_v4, 7  ;;  %v15897_v4 = vpack.c.bf16 %v12211_v24, %v12225_v60 }
 0x6dc   : > { %v12685_v6 = vsel %vm15854_vm12, %v4557_v41, %v4558_v15  ;;  %vm15855_vm9 = vmmov %vm15853_vm11  ;;  %v12720_v32 = vsel %vm15861_vm14, %v15860_v62, %v4982_v13  ;;  %7672 = vmatpush3.bf16.msra.mxu1 %v8426_v19 }
 0x6dd   : > { %v12689_v57 = vsel %vm15855_vm9, %v4556_v33, %v4557_v41  ;;  %vm15856_vm0 = vmmov %vm15855_vm9  ;;  %v15863_v33 = vrot.slane %v12183_v12, 1 }
 0x6de   : > { %v12693_v18 = vsel %vm15856_vm0, %v4559_v38, %v4560_v56  ;;  %vm15858_vm4 = vmmov %vm15856_vm0  ;;  %v15862_v56 = vrot.slane %v12227_v28, 1 }
 0x6df   : > { %15857 = vst [vmem:[#allocation21_spill] sm:$0xff] %v12693_v18  ;;  %v12699_v22 = vsel %vm15858_vm4, %v4558_v15, %v4559_v38  ;;  %v4983_v38 = vrot.slane %v12175_v14, 1  ;;  %vm15864_vm11 = vmmov %vm15861_vm14  ;;  %v4986_v15 = vrot.slane %v12234_v61, 1  ;;  %v4988_v14 = vrot.slane %v12229_v35, 1  ;;  %v15869_v35 = vld [vmem:[#allocation164_spill] sm:$0xff] }
 0x6e0   : > { %15859 = vst [vmem:[#allocation22_spill] sm:$0xff] %v12699_v22  ;;  %v12728_v41 = vsel %vm15864_vm11, %v15863_v33, %v15862_v56  ;;  %v4989_v22 = vrot.slane %v12277_v26, 1  ;;  %v15865_v62 = vmov %v15863_v33  ;;  %vm15866_vm12 = vmmov %vm15864_vm11  ;;  %v4990_v56 = vrot.slane %v12293_v30, 1  ;;  %v15871_v26 = vld [vmem:[#allocation160_spill] sm:$0xff] }
 0x6e1   : > { %v12738_v18 = vsel %vm15866_vm12, %v4983_v38, %v15865_v62  ;;  %vm15867_vm9 = vmmov %vm15864_vm11  ;;  %v4991_v61 = vrot.slane %v12269_v42, 1  ;;  %vm15870_vm0 = vnez %v15869_v35  ;;  %vm15872_vm4 = vnez %v15871_v26  ;;  %v15879_v35 = vld [vmem:[#allocation168_spill] sm:$0xff] }
 0x6e2   : > { %v12742_v33 = vsel %vm15867_vm9, %v4982_v13, %v4983_v38  ;;  %vm15873_vm14 = vmpackc.low %vm15870_vm0, %vm15872_vm4  ;;  %v15875_v42 = vrot.slane %v12227_v28, 1  ;;  %v15878_v26 = vpack.c.bf16 %v12240_v44, %v12391_v53  ;;  %v4993_v13 = vrot.slane %v12339_v59, 1  ;;  %v15905_v53 = vld [vmem:[#allocation180_spill] sm:$0xff] }
 0x6e3   : > { %7654 = vmatmul.mubr.msk.bf16.gmra.mrb[60].mxu1 %vm15873_vm14, %v15868_v7  ;;  %vm15874_vm11 = vmmov %vm15867_vm9  ;;  %v15881_v7 = vld [vmem:[#allocation157_spill] sm:$0xff] }
 0x6e4   : > { %v12760_v38 = vsel %vm15874_vm11, %v4986_v15, %v4987_v51  ;;  %vm15876_vm12 = vmmov %vm15867_vm9  ;;  %vm15880_vm9 = vnez %v15879_v35  ;;  %vm15882_vm0 = vnez %v15881_v7  ;;  %v4995_v35 = vrot.slane %v12333_v10, 1 }
 0x6e5   : > { %v12766_v30 = vsel %vm15876_vm12, %v15875_v42, %v4986_v15  ;;  %vm15883_vm4 = vmpackc.low %vm15880_vm9, %vm15882_vm0  ;;  %v12784_v42 = vsel %vm15874_vm11, %v4987_v51, %v4988_v14  ;;  %v8427_v15 = vld [vmem:[#allocation10 + $0x2c0] sm:$0xff]  }
 0x6e6   : > { %15877 = vst [vmem:[#allocation27_spill] sm:$0xff] %v12766_v30  ;;  %7673 = vmatprep.mubr.msk.bf16.mxu1 %vm15883_vm4, %v15878_v26  ;;  %vm15884_vm14 = vmmov %vm15874_vm11  ;;  %v4994_v30 = vrot.slane %v12351_v37, 1  ;;  %7689 = vmatprep.subr.bf16.mxu1 %v8427_v15 }
 0x6e7   : > { %v12780_v62 = vsel %vm15884_vm14, %v4988_v14, %v4989_v22  ;;  %15885 = vst [vmem:[#allocation24_spill] sm:$0xff] %v12784_v42  ;;  %vm15886_vm12 = vmmov %vm15874_vm11  ;;  %v15922_v14 = vld [vmem:[#allocation120_spill] sm:$0xff] }
 0x6e8   : > { %v12791_v26 = vsel %vm15886_vm12, %v4990_v56, %v4991_v61  ;;  %vm15888_vm9 = vmmov %vm15874_vm11 }
 0x6e9   : > { %15887 = vst [vmem:[#allocation25_spill] sm:$0xff] %v12791_v26  ;;  %v12795_v7 = vsel %vm15888_vm9, %v4989_v22, %v4990_v56  ;;  %vm15890_vm0 = vmmov %vm15888_vm9  ;;  %v4996_v22 = vrot.slane %v12346_v52, 1  ;;  %v8428_v56 = vld [vmem:[#allocation10 + $0x2c8] sm:$0xff]   ;;  %v15929_v26 = vpack.c.bf16 %v12356_v5, %v12344_v36 }
 0x6ea   : > { %15889 = vst [vmem:[#allocation26_spill] sm:$0xff] %v12795_v7  ;;  %v12802_v51 = vsel %vm15890_vm0, %v4991_v61, %v4992_v63  ;;  %vm15891_vm4 = vmmov %vm15890_vm0  ;;  %v15895_v61 = vrot.slane %v12177_v49, 1 }
 0x6eb   : > { %v12808_v42 = vsel %vm15891_vm4, %v4992_v63, %v4993_v13  ;;  %vm15892_vm14 = vmmov %vm15890_vm0 }
 0x6ec   : > { %v12819_v7 = vsel %vm15892_vm14, %v4994_v30, %v4995_v35  ;;  %vm15893_vm11 = vmmov %vm15890_vm0 }
 0x6ed   : > { %v12823_v63 = vsel %vm15893_vm11, %v4993_v13, %v4994_v30  ;;  %vm15894_vm12 = vmmov %vm15890_vm0  ;;  %v15903_v13 = vld [vmem:[#allocation127_spill] sm:$0xff]  ;;  %vm15906_vm11 = vnez %v15905_v53  ;;  %v15914_v53 = vld [vmem:[#allocation138_spill] sm:$0xff] }
 0x6ee   : > { %v12831_v19 = vsel %vm15894_vm12, %v4995_v35, %v4996_v22  ;;  %vm15896_vm9 = vmmov %vm15890_vm0  ;;  %v15911_v35 = vld [vmem:[#allocation123_spill] sm:$0xff]  ;;  %v15930_v30 = vld [vmem:[#allocation193_spill] sm:$0xff] }
 0x6ef   : > { %v12837_v44 = vsel %vm15896_vm9, %v4996_v22, %v15895_v61  ;;  %v15898_v22 = vld [vmem:[#allocation176_spill] sm:$0xff]  ;;  %v15900_v61 = vld [vmem:[#allocation174_spill] sm:$0xff] }
 0x6f0   : > { %vm15899_vm0 = vnez %v15898_v22  ;;  %vm15901_vm4 = vnez %v15900_v61  ;;  %v15904_v22 = vpack.c.bf16 %v12283_v40, %v15903_v13  ;;  %v15907_v61 = vld [vmem:[#allocation177_spill] sm:$0xff] }
 0x6f1   : > { %vm15902_vm14 = vmpackc.low %vm15899_vm0, %vm15901_vm4  ;;  %vm15908_vm12 = vnez %v15907_v61  ;;  %v15915_v61 = vld [vmem:[#allocation131_spill] sm:$0xff]  ;;  %vm15925_vm0 = vnez %v15924_v8  ;;  %v15935_v8 = vpack.c.bf16 %v12365_v50, %v12374_v25 }
 0x6f2   : > { %7674 = vmatmul.mubr.msk.bf16.vlgmr.msra.gmra.mrb[48].mxu1 %vm15902_vm14, %v15897_v4  ;;  %vm15909_vm9 = vmpackc.low %vm15906_vm11, %vm15908_vm12  ;;  %vm15931_vm11 = vnez %v15930_v30  ;;  %v15932_v4 = vld [vmem:[#allocation190_spill] sm:$0xff]  ;;  %v15941_v30 = vpack.c.bf16 %v12413_v39, %v12417_v47 }
 0x6f3   : > { %7690 = vmatpush3.bf16.msra.mxu1 %v8427_v15  ;;  %7677 = vmatprep.mubr.msk.bf16.mxu1 %vm15909_vm9, %v15904_v22  ;;  %v8429_v15 = vld [vmem:[#allocation10 + $0x2d0] sm:$0xff]   ;;  %vm15933_vm12 = vnez %v15932_v4  ;;  %v15942_v4 = vld [vmem:[#allocation203_spill] sm:$0xff] }
 0x6f4   : > { %7691 = vmatprep.subr.bf16.mxu1 %v8428_v56  ;;  %v15926_v22 = vld [vmem:[#allocation181_spill] sm:$0xff]  ;;  %vm15934_vm9 = vmpackc.low %vm15931_vm11, %vm15933_vm12  ;;  %vm15943_vm11 = vnez %v15942_v4  ;;  %v15954_v4 = vld [vmem:[#allocation210_spill] sm:$0xff] }
 0x6f5   : > { %vm15927_vm4 = vnez %v15926_v22  ;;  %v15936_v22 = vld [vmem:[#allocation197_spill] sm:$0xff] }
 0x6f6   : > { %vm15928_vm14 = vmpackc.low %vm15925_vm0, %vm15927_vm4  ;;  %vm15937_vm0 = vnez %v15936_v22  ;;  %v15947_v22 = vpack.c.bf16 %v12459_v2, %v12463_v3 }
 0x6f7   : > { %7692 = vmatpush3.bf16.msra.mxu1 %v8428_v56  ;;  %v8431_v56 = vld [vmem:[#allocation10 + $0x2e0] sm:$0xff]  }
 0x6f8   : > { %7693 = vmatprep.subr.bf16.mxu1 %v8429_v15 }
 0x6fa   : > { %7678 = vmatmul.mubr.msk.bf16.gmra.mrb[52].mxu1 %vm15928_vm14, %v15923_v34  ;;  %v15938_v34 = vld [vmem:[#allocation196_spill] sm:$0xff] }
 0x6fb   : > { %7694 = vmatpush3.bf16.msra.mxu1 %v8429_v15  ;;  %7681 = vmatprep.mubr.msk.bf16.mxu1 %vm15934_vm9, %v15929_v26  ;;  %vm15939_vm4 = vnez %v15938_v34  ;;  %v15944_v26 = vld [vmem:[#allocation199_spill] sm:$0xff]  ;;  %v8434_v15 = vld [vmem:[#allocation10 + $0x2f8] sm:$0xff]   ;;  %v15948_v34 = vld [vmem:[#allocation208_spill] sm:$0xff] }
 0x6fc   : > { %7695 = vmatprep.subr.bf16.mxu1 %v8430_v31  ;;  %vm15940_vm14 = vmpackc.low %vm15937_vm0, %vm15939_vm4  ;;  %vm15945_vm12 = vnez %v15944_v26  ;;  %vm15949_vm0 = vnez %v15948_v34  ;;  %v8436_v26 = vld [vmem:[#allocation10 + $0x308] sm:$0xff]   ;;  %v15959_v34 = vld [vmem:[#allocation102_spill] sm:$0xff] }
 0x6fd   : > { %vm15946_vm9 = vmpackc.low %vm15943_vm11, %vm15945_vm12  ;;  %vm15955_vm11 = vnez %v15954_v4 }
 0x6ff   : > { %7696 = vmatpush3.bf16.msra.mxu1 %v8430_v31  ;;  %v8433_v31 = vld [vmem:[#allocation10 + $0x2f0] sm:$0xff]  }
 0x700   : > { %7697 = vmatprep.subr.bf16.mxu1 %v8431_v56 }
 0x702   : > { %7682 = vmatmul.mubr.msk.bf16.gmra.mrb[56].mxu1 %vm15940_vm14, %v15935_v8  ;;  %v15953_v8 = vpack.c.bf16 %v15911_v35, %v15922_v14  ;;  %v8438_v14 = vld [vmem:[#allocation10 + $0x318] sm:$0xff]  }
 0x703   : > { %7698 = vmatpush3.bf16.msra.mxu1 %v8431_v56  ;;  %7685 = vmatprep.mubr.msk.bf16.mxu1 %vm15946_vm9, %v15941_v30  ;;  %v15950_v56 = vld [vmem:[#allocation207_spill] sm:$0xff]  ;;  %v15956_v30 = vld [vmem:[#allocation209_spill] sm:$0xff] }
 0x704   : > { %7699 = vmatprep.subr.bf16.mxu1 %v8432_v29  ;;  %vm15951_vm4 = vnez %v15950_v56  ;;  %vm15957_vm12 = vnez %v15956_v30  ;;  %v15960_v56 = vpack.c.bf16 %v15959_v34, %v15912_v46  ;;  %v15968_v30 = vld [vmem:[#allocation213_spill] sm:$0xff] }
 0x705   : > { %vm15952_vm14 = vmpackc.low %vm15949_vm0, %vm15951_vm4  ;;  %vm15962_vm0 = vnez %v15961_v43  ;;  %v15973_v43 = vpack.c.bf16 %v15915_v61, %v15914_v53 }
 0x706   : > { %vm15958_vm9 = vmpackc.low %vm15955_vm11, %vm15957_vm12  ;;  %vm15969_vm11 = vnez %v15968_v30  ;;  %v15980_v30 = vld [vmem:[#allocation223_spill] sm:$0xff] }
 0x707   : > { %7700 = vmatpush3.bf16.msra.mxu1 %v8432_v29  ;;  %v8435_v29 = vld [vmem:[#allocation10 + $0x300] sm:$0xff]  }
 0x708   : > { %7701 = vmatprep.subr.bf16.mxu1 %v8433_v31 }
 0x70a   : > { %7686 = vmatmul.mubr.msk.bf16.gmra.mrb[60].mxu1 %vm15952_vm14, %v15947_v22  ;;  %v15966_v22 = vld [vmem:[#allocation130_spill] sm:$0xff] }
 0x70b   : > { %7702 = vmatpush3.bf16.msra.mxu1 %v8433_v31  ;;  %7705 = vmatprep.mubr.msk.bf16.mxu1 %vm15958_vm9, %v15953_v8  ;;  %v15963_v31 = vld [vmem:[#allocation53_spill] sm:$0xff]  ;;  %v15967_v4 = vpack.c.bf16 %v15913_v17, %v15966_v22  ;;  %v15970_v8 = vld [vmem:[#allocation54_spill] sm:$0xff] }
 0x70c   : > { %7703 = vmatprep.subr.bf16.mxu1 %v8434_v15  ;;  %vm15964_vm4 = vnez %v15963_v31  ;;  %vm15971_vm12 = vnez %v15970_v8  ;;  %v15974_v31 = vld [vmem:[#allocation221_spill] sm:$0xff]  ;;  %v8440_v8 = vld [vmem:[#allocation10 + $0x328] sm:$0xff]  }
 0x70d   : > { %vm15965_vm14 = vmpackc.low %vm15962_vm0, %vm15964_vm4  ;;  %vm15975_vm0 = vnez %v15974_v31  ;;  %v15985_v31 = vpack.c.bf16 %v15917_v0, %v15916_v11  ;;  %v16014_v0 = vld [vmem:[#allocation154_spill] sm:$0xff] }
 0x70e   : > { %vm15972_vm9 = vmpackc.low %vm15969_vm11, %vm15971_vm12  ;;  %vm15981_vm11 = vnez %v15980_v30  ;;  %v15992_v30 = vld [vmem:[#allocation241_spill] sm:$0xff] }
 0x70f   : > { %7704 = vmatpush3.bf16.msra.mxu1 %v8434_v15  ;;  %v8437_v15 = vld [vmem:[#allocation10 + $0x310] sm:$0xff]  }
 0x710   : > { %7721 = vmatprep.subr.bf16.mxu1 %v8435_v29 }
 0x712   : > { %7706 = vmatmul.mubr.msk.bf16.vlgmr.msra.gmra.mrb[48].mxu1 %vm15965_vm14, %v15960_v56  ;;  %v15979_v56 = vpack.c.bf16 %v12527_v9, %v12520_v55 }
 0x713   : > { %7722 = vmatpush3.bf16.msra.mxu1 %v8435_v29  ;;  %7709 = vmatprep.mubr.msk.bf16.mxu1 %vm15972_vm9, %v15967_v4  ;;  %v15976_v29 = vld [vmem:[#allocation220_spill] sm:$0xff]  ;;  %v15982_v4 = vld [vmem:[#allocation222_spill] sm:$0xff] }
 0x714   : > { %7723 = vmatprep.subr.bf16.mxu1 %v8436_v26  ;;  %vm15977_vm4 = vnez %v15976_v29  ;;  %vm15983_vm12 = vnez %v15982_v4  ;;  %v15986_v29 = vld [vmem:[#allocation239_spill] sm:$0xff]  ;;  %v8442_v4 = vld [vmem:[#allocation10 + $0x338] sm:$0xff]  }
 0x715   : > { %vm15978_vm14 = vmpackc.low %vm15975_vm0, %vm15977_vm4  ;;  %vm15987_vm0 = vnez %v15986_v29  ;;  %v15997_v29 = vpack.c.bf16 %v15921_v20, %v15920_v27  ;;  %v8444_v20 = vld [vmem:[#allocation10 + $0x348] sm:$0xff]   ;;  %v16012_v27 = vld [vmem:[#allocation141_spill] sm:$0xff] }
 0x716   : > { %vm15984_vm9 = vmpackc.low %vm15981_vm11, %vm15983_vm12  ;;  %vm15993_vm11 = vnez %v15992_v30  ;;  %v16004_v30 = vld [vmem:[#allocation151_spill] sm:$0xff] }
 0x717   : > { %7724 = vmatpush3.bf16.msra.mxu1 %v8436_v26  ;;  %v8439_v26 = vld [vmem:[#allocation10 + $0x320] sm:$0xff]  }
 0x718   : > { %7725 = vmatprep.subr.bf16.mxu1 %v8437_v15 }
 0x71a   : > { %7710 = vmatmul.mubr.msk.bf16.gmra.mrb[52].mxu1 %vm15978_vm14, %v15973_v43  ;;  %v15991_v43 = vpack.c.bf16 %v15919_v48, %v15918_v23  ;;  %v16006_v48 = vld [vmem:[#allocation68_spill] sm:$0xff] }
 0x71b   : > { %7726 = vmatpush3.bf16.msra.mxu1 %v8437_v15  ;;  %7713 = vmatprep.mubr.msk.bf16.mxu1 %vm15984_vm9, %v15979_v56  ;;  %v15988_v15 = vld [vmem:[#allocation238_spill] sm:$0xff]  ;;  %v15994_v56 = vld [vmem:[#allocation240_spill] sm:$0xff] }
 0x71c   : > { %7727 = vmatprep.subr.bf16.mxu1 %v8438_v14  ;;  %vm15989_vm4 = vnez %v15988_v15  ;;  %vm15995_vm12 = vnez %v15994_v56  ;;  %v15998_v15 = vld [vmem:[#allocation243_spill] sm:$0xff] }
 0x71d   : > { %vm15990_vm14 = vmpackc.low %vm15987_vm0, %vm15989_vm4  ;;  %vm15999_vm0 = vnez %v15998_v15  ;;  %v16011_v15 = vld [vmem:[#allocation145_spill] sm:$0xff] }
 0x71e   : > { %vm15996_vm9 = vmpackc.low %vm15993_vm11, %vm15995_vm12  ;;  %vm16007_vm11 = vnez %v16006_v48  ;;  %v16019_v48 = vld [vmem:[#allocation147_spill] sm:$0xff] }
 0x71f   : > { %7728 = vmatpush3.bf16.msra.mxu1 %v8438_v14  ;;  %v8441_v14 = vld [vmem:[#allocation10 + $0x330] sm:$0xff]  }
 0x720   : > { %7729 = vmatprep.subr.bf16.mxu1 %v8439_v26 }
 0x722   : > { %7714 = vmatmul.mubr.msk.bf16.gmra.mrb[56].mxu1 %vm15990_vm14, %v15985_v31  ;;  %v16003_v31 = vld [vmem:[#allocation148_spill] sm:$0xff] }
 0x723   : > { %7730 = vmatpush3.bf16.msra.mxu1 %v8439_v26  ;;  %7717 = vmatprep.mubr.msk.bf16.mxu1 %vm15996_vm9, %v15991_v43  ;;  %v16000_v26 = vld [vmem:[#allocation242_spill] sm:$0xff]  ;;  %v16005_v56 = vpack.c.bf16 %v16003_v31, %v16004_v30  ;;  %v16008_v43 = vld [vmem:[#allocation67_spill] sm:$0xff] }
 0x724   : > { %7731 = vmatprep.subr.bf16.mxu1 %v8440_v8  ;;  %vm16001_vm4 = vnez %v16000_v26  ;;  %vm16009_vm12 = vnez %v16008_v43  ;;  %v16013_v26 = vpack.c.bf16 %v16011_v15, %v16012_v27  ;;  %v16022_v30 = vld [vmem:[#allocation71_spill] sm:$0xff]  ;;  %v8446_v27 = vld [vmem:[#allocation10 + $0x358] sm:$0xff]  }
 0x725   : > { %vm16002_vm14 = vmpackc.low %vm15999_vm0, %vm16001_vm4  ;;  %vm16015_vm0 = vnez %v16014_v0  ;;  %v16027_v0 = vld [vmem:[#allocation150_spill] sm:$0xff]  ;;  %v16028_v43 = vld [vmem:[#allocation23_spill] sm:$0xff] }
 0x726   : > { %vm16010_vm9 = vmpackc.low %vm16007_vm11, %vm16009_vm12  ;;  %vm16023_vm11 = vnez %v16022_v30  ;;  %v16029_v15 = vpack.c.bf16 %v16027_v0, %v16028_v43  ;;  %v8448_v30 = vld [vmem:[#allocation10 + $0x368] sm:$0xff]   ;;  %v16043_v0 = vld [vmem:[#allocation158_spill] sm:$0xff] }
 0x727   : > { %7732 = vmatpush3.bf16.msra.mxu1 %v8440_v8  ;;  %v8443_v8 = vld [vmem:[#allocation10 + $0x340] sm:$0xff]   ;;  %v16049_v43 = vld [vmem:[#allocation166_spill] sm:$0xff] }
 0x728   : > { %7733 = vmatprep.subr.bf16.mxu1 %v8441_v14 }
 0x72a   : > { %7718 = vmatmul.mubr.msk.bf16.gmra.mrb[60].mxu1 %vm16002_vm14, %v15997_v29  ;;  %v16020_v29 = vld [vmem:[#allocation134_spill] sm:$0xff] }
 0x72b   : > { %7734 = vmatpush3.bf16.msra.mxu1 %v8441_v14  ;;  %7737 = vmatprep.mubr.msk.bf16.mxu1 %vm16010_vm9, %v16005_v56  ;;  %v16016_v14 = vld [vmem:[#allocation70_spill] sm:$0xff]  ;;  %v16021_v31 = vpack.c.bf16 %v16019_v48, %v16020_v29  ;;  %v16024_v56 = vld [vmem:[#allocation155_spill] sm:$0xff]  ;;  %v16037_v29 = vld [vmem:[#allocation153_spill] sm:$0xff] }
 0x72c   : > { %7735 = vmatprep.subr.bf16.mxu1 %v8442_v4  ;;  %vm16017_vm4 = vnez %v16016_v14  ;;  %vm16025_vm12 = vnez %v16024_v56  ;;  %v16030_v14 = vld [vmem:[#allocation74_spill] sm:$0xff]  ;;  %v16042_v56 = vpack.c.bf16 %v12674_v45, %v12649_v21  ;;  %v16054_v45 = vld [vmem:[#allocation21_spill] sm:$0xff] }
 0x72d   : > { %vm16018_vm14 = vmpackc.low %vm16015_vm0, %vm16017_vm4  ;;  %vm16031_vm0 = vnez %v16030_v14  ;;  %v8450_v21 = vld [vmem:[#allocation10 + $0x378] sm:$0xff]  }
 0x72e   : > { %vm16026_vm9 = vmpackc.low %vm16023_vm11, %vm16025_vm12  ;;  %vm16038_vm11 = vnez %v16037_v29  ;;  %v16055_v14 = vld [vmem:[#allocation22_spill] sm:$0xff] }
 0x72f   : > { %7736 = vmatpush3.bf16.msra.mxu1 %v8442_v4  ;;  %v8445_v4 = vld [vmem:[#allocation10 + $0x350] sm:$0xff]   ;;  %v16064_v29 = vld [vmem:[#allocation42_spill] sm:$0xff] }
 0x730   : > { %7753 = vmatprep.subr.bf16.mxu1 %v8443_v8 }
 0x732   : > { %7738 = vmatmul.mubr.msk.bf16.vlgmr.msra.gmra.mrb[48].mxu1 %vm16018_vm14, %v16013_v26  ;;  %v16035_v26 = vld [vmem:[#allocation20_spill] sm:$0xff] }
 0x733   : > { %7754 = vmatpush3.bf16.msra.mxu1 %v8443_v8  ;;  %7741 = vmatprep.mubr.msk.bf16.mxu1 %vm16026_vm9, %v16021_v31  ;;  %v16032_v8 = vld [vmem:[#allocation73_spill] sm:$0xff]  ;;  %v16036_v48 = vpack.c.bf16 %v12644_v54, %v16035_v26  ;;  %v16039_v31 = vld [vmem:[#allocation156_spill] sm:$0xff]  ;;  %v16048_v54 = vpack.c.bf16 %v12685_v6, %v12689_v57 }
 0x734   : > { %7755 = vmatprep.subr.bf16.mxu1 %v8444_v20  ;;  %vm16033_vm4 = vnez %v16032_v8  ;;  %vm16040_vm12 = vnez %v16039_v31  ;;  %v16056_v8 = vpack.c.bf16 %v16054_v45, %v16055_v14  ;;  %v16057_v26 = vld [vmem:[#allocation36_spill] sm:$0xff]  ;;  %v16062_v6 = vld [vmem:[#allocation101_spill] sm:$0xff]  ;;  %v16084_v14 = vld [vmem:[#allocation115_spill] sm:$0xff] }
 0x735   : > { %vm16034_vm14 = vmpackc.low %vm16031_vm0, %vm16033_vm4  ;;  %vm16044_vm0 = vnez %v16043_v0  ;;  %v16063_v57 = vpack.c.bf16 %v16062_v6, %v12177_v49  ;;  %v16066_v31 = vld [vmem:[#allocation212_spill] sm:$0xff]  ;;  %v16076_v49 = vld [vmem:[#allocation170_spill] sm:$0xff] }
 0x736   : > { %vm16041_vm9 = vmpackc.low %vm16038_vm11, %vm16040_vm12  ;;  %vm16050_vm11 = vnez %v16049_v43  ;;  %v16077_v43 = vpack.c.bf16 %v16076_v49, %v12227_v28  ;;  %v16083_v45 = vld [vmem:[#allocation169_spill] sm:$0xff]  ;;  %v16091_v28 = vld [vmem:[#allocation82_spill] sm:$0xff]  ;;  %v16106_v49 = vpack.c.bf16 %v12351_v37, %v12339_v59 }
 0x737   : > { %7756 = vmatpush3.bf16.msra.mxu1 %v8444_v20  ;;  %v8447_v20 = vld [vmem:[#allocation10 + $0x360] sm:$0xff]   ;;  %v16092_v6 = vld [vmem:[#allocation122_spill] sm:$0xff]  ;;  %v8484_v37 = vld [vmem:[#allocation11 + $0x48] sm:$0xff]  }
 0x738   : > { %7757 = vmatprep.subr.bf16.mxu1 %v8445_v4  ;;  %v8483_v59 = vld [vmem:[#allocation11 + $0x40] sm:$0xff]  }
 0x739   : > { %7913 = vmatprep.subr.bf16.mxu0 %v8483_v59 }
 0x73a   : > { %7742 = vmatmul.mubr.msk.bf16.gmra.mrb[52].mxu1 %vm16034_vm14, %v16029_v15  ;;  %v16051_v15 = vld [vmem:[#allocation159_spill] sm:$0xff]  ;;  %7914 = vmatpush3.bf16.msra.mxu0 %v8483_v59  ;;  %v16158_v59 = vpack.c.bf16 %v12819_v7, %v12823_v63  ;;  %v16170_v7 = vld [vmem:[#allocation126_spill] sm:$0xff] }
 0x73b   : > { %7758 = vmatpush3.bf16.msra.mxu1 %v8445_v4  ;;  %7745 = vmatprep.mubr.msk.bf16.mxu1 %vm16041_vm9, %v16036_v48  ;;  %v16045_v4 = vld [vmem:[#allocation76_spill] sm:$0xff]  ;;  %vm16052_vm12 = vnez %v16051_v15  ;;  %v16059_v48 = vld [vmem:[#allocation167_spill] sm:$0xff]  ;;  %v16078_v15 = vld [vmem:[#allocation217_spill] sm:$0xff]  ;;  %v16171_v63 = vpack.c.bf16 %v12225_v60, %v16170_v7  ;;  %v16183_v60 = vpack.c.bf16 %v12308_v58, %v12283_v40  ;;  %v16195_v40 = vpack.c.bf16 %v12374_v25, %v12356_v5 }
 0x73c   : > { %7759 = vmatprep.subr.bf16.mxu1 %v8446_v27  ;;  %vm16046_vm4 = vnez %v16045_v4  ;;  %vm16053_vm9 = vmpackc.low %vm16050_vm11, %vm16052_vm12  ;;  %vm16065_vm11 = vnez %v16064_v29  ;;  %vm16067_vm12 = vnez %v16066_v31  ;;  %v16071_v4 = vld [vmem:[#allocation215_spill] sm:$0xff]  ;;  %v16094_v29 = vld [vmem:[#allocation225_spill] sm:$0xff]  ;;  %7915 = vmatprep.subr.bf16.mxu0 %v8484_v37  ;;  %v16206_v5 = vpack.c.bf16 %v12463_v3, %v12413_v39 }
 0x73d   : > { %vm16047_vm14 = vmpackc.low %vm16044_vm0, %vm16046_vm4  ;;  %vm16058_vm0 = vnez %v16057_v26  ;;  %vm16060_vm4 = vnez %v16059_v48  ;;  %v16086_v26 = vld [vmem:[#allocation219_spill] sm:$0xff]  ;;  %v16088_v48 = vld [vmem:[#allocation218_spill] sm:$0xff] }
 0x73e   : > { %v16096_v31 = vld [vmem:[#allocation224_spill] sm:$0xff]  ;;  %7916 = vmatpush3.bf16.msra.mxu0 %v8484_v37  ;;  %v16159_v37 = vld [vmem:[#allocation235_spill] sm:$0xff]  ;;  %v16196_v58 = vld [vmem:[#allocation185_spill] sm:$0xff] }
 0x73f   : > { %7760 = vmatpush3.bf16.msra.mxu1 %v8446_v27  ;;  %v8449_v27 = vld [vmem:[#allocation10 + $0x370] sm:$0xff]   ;;  %v16207_v25 = vld [vmem:[#allocation192_spill] sm:$0xff]  ;;  %v16219_v39 = vld [vmem:[#allocation114_spill] sm:$0xff] }
 0x740   : > { %7761 = vmatprep.subr.bf16.mxu1 %v8447_v20  ;;  %v16220_v3 = vld [vmem:[#allocation165_spill] sm:$0xff]  ;;  %v16241_v7 = vld [vmem:[#allocation80_spill] sm:$0xff] }
 0x742   : > { %7746 = vmatmul.mubr.msk.bf16.gmra.mrb[56].mxu1 %vm16047_vm14, %v16042_v56  ;;  %vm16061_vm14 = vmpackc.low %vm16058_vm0, %vm16060_vm4  ;;  %v16069_v56 = vld [vmem:[#allocation109_spill] sm:$0xff]  ;;  %vm16072_vm0 = vnez %v16071_v4 }
 0x743   : > { %7762 = vmatpush3.bf16.msra.mxu1 %v8447_v20  ;;  %7749 = vmatprep.mubr.msk.bf16.mxu1 %vm16053_vm9, %v16048_v54  ;;  %vm16068_vm9 = vmpackc.low %vm16065_vm11, %vm16067_vm12  ;;  %v8451_v20 = vld [vmem:[#allocation10 + $0x380] sm:$0xff]   ;;  %v16070_v0 = vpack.c.bf16 %v12183_v12, %v16069_v56  ;;  %v16073_v54 = vld [vmem:[#allocation214_spill] sm:$0xff]  ;;  %vm16079_vm11 = vnez %v16078_v15 }
 0x744   : > { %7763 = vmatprep.subr.bf16.mxu1 %v8448_v30  ;;  %vm16074_vm4 = vnez %v16073_v54  ;;  %v8454_v12 = vld [vmem:[#allocation10 + $0x398] sm:$0xff]   ;;  %v16099_v56 = vld [vmem:[#allocation171_spill] sm:$0xff]  ;;  %v16101_v4 = vld [vmem:[#allocation229_spill] sm:$0xff] }
 0x745   : > { %v16103_v54 = vld [vmem:[#allocation227_spill] sm:$0xff]  ;;  %v16109_v15 = vld [vmem:[#allocation230_spill] sm:$0xff] }
 0x747   : > { %7764 = vmatpush3.bf16.msra.mxu1 %v8448_v30  ;;  %v8452_v30 = vld [vmem:[#allocation10 + $0x388] sm:$0xff]  }
 0x748   : > { %7765 = vmatprep.subr.bf16.mxu1 %v8449_v27 }
 0x74a   : > { %7750 = vmatmul.mubr.msk.bf16.gmra.mrb[60].mxu1 %vm16061_vm14, %v16056_v8  ;;  %vm16075_vm14 = vmpackc.low %vm16072_vm0, %vm16074_vm4  ;;  %v16085_v8 = vpack.c.bf16 %v16083_v45, %v16084_v14  ;;  %vm16087_vm0 = vnez %v16086_v26  ;;  %vm16089_vm4 = vnez %v16088_v48  ;;  %v16115_v45 = vld [vmem:[#allocation46_spill] sm:$0xff]  ;;  %v16118_v14 = vpack.c.bf16 %v12742_v33, %v12720_v32  ;;  %v16121_v26 = vld [vmem:[#allocation59_spill] sm:$0xff] }
 0x74b   : > { %7766 = vmatpush3.bf16.msra.mxu1 %v8449_v27  ;;  %7769 = vmatprep.mubr.msk.bf16.mxu1 %vm16068_vm9, %v16063_v57  ;;  %v16080_v27 = vld [vmem:[#allocation216_spill] sm:$0xff]  ;;  %v16093_v57 = vpack.c.bf16 %v16091_v28, %v16092_v6  ;;  %v16124_v28 = vpack.c.bf16 %v12728_v41, %v12738_v18  ;;  %v16125_v32 = vld [vmem:[#allocation226_spill] sm:$0xff]  ;;  %v16127_v33 = vld [vmem:[#allocation61_spill] sm:$0xff] }
 0x74c   : > { %7767 = vmatprep.subr.bf16.mxu1 %v8450_v21  ;;  %vm16081_vm12 = vnez %v16080_v27  ;;  %v8457_v27 = vld [vmem:[#allocation10 + $0x3b0] sm:$0xff]   ;;  %v8460_v48 = vld [vmem:[#allocation10 + $0x3c8] sm:$0xff]   ;;  %v8486_v6 = vld [vmem:[#allocation11 + $0x58] sm:$0xff]  }
 0x74d   : > { %vm16082_vm9 = vmpackc.low %vm16079_vm11, %vm16081_vm12  ;;  %vm16095_vm11 = vnez %v16094_v29  ;;  %vm16097_vm12 = vnez %v16096_v31  ;;  %v16132_v31 = vld [vmem:[#allocation64_spill] sm:$0xff]  ;;  %v8461_v18 = vld [vmem:[#allocation10 + $0x3d0] sm:$0xff]  }
 0x74e   : > { %v8487_v41 = vld [vmem:[#allocation11 + $0x60] sm:$0xff]  }
 0x74f   : > { %7768 = vmatpush3.bf16.msra.mxu1 %v8450_v21  ;;  %v8453_v21 = vld [vmem:[#allocation10 + $0x390] sm:$0xff]  }
 0x750   : > { %7785 = vmatprep.subr.bf16.mxu1 %v8451_v20 }
 0x752   : > { %7770 = vmatmul.mubr.msk.bf16.vlgmr.msra.gmra.mrb[48].mxu1 %vm16075_vm14, %v16070_v0  ;;  %vm16090_vm14 = vmpackc.low %vm16087_vm0, %vm16089_vm4  ;;  %v16100_v0 = vpack.c.bf16 %v12285_v16, %v16099_v56  ;;  %vm16102_vm0 = vnez %v16101_v4  ;;  %vm16104_vm4 = vnez %v16103_v54  ;;  %v8458_v16 = vld [vmem:[#allocation10 + $0x3b8] sm:$0xff]   ;;  %v16137_v56 = vld [vmem:[#allocation24_spill] sm:$0xff] }
 0x753   : > { %7786 = vmatpush3.bf16.msra.mxu1 %v8451_v20  ;;  %7773 = vmatprep.mubr.msk.bf16.mxu1 %vm16082_vm9, %v16077_v43  ;;  %vm16098_vm9 = vmpackc.low %vm16095_vm11, %vm16097_vm12  ;;  %v8455_v20 = vld [vmem:[#allocation10 + $0x3a0] sm:$0xff]   ;;  %v16107_v43 = vld [vmem:[#allocation45_spill] sm:$0xff]  ;;  %vm16110_vm12 = vnez %v16109_v15 }
 0x754   : > { %7787 = vmatprep.subr.bf16.mxu1 %v8452_v30  ;;  %vm16108_vm11 = vnez %v16107_v43  ;;  %v16139_v4 = vld [vmem:[#allocation232_spill] sm:$0xff]  ;;  %v16144_v54 = vld [vmem:[#allocation25_spill] sm:$0xff]  ;;  %v16147_v15 = vld [vmem:[#allocation234_spill] sm:$0xff] }
 0x757   : > { %7788 = vmatpush3.bf16.msra.mxu1 %v8452_v30  ;;  %v8456_v30 = vld [vmem:[#allocation10 + $0x3a8] sm:$0xff]  }
 0x758   : > { %7789 = vmatprep.subr.bf16.mxu1 %v8453_v21 }
 0x75a   : > { %7774 = vmatmul.mubr.msk.bf16.gmra.mrb[52].mxu1 %vm16090_vm14, %v16085_v8  ;;  %vm16105_vm14 = vmpackc.low %vm16102_vm0, %vm16104_vm4  ;;  %vm16116_vm4 = vnez %v16115_v45  ;;  %v16119_v8 = vld [vmem:[#allocation60_spill] sm:$0xff] }
 0x75b   : > { %7790 = vmatpush3.bf16.msra.mxu1 %v8453_v21  ;;  %7777 = vmatprep.mubr.msk.bf16.mxu1 %vm16098_vm9, %v16093_v57  ;;  %vm16111_vm9 = vmpackc.low %vm16108_vm11, %vm16110_vm12  ;;  %v16112_v21 = vpack.c.bf16 %v12346_v52, %v12333_v10  ;;  %vm16120_vm11 = vnez %v16119_v8  ;;  %vm16122_vm12 = vnez %v16121_v26  ;;  %v8459_v10 = vld [vmem:[#allocation10 + $0x3c0] sm:$0xff]   ;;  %v8485_v52 = vld [vmem:[#allocation11 + $0x50] sm:$0xff]  }
 0x75c   : > { %7791 = vmatprep.subr.bf16.mxu1 %v8454_v12  ;;  %7917 = vmatprep.subr.bf16.mxu0 %v8485_v52  ;;  %v16130_v57 = vld [vmem:[#allocation27_spill] sm:$0xff]  ;;  %v16155_v45 = vld [vmem:[#allocation48_spill] sm:$0xff]  ;;  %v8465_v8 = vld [vmem:[#allocation10 + $0x3f0] sm:$0xff]  }
 0x75d   : > { %v16131_v29 = vpack.c.bf16 %v12760_v38, %v16130_v57  ;;  %7918 = vmatpush3.bf16.msra.mxu0 %v8485_v52  ;;  %v16141_v38 = vld [vmem:[#allocation231_spill] sm:$0xff]  ;;  %v16165_v26 = vld [vmem:[#allocation237_spill] sm:$0xff] }
 0x75e   : > { %7919 = vmatprep.subr.bf16.mxu0 %v8486_v6  ;;  %v16172_v52 = vld [vmem:[#allocation97_spill] sm:$0xff]  ;;  %v16186_v57 = vld [vmem:[#allocation107_spill] sm:$0xff] }
 0x75f   : > { %7792 = vmatpush3.bf16.msra.mxu1 %v8454_v12  ;;  %v16113_v12 = vld [vmem:[#allocation47_spill] sm:$0xff] }
 0x760   : > { %7793 = vmatprep.subr.bf16.mxu1 %v8455_v20  ;;  %vm16114_vm0 = vnez %v16113_v12  ;;  %v16153_v12 = vld [vmem:[#allocation51_spill] sm:$0xff] }
 0x761   : > { %7920 = vmatpush3.bf16.msra.mxu0 %v8486_v6  ;;  %v16184_v6 = vld [vmem:[#allocation110_spill] sm:$0xff] }
 0x762   : > { %7778 = vmatmul.mubr.msk.bf16.gmra.mrb[56].mxu1 %vm16105_vm14, %v16100_v0  ;;  %vm16117_vm14 = vmpackc.low %vm16114_vm0, %vm16116_vm4  ;;  %vm16126_vm0 = vnez %v16125_v32  ;;  %vm16128_vm4 = vnez %v16127_v33  ;;  %v16138_v0 = vpack.c.bf16 %v12780_v62, %v16137_v56  ;;  %7921 = vmatprep.subr.bf16.mxu0 %v8487_v41  ;;  %v8464_v62 = vld [vmem:[#allocation10 + $0x3e8] sm:$0xff]   ;;  %v16180_v33 = vld [vmem:[#allocation93_spill] sm:$0xff] }
 0x763   : > { %7794 = vmatpush3.bf16.msra.mxu1 %v8455_v20  ;;  %7781 = vmatprep.mubr.msk.bf16.mxu1 %vm16111_vm9, %v16106_v49  ;;  %vm16123_vm9 = vmpackc.low %vm16120_vm11, %vm16122_vm12  ;;  %vm16133_vm11 = vnez %v16132_v31  ;;  %v16134_v20 = vld [vmem:[#allocation228_spill] sm:$0xff]  ;;  %v16145_v49 = vld [vmem:[#allocation26_spill] sm:$0xff] }
 0x764   : > { %7795 = vmatprep.subr.bf16.mxu1 %v8456_v30  ;;  %vm16135_vm12 = vnez %v16134_v20  ;;  %v16146_v43 = vpack.c.bf16 %v16144_v54, %v16145_v49  ;;  %v16178_v32 = vld [vmem:[#allocation112_spill] sm:$0xff]  ;;  %v16190_v31 = vld [vmem:[#allocation187_spill] sm:$0xff]  ;;  %v16192_v20 = vld [vmem:[#allocation105_spill] sm:$0xff] }
 0x765   : > { %7922 = vmatpush3.bf16.msra.mxu0 %v8487_v41  ;;  %v8471_v41 = vld [vmem:[#allocation10 + $0x420] sm:$0xff]   ;;  %v16203_v56 = vld [vmem:[#allocation186_spill] sm:$0xff] }
 0x766   : > { %v16214_v54 = vld [vmem:[#allocation198_spill] sm:$0xff] }
 0x767   : > { %7796 = vmatpush3.bf16.msra.mxu1 %v8456_v30  ;;  %v8462_v30 = vld [vmem:[#allocation10 + $0x3d8] sm:$0xff]  }
 0x768   : > { %7797 = vmatprep.subr.bf16.mxu1 %v8457_v27  ;;  %v16216_v49 = vld [vmem:[#allocation194_spill] sm:$0xff] }
 0x76a   : > { %7782 = vmatmul.mubr.msk.bf16.gmra.mrb[60].mxu1 %vm16117_vm14, %v16112_v21  ;;  %vm16129_vm14 = vmpackc.low %vm16126_vm0, %vm16128_vm4  ;;  %vm16140_vm0 = vnez %v16139_v4  ;;  %vm16142_vm4 = vnez %v16141_v38  ;;  %v16152_v21 = vpack.c.bf16 %v12808_v42, %v12802_v51  ;;  %v8466_v42 = vld [vmem:[#allocation10 + $0x3f8] sm:$0xff]   ;;  %v16164_v51 = vpack.c.bf16 %v12837_v44, %v12831_v19  ;;  %v8468_v44 = vld [vmem:[#allocation10 + $0x408] sm:$0xff]  }
 0x76b   : > { %7798 = vmatpush3.bf16.msra.mxu1 %v8457_v27  ;;  %7801 = vmatprep.mubr.msk.bf16.mxu1 %vm16123_vm9, %v16118_v14  ;;  %vm16136_vm9 = vmpackc.low %vm16133_vm11, %vm16135_vm12  ;;  %vm16148_vm11 = vnez %v16147_v15  ;;  %v16149_v27 = vld [vmem:[#allocation233_spill] sm:$0xff]  ;;  %v16161_v14 = vld [vmem:[#allocation52_spill] sm:$0xff]  ;;  %v16177_v19 = vpack.c.bf16 %v15903_v13, %v12211_v24  ;;  %v16189_v13 = vpack.c.bf16 %v12344_v36, %v12304_v1  ;;  %v16201_v36 = vpack.c.bf16 %v12417_v47, %v12365_v50 }
 0x76c   : > { %7799 = vmatprep.subr.bf16.mxu1 %v8458_v16  ;;  %vm16150_vm12 = vnez %v16149_v27  ;;  %v8470_v24 = vld [vmem:[#allocation10 + $0x418] sm:$0xff]   ;;  %v8472_v1 = vld [vmem:[#allocation10 + $0x428] sm:$0xff]   ;;  %v8473_v4 = vld [vmem:[#allocation10 + $0x430] sm:$0xff]  }
 0x76d   : > { %v8474_v50 = vld [vmem:[#allocation10 + $0x438] sm:$0xff]   ;;  %v16212_v47 = vld [vmem:[#allocation104_spill] sm:$0xff]  ;;  %v16223_v27 = vld [vmem:[#allocation173_spill] sm:$0xff] }
 0x76e   : > { %v16213_v38 = vpack.c.bf16 %v16212_v47, %v12459_v2  ;;  %v8476_v2 = vld [vmem:[#allocation10 + $0x448] sm:$0xff]   ;;  %v16296_v15 = vld [vmem:[#allocation69_spill] sm:$0xff] }
 0x76f   : > { %7800 = vmatpush3.bf16.msra.mxu1 %v8458_v16  ;;  %v8463_v16 = vld [vmem:[#allocation10 + $0x3e0] sm:$0xff]   ;;  %v16278_v47 = vld [vmem:[#allocation56_spill] sm:$0xff] }
 0x770   : > { %7817 = vmatprep.subr.bf16.mxu1 %v8459_v10 }
 0x772   : > { %7802 = vmatmul.mubr.msk.bf16.vlgmr.msra.gmra.mrb[48].mxu1 %vm16129_vm14, %v16124_v28  ;;  %vm16143_vm14 = vmpackc.low %vm16140_vm0, %vm16142_vm4  ;;  %vm16154_vm0 = vnez %v16153_v12  ;;  %vm16156_vm4 = vnez %v16155_v45  ;;  %v8467_v28 = vld [vmem:[#allocation10 + $0x400] sm:$0xff]  }
 0x773   : > { %7818 = vmatpush3.bf16.msra.mxu1 %v8459_v10  ;;  %7805 = vmatprep.mubr.msk.bf16.mxu1 %vm16136_vm9, %v16131_v29  ;;  %vm16151_vm9 = vmpackc.low %vm16148_vm11, %vm16150_vm12  ;;  %vm16160_vm11 = vnez %v16159_v37  ;;  %vm16162_vm12 = vnez %v16161_v14  ;;  %v16167_v10 = vld [vmem:[#allocation236_spill] sm:$0xff]  ;;  %v8469_v29 = vld [vmem:[#allocation10 + $0x410] sm:$0xff]  }
 0x774   : > { %7819 = vmatprep.subr.bf16.mxu1 %v8460_v48  ;;  %v16229_v45 = vld [vmem:[#allocation175_spill] sm:$0xff]  ;;  %v16234_v37 = vld [vmem:[#allocation172_spill] sm:$0xff]  ;;  %v16235_v14 = vld [vmem:[#allocation125_spill] sm:$0xff] }
 0x777   : > { %7820 = vmatpush3.bf16.msra.mxu1 %v8460_v48  ;;  %v16174_v48 = vld [vmem:[#allocation44_spill] sm:$0xff] }
 0x778   : > { %7821 = vmatprep.subr.bf16.mxu1 %v8461_v18 }
 0x77a   : > { %7806 = vmatmul.mubr.msk.bf16.gmra.mrb[52].mxu1 %vm16143_vm14, %v16138_v0  ;;  %vm16157_vm14 = vmpackc.low %vm16154_vm0, %vm16156_vm4  ;;  %vm16166_vm0 = vnez %v16165_v26  ;;  %vm16168_vm4 = vnez %v16167_v10  ;;  %v16209_v0 = vld [vmem:[#allocation189_spill] sm:$0xff]  ;;  %v8478_v10 = vld [vmem:[#allocation10 + $0x458] sm:$0xff]  }
 0x77b   : > { %7822 = vmatpush3.bf16.msra.mxu1 %v8461_v18  ;;  %7809 = vmatprep.mubr.msk.bf16.mxu1 %vm16151_vm9, %v16146_v43  ;;  %vm16163_vm9 = vmpackc.low %vm16160_vm11, %vm16162_vm12  ;;  %vm16173_vm11 = vnez %v16172_v52  ;;  %vm16175_vm12 = vnez %v16174_v48  ;;  %v16198_v18 = vld [vmem:[#allocation188_spill] sm:$0xff]  ;;  %v16221_v43 = vpack.c.bf16 %v16219_v39, %v16220_v3  ;;  %v8477_v26 = vld [vmem:[#allocation10 + $0x450] sm:$0xff]  }
 0x77c   : > { %7823 = vmatprep.subr.bf16.mxu1 %v8462_v30  ;;  %v16286_v39 = vld [vmem:[#allocation58_spill] sm:$0xff]  ;;  %v16292_v3 = vld [vmem:[#allocation72_spill] sm:$0xff] }
 0x77f   : > { %7824 = vmatpush3.bf16.msra.mxu1 %v8462_v30  ;;  %v8482_v30 = vld [vmem:[#allocation10 + $0x478] sm:$0xff]  }
 0x780   : > { %7825 = vmatprep.subr.bf16.mxu1 %v8463_v16 }
 0x782   : > { %7810 = vmatmul.mubr.msk.bf16.gmra.mrb[56].mxu1 %vm16157_vm14, %v16152_v21  ;;  %vm16169_vm14 = vmpackc.low %vm16166_vm0, %vm16168_vm4  ;;  %vm16179_vm0 = vnez %v16178_v32  ;;  %vm16181_vm4 = vnez %v16180_v33  ;;  %v16227_v21 = vld [vmem:[#allocation163_spill] sm:$0xff] }
 0x783   : > { %7826 = vmatpush3.bf16.msra.mxu1 %v8463_v16  ;;  %7813 = vmatprep.mubr.msk.bf16.mxu1 %vm16163_vm9, %v16158_v59  ;;  %vm16176_vm9 = vmpackc.low %vm16173_vm11, %vm16175_vm12  ;;  %vm16185_vm11 = vnez %v16184_v6  ;;  %vm16187_vm12 = vnez %v16186_v57  ;;  %v8475_v16 = vld [vmem:[#allocation10 + $0x440] sm:$0xff]   ;;  %v16231_v59 = vld [vmem:[#allocation50_spill] sm:$0xff] }
 0x784   : > { %7827 = vmatprep.subr.bf16.mxu1 %v8464_v62  ;;  %v8479_v6 = vld [vmem:[#allocation10 + $0x460] sm:$0xff]   ;;  %v8480_v57 = vld [vmem:[#allocation10 + $0x468] sm:$0xff]  }
 0x787   : > { %7828 = vmatpush3.bf16.msra.mxu1 %v8464_v62  ;;  %v16226_v62 = vld [vmem:[#allocation117_spill] sm:$0xff] }
 0x788   : > { %7829 = vmatprep.subr.bf16.mxu1 %v8465_v8  ;;  %v16228_v12 = vpack.c.bf16 %v16226_v62, %v16227_v21  ;;  %v16313_v62 = vld [vmem:[#allocation137_spill] sm:$0xff] }
 0x78a   : > { %7814 = vmatmul.mubr.msk.bf16.gmra.mrb[60].mxu1 %vm16169_vm14, %v16164_v51  ;;  %vm16182_vm14 = vmpackc.low %vm16179_vm0, %vm16181_vm4  ;;  %vm16191_vm0 = vnez %v16190_v31  ;;  %vm16193_vm4 = vnez %v16192_v20  ;;  %v16238_v51 = vld [vmem:[#allocation38_spill] sm:$0xff]  ;;  %v16256_v31 = vld [vmem:[#allocation63_spill] sm:$0xff] }
 0x78b   : > { %7830 = vmatpush3.bf16.msra.mxu1 %v8465_v8  ;;  %7833 = vmatprep.mubr.msk.bf16.mxu1 %vm16176_vm9, %v16171_v63  ;;  %vm16188_vm9 = vmpackc.low %vm16185_vm11, %vm16187_vm12  ;;  %vm16197_vm11 = vnez %v16196_v58  ;;  %vm16199_vm12 = vnez %v16198_v18  ;;  %v16236_v8 = vpack.c.bf16 %v16234_v37, %v16235_v14  ;;  %v16242_v63 = vld [vmem:[#allocation128_spill] sm:$0xff]  ;;  %v16258_v20 = vld [vmem:[#allocation62_spill] sm:$0xff] }
 0x78c   : > { %7831 = vmatprep.subr.bf16.mxu1 %v8466_v42  ;;  %v16243_v52 = vpack.c.bf16 %v16241_v7, %v16242_v63  ;;  %v16262_v58 = vld [vmem:[#allocation103_spill] sm:$0xff]  ;;  %v16322_v37 = vld [vmem:[#allocation94_spill] sm:$0xff]  ;;  %v8488_v14 = vld [vmem:[#allocation11 + $0x68] sm:$0xff]  }
 0x78d   : > { %7923 = vmatprep.subr.bf16.mxu0 %v8488_v14 }
 0x78e   : > { %7924 = vmatpush3.bf16.msra.mxu0 %v8488_v14 }
 0x78f   : > { %7832 = vmatpush3.bf16.msra.mxu1 %v8466_v42  ;;  %v8490_v42 = vld [vmem:[#allocation11 + $0x78] sm:$0xff]  }
 0x790   : > { %7849 = vmatprep.subr.bf16.mxu1 %v8467_v28 }
 0x792   : > { %7834 = vmatmul.mubr.msk.bf16.vlgmr.msra.gmra.mrb[48].mxu1 %vm16182_vm14, %v16177_v19  ;;  %vm16194_vm14 = vmpackc.low %vm16191_vm0, %vm16193_vm4  ;;  %vm16204_vm0 = vnez %v16203_v56  ;;  %v16248_v19 = vld [vmem:[#allocation81_spill] sm:$0xff]  ;;  %v16269_v56 = vld [vmem:[#allocation100_spill] sm:$0xff] }
 0x793   : > { %7850 = vmatpush3.bf16.msra.mxu1 %v8467_v28  ;;  %7837 = vmatprep.mubr.msk.bf16.mxu1 %vm16188_vm9, %v16183_v60  ;;  %vm16200_vm9 = vmpackc.low %vm16197_vm11, %vm16199_vm12  ;;  %vm16210_vm11 = vnez %v16209_v0  ;;  %v16272_v0 = vld [vmem:[#allocation84_spill] sm:$0xff] }
 0x794   : > { %7851 = vmatprep.subr.bf16.mxu1 %v8468_v44  ;;  %vm16205_vm4 = vmpackc.low %vm11846_vm1, %vm16204_vm0  ;;  %vm16215_vm1 = vnez %v16214_v54  ;;  %v16283_v54 = vpack.c.bf16 %v15966_v22, %v15959_v34  ;;  %v16298_v34 = vld [vmem:[#allocation75_spill] sm:$0xff]  ;;  %v16301_v22 = vpack.c.bf16 %v15916_v11, %v12527_v9  ;;  %v16316_v11 = vld [vmem:[#allocation66_spill] sm:$0xff] }
 0x795   : > { %v16319_v9 = vld [vmem:[#allocation120_spill] sm:$0xff] }
 0x797   : > { %7852 = vmatpush3.bf16.msra.mxu1 %v8468_v44  ;;  %v16247_v44 = vld [vmem:[#allocation92_spill] sm:$0xff] }
 0x798   : > { %7853 = vmatprep.subr.bf16.mxu1 %v8469_v29  ;;  %v16249_v32 = vpack.c.bf16 %v16247_v44, %v16248_v19 }
 0x79a   : > { %7838 = vmatmul.mubr.msk.bf16.gmra.mrb[52].mxu1 %vm16194_vm14, %v16189_v13  ;;  %vm16208_vm14 = vnez %v16207_v25 }
 0x79b   : > { %7854 = vmatpush3.bf16.msra.mxu1 %v8469_v29  ;;  %7841 = vmatprep.mubr.msk.bf16.mxu1 %vm16200_vm9, %v16195_v40  ;;  %vm16211_vm12 = vmpackc.low %vm16208_vm14, %vm16210_vm11  ;;  %vm16217_vm9 = vnez %v16216_v49  ;;  %vm16230_vm11 = vnez %v16229_v45  ;;  %v16253_v29 = vld [vmem:[#allocation91_spill] sm:$0xff]  ;;  %v16284_v49 = vld [vmem:[#allocation182_spill] sm:$0xff] }
 0x79c   : > { %7855 = vmatprep.subr.bf16.mxu1 %v8470_v24  ;;  %vm16218_vm0 = vmpackc.low %vm16215_vm1, %vm16217_vm9  ;;  %v16261_v40 = vld [vmem:[#allocation119_spill] sm:$0xff] }
 0x79d   : > { %v16263_v18 = vpack.c.bf16 %v16261_v40, %v16262_v58  ;;  %v16320_v45 = vld [vmem:[#allocation139_spill] sm:$0xff] }
 0x79f   : > { %7856 = vmatpush3.bf16.msra.mxu1 %v8470_v24  ;;  %v16254_v24 = vld [vmem:[#allocation89_spill] sm:$0xff] }
 0x7a0   : > { %7857 = vmatprep.subr.bf16.mxu1 %v8471_v41  ;;  %v16255_v13 = vpack.c.bf16 %v16253_v29, %v16254_v24 }
 0x7a2   : > { %7842 = vmatmul.mubr.msk.bf16.gmra.mrb[56].mxu1 %vm16205_vm4, %v16201_v36  ;;  %vm16224_vm4 = vnez %v16223_v27  ;;  %v8481_v36 = vld [vmem:[#allocation10 + $0x470] sm:$0xff]   ;;  %v16302_v27 = vld [vmem:[#allocation40_spill] sm:$0xff] }
 0x7a3   : > { %7858 = vmatpush3.bf16.msra.mxu1 %v8471_v41  ;;  %7845 = vmatprep.mubr.msk.bf16.mxu1 %vm16211_vm12, %v16206_v5  ;;  %vm16225_vm14 = vmpackc.low %vm15473_vm5, %vm16224_vm4  ;;  %vm16232_vm12 = vnez %v16231_v59  ;;  %vm16239_vm5 = vnez %v16238_v51  ;;  %v16264_v41 = vld [vmem:[#allocation88_spill] sm:$0xff]  ;;  %v16270_v5 = vld [vmem:[#allocation90_spill] sm:$0xff]  ;;  %v16321_v59 = vpack.c.bf16 %v16319_v9, %v16320_v45 }
 0x7a4   : > { %7859 = vmatprep.subr.bf16.mxu1 %v8472_v1  ;;  %vm16233_vm1 = vmpackc.low %vm16230_vm11, %vm16232_vm12  ;;  %v16271_v25 = vpack.c.bf16 %v16269_v56, %v16270_v5  ;;  %vm16273_vm11 = vnez %v16272_v0  ;;  %v13384_v51 = vld [vmem:[%s13494_s6 + $0x1] ss:$0 sm:$0xff] }
 0x7a5   : > { %vm16240_vm9 = vmpackc.low %vm15588_vm7, %vm16239_vm5  ;;  %vm16279_vm5 = vnez %v16278_v47 }
 0x7a6   : > { %vm16252_vm7 = vmpackc.low %vm15597_vm13, %vm15596_vm6  ;;  %vm16265_vm6 = vnez %v16264_v41 }
 0x7a7   : > { %7860 = vmatpush3.bf16.msra.mxu1 %v8472_v1  ;;  %v16266_v1 = vld [vmem:[#allocation39_spill] sm:$0xff] }
 0x7a8   : > { %7861 = vmatprep.subr.bf16.mxu1 %v8473_v4  ;;  %vm16267_vm13 = vnez %v16266_v1 }
 0x7aa   : > { %7846 = vmatmul.mubr.msk.bf16.gmra.mrb[60].mxu1 %vm16218_vm0, %v16213_v38  ;;  %vm16246_vm0 = vmpackc.low %vm15519_vm15, %vm15595_vm8  ;;  %vm16257_vm15 = vnez %v16256_v31  ;;  %vm16259_vm8 = vnez %v16258_v20  ;;  %v16280_v38 = vld [vmem:[#allocation178_spill] sm:$0xff] }
 0x7ab   : > { %7862 = vmatpush3.bf16.msra.mxu1 %v8473_v4  ;;  %7865 = vmatprep.mubr.msk.bf16.mxu1 %vm16225_vm14, %v16221_v43  ;;  %vm16260_vm4 = vmpackc.low %vm16257_vm15, %vm16259_vm8  ;;  %v16274_v4 = vld [vmem:[#allocation86_spill] sm:$0xff]  ;;  %vm16287_vm15 = vnez %v16286_v39  ;;  %v16295_v43 = vpack.c.bf16 %v12520_v55, %v15915_v61  ;;  %v16312_v61 = vld [vmem:[#allocation143_spill] sm:$0xff] }
 0x7ac   : > { %7863 = vmatprep.subr.bf16.mxu1 %v8474_v50  ;;  %vm16268_vm14 = vmpackc.low %vm16265_vm6, %vm16267_vm13  ;;  %vm16275_vm12 = vnez %v16274_v4  ;;  %vm16293_vm6 = vnez %v16292_v3  ;;  %v16314_v21 = vpack.c.bf16 %v16312_v61, %v16313_v62 }
 0x7af   : > { %7864 = vmatpush3.bf16.msra.mxu1 %v8474_v50  ;;  %v16277_v50 = vpack.c.bf16 %v15912_v46, %v15911_v35  ;;  %v16289_v46 = vpack.c.bf16 %v15914_v53, %v15913_v17  ;;  %v16290_v35 = vld [vmem:[#allocation37_spill] sm:$0xff]  ;;  %v16307_v53 = vld [vmem:[#allocation132_spill] sm:$0xff] }
 0x7b0   : > { %7881 = vmatprep.subr.bf16.mxu1 %v8475_v16  ;;  %v16304_v17 = vld [vmem:[#allocation85_spill] sm:$0xff] }
 0x7b2   : > { %7866 = vmatmul.mubr.msk.bf16.vlgmr.msra.gmra.mrb[48].mxu1 %vm16233_vm1, %v16228_v12  ;;  %vm16276_vm1 = vmpackc.low %vm16273_vm11, %vm16275_vm12  ;;  %vm16299_vm11 = vnez %v16298_v34 }
 0x7b3   : > { %7882 = vmatpush3.bf16.msra.mxu1 %v8475_v16  ;;  %7869 = vmatprep.mubr.msk.bf16.mxu1 %vm16240_vm9, %v16236_v8  ;;  %vm16281_vm9 = vnez %v16280_v38  ;;  %v16308_v16 = vpack.c.bf16 %v15918_v23, %v16307_v53  ;;  %v16324_v23 = vld [vmem:[#allocation98_spill] sm:$0xff]  ;;  %v8489_v8 = vld [vmem:[#allocation11 + $0x70] sm:$0xff]  }
 0x7b4   : > { %7883 = vmatprep.subr.bf16.mxu1 %v8476_v2  ;;  %7925 = vmatprep.subr.bf16.mxu0 %v8489_v8 }
 0x7b5   : > { %7926 = vmatpush3.bf16.msra.mxu0 %v8489_v8 }
 0x7b6   : > { %7927 = vmatprep.subr.bf16.mxu0 %v8490_v42 }
 0x7b7   : > { %7884 = vmatpush3.bf16.msra.mxu1 %v8476_v2 }
 0x7b8   : > { %7885 = vmatprep.subr.bf16.mxu1 %v8477_v26 }
 0x7b9   : > { %7928 = vmatpush3.bf16.msra.mxu0 %v8490_v42 }
 0x7ba   : > { %7870 = vmatmul.mubr.msk.bf16.gmra.mrb[52].mxu1 %vm16246_vm0, %v16243_v52  ;;  %vm16282_vm0 = vmpackc.low %vm16279_vm5, %vm16281_vm9  ;;  %vm16305_vm5 = vnez %v16304_v17 }
 0x7bb   : > { %7886 = vmatpush3.bf16.msra.mxu1 %v8477_v26  ;;  %7873 = vmatprep.mubr.msk.bf16.mxu1 %vm16252_vm7, %v16249_v32  ;;  %vm16285_vm7 = vnez %v16284_v49 }
 0x7bc   : > { %7887 = vmatprep.subr.bf16.mxu1 %v8478_v10  ;;  %vm16288_vm8 = vmpackc.low %vm16285_vm7, %vm16287_vm15  ;;  %vm16317_vm7 = vnez %v16316_v11 }
 0x7bd   : > { %vm16318_vm15 = vmpackc.low %vm15653_vm10, %vm16317_vm7 }
 0x7bf   : > { %7888 = vmatpush3.bf16.msra.mxu1 %v8478_v10 }
 0x7c0   : > { %7889 = vmatprep.subr.bf16.mxu1 %v8479_v6 }
 0x7c2   : > { %7874 = vmatmul.mubr.msk.bf16.gmra.mrb[56].mxu1 %vm16260_vm4, %v16255_v13  ;;  %vm16291_vm4 = vnez %v16290_v35 }
 0x7c3   : > { %7890 = vmatpush3.bf16.msra.mxu1 %v8479_v6  ;;  %7877 = vmatprep.mubr.msk.bf16.mxu1 %vm16268_vm14, %v16263_v18  ;;  %vm16294_vm13 = vmpackc.low %vm16291_vm4, %vm16293_vm6  ;;  %vm16297_vm14 = vnez %v16296_v15  ;;  %vm16325_vm4 = vnez %v16324_v23 }
 0x7c4   : > { %7891 = vmatprep.subr.bf16.mxu1 %v8480_v57  ;;  %vm16300_vm12 = vmpackc.low %vm16297_vm14, %vm16299_vm11 }
 0x7c7   : > { %7892 = vmatpush3.bf16.msra.mxu1 %v8480_v57 }
 0x7c8   : > { %7893 = vmatprep.subr.bf16.mxu1 %v8481_v36 }
 0x7ca   : > { %7878 = vmatmul.mubr.msk.bf16.gmra.mrb[60].mxu1 %vm16276_vm1, %v16271_v25  ;;  %vm16303_vm1 = vnez %v16302_v27 }
 0x7cb   : > { %7894 = vmatpush3.bf16.msra.mxu1 %v8481_v36  ;;  %7897 = vmatprep.mubr.msk.bf16.mxu1 %vm16282_vm0, %v16277_v50  ;;  %vm16306_vm9 = vmpackc.low %vm16303_vm1, %vm16305_vm5 }
 0x7cc   : > { %7895 = vmatprep.subr.bf16.mxu1 %v8482_v30  ;;  %vm16311_vm0 = vmpackc.low %vm15647_vm3, %vm15648_vm2 }
 0x7cf   : > { %7896 = vmatpush3.bf16.msra.mxu1 %v8482_v30 }
 0x7d2   : > { %7898 = vmatmul.mubr.msk.bf16.vlgmr.msra.gmra.mrb[48].mxu1 %vm16288_vm8, %v16283_v54  ;;  %vm16323_vm8 = vnez %v16322_v37 }
 0x7d3   : > { %7901 = vmatprep.mubr.msk.bf16.mxu1 %vm16294_vm13, %v16289_v46  ;;  %vm16326_vm6 = vmpackc.low %vm16323_vm8, %vm16325_vm4 }
 0x7da   : > { %7902 = vmatmul.mubr.msk.bf16.gmra.mrb[52].mxu1 %vm16300_vm12, %v16295_v43 }
 0x7db   : > { %7905 = vmatprep.mubr.msk.bf16.mxu1 %vm16306_vm9, %v16301_v22 }
 0x7e2   : > { %7906 = vmatmul.mubr.msk.bf16.gmra.mrb[56].mxu1 %vm16311_vm0, %v16308_v16 }
 0x7e3   : > { %7909 = vmatprep.mubr.msk.bf16.mxu1 %vm16318_vm15, %v16314_v21 }
 0x7ea   : > { %7910 = vmatmul.mubr.msk.bf16.gmra.mrb[60].mxu1 %vm16326_vm6, %v16321_v59 }
 0x8a5   : > { %v7899_v26 = vpop.f32.mrb[48].mxu1 }
 0x8a6   : > { %v5831_v10 = vadd.f32 %v7899_v26, %v13384_v51  ;;  %v5742_v7 = vpop.f32.mrb[49].mxu1 }
 0x8a7   : > { %v5829_v63 = vadd.f32 %v13384_v51, %v5742_v7  ;;  %v7900_v52 = vpop.f32.mrb[50].mxu1 }
 0x8a8   : > { %v5847_v48 = vmul.f32 0.2, %v5831_v10  ;;  %v5832_v28 = vadd.f32 %v7900_v52, %v13384_v51  ;;  %v5745_v44 = vpop.f32.mrb[51].mxu1 }
 0x8a9   : > { %v5845_v19 = vmul.f32 0.2, %v5829_v63  ;;  %v5830_v32 = vadd.f32 %v13384_v51, %v5745_v44 }
 0x8aa   : > { %v5848_v33 = vmul.f32 0.2, %v5832_v28  ;;  %v5863_v6 = vmax.f32 %v5831_v10, %v5847_v48 }
 0x8ab   : > { %v5846_v60 = vmul.f32 0.2, %v5830_v32  ;;  %v5861_v29 = vmax.f32 %v5829_v63, %v5845_v19 }
 0x8ac   : > { %v5864_v57 = vmax.f32 %v5832_v28, %v5848_v33  ;;  %v16327_v33 = vld [vmem:[#allocation204_spill] sm:$0xff] }
 0x8ad   : > { %v5862_v24 = vmax.f32 %v5830_v32, %v5846_v60  ;;  %v7903_v13 = vpop.f32.mrb[52].mxu1 }
 0x8ae   : > { %v5878_v31 = vpack.c.bf16 %v5864_v57, %v5863_v6  ;;  %v5835_v20 = vadd.f32 %v7903_v13, %v13384_v51  ;;  %v5758_v40 = vpop.f32.mrb[53].mxu1  ;;  %v16328_v57 = vld [vmem:[#allocation200_spill] sm:$0xff] }
 0x8af   : > { %v5833_v58 = vadd.f32 %v13384_v51, %v5758_v40  ;;  %v7904_v18 = vpop.f32.mrb[54].mxu1  ;;  %v5877_v41 = vpack.c.bf16 %v5862_v24, %v5861_v29  ;;  %v16329_v24 = vld [vmem:[#allocation195_spill] sm:$0xff] }
 0x8b0   : > { %v5851_v1 = vmul.f32 0.2, %v5835_v20  ;;  %v5836_v36 = vadd.f32 %v7904_v18, %v13384_v51  ;;  %v5761_v30 = vpop.f32.mrb[55].mxu1  ;;  %v16331_v18 = vld [vmem:[#allocation83_spill] sm:$0xff] }
 0x8b1   : > { %v5849_v56 = vmul.f32 0.2, %v5833_v58  ;;  %v5834_v5 = vadd.f32 %v13384_v51, %v5761_v30  ;;  %7929 = vmatprep.mubr.bf16.mxu0 %v5877_v41 }
 0x8b2   : > { %v5852_v25 = vmul.f32 0.2, %v5836_v36  ;;  %7930 = vmatmul.mubr.bf16.vlgmr.msra.gmra.mrb[20].mxu0 %v5878_v31  ;;  %v5867_v4 = vmax.f32 %v5835_v20, %v5851_v1  ;;  %v16330_v20 = vld [vmem:[#allocation201_spill] sm:$0xff] }
 0x8b3   : > { %v5850_v0 = vmul.f32 0.2, %v5834_v5  ;;  %v5865_v47 = vmax.f32 %v5833_v58, %v5849_v56 }
 0x8b4   : > { %v5868_v50 = vmax.f32 %v5836_v36, %v5852_v25  ;;  %v16332_v36 = vld [vmem:[#allocation206_spill] sm:$0xff] }
 0x8b5   : > { %v5866_v38 = vmax.f32 %v5834_v5, %v5850_v0  ;;  %v7907_v54 = vpop.f32.mrb[56].mxu1  ;;  %v16333_v5 = vld [vmem:[#allocation202_spill] sm:$0xff] }
 0x8b6   : > { %v5839_v49 = vadd.f32 %v7907_v54, %v13384_v51  ;;  %v5774_v39 = vpop.f32.mrb[57].mxu1  ;;  %v5880_v46 = vpack.c.bf16 %v5868_v50, %v5867_v4  ;;  %v16334_v4 = vld [vmem:[#allocation205_spill] sm:$0xff] }
 0x8b7   : > { %v5837_v35 = vadd.f32 %v13384_v51, %v5774_v39  ;;  %v7908_v3 = vpop.f32.mrb[58].mxu1  ;;  %v5879_v43 = vpack.c.bf16 %v5866_v38, %v5865_v47  ;;  %v16335_v38 = vld [vmem:[#allocation99_spill] sm:$0xff]  ;;  %v16336_v39 = vld [vmem:[#allocation96_spill] sm:$0xff] }
 0x8b8   : > { %v5855_v15 = vmul.f32 0.2, %v5839_v49  ;;  %v5840_v34 = vadd.f32 %v7908_v3, %v13384_v51  ;;  %v5777_v22 = vpop.f32.mrb[59].mxu1  ;;  %v16337_v3 = vld [vmem:[#allocation87_spill] sm:$0xff] }
 0x8b9   : > { %v5853_v27 = vmul.f32 0.2, %v5837_v35  ;;  %v5838_v17 = vadd.f32 %v13384_v51, %v5777_v22  ;;  %7933 = vmatprep.mubr.bf16.mxu0 %v5879_v43 }
 0x8ba   : > { %v5856_v53 = vmul.f32 0.2, %v5840_v34  ;;  %7934 = vmatmul.mubr.bf16.gmra.mrb[24].mxu0 %v5880_v46  ;;  %v5871_v2 = vmax.f32 %v5839_v49, %v5855_v15 }
 0x8bb   : > { %v5854_v16 = vmul.f32 0.2, %v5838_v17  ;;  %v5869_v61 = vmax.f32 %v5837_v35, %v5853_v27 }
 0x8bc   : > { %v5872_v55 = vmax.f32 %v5840_v34, %v5856_v53  ;;  %v16338_v34 = vld [vmem:[#allocation79_spill] sm:$0xff] }
 0x8bd   : > { %v5870_v62 = vmax.f32 %v5838_v17, %v5854_v16  ;;  %v7911_v21 = vpop.f32.mrb[60].mxu1  ;;  %v16339_v17 = vld [vmem:[#allocation162_spill] sm:$0xff] }
 0x8be   : > { %v5843_v12 = vadd.f32 %v7911_v21, %v13384_v51  ;;  %v5790_v11 = vpop.f32.mrb[61].mxu1  ;;  %v5882_v9 = vpack.c.bf16 %v5872_v55, %v5871_v2  ;;  %v16340_v2 = vld [vmem:[#allocation77_spill] sm:$0xff] }
 0x8bf   : > { %v5841_v45 = vadd.f32 %v13384_v51, %v5790_v11  ;;  %v7912_v59 = vpop.f32.mrb[62].mxu1  ;;  %v5881_v37 = vpack.c.bf16 %v5870_v62, %v5869_v61  ;;  %v16341_v62 = vld [vmem:[#allocation95_spill] sm:$0xff]  ;;  %v16342_v11 = vld [vmem:[#allocation161_spill] sm:$0xff] }
 0x8c0   : > { %v5859_v23 = vmul.f32 0.2, %v5843_v12  ;;  %v5844_v14 = vadd.f32 %v7912_v59, %v13384_v51  ;;  %v5793_v8 = vpop.f32.mrb[63].mxu1 }
 0x8c1   : > { %v5857_v42 = vmul.f32 0.2, %v5841_v45  ;;  %v5842_v26 = vadd.f32 %v13384_v51, %v5793_v8  ;;  %7937 = vmatprep.mubr.bf16.mxu0 %v5881_v37 }
 0x8c2   : > { %v5860_v10 = vmul.f32 0.2, %v5844_v14  ;;  %7938 = vmatmul.mubr.bf16.gmra.mrb[28].mxu0 %v5882_v9  ;;  %v5875_v63 = vmax.f32 %v5843_v12, %v5859_v23 }
 0x8c3   : > { %v5858_v7 = vmul.f32 0.2, %v5842_v26  ;;  %v5873_v48 = vmax.f32 %v5841_v45, %v5857_v42 }
 0x8c4   : > { %v5876_v52 = vmax.f32 %v5844_v14, %v5860_v10 }
 0x8c5   : > { %v5874_v28 = vmax.f32 %v5842_v26, %v5858_v7 }
 0x8c6   : > { %v5884_v44 = vpack.c.bf16 %v5876_v52, %v5875_v63 }
 0x8c7   : > { %v5883_v19 = vpack.c.bf16 %v5874_v28, %v5873_v48 }
 0x8c9   : > { %7941 = vmatprep.mubr.bf16.mxu0 %v5883_v19 }
 0x8ca   : > { %7942 = vmatmul.mubr.bf16.gmra.mrb[32].mxu0 %v5884_v44 }
 0x985   : > { %v7931_v32 = vpop.f32.mrb[20].mxu0 }
 0x986   : > { %v6049_v60 = vadd.f32 %v7931_v32, %v16327_v33  ;;  %v5984_v6 = vpop.f32.mrb[21].mxu0 }
 0x987   : > { %v6047_v29 = vadd.f32 %v5984_v6, %v16328_v57  ;;  %v7932_v51 = vpop.f32.mrb[22].mxu0 }
 0x988   : > { %6065 = vst [vmem:[%s13405_s25 + $0x10] sm:$0xff] %v6049_v60  ;;  %v6050_v13 = vadd.f32 %v7932_v51, %v16329_v24  ;;  %v5987_v31 = vpop.f32.mrb[23].mxu0 }
 0x989   : > { %6063 = vst [vmem:[%s13405_s25] sm:$0xff] %v6047_v29  ;;  %v6048_v40 = vadd.f32 %v5987_v31, %v16330_v20 }
 0x98a   : > { %6066 = vst [vmem:[%s13405_s25 + $0x18] sm:$0xff] %v6050_v13 }
 0x98b   : > { %6064 = vst [vmem:[%s13405_s25 + $0x8] sm:$0xff] %v6048_v40 }
 0x98d   : > { %v7935_v58 = vpop.f32.mrb[24].mxu0 }
 0x98e   : > { %v6053_v41 = vadd.f32 %v7935_v58, %v16331_v18  ;;  %v6000_v1 = vpop.f32.mrb[25].mxu0 }
 0x98f   : > { %v6051_v30 = vadd.f32 %v6000_v1, %v16332_v36  ;;  %v7936_v56 = vpop.f32.mrb[26].mxu0 }
 0x990   : > { %6069 = vst [vmem:[%s13405_s25 + $0x30] sm:$0xff] %v6053_v41  ;;  %v6054_v25 = vadd.f32 %v7936_v56, %v16333_v5  ;;  %v6003_v0 = vpop.f32.mrb[27].mxu0 }
 0x991   : > { %6067 = vst [vmem:[%s13405_s25 + $0x20] sm:$0xff] %v6051_v30  ;;  %v6052_v50 = vadd.f32 %v6003_v0, %v16334_v4 }
 0x992   : > { %6070 = vst [vmem:[%s13405_s25 + $0x38] sm:$0xff] %v6054_v25 }
 0x993   : > { %6068 = vst [vmem:[%s13405_s25 + $0x28] sm:$0xff] %v6052_v50 }
 0x995   : > { %v7939_v47 = vpop.f32.mrb[28].mxu0 }
 0x996   : > { %v6057_v54 = vadd.f32 %v7939_v47, %v16335_v38  ;;  %v6016_v49 = vpop.f32.mrb[29].mxu0 }
 0x997   : > { %v6055_v46 = vadd.f32 %v6016_v49, %v16336_v39  ;;  %v7940_v35 = vpop.f32.mrb[30].mxu0 }
 0x998   : > { %6073 = vst [vmem:[%s13405_s25 + $0x50] sm:$0xff] %v6057_v54  ;;  %v6058_v43 = vadd.f32 %v7940_v35, %v16337_v3  ;;  %v6019_v15 = vpop.f32.mrb[31].mxu0 }
 0x999   : > { %6071 = vst [vmem:[%s13405_s25 + $0x40] sm:$0xff] %v6055_v46  ;;  %v6056_v22 = vadd.f32 %v6019_v15, %v16338_v34 }
 0x99a   : > { %6074 = vst [vmem:[%s13405_s25 + $0x58] sm:$0xff] %v6058_v43 }
 0x99b   : > { %6072 = vst [vmem:[%s13405_s25 + $0x48] sm:$0xff] %v6056_v22 }
 0x99d   : > { %v7943_v27 = vpop.f32.mrb[32].mxu0 }
 0x99e   : > { %v6061_v53 = vadd.f32 %v7943_v27, %v16339_v17  ;;  %v6032_v16 = vpop.f32.mrb[33].mxu0 }
 0x99f   : > { %v6059_v55 = vadd.f32 %v6032_v16, %v16340_v2  ;;  %v7944_v61 = vpop.f32.mrb[34].mxu0 }
 0x9a0   : > { %6077 = vst [vmem:[%s13405_s25 + $0x70] sm:$0xff] %v6061_v53  ;;  %v6062_v21 = vadd.f32 %v7944_v61, %v16341_v62  ;;  %v6035_v12 = vpop.f32.mrb[35].mxu0 }
 0x9a1   : > { %6075 = vst [vmem:[%s13405_s25 + $0x60] sm:$0xff] %v6059_v55  ;;  %v6060_v9 = vadd.f32 %v6035_v12, %v16342_v11 }
 0x9a2   : > { %6078 = vst [vmem:[%s13405_s25 + $0x78] sm:$0xff] %v6062_v21 }
 0x9a3   : > { %6076 = vst [vmem:[%s13405_s25 + $0x68] sm:$0xff] %v6060_v9 }
 0x9a4   : > { %8674 = shalt.err (!%p8671_p3)
}
 0x9a5   : > { %s8675_s14 = scalar_lea.hbm %s13438_s12, 2048  ;;  %s8679_s20 = scalar_lea.hbm %s13496_s8, 4096 }
 0x9a6   : > { %p8676_p6 = scmp.ne.s32.totalorder %s13438_s12, %s8675_s14  ;;  %p8680_p8 = scmp.lt.u32.totalorder %s13438_s12, %s13496_s8 }
 0x9a7   : > { %p8681_p5 = scmp.lt.u32.totalorder %s8679_s20, %s8675_s14  ;;  %p8683_p7 = scmp.lt.u32.totalorder %s8675_s14, %s13438_s12 }
 0x9a8   : > { %p8677_p10 = pnand %p8676_p6, %p16343_p4 }
 0x9a9   : > { %p8682_p9 = por %p8681_p5, %p8680_p8 }
 0x9aa   : > { %p8678_p11 = pneg %p8677_p10 }
 0x9ab   : > { %p8684_p12 = por %p8683_p7, %p8682_p9 }
 0x9ad   : > { %p8685_p1 = pnand %p8684_p12, %p8678_p11 }
 0x9af   : > { %8688 = shalt.err (!%p8685_p1)
}
 0x9b0   : > { %s8755_s16 = smov 128   ;;  %s8756_s18 = smov 8  }
 0x9b1   : > { %8223 = dma.vmem_to_hbm [thread:$0]  (%p16343_p4), %s13440_s1, 2048, %s13438_s12, %s6080_s11, %s8755_s16, %s8755_s16, %s8756_s18  }
 0x9b2 PF: > { %s6108_s10 = sand.u32 1, %s8727_s27   ;;  %p16344_p13 = scmp.ne.s32.totalorder %s14331_s13, 0 }
 0x9b3   : > { %p16345_p0 = scmp.ge.s32.totalorder %s8739_s30, 2  ;;  %s6109_s22 = scalar_lea.sflag [#allocation4], %s6108_s10 }
 0x9b5   : > { %p8246_p2 = pnand %p16345_p0, %p16344_p13 }
 0x9b7   : > { %8722 = dma.done.wait (!%p8246_p2), %s6109_s22, 2048  }
 0x9b8   : > { %8724 = vsyncadd (!%p8246_p2), %s6109_s22, 4294965248  ;;  %p24_p3 = scmp.ge.s32.totalorder %s8972_s23, 4   ;;  %s16346_s27 = smov %s8731_s28 }
 0x9b9   : > { %s16347_s28 = smov %s8735_s29  ;;  %s16348_s29 = smov %s8984_s3 }
 0x9ba   : > { %s16349_s30 = smov %s8972_s23  ;;  %26 = sbr.rel (!%p24_p3) target bundleno = 11 (0xb), region = 138 }
 0x9c1   :  { %6114 = vsyncpa [#allocation3], 1 }
 0x9c2   :  { %6116 = vsyncpa [#allocation3 + $0x1], 1 }
 0x9c3   :  { %6117 = vsyncpa [#allocation6], 1 }
 0x9c4   :  { %6118 = vsyncpa [#allocation9], 1 }
 0x9c5   :  { %6119 = vsyncpa [#allocation12], 1 }
 0x9c6   :  { %6120 = vsyncpa [#allocation4], 1 }
 0x9c7   :  { %6122 = vsyncpa [#allocation4 + $0x1], 1 }

</bundles_post_ra>
